<compile_context>
chip_gen: v7x
topology: tpu7x:2x2x1
jax: 0.10.0
libtpu: 0.0.40
codegen_flags: <defaults>
</compile_context>

<pallas_src>
import functools

import jax
import jax.numpy as jnp
from jax.experimental import pallas as pl
from jax.experimental.pallas import tpu as pltpu

EPS = 1e-5  # PyTorch BatchNorm2d default eps


# --------------------------------------------------------------------------
# Fused matmul: [affine+ReLU prologue] -> bf16 MXU dot -> [affine+ReLU epilogue]
# --------------------------------------------------------------------------
def _fused_matmul_kernel(*refs, use_pre, pre_relu, use_post, post_relu):
    o_ref = refs[-1]
    a_ref, b_ref = refs[0], refs[1]
    idx = 2
    a = a_ref[...].astype(jnp.float32)               # (bm, K)
    if use_pre:                                      # pre-activation BatchNorm (+ReLU)
        a = a * refs[idx][...] + refs[idx + 1][...]  # (1, K) broadcast, f32
        idx += 2
        if pre_relu:
            a = jnp.maximum(a, 0.0)
    acc = jnp.dot(a.astype(jnp.bfloat16), b_ref[...],
                  preferred_element_type=jnp.float32)
    if use_post:                                     # post-conv BatchNorm (+ReLU)
        acc = acc * refs[idx][...] + refs[idx + 1][...]
        if post_relu:
            acc = jnp.maximum(acc, 0.0)
    o_ref[...] = acc.astype(o_ref.dtype)             # bf16 store (activation storage)


def _pick_bm(m):
    # Largest row tile that divides M while keeping >= 2 grid steps (v7x 2-TC balance).
    for bm in (1024, 512, 256, 128, 64, 32, 16, 8):
        if m % bm == 0 and m // bm >= 2:
            return bm
    return m  # tiny problem: single step


def fused_matmul(a, b, pre=None, pre_relu=False, post=None, post_relu=False):
    """a:(M,K) bf16 @ b:(K,N) bf16 (pre-transposed weight) -> (M,N) bf16.

    K and N are small for every DenseNet matmul, so K is not tiled (single dot per row
    tile) and blocks use the full K/N extent (no pad/slice copies)."""
    M, K = a.shape
    Kb, Nc = b.shape
    assert K == Kb
    assert M % 8 == 0, f"row count {M} must be a sublane multiple (no pad fallback)"
    bm = _pick_bm(M)

    operands = [a, b]
    in_specs = [pl.BlockSpec((bm, K), lambda i: (i, 0)),
                pl.BlockSpec((K, Nc), lambda i: (0, 0))]
    if pre is not None:
        psc, psh = pre
        operands += [psc.reshape(1, K).astype(jnp.float32),
                     psh.reshape(1, K).astype(jnp.float32)]
        in_specs += [pl.BlockSpec((1, K), lambda i: (0, 0)),
                     pl.BlockSpec((1, K), lambda i: (0, 0))]
    if post is not None:
        qsc, qsh = post
        operands += [qsc.reshape(1, Nc).astype(jnp.float32),
                     qsh.reshape(1, Nc).astype(jnp.float32)]
        in_specs += [pl.BlockSpec((1, Nc), lambda i: (0, 0)),
                     pl.BlockSpec((1, Nc), lambda i: (0, 0))]

    return pl.pallas_call(
        functools.partial(_fused_matmul_kernel,
                          use_pre=pre is not None, pre_relu=pre_relu,
                          use_post=post is not None, post_relu=post_relu),
        out_shape=jax.ShapeDtypeStruct((M, Nc), jnp.bfloat16),
        grid=(M // bm,),
        in_specs=in_specs,
        out_specs=pl.BlockSpec((bm, Nc), lambda i: (i, 0)),
        compiler_params=pltpu.CompilerParams(dimension_semantics=("parallel",)),
    )(*operands)


# --------------------------------------------------------------------------
# Stem: direct 7x7 stride-2 pad-3 conv with fused norm0+ReLU epilogue (no im2col).
# --------------------------------------------------------------------------
def _stem_kernel(*refs, kh, kw):
    o_ref = refs[-1]
    w_ref, sc_ref, sh_ref = refs[kh], refs[kh + 1], refs[kh + 2]
    ow = o_ref.shape[2]
    w = w_ref[...]                                     # (kh, kw*Cin, Cout) bf16
    acc = None
    for ki in range(kh):
        row = refs[ki][0, 0]                           # (Wp//2, 2, Cin) bf16
        # column tap kj hits padded col 2*w + kj == row[w + kj//2, kj%2, :]
        pieces = [row[kj // 2: kj // 2 + ow, kj % 2, :] for kj in range(kw)]
        a = jnp.concatenate(pieces, axis=-1)           # (ow, kw*Cin)
        p = jnp.dot(a, w[ki], preferred_element_type=jnp.float32)
        acc = p if acc is None else acc + p
    acc = acc * sc_ref[...] + sh_ref[...]              # fused norm0
    acc = jnp.maximum(acc, 0.0)                        # fused relu0
    o_ref[0, 0] = acc.astype(o_ref.dtype)


def conv_stem(x_nhwc, w_taps, post_scale, post_shift, *, k=7, stride=2, pad=3):
    N, H, W, Cin = x_nhwc.shape
    Cout = w_taps.shape[-1]
    xp = jnp.pad(x_nhwc, ((0, 0), (pad, pad), (pad, pad), (0, 0)))
    Hp, Wp = H + 2 * pad, W + 2 * pad
    assert Wp % 2 == 0
    oh = (Hp - k) // stride + 1
    ow = (Wp - k) // stride + 1
    x5 = xp.reshape(N, Hp, Wp // 2, 2, Cin)            # free reshape: W -> (W/2, 2)

    def row_map(ki):
        return lambda n, r: (n, stride * r + ki, 0, 0, 0)

    in_specs = [pl.BlockSpec((1, 1, Wp // 2, 2, Cin), row_map(ki)) for ki in range(k)]
    in_specs += [pl.BlockSpec(w_taps.shape, lambda n, r: (0, 0, 0)),
                 pl.BlockSpec((1, Cout), lambda n, r: (0, 0)),
                 pl.BlockSpec((1, Cout), lambda n, r: (0, 0))]
    operands = [x5] * k + [w_taps,
                           post_scale.reshape(1, Cout).astype(jnp.float32),
                           post_shift.reshape(1, Cout).astype(jnp.float32)]
    return pl.pallas_call(
        functools.partial(_stem_kernel, kh=k, kw=k),
        out_shape=jax.ShapeDtypeStruct((N, oh, ow, Cout), jnp.bfloat16),
        grid=(N, oh),
        in_specs=in_specs,
        out_specs=pl.BlockSpec((1, 1, ow, Cout), lambda n, r: (n, r, 0, 0)),
        compiler_params=pltpu.CompilerParams(
            dimension_semantics=("parallel", "parallel")),
    )(*operands)


# --------------------------------------------------------------------------
# MaxPool 3x3 stride 2 pad 1 (taps collapsed in-kernel, no strided pre-pass).
# Zero padding == PyTorch's -inf padding because the input is post-ReLU (>= 0).
# --------------------------------------------------------------------------
def _maxpool_kernel(*refs, k):
    o_ref = refs[-1]
    ow = o_ref.shape[2]
    best = None
    for ki in range(k):
        row = refs[ki][0, 0]                           # (Wp//2, 2, C)
        for kj in range(k):
            t = row[kj // 2: kj // 2 + ow, kj % 2, :]
            best = t if best is None else jnp.maximum(best, t)
    o_ref[0, 0] = best.astype(o_ref.dtype)


def maxpool_s2(x_nhwc, *, k=3, pad=1):
    N, H, W, C = x_nhwc.shape
    xp = jnp.pad(x_nhwc, ((0, 0), (pad, pad), (pad, pad), (0, 0)))
    Hp, Wp = H + 2 * pad, W + 2 * pad
    assert Wp % 2 == 0
    oh = (Hp - k) // 2 + 1
    ow = (Wp - k) // 2 + 1
    x5 = xp.reshape(N, Hp, Wp // 2, 2, C)

    def row_map(ki):
        return lambda n, r: (n, 2 * r + ki, 0, 0, 0)

    return pl.pallas_call(
        functools.partial(_maxpool_kernel, k=k),
        out_shape=jax.ShapeDtypeStruct((N, oh, ow, C), x_nhwc.dtype),
        grid=(N, oh),
        in_specs=[pl.BlockSpec((1, 1, Wp // 2, 2, C), row_map(ki)) for ki in range(k)],
        out_specs=pl.BlockSpec((1, 1, ow, C), lambda n, r: (n, r, 0, 0)),
        compiler_params=pltpu.CompilerParams(
            dimension_semantics=("parallel", "parallel")),
    )(*([x5] * k))


# --------------------------------------------------------------------------
# Transition AvgPool 2x2 stride 2 (no pad), taps collapsed in-kernel.
# --------------------------------------------------------------------------
def _avgpool2_kernel(r0_ref, r1_ref, o_ref):
    v0 = r0_ref[0, 0].astype(jnp.float32)              # (ow, 2, C)
    v1 = r1_ref[0, 0].astype(jnp.float32)
    s = (v0[:, 0, :] + v0[:, 1, :] + v1[:, 0, :] + v1[:, 1, :]) * 0.25
    o_ref[0, 0] = s.astype(o_ref.dtype)


def avgpool2_s2(x_nhwc):
    N, H, W, C = x_nhwc.shape
    assert H % 2 == 0 and W % 2 == 0
    oh, ow = H // 2, W // 2
    x5 = x_nhwc.reshape(N, H, ow, 2, C)                # free reshape: W -> (W/2, 2)

    def row_map(ki):
        return lambda n, r: (n, 2 * r + ki, 0, 0, 0)

    return pl.pallas_call(
        _avgpool2_kernel,
        out_shape=jax.ShapeDtypeStruct((N, oh, ow, C), x_nhwc.dtype),
        grid=(N, oh),
        in_specs=[pl.BlockSpec((1, 1, ow, 2, C), row_map(ki)) for ki in range(2)],
        out_specs=pl.BlockSpec((1, 1, ow, C), lambda n, r: (n, r, 0, 0)),
        compiler_params=pltpu.CompilerParams(
            dimension_semantics=("parallel", "parallel")),
    )(x5, x5)


# --------------------------------------------------------------------------
# Dense-layer 3x3 stride-1 conv with the channel-append fused into the store:
#   out_row = concat([x_row, conv3x3(bottleneck)_row], axis=-1)
# All 9 taps run inside one kernel invocation (grid (N, H), fully parallel).
# --------------------------------------------------------------------------
def _conv3x3_concat_kernel(r0_ref, r1_ref, r2_ref, w_ref, x_ref, o_ref):
    W = o_ref.shape[2]
    w = w_ref[...]                                     # (3, 3, C2, G) bf16
    acc = None
    for ki, r_ref in enumerate((r0_ref, r1_ref, r2_ref)):
        row = r_ref[0, 0]                              # (W+2, C2) bf16
        for kj in range(3):
            p = jnp.dot(row[kj:kj + W, :], w[ki, kj],
                        preferred_element_type=jnp.float32)
            acc = p if acc is None else acc + p
    y = acc.astype(o_ref.dtype)                        # (W, G)
    o_ref[0, 0] = jnp.concatenate([x_ref[0, 0], y], axis=-1)


def conv3x3_concat(x_nhwc, b_nhwc, w_taps):
    """Returns concat([x, conv3x3_s1_p1(b)], channel axis).  w_taps: (3,3,C2,G) bf16."""
    N, H, W, Cin = x_nhwc.shape
    C2 = b_nhwc.shape[-1]
    G = w_taps.shape[-1]
    bp = jnp.pad(b_nhwc, ((0, 0), (1, 1), (1, 1), (0, 0)))
    Wp = W + 2

    def row_map(ki):
        return lambda n, r: (n, r + ki, 0, 0)

    return pl.pallas_call(
        _conv3x3_concat_kernel,
        out_shape=jax.ShapeDtypeStruct((N, H, W, Cin + G), x_nhwc.dtype),
        grid=(N, H),
        in_specs=[pl.BlockSpec((1, 1, Wp, C2), row_map(ki)) for ki in range(3)]
        + [pl.BlockSpec(w_taps.shape, lambda n, r: (0, 0, 0, 0)),
           pl.BlockSpec((1, 1, W, Cin), lambda n, r: (n, r, 0, 0))],
        out_specs=pl.BlockSpec((1, 1, W, Cin + G), lambda n, r: (n, r, 0, 0)),
        compiler_params=pltpu.CompilerParams(
            dimension_semantics=("parallel", "parallel")),
    )(bp, bp, bp, w_taps, x_nhwc)


# --------------------------------------------------------------------------
# norm5 + AdaptiveAvgPool2d((1,1)) + flatten
# --------------------------------------------------------------------------
def _global_pool_bn_kernel(x_ref, sc_ref, sh_ref, o_ref, *, inv_hw):
    x = x_ref[0].astype(jnp.float32)                   # (H, W, C)
    s = jnp.sum(x, axis=0)                             # (W, C)
    s = jnp.sum(s, axis=0, keepdims=True)              # (1, C)
    o_ref[0] = s * inv_hw * sc_ref[...] + sh_ref[...]


def global_avgpool_bn(x_nhwc, scale, shift):
    N, H, W, C = x_nhwc.shape
    out = pl.pallas_call(
        functools.partial(_global_pool_bn_kernel, inv_hw=1.0 / (H * W)),
        out_shape=jax.ShapeDtypeStruct((N, 1, C), jnp.float32),
        grid=(N,),
        in_specs=[pl.BlockSpec((1, H, W, C), lambda n: (n, 0, 0, 0)),
                  pl.BlockSpec((1, C), lambda n: (0, 0)),
                  pl.BlockSpec((1, C), lambda n: (0, 0))],
        out_specs=pl.BlockSpec((1, 1, C), lambda n: (n, 0, 0)),
        compiler_params=pltpu.CompilerParams(dimension_semantics=("parallel",)),
    )(x_nhwc, scale.reshape(1, C).astype(jnp.float32),
      shift.reshape(1, C).astype(jnp.float32))
    return out.reshape(N, C)


# --------------------------------------------------------------------------
# Tiny DenseNet "model.features" parameters in kernel-ready layout
# --------------------------------------------------------------------------
def init_params(key, growth=8, bn_size=2, num_init=16, block_config=(2, 2)):
    keys = iter(jax.random.split(key, 256))

    def conv_w(cout, cin, k):
        fan_in = cin * k * k
        return jax.random.normal(next(keys), (cout, cin, k, k),
                                 jnp.float32) * (1.0 / fan_in ** 0.5)

    def bn_affine(c):  # inference BN folded to scale/shift at init time
        gamma = 0.5 + jax.random.uniform(next(keys), (c,), jnp.float32)
        beta = 0.1 * jax.random.normal(next(keys), (c,), jnp.float32)
        mean = 0.1 * jax.random.normal(next(keys), (c,), jnp.float32)
        var = 0.5 + jax.random.uniform(next(keys), (c,), jnp.float32)
        scale = gamma / jnp.sqrt(var + EPS)
        shift = beta - mean * scale
        return scale.reshape(1, c), shift.reshape(1, c)

    def w_1x1(cout, cin):                      # (Cin, Cout) bf16, matmul-ready
        w = conv_w(cout, cin, 1)
        return jnp.transpose(w[:, :, 0, 0], (1, 0)).astype(jnp.bfloat16)

    def w_stem(cout, cin, k):                  # (k, k*Cin, Cout) bf16, row-tap ready
        w = conv_w(cout, cin, k)
        return jnp.transpose(w, (2, 3, 1, 0)).reshape(k, k * cin, cout).astype(jnp.bfloat16)

    def w_3x3_taps(cout, cin):                 # (3, 3, Cin, Cout) bf16, tap-ready
        w = conv_w(cout, cin, 3)
        return jnp.transpose(w, (2, 3, 1, 0)).astype(jnp.bfloat16)

    params = {"conv0_w": w_stem(num_init, 3, 7), "norm0": bn_affine(num_init)}
    blocks, transitions = [], []
    nfeat = num_init
    for bi, nlayers in enumerate(block_config):
        block = []
        for li in range(nlayers):
            cin = nfeat + li * growth
            block.append({
                "norm1": bn_affine(cin),
                "conv1_w": w_1x1(bn_size * growth, cin),
                "norm2": bn_affine(bn_size * growth),
                "conv2_w": w_3x3_taps(growth, bn_size * growth),
            })
        blocks.append(block)
        nfeat += nlayers * growth
        if bi != len(block_config) - 1:
            transitions.append({"norm": bn_affine(nfeat),
                                "conv_w": w_1x1(nfeat // 2, nfeat)})
            nfeat //= 2
    params["blocks"] = blocks
    params["transitions"] = transitions
    params["norm5"] = bn_affine(nfeat)
    return params, nfeat


# --------------------------------------------------------------------------
# DenseNetBackbone.forward: model.features -> AdaptiveAvgPool2d((1,1)) -> flatten
# --------------------------------------------------------------------------
def densenet_backbone_forward(params, x_nchw):
    x = jnp.transpose(x_nchw, (0, 2, 3, 1)).astype(jnp.bfloat16)   # NCHW -> NHWC, bf16

    # stem: direct conv0 (7x7 s2 p3) + fused norm0/relu, then maxpool 3x3 s2 p1
    x = conv_stem(x, params["conv0_w"], *params["norm0"])
    x = maxpool_s2(x, k=3, pad=1)

    # dense blocks + transitions (pre-activation BN fused as matmul prologues,
    # bottleneck norm2/relu fused as the 1x1-conv epilogue, channel-append fused
    # into the 3x3-conv store)
    for bi, block in enumerate(params["blocks"]):
        for layer in block:
            N, H, W, Cin = x.shape
            a = x.reshape(N * H * W, Cin)
            b = fused_matmul(a, layer["conv1_w"],
                             pre=layer["norm1"], pre_relu=True,
                             post=layer["norm2"], post_relu=True)
            b = b.reshape(N, H, W, layer["conv1_w"].shape[1])
            # TODO(synk): fuse the 1x1 bottleneck + this 3x3 into one halo-tiled kernel
            # writing into a persistent 128-aligned channel slab.
            x = conv3x3_concat(x, b, layer["conv2_w"])
        if bi < len(params["blocks"]) - 1:
            t = params["transitions"][bi]
            N, H, W, Cin = x.shape
            a = x.reshape(N * H * W, Cin)
            y = fused_matmul(a, t["conv_w"], pre=t["norm"], pre_relu=True)
            x = y.reshape(N, H, W, t["conv_w"].shape[1])
            x = avgpool2_s2(x)

    # norm5 (no trailing ReLU in model.features) fused into the global average pool
    return global_avgpool_bn(x, *params["norm5"])                  # (N, C) f32


if __name__ == "__main__":
    key = jax.random.PRNGKey(0)
    pkey, xkey = jax.random.split(key)
    params, out_dim = init_params(pkey)
    # input matches PyTorch NCHW convention: (batch=2, channels=3, 32, 32)
    x = jax.random.normal(xkey, (2, 3, 32, 32), jnp.float32)
    fwd = jax.jit(densenet_backbone_forward)
    out = jax.block_until_ready(fwd(params, x))
    assert out.shape == (2, out_dim), out.shape
    assert bool(jnp.all(jnp.isfinite(out)))
    print("KERNEL_OK")
</pallas_src>

<mosaic_0001>
module attributes {stable_mosaic.version = 11 : i64} {
  func.func @_stem_kernel(%arg0: i32, %arg1: i32, %arg2: memref<1x1x19x2x3xbf16, #tpu.memory_space<vmem>>, %arg3: memref<1x1x19x2x3xbf16, #tpu.memory_space<vmem>>, %arg4: memref<1x1x19x2x3xbf16, #tpu.memory_space<vmem>>, %arg5: memref<1x1x19x2x3xbf16, #tpu.memory_space<vmem>>, %arg6: memref<1x1x19x2x3xbf16, #tpu.memory_space<vmem>>, %arg7: memref<1x1x19x2x3xbf16, #tpu.memory_space<vmem>>, %arg8: memref<1x1x19x2x3xbf16, #tpu.memory_space<vmem>>, %arg9: memref<7x21x16xbf16, #tpu.memory_space<vmem>>, %arg10: memref<1x16xf32, #tpu.memory_space<vmem>>, %arg11: memref<1x16xf32, #tpu.memory_space<vmem>>, %arg12: memref<1x1x16x16xbf16, #tpu.memory_space<vmem>>) attributes {dimension_semantics = [#tpu.dimension_semantics<parallel>, #tpu.dimension_semantics<parallel>], iteration_bounds = array<i64: 2, 16>, scalar_prefetch = 0 : i64, scratch_operands = 0 : i64, tpu.core_type = #tpu.core_type<tc>, window_params = [{transform_indices = @transform_0, window_bounds = array<i64: 1, 1, 19, 2, 3>}, {transform_indices = @transform_1, window_bounds = array<i64: 1, 1, 19, 2, 3>}, {transform_indices = @transform_2, window_bounds = array<i64: 1, 1, 19, 2, 3>}, {transform_indices = @transform_3, window_bounds = array<i64: 1, 1, 19, 2, 3>}, {transform_indices = @transform_4, window_bounds = array<i64: 1, 1, 19, 2, 3>}, {transform_indices = @transform_5, window_bounds = array<i64: 1, 1, 19, 2, 3>}, {transform_indices = @transform_6, window_bounds = array<i64: 1, 1, 19, 2, 3>}, {pipeline_mode = #tpu.pipeline_mode<synchronous>, transform_indices = @transform_7, window_bounds = array<i64: 7, 21, 16>}, {pipeline_mode = #tpu.pipeline_mode<synchronous>, transform_indices = @transform_8, window_bounds = array<i64: 1, 16>}, {pipeline_mode = #tpu.pipeline_mode<synchronous>, transform_indices = @transform_9, window_bounds = array<i64: 1, 16>}, {transform_indices = @transform_10, window_bounds = array<i64: 1, 1, 16, 16>}]} {
    %c0 = arith.constant 0 : index
    %c0_0 = arith.constant 0 : index
    %c0_1 = arith.constant 0 : index
    %0 = vector.load %arg9[%c0, %c0_0, %c0_1] : memref<7x21x16xbf16, #tpu.memory_space<vmem>>, vector<7x21x16xbf16>
    %c0_2 = arith.constant 0 : index
    %c0_3 = arith.constant 0 : index
    %c0_4 = arith.constant 0 : index
    %c0_5 = arith.constant 0 : index
    %c0_6 = arith.constant 0 : index
    %1 = vector.load %arg2[%c0_2, %c0_3, %c0_4, %c0_5, %c0_6] : memref<1x1x19x2x3xbf16, #tpu.memory_space<vmem>>, vector<1x1x19x2x3xbf16>
    %2 = vector.shape_cast %1 : vector<1x1x19x2x3xbf16> to vector<19x2x3xbf16>
    %3 = vector.extract_strided_slice %2 {offsets = [0, 0, 0], sizes = [16, 1, 3], strides = [1, 1, 1]} : vector<19x2x3xbf16> to vector<16x1x3xbf16>
    %4 = vector.shape_cast %3 : vector<16x1x3xbf16> to vector<16x3xbf16>
    %5 = vector.extract_strided_slice %2 {offsets = [0, 1, 0], sizes = [16, 1, 3], strides = [1, 1, 1]} : vector<19x2x3xbf16> to vector<16x1x3xbf16>
    %6 = vector.shape_cast %5 : vector<16x1x3xbf16> to vector<16x3xbf16>
    %7 = vector.extract_strided_slice %2 {offsets = [1, 0, 0], sizes = [16, 1, 3], strides = [1, 1, 1]} : vector<19x2x3xbf16> to vector<16x1x3xbf16>
    %8 = vector.shape_cast %7 : vector<16x1x3xbf16> to vector<16x3xbf16>
    %9 = vector.extract_strided_slice %2 {offsets = [1, 1, 0], sizes = [16, 1, 3], strides = [1, 1, 1]} : vector<19x2x3xbf16> to vector<16x1x3xbf16>
    %10 = vector.shape_cast %9 : vector<16x1x3xbf16> to vector<16x3xbf16>
    %11 = vector.extract_strided_slice %2 {offsets = [2, 0, 0], sizes = [16, 1, 3], strides = [1, 1, 1]} : vector<19x2x3xbf16> to vector<16x1x3xbf16>
    %12 = vector.shape_cast %11 : vector<16x1x3xbf16> to vector<16x3xbf16>
    %13 = vector.extract_strided_slice %2 {offsets = [2, 1, 0], sizes = [16, 1, 3], strides = [1, 1, 1]} : vector<19x2x3xbf16> to vector<16x1x3xbf16>
    %14 = vector.shape_cast %13 : vector<16x1x3xbf16> to vector<16x3xbf16>
    %15 = vector.extract_strided_slice %2 {offsets = [3, 0, 0], sizes = [16, 1, 3], strides = [1, 1, 1]} : vector<19x2x3xbf16> to vector<16x1x3xbf16>
    %16 = vector.shape_cast %15 : vector<16x1x3xbf16> to vector<16x3xbf16>
    %17 = tpu.concatenate %4, %6, %8, %10, %12, %14, %16 in 1 : vector<16x3xbf16>, vector<16x3xbf16>, vector<16x3xbf16>, vector<16x3xbf16>, vector<16x3xbf16>, vector<16x3xbf16>, vector<16x3xbf16> -> vector<16x21xbf16>
    %18 = vector.extract_strided_slice %0 {offsets = [0, 0, 0], sizes = [1, 21, 16], strides = [1, 1, 1]} : vector<7x21x16xbf16> to vector<1x21x16xbf16>
    %19 = vector.shape_cast %18 : vector<1x21x16xbf16> to vector<21x16xbf16>
    %cst = arith.constant dense<0.000000e+00> : vector<16x16xf32>
    %20 = tpu.matmul %17, %19, %cst {dimension_numbers = #tpu.dot_dimension_numbers<[1], [0], [0], [1], [0, 0, 1, 1], [], []>} : vector<16x21xbf16>, vector<21x16xbf16>, vector<16x16xf32> -> vector<16x16xf32>
    %c0_7 = arith.constant 0 : index
    %c0_8 = arith.constant 0 : index
    %c0_9 = arith.constant 0 : index
    %c0_10 = arith.constant 0 : index
    %c0_11 = arith.constant 0 : index
    %21 = vector.load %arg3[%c0_7, %c0_8, %c0_9, %c0_10, %c0_11] : memref<1x1x19x2x3xbf16, #tpu.memory_space<vmem>>, vector<1x1x19x2x3xbf16>
    %22 = vector.shape_cast %21 : vector<1x1x19x2x3xbf16> to vector<19x2x3xbf16>
    %23 = vector.extract_strided_slice %22 {offsets = [0, 0, 0], sizes = [16, 1, 3], strides = [1, 1, 1]} : vector<19x2x3xbf16> to vector<16x1x3xbf16>
    %24 = vector.shape_cast %23 : vector<16x1x3xbf16> to vector<16x3xbf16>
    %25 = vector.extract_strided_slice %22 {offsets = [0, 1, 0], sizes = [16, 1, 3], strides = [1, 1, 1]} : vector<19x2x3xbf16> to vector<16x1x3xbf16>
    %26 = vector.shape_cast %25 : vector<16x1x3xbf16> to vector<16x3xbf16>
    %27 = vector.extract_strided_slice %22 {offsets = [1, 0, 0], sizes = [16, 1, 3], strides = [1, 1, 1]} : vector<19x2x3xbf16> to vector<16x1x3xbf16>
    %28 = vector.shape_cast %27 : vector<16x1x3xbf16> to vector<16x3xbf16>
    %29 = vector.extract_strided_slice %22 {offsets = [1, 1, 0], sizes = [16, 1, 3], strides = [1, 1, 1]} : vector<19x2x3xbf16> to vector<16x1x3xbf16>
    %30 = vector.shape_cast %29 : vector<16x1x3xbf16> to vector<16x3xbf16>
    %31 = vector.extract_strided_slice %22 {offsets = [2, 0, 0], sizes = [16, 1, 3], strides = [1, 1, 1]} : vector<19x2x3xbf16> to vector<16x1x3xbf16>
    %32 = vector.shape_cast %31 : vector<16x1x3xbf16> to vector<16x3xbf16>
    %33 = vector.extract_strided_slice %22 {offsets = [2, 1, 0], sizes = [16, 1, 3], strides = [1, 1, 1]} : vector<19x2x3xbf16> to vector<16x1x3xbf16>
    %34 = vector.shape_cast %33 : vector<16x1x3xbf16> to vector<16x3xbf16>
    %35 = vector.extract_strided_slice %22 {offsets = [3, 0, 0], sizes = [16, 1, 3], strides = [1, 1, 1]} : vector<19x2x3xbf16> to vector<16x1x3xbf16>
    %36 = vector.shape_cast %35 : vector<16x1x3xbf16> to vector<16x3xbf16>
    %37 = tpu.concatenate %24, %26, %28, %30, %32, %34, %36 in 1 : vector<16x3xbf16>, vector<16x3xbf16>, vector<16x3xbf16>, vector<16x3xbf16>, vector<16x3xbf16>, vector<16x3xbf16>, vector<16x3xbf16> -> vector<16x21xbf16>
    %38 = vector.extract_strided_slice %0 {offsets = [1, 0, 0], sizes = [1, 21, 16], strides = [1, 1, 1]} : vector<7x21x16xbf16> to vector<1x21x16xbf16>
    %39 = vector.shape_cast %38 : vector<1x21x16xbf16> to vector<21x16xbf16>
    %cst_12 = arith.constant dense<0.000000e+00> : vector<16x16xf32>
    %40 = tpu.matmul %37, %39, %cst_12 {dimension_numbers = #tpu.dot_dimension_numbers<[1], [0], [0], [1], [0, 0, 1, 1], [], []>} : vector<16x21xbf16>, vector<21x16xbf16>, vector<16x16xf32> -> vector<16x16xf32>
    %41 = arith.addf %20, %40 : vector<16x16xf32>
    %c0_13 = arith.constant 0 : index
    %c0_14 = arith.constant 0 : index
    %c0_15 = arith.constant 0 : index
    %c0_16 = arith.constant 0 : index
    %c0_17 = arith.constant 0 : index
    %42 = vector.load %arg4[%c0_13, %c0_14, %c0_15, %c0_16, %c0_17] : memref<1x1x19x2x3xbf16, #tpu.memory_space<vmem>>, vector<1x1x19x2x3xbf16>
    %43 = vector.shape_cast %42 : vector<1x1x19x2x3xbf16> to vector<19x2x3xbf16>
    %44 = vector.extract_strided_slice %43 {offsets = [0, 0, 0], sizes = [16, 1, 3], strides = [1, 1, 1]} : vector<19x2x3xbf16> to vector<16x1x3xbf16>
    %45 = vector.shape_cast %44 : vector<16x1x3xbf16> to vector<16x3xbf16>
    %46 = vector.extract_strided_slice %43 {offsets = [0, 1, 0], sizes = [16, 1, 3], strides = [1, 1, 1]} : vector<19x2x3xbf16> to vector<16x1x3xbf16>
    %47 = vector.shape_cast %46 : vector<16x1x3xbf16> to vector<16x3xbf16>
    %48 = vector.extract_strided_slice %43 {offsets = [1, 0, 0], sizes = [16, 1, 3], strides = [1, 1, 1]} : vector<19x2x3xbf16> to vector<16x1x3xbf16>
    %49 = vector.shape_cast %48 : vector<16x1x3xbf16> to vector<16x3xbf16>
    %50 = vector.extract_strided_slice %43 {offsets = [1, 1, 0], sizes = [16, 1, 3], strides = [1, 1, 1]} : vector<19x2x3xbf16> to vector<16x1x3xbf16>
    %51 = vector.shape_cast %50 : vector<16x1x3xbf16> to vector<16x3xbf16>
    %52 = vector.extract_strided_slice %43 {offsets = [2, 0, 0], sizes = [16, 1, 3], strides = [1, 1, 1]} : vector<19x2x3xbf16> to vector<16x1x3xbf16>
    %53 = vector.shape_cast %52 : vector<16x1x3xbf16> to vector<16x3xbf16>
    %54 = vector.extract_strided_slice %43 {offsets = [2, 1, 0], sizes = [16, 1, 3], strides = [1, 1, 1]} : vector<19x2x3xbf16> to vector<16x1x3xbf16>
    %55 = vector.shape_cast %54 : vector<16x1x3xbf16> to vector<16x3xbf16>
    %56 = vector.extract_strided_slice %43 {offsets = [3, 0, 0], sizes = [16, 1, 3], strides = [1, 1, 1]} : vector<19x2x3xbf16> to vector<16x1x3xbf16>
    %57 = vector.shape_cast %56 : vector<16x1x3xbf16> to vector<16x3xbf16>
    %58 = tpu.concatenate %45, %47, %49, %51, %53, %55, %57 in 1 : vector<16x3xbf16>, vector<16x3xbf16>, vector<16x3xbf16>, vector<16x3xbf16>, vector<16x3xbf16>, vector<16x3xbf16>, vector<16x3xbf16> -> vector<16x21xbf16>
    %59 = vector.extract_strided_slice %0 {offsets = [2, 0, 0], sizes = [1, 21, 16], strides = [1, 1, 1]} : vector<7x21x16xbf16> to vector<1x21x16xbf16>
    %60 = vector.shape_cast %59 : vector<1x21x16xbf16> to vector<21x16xbf16>
    %cst_18 = arith.constant dense<0.000000e+00> : vector<16x16xf32>
    %61 = tpu.matmul %58, %60, %cst_18 {dimension_numbers = #tpu.dot_dimension_numbers<[1], [0], [0], [1], [0, 0, 1, 1], [], []>} : vector<16x21xbf16>, vector<21x16xbf16>, vector<16x16xf32> -> vector<16x16xf32>
    %62 = arith.addf %41, %61 : vector<16x16xf32>
    %c0_19 = arith.constant 0 : index
    %c0_20 = arith.constant 0 : index
    %c0_21 = arith.constant 0 : index
    %c0_22 = arith.constant 0 : index
    %c0_23 = arith.constant 0 : index
    %63 = vector.load %arg5[%c0_19, %c0_20, %c0_21, %c0_22, %c0_23] : memref<1x1x19x2x3xbf16, #tpu.memory_space<vmem>>, vector<1x1x19x2x3xbf16>
    %64 = vector.shape_cast %63 : vector<1x1x19x2x3xbf16> to vector<19x2x3xbf16>
    %65 = vector.extract_strided_slice %64 {offsets = [0, 0, 0], sizes = [16, 1, 3], strides = [1, 1, 1]} : vector<19x2x3xbf16> to vector<16x1x3xbf16>
    %66 = vector.shape_cast %65 : vector<16x1x3xbf16> to vector<16x3xbf16>
    %67 = vector.extract_strided_slice %64 {offsets = [0, 1, 0], sizes = [16, 1, 3], strides = [1, 1, 1]} : vector<19x2x3xbf16> to vector<16x1x3xbf16>
    %68 = vector.shape_cast %67 : vector<16x1x3xbf16> to vector<16x3xbf16>
    %69 = vector.extract_strided_slice %64 {offsets = [1, 0, 0], sizes = [16, 1, 3], strides = [1, 1, 1]} : vector<19x2x3xbf16> to vector<16x1x3xbf16>
    %70 = vector.shape_cast %69 : vector<16x1x3xbf16> to vector<16x3xbf16>
    %71 = vector.extract_strided_slice %64 {offsets = [1, 1, 0], sizes = [16, 1, 3], strides = [1, 1, 1]} : vector<19x2x3xbf16> to vector<16x1x3xbf16>
    %72 = vector.shape_cast %71 : vector<16x1x3xbf16> to vector<16x3xbf16>
    %73 = vector.extract_strided_slice %64 {offsets = [2, 0, 0], sizes = [16, 1, 3], strides = [1, 1, 1]} : vector<19x2x3xbf16> to vector<16x1x3xbf16>
    %74 = vector.shape_cast %73 : vector<16x1x3xbf16> to vector<16x3xbf16>
    %75 = vector.extract_strided_slice %64 {offsets = [2, 1, 0], sizes = [16, 1, 3], strides = [1, 1, 1]} : vector<19x2x3xbf16> to vector<16x1x3xbf16>
    %76 = vector.shape_cast %75 : vector<16x1x3xbf16> to vector<16x3xbf16>
    %77 = vector.extract_strided_slice %64 {offsets = [3, 0, 0], sizes = [16, 1, 3], strides = [1, 1, 1]} : vector<19x2x3xbf16> to vector<16x1x3xbf16>
    %78 = vector.shape_cast %77 : vector<16x1x3xbf16> to vector<16x3xbf16>
    %79 = tpu.concatenate %66, %68, %70, %72, %74, %76, %78 in 1 : vector<16x3xbf16>, vector<16x3xbf16>, vector<16x3xbf16>, vector<16x3xbf16>, vector<16x3xbf16>, vector<16x3xbf16>, vector<16x3xbf16> -> vector<16x21xbf16>
    %80 = vector.extract_strided_slice %0 {offsets = [3, 0, 0], sizes = [1, 21, 16], strides = [1, 1, 1]} : vector<7x21x16xbf16> to vector<1x21x16xbf16>
    %81 = vector.shape_cast %80 : vector<1x21x16xbf16> to vector<21x16xbf16>
    %cst_24 = arith.constant dense<0.000000e+00> : vector<16x16xf32>
    %82 = tpu.matmul %79, %81, %cst_24 {dimension_numbers = #tpu.dot_dimension_numbers<[1], [0], [0], [1], [0, 0, 1, 1], [], []>} : vector<16x21xbf16>, vector<21x16xbf16>, vector<16x16xf32> -> vector<16x16xf32>
    %83 = arith.addf %62, %82 : vector<16x16xf32>
    %c0_25 = arith.constant 0 : index
    %c0_26 = arith.constant 0 : index
    %c0_27 = arith.constant 0 : index
    %c0_28 = arith.constant 0 : index
    %c0_29 = arith.constant 0 : index
    %84 = vector.load %arg6[%c0_25, %c0_26, %c0_27, %c0_28, %c0_29] : memref<1x1x19x2x3xbf16, #tpu.memory_space<vmem>>, vector<1x1x19x2x3xbf16>
    %85 = vector.shape_cast %84 : vector<1x1x19x2x3xbf16> to vector<19x2x3xbf16>
    %86 = vector.extract_strided_slice %85 {offsets = [0, 0, 0], sizes = [16, 1, 3], strides = [1, 1, 1]} : vector<19x2x3xbf16> to vector<16x1x3xbf16>
    %87 = vector.shape_cast %86 : vector<16x1x3xbf16> to vector<16x3xbf16>
    %88 = vector.extract_strided_slice %85 {offsets = [0, 1, 0], sizes = [16, 1, 3], strides = [1, 1, 1]} : vector<19x2x3xbf16> to vector<16x1x3xbf16>
    %89 = vector.shape_cast %88 : vector<16x1x3xbf16> to vector<16x3xbf16>
    %90 = vector.extract_strided_slice %85 {offsets = [1, 0, 0], sizes = [16, 1, 3], strides = [1, 1, 1]} : vector<19x2x3xbf16> to vector<16x1x3xbf16>
    %91 = vector.shape_cast %90 : vector<16x1x3xbf16> to vector<16x3xbf16>
    %92 = vector.extract_strided_slice %85 {offsets = [1, 1, 0], sizes = [16, 1, 3], strides = [1, 1, 1]} : vector<19x2x3xbf16> to vector<16x1x3xbf16>
    %93 = vector.shape_cast %92 : vector<16x1x3xbf16> to vector<16x3xbf16>
    %94 = vector.extract_strided_slice %85 {offsets = [2, 0, 0], sizes = [16, 1, 3], strides = [1, 1, 1]} : vector<19x2x3xbf16> to vector<16x1x3xbf16>
    %95 = vector.shape_cast %94 : vector<16x1x3xbf16> to vector<16x3xbf16>
    %96 = vector.extract_strided_slice %85 {offsets = [2, 1, 0], sizes = [16, 1, 3], strides = [1, 1, 1]} : vector<19x2x3xbf16> to vector<16x1x3xbf16>
    %97 = vector.shape_cast %96 : vector<16x1x3xbf16> to vector<16x3xbf16>
    %98 = vector.extract_strided_slice %85 {offsets = [3, 0, 0], sizes = [16, 1, 3], strides = [1, 1, 1]} : vector<19x2x3xbf16> to vector<16x1x3xbf16>
    %99 = vector.shape_cast %98 : vector<16x1x3xbf16> to vector<16x3xbf16>
    %100 = tpu.concatenate %87, %89, %91, %93, %95, %97, %99 in 1 : vector<16x3xbf16>, vector<16x3xbf16>, vector<16x3xbf16>, vector<16x3xbf16>, vector<16x3xbf16>, vector<16x3xbf16>, vector<16x3xbf16> -> vector<16x21xbf16>
    %101 = vector.extract_strided_slice %0 {offsets = [4, 0, 0], sizes = [1, 21, 16], strides = [1, 1, 1]} : vector<7x21x16xbf16> to vector<1x21x16xbf16>
    %102 = vector.shape_cast %101 : vector<1x21x16xbf16> to vector<21x16xbf16>
    %cst_30 = arith.constant dense<0.000000e+00> : vector<16x16xf32>
    %103 = tpu.matmul %100, %102, %cst_30 {dimension_numbers = #tpu.dot_dimension_numbers<[1], [0], [0], [1], [0, 0, 1, 1], [], []>} : vector<16x21xbf16>, vector<21x16xbf16>, vector<16x16xf32> -> vector<16x16xf32>
    %104 = arith.addf %83, %103 : vector<16x16xf32>
    %c0_31 = arith.constant 0 : index
    %c0_32 = arith.constant 0 : index
    %c0_33 = arith.constant 0 : index
    %c0_34 = arith.constant 0 : index
    %c0_35 = arith.constant 0 : index
    %105 = vector.load %arg7[%c0_31, %c0_32, %c0_33, %c0_34, %c0_35] : memref<1x1x19x2x3xbf16, #tpu.memory_space<vmem>>, vector<1x1x19x2x3xbf16>
    %106 = vector.shape_cast %105 : vector<1x1x19x2x3xbf16> to vector<19x2x3xbf16>
    %107 = vector.extract_strided_slice %106 {offsets = [0, 0, 0], sizes = [16, 1, 3], strides = [1, 1, 1]} : vector<19x2x3xbf16> to vector<16x1x3xbf16>
    %108 = vector.shape_cast %107 : vector<16x1x3xbf16> to vector<16x3xbf16>
    %109 = vector.extract_strided_slice %106 {offsets = [0, 1, 0], sizes = [16, 1, 3], strides = [1, 1, 1]} : vector<19x2x3xbf16> to vector<16x1x3xbf16>
    %110 = vector.shape_cast %109 : vector<16x1x3xbf16> to vector<16x3xbf16>
    %111 = vector.extract_strided_slice %106 {offsets = [1, 0, 0], sizes = [16, 1, 3], strides = [1, 1, 1]} : vector<19x2x3xbf16> to vector<16x1x3xbf16>
    %112 = vector.shape_cast %111 : vector<16x1x3xbf16> to vector<16x3xbf16>
    %113 = vector.extract_strided_slice %106 {offsets = [1, 1, 0], sizes = [16, 1, 3], strides = [1, 1, 1]} : vector<19x2x3xbf16> to vector<16x1x3xbf16>
    %114 = vector.shape_cast %113 : vector<16x1x3xbf16> to vector<16x3xbf16>
    %115 = vector.extract_strided_slice %106 {offsets = [2, 0, 0], sizes = [16, 1, 3], strides = [1, 1, 1]} : vector<19x2x3xbf16> to vector<16x1x3xbf16>
    %116 = vector.shape_cast %115 : vector<16x1x3xbf16> to vector<16x3xbf16>
    %117 = vector.extract_strided_slice %106 {offsets = [2, 1, 0], sizes = [16, 1, 3], strides = [1, 1, 1]} : vector<19x2x3xbf16> to vector<16x1x3xbf16>
    %118 = vector.shape_cast %117 : vector<16x1x3xbf16> to vector<16x3xbf16>
    %119 = vector.extract_strided_slice %106 {offsets = [3, 0, 0], sizes = [16, 1, 3], strides = [1, 1, 1]} : vector<19x2x3xbf16> to vector<16x1x3xbf16>
    %120 = vector.shape_cast %119 : vector<16x1x3xbf16> to vector<16x3xbf16>
    %121 = tpu.concatenate %108, %110, %112, %114, %116, %118, %120 in 1 : vector<16x3xbf16>, vector<16x3xbf16>, vector<16x3xbf16>, vector<16x3xbf16>, vector<16x3xbf16>, vector<16x3xbf16>, vector<16x3xbf16> -> vector<16x21xbf16>
    %122 = vector.extract_strided_slice %0 {offsets = [5, 0, 0], sizes = [1, 21, 16], strides = [1, 1, 1]} : vector<7x21x16xbf16> to vector<1x21x16xbf16>
    %123 = vector.shape_cast %122 : vector<1x21x16xbf16> to vector<21x16xbf16>
    %cst_36 = arith.constant dense<0.000000e+00> : vector<16x16xf32>
    %124 = tpu.matmul %121, %123, %cst_36 {dimension_numbers = #tpu.dot_dimension_numbers<[1], [0], [0], [1], [0, 0, 1, 1], [], []>} : vector<16x21xbf16>, vector<21x16xbf16>, vector<16x16xf32> -> vector<16x16xf32>
    %125 = arith.addf %104, %124 : vector<16x16xf32>
    %c0_37 = arith.constant 0 : index
    %c0_38 = arith.constant 0 : index
    %c0_39 = arith.constant 0 : index
    %c0_40 = arith.constant 0 : index
    %c0_41 = arith.constant 0 : index
    %126 = vector.load %arg8[%c0_37, %c0_38, %c0_39, %c0_40, %c0_41] : memref<1x1x19x2x3xbf16, #tpu.memory_space<vmem>>, vector<1x1x19x2x3xbf16>
    %127 = vector.shape_cast %126 : vector<1x1x19x2x3xbf16> to vector<19x2x3xbf16>
    %128 = vector.extract_strided_slice %127 {offsets = [0, 0, 0], sizes = [16, 1, 3], strides = [1, 1, 1]} : vector<19x2x3xbf16> to vector<16x1x3xbf16>
    %129 = vector.shape_cast %128 : vector<16x1x3xbf16> to vector<16x3xbf16>
    %130 = vector.extract_strided_slice %127 {offsets = [0, 1, 0], sizes = [16, 1, 3], strides = [1, 1, 1]} : vector<19x2x3xbf16> to vector<16x1x3xbf16>
    %131 = vector.shape_cast %130 : vector<16x1x3xbf16> to vector<16x3xbf16>
    %132 = vector.extract_strided_slice %127 {offsets = [1, 0, 0], sizes = [16, 1, 3], strides = [1, 1, 1]} : vector<19x2x3xbf16> to vector<16x1x3xbf16>
    %133 = vector.shape_cast %132 : vector<16x1x3xbf16> to vector<16x3xbf16>
    %134 = vector.extract_strided_slice %127 {offsets = [1, 1, 0], sizes = [16, 1, 3], strides = [1, 1, 1]} : vector<19x2x3xbf16> to vector<16x1x3xbf16>
    %135 = vector.shape_cast %134 : vector<16x1x3xbf16> to vector<16x3xbf16>
    %136 = vector.extract_strided_slice %127 {offsets = [2, 0, 0], sizes = [16, 1, 3], strides = [1, 1, 1]} : vector<19x2x3xbf16> to vector<16x1x3xbf16>
    %137 = vector.shape_cast %136 : vector<16x1x3xbf16> to vector<16x3xbf16>
    %138 = vector.extract_strided_slice %127 {offsets = [2, 1, 0], sizes = [16, 1, 3], strides = [1, 1, 1]} : vector<19x2x3xbf16> to vector<16x1x3xbf16>
    %139 = vector.shape_cast %138 : vector<16x1x3xbf16> to vector<16x3xbf16>
    %140 = vector.extract_strided_slice %127 {offsets = [3, 0, 0], sizes = [16, 1, 3], strides = [1, 1, 1]} : vector<19x2x3xbf16> to vector<16x1x3xbf16>
    %141 = vector.shape_cast %140 : vector<16x1x3xbf16> to vector<16x3xbf16>
    %142 = tpu.concatenate %129, %131, %133, %135, %137, %139, %141 in 1 : vector<16x3xbf16>, vector<16x3xbf16>, vector<16x3xbf16>, vector<16x3xbf16>, vector<16x3xbf16>, vector<16x3xbf16>, vector<16x3xbf16> -> vector<16x21xbf16>
    %143 = vector.extract_strided_slice %0 {offsets = [6, 0, 0], sizes = [1, 21, 16], strides = [1, 1, 1]} : vector<7x21x16xbf16> to vector<1x21x16xbf16>
    %144 = vector.shape_cast %143 : vector<1x21x16xbf16> to vector<21x16xbf16>
    %cst_42 = arith.constant dense<0.000000e+00> : vector<16x16xf32>
    %145 = tpu.matmul %142, %144, %cst_42 {dimension_numbers = #tpu.dot_dimension_numbers<[1], [0], [0], [1], [0, 0, 1, 1], [], []>} : vector<16x21xbf16>, vector<21x16xbf16>, vector<16x16xf32> -> vector<16x16xf32>
    %146 = arith.addf %125, %145 : vector<16x16xf32>
    %c0_43 = arith.constant 0 : index
    %c0_44 = arith.constant 0 : index
    %147 = vector.load %arg10[%c0_43, %c0_44] : memref<1x16xf32, #tpu.memory_space<vmem>>, vector<1x16xf32>
    %148 = vector.broadcast %147 : vector<1x16xf32> to vector<16x16xf32>
    %149 = arith.mulf %146, %148 : vector<16x16xf32>
    %c0_45 = arith.constant 0 : index
    %c0_46 = arith.constant 0 : index
    %150 = vector.load %arg11[%c0_45, %c0_46] : memref<1x16xf32, #tpu.memory_space<vmem>>, vector<1x16xf32>
    %151 = vector.broadcast %150 : vector<1x16xf32> to vector<16x16xf32>
    %152 = arith.addf %149, %151 : vector<16x16xf32>
    %cst_47 = arith.constant 0.000000e+00 : f32
    %153 = vector.broadcast %cst_47 : f32 to vector<16x16xf32>
    %154 = arith.maximumf %152, %153 : vector<16x16xf32>
    %155 = arith.truncf %154 : vector<16x16xf32> to vector<16x16xbf16>
    %c0_48 = arith.constant 0 : index
    %c0_49 = arith.constant 0 : index
    %c0_50 = arith.constant 0 : index
    %c0_51 = arith.constant 0 : index
    %156 = vector.load %arg12[%c0_48, %c0_49, %c0_50, %c0_51] : memref<1x1x16x16xbf16, #tpu.memory_space<vmem>>, vector<1x1x16x16xbf16>
    %157 = vector.shape_cast %156 : vector<1x1x16x16xbf16> to vector<16x16xbf16>
    %158 = vector.shape_cast %155 : vector<16x16xbf16> to vector<1x1x16x16xbf16>
    tpu.vector_store %arg12[%c0_48, %c0_49, %c0_50, %c0_51], %158 {strides = array<i32>} : memref<1x1x16x16xbf16, #tpu.memory_space<vmem>>, vector<1x1x16x16xbf16>,
    return
  }
  func.func @transform_0(%arg0: i32, %arg1: i32) -> (i32, i32, i32, i32, i32) {
    %c2_i32 = arith.constant 2 : i32
    %0 = arith.muli %c2_i32, %arg1 : i32
    %c0_i32 = arith.constant 0 : i32
    %1 = arith.addi %0, %c0_i32 : i32
    %c0_i32_0 = arith.constant 0 : i32
    %c0_i32_1 = arith.constant 0 : i32
    %c0_i32_2 = arith.constant 0 : i32
    %c0_i32_3 = arith.constant 0 : i32
    return %arg0, %1, %c0_i32_0, %c0_i32_1, %c0_i32_2 : i32, i32, i32, i32, i32
  }
  func.func @transform_1(%arg0: i32, %arg1: i32) -> (i32, i32, i32, i32, i32) {
    %c2_i32 = arith.constant 2 : i32
    %0 = arith.muli %c2_i32, %arg1 : i32
    %c1_i32 = arith.constant 1 : i32
    %1 = arith.addi %0, %c1_i32 : i32
    %c0_i32 = arith.constant 0 : i32
    %c0_i32_0 = arith.constant 0 : i32
    %c0_i32_1 = arith.constant 0 : i32
    %c0_i32_2 = arith.constant 0 : i32
    return %arg0, %1, %c0_i32, %c0_i32_0, %c0_i32_1 : i32, i32, i32, i32, i32
  }
  func.func @transform_2(%arg0: i32, %arg1: i32) -> (i32, i32, i32, i32, i32) {
    %c2_i32 = arith.constant 2 : i32
    %0 = arith.muli %c2_i32, %arg1 : i32
    %c2_i32_0 = arith.constant 2 : i32
    %1 = arith.addi %0, %c2_i32_0 : i32
    %c0_i32 = arith.constant 0 : i32
    %c0_i32_1 = arith.constant 0 : i32
    %c0_i32_2 = arith.constant 0 : i32
    %c0_i32_3 = arith.constant 0 : i32
    return %arg0, %1, %c0_i32, %c0_i32_1, %c0_i32_2 : i32, i32, i32, i32, i32
  }
  func.func @transform_3(%arg0: i32, %arg1: i32) -> (i32, i32, i32, i32, i32) {
    %c2_i32 = arith.constant 2 : i32
    %0 = arith.muli %c2_i32, %arg1 : i32
    %c3_i32 = arith.constant 3 : i32
    %1 = arith.addi %0, %c3_i32 : i32
    %c0_i32 = arith.constant 0 : i32
    %c0_i32_0 = arith.constant 0 : i32
    %c0_i32_1 = arith.constant 0 : i32
    %c0_i32_2 = arith.constant 0 : i32
    return %arg0, %1, %c0_i32, %c0_i32_0, %c0_i32_1 : i32, i32, i32, i32, i32
  }
  func.func @transform_4(%arg0: i32, %arg1: i32) -> (i32, i32, i32, i32, i32) {
    %c2_i32 = arith.constant 2 : i32
    %0 = arith.muli %c2_i32, %arg1 : i32
    %c4_i32 = arith.constant 4 : i32
    %1 = arith.addi %0, %c4_i32 : i32
    %c0_i32 = arith.constant 0 : i32
    %c0_i32_0 = arith.constant 0 : i32
    %c0_i32_1 = arith.constant 0 : i32
    %c0_i32_2 = arith.constant 0 : i32
    return %arg0, %1, %c0_i32, %c0_i32_0, %c0_i32_1 : i32, i32, i32, i32, i32
  }
  func.func @transform_5(%arg0: i32, %arg1: i32) -> (i32, i32, i32, i32, i32) {
    %c2_i32 = arith.constant 2 : i32
    %0 = arith.muli %c2_i32, %arg1 : i32
    %c5_i32 = arith.constant 5 : i32
    %1 = arith.addi %0, %c5_i32 : i32
    %c0_i32 = arith.constant 0 : i32
    %c0_i32_0 = arith.constant 0 : i32
    %c0_i32_1 = arith.constant 0 : i32
    %c0_i32_2 = arith.constant 0 : i32
    return %arg0, %1, %c0_i32, %c0_i32_0, %c0_i32_1 : i32, i32, i32, i32, i32
  }
  func.func @transform_6(%arg0: i32, %arg1: i32) -> (i32, i32, i32, i32, i32) {
    %c2_i32 = arith.constant 2 : i32
    %0 = arith.muli %c2_i32, %arg1 : i32
    %c6_i32 = arith.constant 6 : i32
    %1 = arith.addi %0, %c6_i32 : i32
    %c0_i32 = arith.constant 0 : i32
    %c0_i32_0 = arith.constant 0 : i32
    %c0_i32_1 = arith.constant 0 : i32
    %c0_i32_2 = arith.constant 0 : i32
    return %arg0, %1, %c0_i32, %c0_i32_0, %c0_i32_1 : i32, i32, i32, i32, i32
  }
  func.func @transform_7(%arg0: i32, %arg1: i32) -> (i32, i32, i32) {
    %c0_i32 = arith.constant 0 : i32
    %c0_i32_0 = arith.constant 0 : i32
    %c0_i32_1 = arith.constant 0 : i32
    %c0_i32_2 = arith.constant 0 : i32
    return %c0_i32, %c0_i32_0, %c0_i32_1 : i32, i32, i32
  }
  func.func @transform_8(%arg0: i32, %arg1: i32) -> (i32, i32) {
    %c0_i32 = arith.constant 0 : i32
    %c0_i32_0 = arith.constant 0 : i32
    %c0_i32_1 = arith.constant 0 : i32
    return %c0_i32, %c0_i32_0 : i32, i32
  }
  func.func @transform_9(%arg0: i32, %arg1: i32) -> (i32, i32) {
    %c0_i32 = arith.constant 0 : i32
    %c0_i32_0 = arith.constant 0 : i32
    %c0_i32_1 = arith.constant 0 : i32
    return %c0_i32, %c0_i32_0 : i32, i32
  }
  func.func @transform_10(%arg0: i32, %arg1: i32) -> (i32, i32, i32, i32) {
    %c0_i32 = arith.constant 0 : i32
    %c0_i32_0 = arith.constant 0 : i32
    %c0_i32_1 = arith.constant 0 : i32
    return %arg0, %arg1, %c0_i32, %c0_i32_0 : i32, i32, i32, i32
  }
}

module attributes {stable_mosaic.version = 11 : i64} {
  func.func @_maxpool_kernel(%arg0: i32, %arg1: i32, %arg2: memref<1x1x9x2x16xbf16, #tpu.memory_space<vmem>>, %arg3: memref<1x1x9x2x16xbf16, #tpu.memory_space<vmem>>, %arg4: memref<1x1x9x2x16xbf16, #tpu.memory_space<vmem>>, %arg5: memref<1x1x8x16xbf16, #tpu.memory_space<vmem>>) attributes {dimension_semantics = [#tpu.dimension_semantics<parallel>, #tpu.dimension_semantics<parallel>], iteration_bounds = array<i64: 2, 8>, scalar_prefetch = 0 : i64, scratch_operands = 0 : i64, tpu.core_type = #tpu.core_type<tc>, window_params = [{transform_indices = @transform_0, window_bounds = array<i64: 1, 1, 9, 2, 16>}, {transform_indices = @transform_1, window_bounds = array<i64: 1, 1, 9, 2, 16>}, {transform_indices = @transform_2, window_bounds = array<i64: 1, 1, 9, 2, 16>}, {transform_indices = @transform_3, window_bounds = array<i64: 1, 1, 8, 16>}]} {
    %c0 = arith.constant 0 : index
    %c0_0 = arith.constant 0 : index
    %c0_1 = arith.constant 0 : index
    %c0_2 = arith.constant 0 : index
    %c0_3 = arith.constant 0 : index
    %0 = vector.load %arg2[%c0, %c0_0, %c0_1, %c0_2, %c0_3] : memref<1x1x9x2x16xbf16, #tpu.memory_space<vmem>>, vector<1x1x9x2x16xbf16>
    %1 = vector.shape_cast %0 : vector<1x1x9x2x16xbf16> to vector<9x2x16xbf16>
    %2 = vector.extract_strided_slice %1 {offsets = [0, 0, 0], sizes = [8, 1, 16], strides = [1, 1, 1]} : vector<9x2x16xbf16> to vector<8x1x16xbf16>
    %3 = vector.shape_cast %2 : vector<8x1x16xbf16> to vector<8x16xbf16>
    %4 = vector.extract_strided_slice %1 {offsets = [0, 1, 0], sizes = [8, 1, 16], strides = [1, 1, 1]} : vector<9x2x16xbf16> to vector<8x1x16xbf16>
    %5 = vector.shape_cast %4 : vector<8x1x16xbf16> to vector<8x16xbf16>
    %6 = arith.maximumf %3, %5 : vector<8x16xbf16>
    %7 = vector.extract_strided_slice %1 {offsets = [1, 0, 0], sizes = [8, 1, 16], strides = [1, 1, 1]} : vector<9x2x16xbf16> to vector<8x1x16xbf16>
    %8 = vector.shape_cast %7 : vector<8x1x16xbf16> to vector<8x16xbf16>
    %9 = arith.maximumf %6, %8 : vector<8x16xbf16>
    %c0_4 = arith.constant 0 : index
    %c0_5 = arith.constant 0 : index
    %c0_6 = arith.constant 0 : index
    %c0_7 = arith.constant 0 : index
    %c0_8 = arith.constant 0 : index
    %10 = vector.load %arg3[%c0_4, %c0_5, %c0_6, %c0_7, %c0_8] : memref<1x1x9x2x16xbf16, #tpu.memory_space<vmem>>, vector<1x1x9x2x16xbf16>
    %11 = vector.shape_cast %10 : vector<1x1x9x2x16xbf16> to vector<9x2x16xbf16>
    %12 = vector.extract_strided_slice %11 {offsets = [0, 0, 0], sizes = [8, 1, 16], strides = [1, 1, 1]} : vector<9x2x16xbf16> to vector<8x1x16xbf16>
    %13 = vector.shape_cast %12 : vector<8x1x16xbf16> to vector<8x16xbf16>
    %14 = arith.maximumf %9, %13 : vector<8x16xbf16>
    %15 = vector.extract_strided_slice %11 {offsets = [0, 1, 0], sizes = [8, 1, 16], strides = [1, 1, 1]} : vector<9x2x16xbf16> to vector<8x1x16xbf16>
    %16 = vector.shape_cast %15 : vector<8x1x16xbf16> to vector<8x16xbf16>
    %17 = arith.maximumf %14, %16 : vector<8x16xbf16>
    %18 = vector.extract_strided_slice %11 {offsets = [1, 0, 0], sizes = [8, 1, 16], strides = [1, 1, 1]} : vector<9x2x16xbf16> to vector<8x1x16xbf16>
    %19 = vector.shape_cast %18 : vector<8x1x16xbf16> to vector<8x16xbf16>
    %20 = arith.maximumf %17, %19 : vector<8x16xbf16>
    %c0_9 = arith.constant 0 : index
    %c0_10 = arith.constant 0 : index
    %c0_11 = arith.constant 0 : index
    %c0_12 = arith.constant 0 : index
    %c0_13 = arith.constant 0 : index
    %21 = vector.load %arg4[%c0_9, %c0_10, %c0_11, %c0_12, %c0_13] : memref<1x1x9x2x16xbf16, #tpu.memory_space<vmem>>, vector<1x1x9x2x16xbf16>
    %22 = vector.shape_cast %21 : vector<1x1x9x2x16xbf16> to vector<9x2x16xbf16>
    %23 = vector.extract_strided_slice %22 {offsets = [0, 0, 0], sizes = [8, 1, 16], strides = [1, 1, 1]} : vector<9x2x16xbf16> to vector<8x1x16xbf16>
    %24 = vector.shape_cast %23 : vector<8x1x16xbf16> to vector<8x16xbf16>
    %25 = arith.maximumf %20, %24 : vector<8x16xbf16>
    %26 = vector.extract_strided_slice %22 {offsets = [0, 1, 0], sizes = [8, 1, 16], strides = [1, 1, 1]} : vector<9x2x16xbf16> to vector<8x1x16xbf16>
    %27 = vector.shape_cast %26 : vector<8x1x16xbf16> to vector<8x16xbf16>
    %28 = arith.maximumf %25, %27 : vector<8x16xbf16>
    %29 = vector.extract_strided_slice %22 {offsets = [1, 0, 0], sizes = [8, 1, 16], strides = [1, 1, 1]} : vector<9x2x16xbf16> to vector<8x1x16xbf16>
    %30 = vector.shape_cast %29 : vector<8x1x16xbf16> to vector<8x16xbf16>
    %31 = arith.maximumf %28, %30 : vector<8x16xbf16>
    %c0_14 = arith.constant 0 : index
    %c0_15 = arith.constant 0 : index
    %c0_16 = arith.constant 0 : index
    %c0_17 = arith.constant 0 : index
    %32 = vector.load %arg5[%c0_14, %c0_15, %c0_16, %c0_17] : memref<1x1x8x16xbf16, #tpu.memory_space<vmem>>, vector<1x1x8x16xbf16>
    %33 = vector.shape_cast %32 : vector<1x1x8x16xbf16> to vector<8x16xbf16>
    %34 = vector.shape_cast %31 : vector<8x16xbf16> to vector<1x1x8x16xbf16>
    tpu.vector_store %arg5[%c0_14, %c0_15, %c0_16, %c0_17], %34 {strides = array<i32>} : memref<1x1x8x16xbf16, #tpu.memory_space<vmem>>, vector<1x1x8x16xbf16>,
    return
  }
  func.func @transform_0(%arg0: i32, %arg1: i32) -> (i32, i32, i32, i32, i32) {
    %c2_i32 = arith.constant 2 : i32
    %0 = arith.muli %c2_i32, %arg1 : i32
    %c0_i32 = arith.constant 0 : i32
    %1 = arith.addi %0, %c0_i32 : i32
    %c0_i32_0 = arith.constant 0 : i32
    %c0_i32_1 = arith.constant 0 : i32
    %c0_i32_2 = arith.constant 0 : i32
    %c0_i32_3 = arith.constant 0 : i32
    return %arg0, %1, %c0_i32_0, %c0_i32_1, %c0_i32_2 : i32, i32, i32, i32, i32
  }
  func.func @transform_1(%arg0: i32, %arg1: i32) -> (i32, i32, i32, i32, i32) {
    %c2_i32 = arith.constant 2 : i32
    %0 = arith.muli %c2_i32, %arg1 : i32
    %c1_i32 = arith.constant 1 : i32
    %1 = arith.addi %0, %c1_i32 : i32
    %c0_i32 = arith.constant 0 : i32
    %c0_i32_0 = arith.constant 0 : i32
    %c0_i32_1 = arith.constant 0 : i32
    %c0_i32_2 = arith.constant 0 : i32
    return %arg0, %1, %c0_i32, %c0_i32_0, %c0_i32_1 : i32, i32, i32, i32, i32
  }
  func.func @transform_2(%arg0: i32, %arg1: i32) -> (i32, i32, i32, i32, i32) {
    %c2_i32 = arith.constant 2 : i32
    %0 = arith.muli %c2_i32, %arg1 : i32
    %c2_i32_0 = arith.constant 2 : i32
    %1 = arith.addi %0, %c2_i32_0 : i32
    %c0_i32 = arith.constant 0 : i32
    %c0_i32_1 = arith.constant 0 : i32
    %c0_i32_2 = arith.constant 0 : i32
    %c0_i32_3 = arith.constant 0 : i32
    return %arg0, %1, %c0_i32, %c0_i32_1, %c0_i32_2 : i32, i32, i32, i32, i32
  }
  func.func @transform_3(%arg0: i32, %arg1: i32) -> (i32, i32, i32, i32) {
    %c0_i32 = arith.constant 0 : i32
    %c0_i32_0 = arith.constant 0 : i32
    %c0_i32_1 = arith.constant 0 : i32
    return %arg0, %arg1, %c0_i32, %c0_i32_0 : i32, i32, i32, i32
  }
}

module attributes {stable_mosaic.version = 11 : i64} {
  func.func @_fused_matmul_kernel(%arg0: i32, %arg1: memref<64x16xbf16, #tpu.memory_space<vmem>>, %arg2: memref<16x16xbf16, #tpu.memory_space<vmem>>, %arg3: memref<1x16xf32, #tpu.memory_space<vmem>>, %arg4: memref<1x16xf32, #tpu.memory_space<vmem>>, %arg5: memref<1x16xf32, #tpu.memory_space<vmem>>, %arg6: memref<1x16xf32, #tpu.memory_space<vmem>>, %arg7: memref<64x16xbf16, #tpu.memory_space<vmem>>) attributes {dimension_semantics = [#tpu.dimension_semantics<parallel>], iteration_bounds = array<i64: 2>, scalar_prefetch = 0 : i64, scratch_operands = 0 : i64, tpu.core_type = #tpu.core_type<tc>, window_params = [{transform_indices = @transform_0, window_bounds = array<i64: 64, 16>}, {pipeline_mode = #tpu.pipeline_mode<synchronous>, transform_indices = @transform_1, window_bounds = array<i64: 16, 16>}, {pipeline_mode = #tpu.pipeline_mode<synchronous>, transform_indices = @transform_2, window_bounds = array<i64: 1, 16>}, {pipeline_mode = #tpu.pipeline_mode<synchronous>, transform_indices = @transform_3, window_bounds = array<i64: 1, 16>}, {pipeline_mode = #tpu.pipeline_mode<synchronous>, transform_indices = @transform_4, window_bounds = array<i64: 1, 16>}, {pipeline_mode = #tpu.pipeline_mode<synchronous>, transform_indices = @transform_5, window_bounds = array<i64: 1, 16>}, {transform_indices = @transform_6, window_bounds = array<i64: 64, 16>}]} {
    %c0 = arith.constant 0 : index
    %c0_0 = arith.constant 0 : index
    %0 = vector.load %arg1[%c0, %c0_0] : memref<64x16xbf16, #tpu.memory_space<vmem>>, vector<64x16xbf16>
    %1 = arith.extf %0 : vector<64x16xbf16> to vector<64x16xf32>
    %c0_1 = arith.constant 0 : index
    %c0_2 = arith.constant 0 : index
    %2 = vector.load %arg3[%c0_1, %c0_2] : memref<1x16xf32, #tpu.memory_space<vmem>>, vector<1x16xf32>
    %3 = vector.broadcast %2 : vector<1x16xf32> to vector<64x16xf32>
    %4 = arith.mulf %1, %3 : vector<64x16xf32>
    %c0_3 = arith.constant 0 : index
    %c0_4 = arith.constant 0 : index
    %5 = vector.load %arg4[%c0_3, %c0_4] : memref<1x16xf32, #tpu.memory_space<vmem>>, vector<1x16xf32>
    %6 = vector.broadcast %5 : vector<1x16xf32> to vector<64x16xf32>
    %7 = arith.addf %4, %6 : vector<64x16xf32>
    %cst = arith.constant 0.000000e+00 : f32
    %8 = vector.broadcast %cst : f32 to vector<64x16xf32>
    %9 = arith.maximumf %7, %8 : vector<64x16xf32>
    %10 = arith.truncf %9 : vector<64x16xf32> to vector<64x16xbf16>
    %c0_5 = arith.constant 0 : index
    %c0_6 = arith.constant 0 : index
    %11 = vector.load %arg2[%c0_5, %c0_6] : memref<16x16xbf16, #tpu.memory_space<vmem>>, vector<16x16xbf16>
    %cst_7 = arith.constant dense<0.000000e+00> : vector<64x16xf32>
    %12 = tpu.matmul %10, %11, %cst_7 {dimension_numbers = #tpu.dot_dimension_numbers<[1], [0], [0], [1], [0, 0, 1, 1], [], []>} : vector<64x16xbf16>, vector<16x16xbf16>, vector<64x16xf32> -> vector<64x16xf32>
    %c0_8 = arith.constant 0 : index
    %c0_9 = arith.constant 0 : index
    %13 = vector.load %arg5[%c0_8, %c0_9] : memref<1x16xf32, #tpu.memory_space<vmem>>, vector<1x16xf32>
    %14 = vector.broadcast %13 : vector<1x16xf32> to vector<64x16xf32>
    %15 = arith.mulf %12, %14 : vector<64x16xf32>
    %c0_10 = arith.constant 0 : index
    %c0_11 = arith.constant 0 : index
    %16 = vector.load %arg6[%c0_10, %c0_11] : memref<1x16xf32, #tpu.memory_space<vmem>>, vector<1x16xf32>
    %17 = vector.broadcast %16 : vector<1x16xf32> to vector<64x16xf32>
    %18 = arith.addf %15, %17 : vector<64x16xf32>
    %cst_12 = arith.constant 0.000000e+00 : f32
    %19 = vector.broadcast %cst_12 : f32 to vector<64x16xf32>
    %20 = arith.maximumf %18, %19 : vector<64x16xf32>
    %21 = arith.truncf %20 : vector<64x16xf32> to vector<64x16xbf16>
    %c0_13 = arith.constant 0 : index
    %c0_14 = arith.constant 0 : index
    %22 = vector.load %arg7[%c0_13, %c0_14] : memref<64x16xbf16, #tpu.memory_space<vmem>>, vector<64x16xbf16>
    tpu.vector_store %arg7[%c0_13, %c0_14], %21 {strides = array<i32>} : memref<64x16xbf16, #tpu.memory_space<vmem>>, vector<64x16xbf16>,
    return
  }
  func.func @transform_0(%arg0: i32) -> (i32, i32) {
    %c0_i32 = arith.constant 0 : i32
    %c0_i32_0 = arith.constant 0 : i32
    return %arg0, %c0_i32 : i32, i32
  }
  func.func @transform_1(%arg0: i32) -> (i32, i32) {
    %c0_i32 = arith.constant 0 : i32
    %c0_i32_0 = arith.constant 0 : i32
    %c0_i32_1 = arith.constant 0 : i32
    return %c0_i32, %c0_i32_0 : i32, i32
  }
  func.func @transform_2(%arg0: i32) -> (i32, i32) {
    %c0_i32 = arith.constant 0 : i32
    %c0_i32_0 = arith.constant 0 : i32
    %c0_i32_1 = arith.constant 0 : i32
    return %c0_i32, %c0_i32_0 : i32, i32
  }
  func.func @transform_3(%arg0: i32) -> (i32, i32) {
    %c0_i32 = arith.constant 0 : i32
    %c0_i32_0 = arith.constant 0 : i32
    %c0_i32_1 = arith.constant 0 : i32
    return %c0_i32, %c0_i32_0 : i32, i32
  }
  func.func @transform_4(%arg0: i32) -> (i32, i32) {
    %c0_i32 = arith.constant 0 : i32
    %c0_i32_0 = arith.constant 0 : i32
    %c0_i32_1 = arith.constant 0 : i32
    return %c0_i32, %c0_i32_0 : i32, i32
  }
  func.func @transform_5(%arg0: i32) -> (i32, i32) {
    %c0_i32 = arith.constant 0 : i32
    %c0_i32_0 = arith.constant 0 : i32
    %c0_i32_1 = arith.constant 0 : i32
    return %c0_i32, %c0_i32_0 : i32, i32
  }
  func.func @transform_6(%arg0: i32) -> (i32, i32) {
    %c0_i32 = arith.constant 0 : i32
    %c0_i32_0 = arith.constant 0 : i32
    return %arg0, %c0_i32 : i32, i32
  }
}

module attributes {stable_mosaic.version = 11 : i64} {
  func.func @_conv3x3_concat_kernel(%arg0: i32, %arg1: i32, %arg2: memref<1x1x10x16xbf16, #tpu.memory_space<vmem>>, %arg3: memref<1x1x10x16xbf16, #tpu.memory_space<vmem>>, %arg4: memref<1x1x10x16xbf16, #tpu.memory_space<vmem>>, %arg5: memref<3x3x16x8xbf16, #tpu.memory_space<vmem>>, %arg6: memref<1x1x8x16xbf16, #tpu.memory_space<vmem>>, %arg7: memref<1x1x8x24xbf16, #tpu.memory_space<vmem>>) attributes {dimension_semantics = [#tpu.dimension_semantics<parallel>, #tpu.dimension_semantics<parallel>], iteration_bounds = array<i64: 2, 8>, scalar_prefetch = 0 : i64, scratch_operands = 0 : i64, tpu.core_type = #tpu.core_type<tc>, window_params = [{transform_indices = @transform_0, window_bounds = array<i64: 1, 1, 10, 16>}, {transform_indices = @transform_1, window_bounds = array<i64: 1, 1, 10, 16>}, {transform_indices = @transform_2, window_bounds = array<i64: 1, 1, 10, 16>}, {pipeline_mode = #tpu.pipeline_mode<synchronous>, transform_indices = @transform_3, window_bounds = array<i64: 3, 3, 16, 8>}, {transform_indices = @transform_4, window_bounds = array<i64: 1, 1, 8, 16>}, {transform_indices = @transform_5, window_bounds = array<i64: 1, 1, 8, 24>}]} {
    %c0 = arith.constant 0 : index
    %c0_0 = arith.constant 0 : index
    %c0_1 = arith.constant 0 : index
    %c0_2 = arith.constant 0 : index
    %0 = vector.load %arg5[%c0, %c0_0, %c0_1, %c0_2] : memref<3x3x16x8xbf16, #tpu.memory_space<vmem>>, vector<3x3x16x8xbf16>
    %c0_3 = arith.constant 0 : index
    %c0_4 = arith.constant 0 : index
    %c0_5 = arith.constant 0 : index
    %c0_6 = arith.constant 0 : index
    %1 = vector.load %arg2[%c0_3, %c0_4, %c0_5, %c0_6] : memref<1x1x10x16xbf16, #tpu.memory_space<vmem>>, vector<1x1x10x16xbf16>
    %2 = vector.shape_cast %1 : vector<1x1x10x16xbf16> to vector<10x16xbf16>
    %3 = vector.extract_strided_slice %2 {offsets = [0, 0], sizes = [8, 16], strides = [1, 1]} : vector<10x16xbf16> to vector<8x16xbf16>
    %4 = vector.extract_strided_slice %0 {offsets = [0, 0, 0, 0], sizes = [1, 1, 16, 8], strides = [1, 1, 1, 1]} : vector<3x3x16x8xbf16> to vector<1x1x16x8xbf16>
    %5 = vector.shape_cast %4 : vector<1x1x16x8xbf16> to vector<16x8xbf16>
    %cst = arith.constant dense<0.000000e+00> : vector<8x8xf32>
    %6 = tpu.matmul %3, %5, %cst {dimension_numbers = #tpu.dot_dimension_numbers<[1], [0], [0], [1], [0, 0, 1, 1], [], []>} : vector<8x16xbf16>, vector<16x8xbf16>, vector<8x8xf32> -> vector<8x8xf32>
    %7 = vector.extract_strided_slice %2 {offsets = [1, 0], sizes = [8, 16], strides = [1, 1]} : vector<10x16xbf16> to vector<8x16xbf16>
    %8 = vector.extract_strided_slice %0 {offsets = [0, 1, 0, 0], sizes = [1, 1, 16, 8], strides = [1, 1, 1, 1]} : vector<3x3x16x8xbf16> to vector<1x1x16x8xbf16>
    %9 = vector.shape_cast %8 : vector<1x1x16x8xbf16> to vector<16x8xbf16>
    %cst_7 = arith.constant dense<0.000000e+00> : vector<8x8xf32>
    %10 = tpu.matmul %7, %9, %cst_7 {dimension_numbers = #tpu.dot_dimension_numbers<[1], [0], [0], [1], [0, 0, 1, 1], [], []>} : vector<8x16xbf16>, vector<16x8xbf16>, vector<8x8xf32> -> vector<8x8xf32>
    %11 = arith.addf %6, %10 : vector<8x8xf32>
    %12 = vector.extract_strided_slice %2 {offsets = [2, 0], sizes = [8, 16], strides = [1, 1]} : vector<10x16xbf16> to vector<8x16xbf16>
    %13 = vector.extract_strided_slice %0 {offsets = [0, 2, 0, 0], sizes = [1, 1, 16, 8], strides = [1, 1, 1, 1]} : vector<3x3x16x8xbf16> to vector<1x1x16x8xbf16>
    %14 = vector.shape_cast %13 : vector<1x1x16x8xbf16> to vector<16x8xbf16>
    %cst_8 = arith.constant dense<0.000000e+00> : vector<8x8xf32>
    %15 = tpu.matmul %12, %14, %cst_8 {dimension_numbers = #tpu.dot_dimension_numbers<[1], [0], [0], [1], [0, 0, 1, 1], [], []>} : vector<8x16xbf16>, vector<16x8xbf16>, vector<8x8xf32> -> vector<8x8xf32>
    %16 = arith.addf %11, %15 : vector<8x8xf32>
    %c0_9 = arith.constant 0 : index
    %c0_10 = arith.constant 0 : index
    %c0_11 = arith.constant 0 : index
    %c0_12 = arith.constant 0 : index
    %17 = vector.load %arg3[%c0_9, %c0_10, %c0_11, %c0_12] : memref<1x1x10x16xbf16, #tpu.memory_space<vmem>>, vector<1x1x10x16xbf16>
    %18 = vector.shape_cast %17 : vector<1x1x10x16xbf16> to vector<10x16xbf16>
    %19 = vector.extract_strided_slice %18 {offsets = [0, 0], sizes = [8, 16], strides = [1, 1]} : vector<10x16xbf16> to vector<8x16xbf16>
    %20 = vector.extract_strided_slice %0 {offsets = [1, 0, 0, 0], sizes = [1, 1, 16, 8], strides = [1, 1, 1, 1]} : vector<3x3x16x8xbf16> to vector<1x1x16x8xbf16>
    %21 = vector.shape_cast %20 : vector<1x1x16x8xbf16> to vector<16x8xbf16>
    %cst_13 = arith.constant dense<0.000000e+00> : vector<8x8xf32>
    %22 = tpu.matmul %19, %21, %cst_13 {dimension_numbers = #tpu.dot_dimension_numbers<[1], [0], [0], [1], [0, 0, 1, 1], [], []>} : vector<8x16xbf16>, vector<16x8xbf16>, vector<8x8xf32> -> vector<8x8xf32>
    %23 = arith.addf %16, %22 : vector<8x8xf32>
    %24 = vector.extract_strided_slice %18 {offsets = [1, 0], sizes = [8, 16], strides = [1, 1]} : vector<10x16xbf16> to vector<8x16xbf16>
    %25 = vector.extract_strided_slice %0 {offsets = [1, 1, 0, 0], sizes = [1, 1, 16, 8], strides = [1, 1, 1, 1]} : vector<3x3x16x8xbf16> to vector<1x1x16x8xbf16>
    %26 = vector.shape_cast %25 : vector<1x1x16x8xbf16> to vector<16x8xbf16>
    %cst_14 = arith.constant dense<0.000000e+00> : vector<8x8xf32>
    %27 = tpu.matmul %24, %26, %cst_14 {dimension_numbers = #tpu.dot_dimension_numbers<[1], [0], [0], [1], [0, 0, 1, 1], [], []>} : vector<8x16xbf16>, vector<16x8xbf16>, vector<8x8xf32> -> vector<8x8xf32>
    %28 = arith.addf %23, %27 : vector<8x8xf32>
    %29 = vector.extract_strided_slice %18 {offsets = [2, 0], sizes = [8, 16], strides = [1, 1]} : vector<10x16xbf16> to vector<8x16xbf16>
    %30 = vector.extract_strided_slice %0 {offsets = [1, 2, 0, 0], sizes = [1, 1, 16, 8], strides = [1, 1, 1, 1]} : vector<3x3x16x8xbf16> to vector<1x1x16x8xbf16>
    %31 = vector.shape_cast %30 : vector<1x1x16x8xbf16> to vector<16x8xbf16>
    %cst_15 = arith.constant dense<0.000000e+00> : vector<8x8xf32>
    %32 = tpu.matmul %29, %31, %cst_15 {dimension_numbers = #tpu.dot_dimension_numbers<[1], [0], [0], [1], [0, 0, 1, 1], [], []>} : vector<8x16xbf16>, vector<16x8xbf16>, vector<8x8xf32> -> vector<8x8xf32>
    %33 = arith.addf %28, %32 : vector<8x8xf32>
    %c0_16 = arith.constant 0 : index
    %c0_17 = arith.constant 0 : index
    %c0_18 = arith.constant 0 : index
    %c0_19 = arith.constant 0 : index
    %34 = vector.load %arg4[%c0_16, %c0_17, %c0_18, %c0_19] : memref<1x1x10x16xbf16, #tpu.memory_space<vmem>>, vector<1x1x10x16xbf16>
    %35 = vector.shape_cast %34 : vector<1x1x10x16xbf16> to vector<10x16xbf16>
    %36 = vector.extract_strided_slice %35 {offsets = [0, 0], sizes = [8, 16], strides = [1, 1]} : vector<10x16xbf16> to vector<8x16xbf16>
    %37 = vector.extract_strided_slice %0 {offsets = [2, 0, 0, 0], sizes = [1, 1, 16, 8], strides = [1, 1, 1, 1]} : vector<3x3x16x8xbf16> to vector<1x1x16x8xbf16>
    %38 = vector.shape_cast %37 : vector<1x1x16x8xbf16> to vector<16x8xbf16>
    %cst_20 = arith.constant dense<0.000000e+00> : vector<8x8xf32>
    %39 = tpu.matmul %36, %38, %cst_20 {dimension_numbers = #tpu.dot_dimension_numbers<[1], [0], [0], [1], [0, 0, 1, 1], [], []>} : vector<8x16xbf16>, vector<16x8xbf16>, vector<8x8xf32> -> vector<8x8xf32>
    %40 = arith.addf %33, %39 : vector<8x8xf32>
    %41 = vector.extract_strided_slice %35 {offsets = [1, 0], sizes = [8, 16], strides = [1, 1]} : vector<10x16xbf16> to vector<8x16xbf16>
    %42 = vector.extract_strided_slice %0 {offsets = [2, 1, 0, 0], sizes = [1, 1, 16, 8], strides = [1, 1, 1, 1]} : vector<3x3x16x8xbf16> to vector<1x1x16x8xbf16>
    %43 = vector.shape_cast %42 : vector<1x1x16x8xbf16> to vector<16x8xbf16>
    %cst_21 = arith.constant dense<0.000000e+00> : vector<8x8xf32>
    %44 = tpu.matmul %41, %43, %cst_21 {dimension_numbers = #tpu.dot_dimension_numbers<[1], [0], [0], [1], [0, 0, 1, 1], [], []>} : vector<8x16xbf16>, vector<16x8xbf16>, vector<8x8xf32> -> vector<8x8xf32>
    %45 = arith.addf %40, %44 : vector<8x8xf32>
    %46 = vector.extract_strided_slice %35 {offsets = [2, 0], sizes = [8, 16], strides = [1, 1]} : vector<10x16xbf16> to vector<8x16xbf16>
    %47 = vector.extract_strided_slice %0 {offsets = [2, 2, 0, 0], sizes = [1, 1, 16, 8], strides = [1, 1, 1, 1]} : vector<3x3x16x8xbf16> to vector<1x1x16x8xbf16>
    %48 = vector.shape_cast %47 : vector<1x1x16x8xbf16> to vector<16x8xbf16>
    %cst_22 = arith.constant dense<0.000000e+00> : vector<8x8xf32>
    %49 = tpu.matmul %46, %48, %cst_22 {dimension_numbers = #tpu.dot_dimension_numbers<[1], [0], [0], [1], [0, 0, 1, 1], [], []>} : vector<8x16xbf16>, vector<16x8xbf16>, vector<8x8xf32> -> vector<8x8xf32>
    %50 = arith.addf %45, %49 : vector<8x8xf32>
    %51 = arith.truncf %50 : vector<8x8xf32> to vector<8x8xbf16>
    %c0_23 = arith.constant 0 : index
    %c0_24 = arith.constant 0 : index
    %c0_25 = arith.constant 0 : index
    %c0_26 = arith.constant 0 : index
    %52 = vector.load %arg6[%c0_23, %c0_24, %c0_25, %c0_26] : memref<1x1x8x16xbf16, #tpu.memory_space<vmem>>, vector<1x1x8x16xbf16>
    %53 = vector.shape_cast %52 : vector<1x1x8x16xbf16> to vector<8x16xbf16>
    %54 = tpu.concatenate %53, %51 in 1 : vector<8x16xbf16>, vector<8x8xbf16> -> vector<8x24xbf16>
    %c0_27 = arith.constant 0 : index
    %c0_28 = arith.constant 0 : index
    %c0_29 = arith.constant 0 : index
    %c0_30 = arith.constant 0 : index
    %55 = vector.load %arg7[%c0_27, %c0_28, %c0_29, %c0_30] : memref<1x1x8x24xbf16, #tpu.memory_space<vmem>>, vector<1x1x8x24xbf16>
    %56 = vector.shape_cast %55 : vector<1x1x8x24xbf16> to vector<8x24xbf16>
    %57 = vector.shape_cast %54 : vector<8x24xbf16> to vector<1x1x8x24xbf16>
    tpu.vector_store %arg7[%c0_27, %c0_28, %c0_29, %c0_30], %57 {strides = array<i32>} : memref<1x1x8x24xbf16, #tpu.memory_space<vmem>>, vector<1x1x8x24xbf16>,
    return
  }
  func.func @transform_0(%arg0: i32, %arg1: i32) -> (i32, i32, i32, i32) {
    %c0_i32 = arith.constant 0 : i32
    %0 = arith.addi %arg1, %c0_i32 : i32
    %c0_i32_0 = arith.constant 0 : i32
    %c0_i32_1 = arith.constant 0 : i32
    %c0_i32_2 = arith.constant 0 : i32
    return %arg0, %0, %c0_i32_0, %c0_i32_1 : i32, i32, i32, i32
  }
  func.func @transform_1(%arg0: i32, %arg1: i32) -> (i32, i32, i32, i32) {
    %c1_i32 = arith.constant 1 : i32
    %0 = arith.addi %arg1, %c1_i32 : i32
    %c0_i32 = arith.constant 0 : i32
    %c0_i32_0 = arith.constant 0 : i32
    %c0_i32_1 = arith.constant 0 : i32
    return %arg0, %0, %c0_i32, %c0_i32_0 : i32, i32, i32, i32
  }
  func.func @transform_2(%arg0: i32, %arg1: i32) -> (i32, i32, i32, i32) {
    %c2_i32 = arith.constant 2 : i32
    %0 = arith.addi %arg1, %c2_i32 : i32
    %c0_i32 = arith.constant 0 : i32
    %c0_i32_0 = arith.constant 0 : i32
    %c0_i32_1 = arith.constant 0 : i32
    return %arg0, %0, %c0_i32, %c0_i32_0 : i32, i32, i32, i32
  }
  func.func @transform_3(%arg0: i32, %arg1: i32) -> (i32, i32, i32, i32) {
    %c0_i32 = arith.constant 0 : i32
    %c0_i32_0 = arith.constant 0 : i32
    %c0_i32_1 = arith.constant 0 : i32
    %c0_i32_2 = arith.constant 0 : i32
    %c0_i32_3 = arith.constant 0 : i32
    return %c0_i32, %c0_i32_0, %c0_i32_1, %c0_i32_2 : i32, i32, i32, i32
  }
  func.func @transform_4(%arg0: i32, %arg1: i32) -> (i32, i32, i32, i32) {
    %c0_i32 = arith.constant 0 : i32
    %c0_i32_0 = arith.constant 0 : i32
    %c0_i32_1 = arith.constant 0 : i32
    return %arg0, %arg1, %c0_i32, %c0_i32_0 : i32, i32, i32, i32
  }
  func.func @transform_5(%arg0: i32, %arg1: i32) -> (i32, i32, i32, i32) {
    %c0_i32 = arith.constant 0 : i32
    %c0_i32_0 = arith.constant 0 : i32
    %c0_i32_1 = arith.constant 0 : i32
    return %arg0, %arg1, %c0_i32, %c0_i32_0 : i32, i32, i32, i32
  }
}

module attributes {stable_mosaic.version = 11 : i64} {
  func.func @_fused_matmul_kernel(%arg0: i32, %arg1: memref<64x24xbf16, #tpu.memory_space<vmem>>, %arg2: memref<24x16xbf16, #tpu.memory_space<vmem>>, %arg3: memref<1x24xf32, #tpu.memory_space<vmem>>, %arg4: memref<1x24xf32, #tpu.memory_space<vmem>>, %arg5: memref<1x16xf32, #tpu.memory_space<vmem>>, %arg6: memref<1x16xf32, #tpu.memory_space<vmem>>, %arg7: memref<64x16xbf16, #tpu.memory_space<vmem>>) attributes {dimension_semantics = [#tpu.dimension_semantics<parallel>], iteration_bounds = array<i64: 2>, scalar_prefetch = 0 : i64, scratch_operands = 0 : i64, tpu.core_type = #tpu.core_type<tc>, window_params = [{transform_indices = @transform_0, window_bounds = array<i64: 64, 24>}, {pipeline_mode = #tpu.pipeline_mode<synchronous>, transform_indices = @transform_1, window_bounds = array<i64: 24, 16>}, {pipeline_mode = #tpu.pipeline_mode<synchronous>, transform_indices = @transform_2, window_bounds = array<i64: 1, 24>}, {pipeline_mode = #tpu.pipeline_mode<synchronous>, transform_indices = @transform_3, window_bounds = array<i64: 1, 24>}, {pipeline_mode = #tpu.pipeline_mode<synchronous>, transform_indices = @transform_4, window_bounds = array<i64: 1, 16>}, {pipeline_mode = #tpu.pipeline_mode<synchronous>, transform_indices = @transform_5, window_bounds = array<i64: 1, 16>}, {transform_indices = @transform_6, window_bounds = array<i64: 64, 16>}]} {
    %c0 = arith.constant 0 : index
    %c0_0 = arith.constant 0 : index
    %0 = vector.load %arg1[%c0, %c0_0] : memref<64x24xbf16, #tpu.memory_space<vmem>>, vector<64x24xbf16>
    %1 = arith.extf %0 : vector<64x24xbf16> to vector<64x24xf32>
    %c0_1 = arith.constant 0 : index
    %c0_2 = arith.constant 0 : index
    %2 = vector.load %arg3[%c0_1, %c0_2] : memref<1x24xf32, #tpu.memory_space<vmem>>, vector<1x24xf32>
    %3 = vector.broadcast %2 : vector<1x24xf32> to vector<64x24xf32>
    %4 = arith.mulf %1, %3 : vector<64x24xf32>
    %c0_3 = arith.constant 0 : index
    %c0_4 = arith.constant 0 : index
    %5 = vector.load %arg4[%c0_3, %c0_4] : memref<1x24xf32, #tpu.memory_space<vmem>>, vector<1x24xf32>
    %6 = vector.broadcast %5 : vector<1x24xf32> to vector<64x24xf32>
    %7 = arith.addf %4, %6 : vector<64x24xf32>
    %cst = arith.constant 0.000000e+00 : f32
    %8 = vector.broadcast %cst : f32 to vector<64x24xf32>
    %9 = arith.maximumf %7, %8 : vector<64x24xf32>
    %10 = arith.truncf %9 : vector<64x24xf32> to vector<64x24xbf16>
    %c0_5 = arith.constant 0 : index
    %c0_6 = arith.constant 0 : index
    %11 = vector.load %arg2[%c0_5, %c0_6] : memref<24x16xbf16, #tpu.memory_space<vmem>>, vector<24x16xbf16>
    %cst_7 = arith.constant dense<0.000000e+00> : vector<64x16xf32>
    %12 = tpu.matmul %10, %11, %cst_7 {dimension_numbers = #tpu.dot_dimension_numbers<[1], [0], [0], [1], [0, 0, 1, 1], [], []>} : vector<64x24xbf16>, vector<24x16xbf16>, vector<64x16xf32> -> vector<64x16xf32>
    %c0_8 = arith.constant 0 : index
    %c0_9 = arith.constant 0 : index
    %13 = vector.load %arg5[%c0_8, %c0_9] : memref<1x16xf32, #tpu.memory_space<vmem>>, vector<1x16xf32>
    %14 = vector.broadcast %13 : vector<1x16xf32> to vector<64x16xf32>
    %15 = arith.mulf %12, %14 : vector<64x16xf32>
    %c0_10 = arith.constant 0 : index
    %c0_11 = arith.constant 0 : index
    %16 = vector.load %arg6[%c0_10, %c0_11] : memref<1x16xf32, #tpu.memory_space<vmem>>, vector<1x16xf32>
    %17 = vector.broadcast %16 : vector<1x16xf32> to vector<64x16xf32>
    %18 = arith.addf %15, %17 : vector<64x16xf32>
    %cst_12 = arith.constant 0.000000e+00 : f32
    %19 = vector.broadcast %cst_12 : f32 to vector<64x16xf32>
    %20 = arith.maximumf %18, %19 : vector<64x16xf32>
    %21 = arith.truncf %20 : vector<64x16xf32> to vector<64x16xbf16>
    %c0_13 = arith.constant 0 : index
    %c0_14 = arith.constant 0 : index
    %22 = vector.load %arg7[%c0_13, %c0_14] : memref<64x16xbf16, #tpu.memory_space<vmem>>, vector<64x16xbf16>
    tpu.vector_store %arg7[%c0_13, %c0_14], %21 {strides = array<i32>} : memref<64x16xbf16, #tpu.memory_space<vmem>>, vector<64x16xbf16>,
    return
  }
  func.func @transform_0(%arg0: i32) -> (i32, i32) {
    %c0_i32 = arith.constant 0 : i32
    %c0_i32_0 = arith.constant 0 : i32
    return %arg0, %c0_i32 : i32, i32
  }
  func.func @transform_1(%arg0: i32) -> (i32, i32) {
    %c0_i32 = arith.constant 0 : i32
    %c0_i32_0 = arith.constant 0 : i32
    %c0_i32_1 = arith.constant 0 : i32
    return %c0_i32, %c0_i32_0 : i32, i32
  }
  func.func @transform_2(%arg0: i32) -> (i32, i32) {
    %c0_i32 = arith.constant 0 : i32
    %c0_i32_0 = arith.constant 0 : i32
    %c0_i32_1 = arith.constant 0 : i32
    return %c0_i32, %c0_i32_0 : i32, i32
  }
  func.func @transform_3(%arg0: i32) -> (i32, i32) {
    %c0_i32 = arith.constant 0 : i32
    %c0_i32_0 = arith.constant 0 : i32
    %c0_i32_1 = arith.constant 0 : i32
    return %c0_i32, %c0_i32_0 : i32, i32
  }
  func.func @transform_4(%arg0: i32) -> (i32, i32) {
    %c0_i32 = arith.constant 0 : i32
    %c0_i32_0 = arith.constant 0 : i32
    %c0_i32_1 = arith.constant 0 : i32
    return %c0_i32, %c0_i32_0 : i32, i32
  }
  func.func @transform_5(%arg0: i32) -> (i32, i32) {
    %c0_i32 = arith.constant 0 : i32
    %c0_i32_0 = arith.constant 0 : i32
    %c0_i32_1 = arith.constant 0 : i32
    return %c0_i32, %c0_i32_0 : i32, i32
  }
  func.func @transform_6(%arg0: i32) -> (i32, i32) {
    %c0_i32 = arith.constant 0 : i32
    %c0_i32_0 = arith.constant 0 : i32
    return %arg0, %c0_i32 : i32, i32
  }
}

module attributes {stable_mosaic.version = 11 : i64} {
  func.func @_conv3x3_concat_kernel(%arg0: i32, %arg1: i32, %arg2: memref<1x1x10x16xbf16, #tpu.memory_space<vmem>>, %arg3: memref<1x1x10x16xbf16, #tpu.memory_space<vmem>>, %arg4: memref<1x1x10x16xbf16, #tpu.memory_space<vmem>>, %arg5: memref<3x3x16x8xbf16, #tpu.memory_space<vmem>>, %arg6: memref<1x1x8x24xbf16, #tpu.memory_space<vmem>>, %arg7: memref<1x1x8x32xbf16, #tpu.memory_space<vmem>>) attributes {dimension_semantics = [#tpu.dimension_semantics<parallel>, #tpu.dimension_semantics<parallel>], iteration_bounds = array<i64: 2, 8>, scalar_prefetch = 0 : i64, scratch_operands = 0 : i64, tpu.core_type = #tpu.core_type<tc>, window_params = [{transform_indices = @transform_0, window_bounds = array<i64: 1, 1, 10, 16>}, {transform_indices = @transform_1, window_bounds = array<i64: 1, 1, 10, 16>}, {transform_indices = @transform_2, window_bounds = array<i64: 1, 1, 10, 16>}, {pipeline_mode = #tpu.pipeline_mode<synchronous>, transform_indices = @transform_3, window_bounds = array<i64: 3, 3, 16, 8>}, {transform_indices = @transform_4, window_bounds = array<i64: 1, 1, 8, 24>}, {transform_indices = @transform_5, window_bounds = array<i64: 1, 1, 8, 32>}]} {
    %c0 = arith.constant 0 : index
    %c0_0 = arith.constant 0 : index
    %c0_1 = arith.constant 0 : index
    %c0_2 = arith.constant 0 : index
    %0 = vector.load %arg5[%c0, %c0_0, %c0_1, %c0_2] : memref<3x3x16x8xbf16, #tpu.memory_space<vmem>>, vector<3x3x16x8xbf16>
    %c0_3 = arith.constant 0 : index
    %c0_4 = arith.constant 0 : index
    %c0_5 = arith.constant 0 : index
    %c0_6 = arith.constant 0 : index
    %1 = vector.load %arg2[%c0_3, %c0_4, %c0_5, %c0_6] : memref<1x1x10x16xbf16, #tpu.memory_space<vmem>>, vector<1x1x10x16xbf16>
    %2 = vector.shape_cast %1 : vector<1x1x10x16xbf16> to vector<10x16xbf16>
    %3 = vector.extract_strided_slice %2 {offsets = [0, 0], sizes = [8, 16], strides = [1, 1]} : vector<10x16xbf16> to vector<8x16xbf16>
    %4 = vector.extract_strided_slice %0 {offsets = [0, 0, 0, 0], sizes = [1, 1, 16, 8], strides = [1, 1, 1, 1]} : vector<3x3x16x8xbf16> to vector<1x1x16x8xbf16>
    %5 = vector.shape_cast %4 : vector<1x1x16x8xbf16> to vector<16x8xbf16>
    %cst = arith.constant dense<0.000000e+00> : vector<8x8xf32>
    %6 = tpu.matmul %3, %5, %cst {dimension_numbers = #tpu.dot_dimension_numbers<[1], [0], [0], [1], [0, 0, 1, 1], [], []>} : vector<8x16xbf16>, vector<16x8xbf16>, vector<8x8xf32> -> vector<8x8xf32>
    %7 = vector.extract_strided_slice %2 {offsets = [1, 0], sizes = [8, 16], strides = [1, 1]} : vector<10x16xbf16> to vector<8x16xbf16>
    %8 = vector.extract_strided_slice %0 {offsets = [0, 1, 0, 0], sizes = [1, 1, 16, 8], strides = [1, 1, 1, 1]} : vector<3x3x16x8xbf16> to vector<1x1x16x8xbf16>
    %9 = vector.shape_cast %8 : vector<1x1x16x8xbf16> to vector<16x8xbf16>
    %cst_7 = arith.constant dense<0.000000e+00> : vector<8x8xf32>
    %10 = tpu.matmul %7, %9, %cst_7 {dimension_numbers = #tpu.dot_dimension_numbers<[1], [0], [0], [1], [0, 0, 1, 1], [], []>} : vector<8x16xbf16>, vector<16x8xbf16>, vector<8x8xf32> -> vector<8x8xf32>
    %11 = arith.addf %6, %10 : vector<8x8xf32>
    %12 = vector.extract_strided_slice %2 {offsets = [2, 0], sizes = [8, 16], strides = [1, 1]} : vector<10x16xbf16> to vector<8x16xbf16>
    %13 = vector.extract_strided_slice %0 {offsets = [0, 2, 0, 0], sizes = [1, 1, 16, 8], strides = [1, 1, 1, 1]} : vector<3x3x16x8xbf16> to vector<1x1x16x8xbf16>
    %14 = vector.shape_cast %13 : vector<1x1x16x8xbf16> to vector<16x8xbf16>
    %cst_8 = arith.constant dense<0.000000e+00> : vector<8x8xf32>
    %15 = tpu.matmul %12, %14, %cst_8 {dimension_numbers = #tpu.dot_dimension_numbers<[1], [0], [0], [1], [0, 0, 1, 1], [], []>} : vector<8x16xbf16>, vector<16x8xbf16>, vector<8x8xf32> -> vector<8x8xf32>
    %16 = arith.addf %11, %15 : vector<8x8xf32>
    %c0_9 = arith.constant 0 : index
    %c0_10 = arith.constant 0 : index
    %c0_11 = arith.constant 0 : index
    %c0_12 = arith.constant 0 : index
    %17 = vector.load %arg3[%c0_9, %c0_10, %c0_11, %c0_12] : memref<1x1x10x16xbf16, #tpu.memory_space<vmem>>, vector<1x1x10x16xbf16>
    %18 = vector.shape_cast %17 : vector<1x1x10x16xbf16> to vector<10x16xbf16>
    %19 = vector.extract_strided_slice %18 {offsets = [0, 0], sizes = [8, 16], strides = [1, 1]} : vector<10x16xbf16> to vector<8x16xbf16>
    %20 = vector.extract_strided_slice %0 {offsets = [1, 0, 0, 0], sizes = [1, 1, 16, 8], strides = [1, 1, 1, 1]} : vector<3x3x16x8xbf16> to vector<1x1x16x8xbf16>
    %21 = vector.shape_cast %20 : vector<1x1x16x8xbf16> to vector<16x8xbf16>
    %cst_13 = arith.constant dense<0.000000e+00> : vector<8x8xf32>
    %22 = tpu.matmul %19, %21, %cst_13 {dimension_numbers = #tpu.dot_dimension_numbers<[1], [0], [0], [1], [0, 0, 1, 1], [], []>} : vector<8x16xbf16>, vector<16x8xbf16>, vector<8x8xf32> -> vector<8x8xf32>
    %23 = arith.addf %16, %22 : vector<8x8xf32>
    %24 = vector.extract_strided_slice %18 {offsets = [1, 0], sizes = [8, 16], strides = [1, 1]} : vector<10x16xbf16> to vector<8x16xbf16>
    %25 = vector.extract_strided_slice %0 {offsets = [1, 1, 0, 0], sizes = [1, 1, 16, 8], strides = [1, 1, 1, 1]} : vector<3x3x16x8xbf16> to vector<1x1x16x8xbf16>
    %26 = vector.shape_cast %25 : vector<1x1x16x8xbf16> to vector<16x8xbf16>
    %cst_14 = arith.constant dense<0.000000e+00> : vector<8x8xf32>
    %27 = tpu.matmul %24, %26, %cst_14 {dimension_numbers = #tpu.dot_dimension_numbers<[1], [0], [0], [1], [0, 0, 1, 1], [], []>} : vector<8x16xbf16>, vector<16x8xbf16>, vector<8x8xf32> -> vector<8x8xf32>
    %28 = arith.addf %23, %27 : vector<8x8xf32>
    %29 = vector.extract_strided_slice %18 {offsets = [2, 0], sizes = [8, 16], strides = [1, 1]} : vector<10x16xbf16> to vector<8x16xbf16>
    %30 = vector.extract_strided_slice %0 {offsets = [1, 2, 0, 0], sizes = [1, 1, 16, 8], strides = [1, 1, 1, 1]} : vector<3x3x16x8xbf16> to vector<1x1x16x8xbf16>
    %31 = vector.shape_cast %30 : vector<1x1x16x8xbf16> to vector<16x8xbf16>
    %cst_15 = arith.constant dense<0.000000e+00> : vector<8x8xf32>
    %32 = tpu.matmul %29, %31, %cst_15 {dimension_numbers = #tpu.dot_dimension_numbers<[1], [0], [0], [1], [0, 0, 1, 1], [], []>} : vector<8x16xbf16>, vector<16x8xbf16>, vector<8x8xf32> -> vector<8x8xf32>
    %33 = arith.addf %28, %32 : vector<8x8xf32>
    %c0_16 = arith.constant 0 : index
    %c0_17 = arith.constant 0 : index
    %c0_18 = arith.constant 0 : index
    %c0_19 = arith.constant 0 : index
    %34 = vector.load %arg4[%c0_16, %c0_17, %c0_18, %c0_19] : memref<1x1x10x16xbf16, #tpu.memory_space<vmem>>, vector<1x1x10x16xbf16>
    %35 = vector.shape_cast %34 : vector<1x1x10x16xbf16> to vector<10x16xbf16>
    %36 = vector.extract_strided_slice %35 {offsets = [0, 0], sizes = [8, 16], strides = [1, 1]} : vector<10x16xbf16> to vector<8x16xbf16>
    %37 = vector.extract_strided_slice %0 {offsets = [2, 0, 0, 0], sizes = [1, 1, 16, 8], strides = [1, 1, 1, 1]} : vector<3x3x16x8xbf16> to vector<1x1x16x8xbf16>
    %38 = vector.shape_cast %37 : vector<1x1x16x8xbf16> to vector<16x8xbf16>
    %cst_20 = arith.constant dense<0.000000e+00> : vector<8x8xf32>
    %39 = tpu.matmul %36, %38, %cst_20 {dimension_numbers = #tpu.dot_dimension_numbers<[1], [0], [0], [1], [0, 0, 1, 1], [], []>} : vector<8x16xbf16>, vector<16x8xbf16>, vector<8x8xf32> -> vector<8x8xf32>
    %40 = arith.addf %33, %39 : vector<8x8xf32>
    %41 = vector.extract_strided_slice %35 {offsets = [1, 0], sizes = [8, 16], strides = [1, 1]} : vector<10x16xbf16> to vector<8x16xbf16>
    %42 = vector.extract_strided_slice %0 {offsets = [2, 1, 0, 0], sizes = [1, 1, 16, 8], strides = [1, 1, 1, 1]} : vector<3x3x16x8xbf16> to vector<1x1x16x8xbf16>
    %43 = vector.shape_cast %42 : vector<1x1x16x8xbf16> to vector<16x8xbf16>
    %cst_21 = arith.constant dense<0.000000e+00> : vector<8x8xf32>
    %44 = tpu.matmul %41, %43, %cst_21 {dimension_numbers = #tpu.dot_dimension_numbers<[1], [0], [0], [1], [0, 0, 1, 1], [], []>} : vector<8x16xbf16>, vector<16x8xbf16>, vector<8x8xf32> -> vector<8x8xf32>
    %45 = arith.addf %40, %44 : vector<8x8xf32>
    %46 = vector.extract_strided_slice %35 {offsets = [2, 0], sizes = [8, 16], strides = [1, 1]} : vector<10x16xbf16> to vector<8x16xbf16>
    %47 = vector.extract_strided_slice %0 {offsets = [2, 2, 0, 0], sizes = [1, 1, 16, 8], strides = [1, 1, 1, 1]} : vector<3x3x16x8xbf16> to vector<1x1x16x8xbf16>
    %48 = vector.shape_cast %47 : vector<1x1x16x8xbf16> to vector<16x8xbf16>
    %cst_22 = arith.constant dense<0.000000e+00> : vector<8x8xf32>
    %49 = tpu.matmul %46, %48, %cst_22 {dimension_numbers = #tpu.dot_dimension_numbers<[1], [0], [0], [1], [0, 0, 1, 1], [], []>} : vector<8x16xbf16>, vector<16x8xbf16>, vector<8x8xf32> -> vector<8x8xf32>
    %50 = arith.addf %45, %49 : vector<8x8xf32>
    %51 = arith.truncf %50 : vector<8x8xf32> to vector<8x8xbf16>
    %c0_23 = arith.constant 0 : index
    %c0_24 = arith.constant 0 : index
    %c0_25 = arith.constant 0 : index
    %c0_26 = arith.constant 0 : index
    %52 = vector.load %arg6[%c0_23, %c0_24, %c0_25, %c0_26] : memref<1x1x8x24xbf16, #tpu.memory_space<vmem>>, vector<1x1x8x24xbf16>
    %53 = vector.shape_cast %52 : vector<1x1x8x24xbf16> to vector<8x24xbf16>
    %54 = tpu.concatenate %53, %51 in 1 : vector<8x24xbf16>, vector<8x8xbf16> -> vector<8x32xbf16>
    %c0_27 = arith.constant 0 : index
    %c0_28 = arith.constant 0 : index
    %c0_29 = arith.constant 0 : index
    %c0_30 = arith.constant 0 : index
    %55 = vector.load %arg7[%c0_27, %c0_28, %c0_29, %c0_30] : memref<1x1x8x32xbf16, #tpu.memory_space<vmem>>, vector<1x1x8x32xbf16>
    %56 = vector.shape_cast %55 : vector<1x1x8x32xbf16> to vector<8x32xbf16>
    %57 = vector.shape_cast %54 : vector<8x32xbf16> to vector<1x1x8x32xbf16>
    tpu.vector_store %arg7[%c0_27, %c0_28, %c0_29, %c0_30], %57 {strides = array<i32>} : memref<1x1x8x32xbf16, #tpu.memory_space<vmem>>, vector<1x1x8x32xbf16>,
    return
  }
  func.func @transform_0(%arg0: i32, %arg1: i32) -> (i32, i32, i32, i32) {
    %c0_i32 = arith.constant 0 : i32
    %0 = arith.addi %arg1, %c0_i32 : i32
    %c0_i32_0 = arith.constant 0 : i32
    %c0_i32_1 = arith.constant 0 : i32
    %c0_i32_2 = arith.constant 0 : i32
    return %arg0, %0, %c0_i32_0, %c0_i32_1 : i32, i32, i32, i32
  }
  func.func @transform_1(%arg0: i32, %arg1: i32) -> (i32, i32, i32, i32) {
    %c1_i32 = arith.constant 1 : i32
    %0 = arith.addi %arg1, %c1_i32 : i32
    %c0_i32 = arith.constant 0 : i32
    %c0_i32_0 = arith.constant 0 : i32
    %c0_i32_1 = arith.constant 0 : i32
    return %arg0, %0, %c0_i32, %c0_i32_0 : i32, i32, i32, i32
  }
  func.func @transform_2(%arg0: i32, %arg1: i32) -> (i32, i32, i32, i32) {
    %c2_i32 = arith.constant 2 : i32
    %0 = arith.addi %arg1, %c2_i32 : i32
    %c0_i32 = arith.constant 0 : i32
    %c0_i32_0 = arith.constant 0 : i32
    %c0_i32_1 = arith.constant 0 : i32
    return %arg0, %0, %c0_i32, %c0_i32_0 : i32, i32, i32, i32
  }
  func.func @transform_3(%arg0: i32, %arg1: i32) -> (i32, i32, i32, i32) {
    %c0_i32 = arith.constant 0 : i32
    %c0_i32_0 = arith.constant 0 : i32
    %c0_i32_1 = arith.constant 0 : i32
    %c0_i32_2 = arith.constant 0 : i32
    %c0_i32_3 = arith.constant 0 : i32
    return %c0_i32, %c0_i32_0, %c0_i32_1, %c0_i32_2 : i32, i32, i32, i32
  }
  func.func @transform_4(%arg0: i32, %arg1: i32) -> (i32, i32, i32, i32) {
    %c0_i32 = arith.constant 0 : i32
    %c0_i32_0 = arith.constant 0 : i32
    %c0_i32_1 = arith.constant 0 : i32
    return %arg0, %arg1, %c0_i32, %c0_i32_0 : i32, i32, i32, i32
  }
  func.func @transform_5(%arg0: i32, %arg1: i32) -> (i32, i32, i32, i32) {
    %c0_i32 = arith.constant 0 : i32
    %c0_i32_0 = arith.constant 0 : i32
    %c0_i32_1 = arith.constant 0 : i32
    return %arg0, %arg1, %c0_i32, %c0_i32_0 : i32, i32, i32, i32
  }
}

module attributes {stable_mosaic.version = 11 : i64} {
  func.func @_fused_matmul_kernel(%arg0: i32, %arg1: memref<64x32xbf16, #tpu.memory_space<vmem>>, %arg2: memref<32x16xbf16, #tpu.memory_space<vmem>>, %arg3: memref<1x32xf32, #tpu.memory_space<vmem>>, %arg4: memref<1x32xf32, #tpu.memory_space<vmem>>, %arg5: memref<64x16xbf16, #tpu.memory_space<vmem>>) attributes {dimension_semantics = [#tpu.dimension_semantics<parallel>], iteration_bounds = array<i64: 2>, scalar_prefetch = 0 : i64, scratch_operands = 0 : i64, tpu.core_type = #tpu.core_type<tc>, window_params = [{transform_indices = @transform_0, window_bounds = array<i64: 64, 32>}, {pipeline_mode = #tpu.pipeline_mode<synchronous>, transform_indices = @transform_1, window_bounds = array<i64: 32, 16>}, {pipeline_mode = #tpu.pipeline_mode<synchronous>, transform_indices = @transform_2, window_bounds = array<i64: 1, 32>}, {pipeline_mode = #tpu.pipeline_mode<synchronous>, transform_indices = @transform_3, window_bounds = array<i64: 1, 32>}, {transform_indices = @transform_4, window_bounds = array<i64: 64, 16>}]} {
    %c0 = arith.constant 0 : index
    %c0_0 = arith.constant 0 : index
    %0 = vector.load %arg1[%c0, %c0_0] : memref<64x32xbf16, #tpu.memory_space<vmem>>, vector<64x32xbf16>
    %1 = arith.extf %0 : vector<64x32xbf16> to vector<64x32xf32>
    %c0_1 = arith.constant 0 : index
    %c0_2 = arith.constant 0 : index
    %2 = vector.load %arg3[%c0_1, %c0_2] : memref<1x32xf32, #tpu.memory_space<vmem>>, vector<1x32xf32>
    %3 = vector.broadcast %2 : vector<1x32xf32> to vector<64x32xf32>
    %4 = arith.mulf %1, %3 : vector<64x32xf32>
    %c0_3 = arith.constant 0 : index
    %c0_4 = arith.constant 0 : index
    %5 = vector.load %arg4[%c0_3, %c0_4] : memref<1x32xf32, #tpu.memory_space<vmem>>, vector<1x32xf32>
    %6 = vector.broadcast %5 : vector<1x32xf32> to vector<64x32xf32>
    %7 = arith.addf %4, %6 : vector<64x32xf32>
    %cst = arith.constant 0.000000e+00 : f32
    %8 = vector.broadcast %cst : f32 to vector<64x32xf32>
    %9 = arith.maximumf %7, %8 : vector<64x32xf32>
    %10 = arith.truncf %9 : vector<64x32xf32> to vector<64x32xbf16>
    %c0_5 = arith.constant 0 : index
    %c0_6 = arith.constant 0 : index
    %11 = vector.load %arg2[%c0_5, %c0_6] : memref<32x16xbf16, #tpu.memory_space<vmem>>, vector<32x16xbf16>
    %cst_7 = arith.constant dense<0.000000e+00> : vector<64x16xf32>
    %12 = tpu.matmul %10, %11, %cst_7 {dimension_numbers = #tpu.dot_dimension_numbers<[1], [0], [0], [1], [0, 0, 1, 1], [], []>} : vector<64x32xbf16>, vector<32x16xbf16>, vector<64x16xf32> -> vector<64x16xf32>
    %13 = arith.truncf %12 : vector<64x16xf32> to vector<64x16xbf16>
    %c0_8 = arith.constant 0 : index
    %c0_9 = arith.constant 0 : index
    %14 = vector.load %arg5[%c0_8, %c0_9] : memref<64x16xbf16, #tpu.memory_space<vmem>>, vector<64x16xbf16>
    tpu.vector_store %arg5[%c0_8, %c0_9], %13 {strides = array<i32>} : memref<64x16xbf16, #tpu.memory_space<vmem>>, vector<64x16xbf16>,
    return
  }
  func.func @transform_0(%arg0: i32) -> (i32, i32) {
    %c0_i32 = arith.constant 0 : i32
    %c0_i32_0 = arith.constant 0 : i32
    return %arg0, %c0_i32 : i32, i32
  }
  func.func @transform_1(%arg0: i32) -> (i32, i32) {
    %c0_i32 = arith.constant 0 : i32
    %c0_i32_0 = arith.constant 0 : i32
    %c0_i32_1 = arith.constant 0 : i32
    return %c0_i32, %c0_i32_0 : i32, i32
  }
  func.func @transform_2(%arg0: i32) -> (i32, i32) {
    %c0_i32 = arith.constant 0 : i32
    %c0_i32_0 = arith.constant 0 : i32
    %c0_i32_1 = arith.constant 0 : i32
    return %c0_i32, %c0_i32_0 : i32, i32
  }
  func.func @transform_3(%arg0: i32) -> (i32, i32) {
    %c0_i32 = arith.constant 0 : i32
    %c0_i32_0 = arith.constant 0 : i32
    %c0_i32_1 = arith.constant 0 : i32
    return %c0_i32, %c0_i32_0 : i32, i32
  }
  func.func @transform_4(%arg0: i32) -> (i32, i32) {
    %c0_i32 = arith.constant 0 : i32
    %c0_i32_0 = arith.constant 0 : i32
    return %arg0, %c0_i32 : i32, i32
  }
}

module attributes {stable_mosaic.version = 11 : i64} {
  func.func @_avgpool2_kernel(%arg0: i32, %arg1: i32, %arg2: memref<1x1x4x2x16xbf16, #tpu.memory_space<vmem>>, %arg3: memref<1x1x4x2x16xbf16, #tpu.memory_space<vmem>>, %arg4: memref<1x1x4x16xbf16, #tpu.memory_space<vmem>>) attributes {dimension_semantics = [#tpu.dimension_semantics<parallel>, #tpu.dimension_semantics<parallel>], iteration_bounds = array<i64: 2, 4>, scalar_prefetch = 0 : i64, scratch_operands = 0 : i64, tpu.core_type = #tpu.core_type<tc>, window_params = [{transform_indices = @transform_0, window_bounds = array<i64: 1, 1, 4, 2, 16>}, {transform_indices = @transform_1, window_bounds = array<i64: 1, 1, 4, 2, 16>}, {transform_indices = @transform_2, window_bounds = array<i64: 1, 1, 4, 16>}]} {
    %c0 = arith.constant 0 : index
    %c0_0 = arith.constant 0 : index
    %c0_1 = arith.constant 0 : index
    %c0_2 = arith.constant 0 : index
    %c0_3 = arith.constant 0 : index
    %0 = vector.load %arg2[%c0, %c0_0, %c0_1, %c0_2, %c0_3] : memref<1x1x4x2x16xbf16, #tpu.memory_space<vmem>>, vector<1x1x4x2x16xbf16>
    %1 = vector.shape_cast %0 : vector<1x1x4x2x16xbf16> to vector<4x2x16xbf16>
    %2 = arith.extf %1 : vector<4x2x16xbf16> to vector<4x2x16xf32>
    %c0_4 = arith.constant 0 : index
    %c0_5 = arith.constant 0 : index
    %c0_6 = arith.constant 0 : index
    %c0_7 = arith.constant 0 : index
    %c0_8 = arith.constant 0 : index
    %3 = vector.load %arg3[%c0_4, %c0_5, %c0_6, %c0_7, %c0_8] : memref<1x1x4x2x16xbf16, #tpu.memory_space<vmem>>, vector<1x1x4x2x16xbf16>
    %4 = vector.shape_cast %3 : vector<1x1x4x2x16xbf16> to vector<4x2x16xbf16>
    %5 = arith.extf %4 : vector<4x2x16xbf16> to vector<4x2x16xf32>
    %6 = vector.extract_strided_slice %2 {offsets = [0, 0, 0], sizes = [4, 1, 16], strides = [1, 1, 1]} : vector<4x2x16xf32> to vector<4x1x16xf32>
    %7 = vector.shape_cast %6 : vector<4x1x16xf32> to vector<4x16xf32>
    %8 = vector.extract_strided_slice %2 {offsets = [0, 1, 0], sizes = [4, 1, 16], strides = [1, 1, 1]} : vector<4x2x16xf32> to vector<4x1x16xf32>
    %9 = vector.shape_cast %8 : vector<4x1x16xf32> to vector<4x16xf32>
    %10 = arith.addf %7, %9 : vector<4x16xf32>
    %11 = vector.extract_strided_slice %5 {offsets = [0, 0, 0], sizes = [4, 1, 16], strides = [1, 1, 1]} : vector<4x2x16xf32> to vector<4x1x16xf32>
    %12 = vector.shape_cast %11 : vector<4x1x16xf32> to vector<4x16xf32>
    %13 = arith.addf %10, %12 : vector<4x16xf32>
    %14 = vector.extract_strided_slice %5 {offsets = [0, 1, 0], sizes = [4, 1, 16], strides = [1, 1, 1]} : vector<4x2x16xf32> to vector<4x1x16xf32>
    %15 = vector.shape_cast %14 : vector<4x1x16xf32> to vector<4x16xf32>
    %16 = arith.addf %13, %15 : vector<4x16xf32>
    %cst = arith.constant 2.500000e-01 : f32
    %17 = vector.broadcast %cst : f32 to vector<4x16xf32>
    %18 = arith.mulf %16, %17 : vector<4x16xf32>
    %19 = arith.truncf %18 : vector<4x16xf32> to vector<4x16xbf16>
    %c0_9 = arith.constant 0 : index
    %c0_10 = arith.constant 0 : index
    %c0_11 = arith.constant 0 : index
    %c0_12 = arith.constant 0 : index
    %20 = vector.load %arg4[%c0_9, %c0_10, %c0_11, %c0_12] : memref<1x1x4x16xbf16, #tpu.memory_space<vmem>>, vector<1x1x4x16xbf16>
    %21 = vector.shape_cast %20 : vector<1x1x4x16xbf16> to vector<4x16xbf16>
    %22 = vector.shape_cast %19 : vector<4x16xbf16> to vector<1x1x4x16xbf16>
    tpu.vector_store %arg4[%c0_9, %c0_10, %c0_11, %c0_12], %22 {strides = array<i32>} : memref<1x1x4x16xbf16, #tpu.memory_space<vmem>>, vector<1x1x4x16xbf16>,
    return
  }
  func.func @transform_0(%arg0: i32, %arg1: i32) -> (i32, i32, i32, i32, i32) {
    %c2_i32 = arith.constant 2 : i32
    %0 = arith.muli %c2_i32, %arg1 : i32
    %c0_i32 = arith.constant 0 : i32
    %1 = arith.addi %0, %c0_i32 : i32
    %c0_i32_0 = arith.constant 0 : i32
    %c0_i32_1 = arith.constant 0 : i32
    %c0_i32_2 = arith.constant 0 : i32
    %c0_i32_3 = arith.constant 0 : i32
    return %arg0, %1, %c0_i32_0, %c0_i32_1, %c0_i32_2 : i32, i32, i32, i32, i32
  }
  func.func @transform_1(%arg0: i32, %arg1: i32) -> (i32, i32, i32, i32, i32) {
    %c2_i32 = arith.constant 2 : i32
    %0 = arith.muli %c2_i32, %arg1 : i32
    %c1_i32 = arith.constant 1 : i32
    %1 = arith.addi %0, %c1_i32 : i32
    %c0_i32 = arith.constant 0 : i32
    %c0_i32_0 = arith.constant 0 : i32
    %c0_i32_1 = arith.constant 0 : i32
    %c0_i32_2 = arith.constant 0 : i32
    return %arg0, %1, %c0_i32, %c0_i32_0, %c0_i32_1 : i32, i32, i32, i32, i32
  }
  func.func @transform_2(%arg0: i32, %arg1: i32) -> (i32, i32, i32, i32) {
    %c0_i32 = arith.constant 0 : i32
    %c0_i32_0 = arith.constant 0 : i32
    %c0_i32_1 = arith.constant 0 : i32
    return %arg0, %arg1, %c0_i32, %c0_i32_0 : i32, i32, i32, i32
  }
}

module attributes {stable_mosaic.version = 11 : i64} {
  func.func @_fused_matmul_kernel(%arg0: i32, %arg1: memref<16x16xbf16, #tpu.memory_space<vmem>>, %arg2: memref<16x16xbf16, #tpu.memory_space<vmem>>, %arg3: memref<1x16xf32, #tpu.memory_space<vmem>>, %arg4: memref<1x16xf32, #tpu.memory_space<vmem>>, %arg5: memref<1x16xf32, #tpu.memory_space<vmem>>, %arg6: memref<1x16xf32, #tpu.memory_space<vmem>>, %arg7: memref<16x16xbf16, #tpu.memory_space<vmem>>) attributes {dimension_semantics = [#tpu.dimension_semantics<parallel>], iteration_bounds = array<i64: 2>, scalar_prefetch = 0 : i64, scratch_operands = 0 : i64, tpu.core_type = #tpu.core_type<tc>, window_params = [{transform_indices = @transform_0, window_bounds = array<i64: 16, 16>}, {pipeline_mode = #tpu.pipeline_mode<synchronous>, transform_indices = @transform_1, window_bounds = array<i64: 16, 16>}, {pipeline_mode = #tpu.pipeline_mode<synchronous>, transform_indices = @transform_2, window_bounds = array<i64: 1, 16>}, {pipeline_mode = #tpu.pipeline_mode<synchronous>, transform_indices = @transform_3, window_bounds = array<i64: 1, 16>}, {pipeline_mode = #tpu.pipeline_mode<synchronous>, transform_indices = @transform_4, window_bounds = array<i64: 1, 16>}, {pipeline_mode = #tpu.pipeline_mode<synchronous>, transform_indices = @transform_5, window_bounds = array<i64: 1, 16>}, {transform_indices = @transform_6, window_bounds = array<i64: 16, 16>}]} {
    %c0 = arith.constant 0 : index
    %c0_0 = arith.constant 0 : index
    %0 = vector.load %arg1[%c0, %c0_0] : memref<16x16xbf16, #tpu.memory_space<vmem>>, vector<16x16xbf16>
    %1 = arith.extf %0 : vector<16x16xbf16> to vector<16x16xf32>
    %c0_1 = arith.constant 0 : index
    %c0_2 = arith.constant 0 : index
    %2 = vector.load %arg3[%c0_1, %c0_2] : memref<1x16xf32, #tpu.memory_space<vmem>>, vector<1x16xf32>
    %3 = vector.broadcast %2 : vector<1x16xf32> to vector<16x16xf32>
    %4 = arith.mulf %1, %3 : vector<16x16xf32>
    %c0_3 = arith.constant 0 : index
    %c0_4 = arith.constant 0 : index
    %5 = vector.load %arg4[%c0_3, %c0_4] : memref<1x16xf32, #tpu.memory_space<vmem>>, vector<1x16xf32>
    %6 = vector.broadcast %5 : vector<1x16xf32> to vector<16x16xf32>
    %7 = arith.addf %4, %6 : vector<16x16xf32>
    %cst = arith.constant 0.000000e+00 : f32
    %8 = vector.broadcast %cst : f32 to vector<16x16xf32>
    %9 = arith.maximumf %7, %8 : vector<16x16xf32>
    %10 = arith.truncf %9 : vector<16x16xf32> to vector<16x16xbf16>
    %c0_5 = arith.constant 0 : index
    %c0_6 = arith.constant 0 : index
    %11 = vector.load %arg2[%c0_5, %c0_6] : memref<16x16xbf16, #tpu.memory_space<vmem>>, vector<16x16xbf16>
    %cst_7 = arith.constant dense<0.000000e+00> : vector<16x16xf32>
    %12 = tpu.matmul %10, %11, %cst_7 {dimension_numbers = #tpu.dot_dimension_numbers<[1], [0], [0], [1], [0, 0, 1, 1], [], []>} : vector<16x16xbf16>, vector<16x16xbf16>, vector<16x16xf32> -> vector<16x16xf32>
    %c0_8 = arith.constant 0 : index
    %c0_9 = arith.constant 0 : index
    %13 = vector.load %arg5[%c0_8, %c0_9] : memref<1x16xf32, #tpu.memory_space<vmem>>, vector<1x16xf32>
    %14 = vector.broadcast %13 : vector<1x16xf32> to vector<16x16xf32>
    %15 = arith.mulf %12, %14 : vector<16x16xf32>
    %c0_10 = arith.constant 0 : index
    %c0_11 = arith.constant 0 : index
    %16 = vector.load %arg6[%c0_10, %c0_11] : memref<1x16xf32, #tpu.memory_space<vmem>>, vector<1x16xf32>
    %17 = vector.broadcast %16 : vector<1x16xf32> to vector<16x16xf32>
    %18 = arith.addf %15, %17 : vector<16x16xf32>
    %cst_12 = arith.constant 0.000000e+00 : f32
    %19 = vector.broadcast %cst_12 : f32 to vector<16x16xf32>
    %20 = arith.maximumf %18, %19 : vector<16x16xf32>
    %21 = arith.truncf %20 : vector<16x16xf32> to vector<16x16xbf16>
    %c0_13 = arith.constant 0 : index
    %c0_14 = arith.constant 0 : index
    %22 = vector.load %arg7[%c0_13, %c0_14] : memref<16x16xbf16, #tpu.memory_space<vmem>>, vector<16x16xbf16>
    tpu.vector_store %arg7[%c0_13, %c0_14], %21 {strides = array<i32>} : memref<16x16xbf16, #tpu.memory_space<vmem>>, vector<16x16xbf16>,
    return
  }
  func.func @transform_0(%arg0: i32) -> (i32, i32) {
    %c0_i32 = arith.constant 0 : i32
    %c0_i32_0 = arith.constant 0 : i32
    return %arg0, %c0_i32 : i32, i32
  }
  func.func @transform_1(%arg0: i32) -> (i32, i32) {
    %c0_i32 = arith.constant 0 : i32
    %c0_i32_0 = arith.constant 0 : i32
    %c0_i32_1 = arith.constant 0 : i32
    return %c0_i32, %c0_i32_0 : i32, i32
  }
  func.func @transform_2(%arg0: i32) -> (i32, i32) {
    %c0_i32 = arith.constant 0 : i32
    %c0_i32_0 = arith.constant 0 : i32
    %c0_i32_1 = arith.constant 0 : i32
    return %c0_i32, %c0_i32_0 : i32, i32
  }
  func.func @transform_3(%arg0: i32) -> (i32, i32) {
    %c0_i32 = arith.constant 0 : i32
    %c0_i32_0 = arith.constant 0 : i32
    %c0_i32_1 = arith.constant 0 : i32
    return %c0_i32, %c0_i32_0 : i32, i32
  }
  func.func @transform_4(%arg0: i32) -> (i32, i32) {
    %c0_i32 = arith.constant 0 : i32
    %c0_i32_0 = arith.constant 0 : i32
    %c0_i32_1 = arith.constant 0 : i32
    return %c0_i32, %c0_i32_0 : i32, i32
  }
  func.func @transform_5(%arg0: i32) -> (i32, i32) {
    %c0_i32 = arith.constant 0 : i32
    %c0_i32_0 = arith.constant 0 : i32
    %c0_i32_1 = arith.constant 0 : i32
    return %c0_i32, %c0_i32_0 : i32, i32
  }
  func.func @transform_6(%arg0: i32) -> (i32, i32) {
    %c0_i32 = arith.constant 0 : i32
    %c0_i32_0 = arith.constant 0 : i32
    return %arg0, %c0_i32 : i32, i32
  }
}

module attributes {stable_mosaic.version = 11 : i64} {
  func.func @_conv3x3_concat_kernel(%arg0: i32, %arg1: i32, %arg2: memref<1x1x6x16xbf16, #tpu.memory_space<vmem>>, %arg3: memref<1x1x6x16xbf16, #tpu.memory_space<vmem>>, %arg4: memref<1x1x6x16xbf16, #tpu.memory_space<vmem>>, %arg5: memref<3x3x16x8xbf16, #tpu.memory_space<vmem>>, %arg6: memref<1x1x4x16xbf16, #tpu.memory_space<vmem>>, %arg7: memref<1x1x4x24xbf16, #tpu.memory_space<vmem>>) attributes {dimension_semantics = [#tpu.dimension_semantics<parallel>, #tpu.dimension_semantics<parallel>], iteration_bounds = array<i64: 2, 4>, scalar_prefetch = 0 : i64, scratch_operands = 0 : i64, tpu.core_type = #tpu.core_type<tc>, window_params = [{transform_indices = @transform_0, window_bounds = array<i64: 1, 1, 6, 16>}, {transform_indices = @transform_1, window_bounds = array<i64: 1, 1, 6, 16>}, {transform_indices = @transform_2, window_bounds = array<i64: 1, 1, 6, 16>}, {pipeline_mode = #tpu.pipeline_mode<synchronous>, transform_indices = @transform_3, window_bounds = array<i64: 3, 3, 16, 8>}, {transform_indices = @transform_4, window_bounds = array<i64: 1, 1, 4, 16>}, {transform_indices = @transform_5, window_bounds = array<i64: 1, 1, 4, 24>}]} {
    %c0 = arith.constant 0 : index
    %c0_0 = arith.constant 0 : index
    %c0_1 = arith.constant 0 : index
    %c0_2 = arith.constant 0 : index
    %0 = vector.load %arg5[%c0, %c0_0, %c0_1, %c0_2] : memref<3x3x16x8xbf16, #tpu.memory_space<vmem>>, vector<3x3x16x8xbf16>
    %c0_3 = arith.constant 0 : index
    %c0_4 = arith.constant 0 : index
    %c0_5 = arith.constant 0 : index
    %c0_6 = arith.constant 0 : index
    %1 = vector.load %arg2[%c0_3, %c0_4, %c0_5, %c0_6] : memref<1x1x6x16xbf16, #tpu.memory_space<vmem>>, vector<1x1x6x16xbf16>
    %2 = vector.shape_cast %1 : vector<1x1x6x16xbf16> to vector<6x16xbf16>
    %3 = vector.extract_strided_slice %2 {offsets = [0, 0], sizes = [4, 16], strides = [1, 1]} : vector<6x16xbf16> to vector<4x16xbf16>
    %4 = vector.extract_strided_slice %0 {offsets = [0, 0, 0, 0], sizes = [1, 1, 16, 8], strides = [1, 1, 1, 1]} : vector<3x3x16x8xbf16> to vector<1x1x16x8xbf16>
    %5 = vector.shape_cast %4 : vector<1x1x16x8xbf16> to vector<16x8xbf16>
    %cst = arith.constant dense<0.000000e+00> : vector<4x8xf32>
    %6 = tpu.matmul %3, %5, %cst {dimension_numbers = #tpu.dot_dimension_numbers<[1], [0], [0], [1], [0, 0, 1, 1], [], []>} : vector<4x16xbf16>, vector<16x8xbf16>, vector<4x8xf32> -> vector<4x8xf32>
    %7 = vector.extract_strided_slice %2 {offsets = [1, 0], sizes = [4, 16], strides = [1, 1]} : vector<6x16xbf16> to vector<4x16xbf16>
    %8 = vector.extract_strided_slice %0 {offsets = [0, 1, 0, 0], sizes = [1, 1, 16, 8], strides = [1, 1, 1, 1]} : vector<3x3x16x8xbf16> to vector<1x1x16x8xbf16>
    %9 = vector.shape_cast %8 : vector<1x1x16x8xbf16> to vector<16x8xbf16>
    %cst_7 = arith.constant dense<0.000000e+00> : vector<4x8xf32>
    %10 = tpu.matmul %7, %9, %cst_7 {dimension_numbers = #tpu.dot_dimension_numbers<[1], [0], [0], [1], [0, 0, 1, 1], [], []>} : vector<4x16xbf16>, vector<16x8xbf16>, vector<4x8xf32> -> vector<4x8xf32>
    %11 = arith.addf %6, %10 : vector<4x8xf32>
    %12 = vector.extract_strided_slice %2 {offsets = [2, 0], sizes = [4, 16], strides = [1, 1]} : vector<6x16xbf16> to vector<4x16xbf16>
    %13 = vector.extract_strided_slice %0 {offsets = [0, 2, 0, 0], sizes = [1, 1, 16, 8], strides = [1, 1, 1, 1]} : vector<3x3x16x8xbf16> to vector<1x1x16x8xbf16>
    %14 = vector.shape_cast %13 : vector<1x1x16x8xbf16> to vector<16x8xbf16>
    %cst_8 = arith.constant dense<0.000000e+00> : vector<4x8xf32>
    %15 = tpu.matmul %12, %14, %cst_8 {dimension_numbers = #tpu.dot_dimension_numbers<[1], [0], [0], [1], [0, 0, 1, 1], [], []>} : vector<4x16xbf16>, vector<16x8xbf16>, vector<4x8xf32> -> vector<4x8xf32>
    %16 = arith.addf %11, %15 : vector<4x8xf32>
    %c0_9 = arith.constant 0 : index
    %c0_10 = arith.constant 0 : index
    %c0_11 = arith.constant 0 : index
    %c0_12 = arith.constant 0 : index
    %17 = vector.load %arg3[%c0_9, %c0_10, %c0_11, %c0_12] : memref<1x1x6x16xbf16, #tpu.memory_space<vmem>>, vector<1x1x6x16xbf16>
    %18 = vector.shape_cast %17 : vector<1x1x6x16xbf16> to vector<6x16xbf16>
    %19 = vector.extract_strided_slice %18 {offsets = [0, 0], sizes = [4, 16], strides = [1, 1]} : vector<6x16xbf16> to vector<4x16xbf16>
    %20 = vector.extract_strided_slice %0 {offsets = [1, 0, 0, 0], sizes = [1, 1, 16, 8], strides = [1, 1, 1, 1]} : vector<3x3x16x8xbf16> to vector<1x1x16x8xbf16>
    %21 = vector.shape_cast %20 : vector<1x1x16x8xbf16> to vector<16x8xbf16>
    %cst_13 = arith.constant dense<0.000000e+00> : vector<4x8xf32>
    %22 = tpu.matmul %19, %21, %cst_13 {dimension_numbers = #tpu.dot_dimension_numbers<[1], [0], [0], [1], [0, 0, 1, 1], [], []>} : vector<4x16xbf16>, vector<16x8xbf16>, vector<4x8xf32> -> vector<4x8xf32>
    %23 = arith.addf %16, %22 : vector<4x8xf32>
    %24 = vector.extract_strided_slice %18 {offsets = [1, 0], sizes = [4, 16], strides = [1, 1]} : vector<6x16xbf16> to vector<4x16xbf16>
    %25 = vector.extract_strided_slice %0 {offsets = [1, 1, 0, 0], sizes = [1, 1, 16, 8], strides = [1, 1, 1, 1]} : vector<3x3x16x8xbf16> to vector<1x1x16x8xbf16>
    %26 = vector.shape_cast %25 : vector<1x1x16x8xbf16> to vector<16x8xbf16>
    %cst_14 = arith.constant dense<0.000000e+00> : vector<4x8xf32>
    %27 = tpu.matmul %24, %26, %cst_14 {dimension_numbers = #tpu.dot_dimension_numbers<[1], [0], [0], [1], [0, 0, 1, 1], [], []>} : vector<4x16xbf16>, vector<16x8xbf16>, vector<4x8xf32> -> vector<4x8xf32>
    %28 = arith.addf %23, %27 : vector<4x8xf32>
    %29 = vector.extract_strided_slice %18 {offsets = [2, 0], sizes = [4, 16], strides = [1, 1]} : vector<6x16xbf16> to vector<4x16xbf16>
    %30 = vector.extract_strided_slice %0 {offsets = [1, 2, 0, 0], sizes = [1, 1, 16, 8], strides = [1, 1, 1, 1]} : vector<3x3x16x8xbf16> to vector<1x1x16x8xbf16>
    %31 = vector.shape_cast %30 : vector<1x1x16x8xbf16> to vector<16x8xbf16>
    %cst_15 = arith.constant dense<0.000000e+00> : vector<4x8xf32>
    %32 = tpu.matmul %29, %31, %cst_15 {dimension_numbers = #tpu.dot_dimension_numbers<[1], [0], [0], [1], [0, 0, 1, 1], [], []>} : vector<4x16xbf16>, vector<16x8xbf16>, vector<4x8xf32> -> vector<4x8xf32>
    %33 = arith.addf %28, %32 : vector<4x8xf32>
    %c0_16 = arith.constant 0 : index
    %c0_17 = arith.constant 0 : index
    %c0_18 = arith.constant 0 : index
    %c0_19 = arith.constant 0 : index
    %34 = vector.load %arg4[%c0_16, %c0_17, %c0_18, %c0_19] : memref<1x1x6x16xbf16, #tpu.memory_space<vmem>>, vector<1x1x6x16xbf16>
    %35 = vector.shape_cast %34 : vector<1x1x6x16xbf16> to vector<6x16xbf16>
    %36 = vector.extract_strided_slice %35 {offsets = [0, 0], sizes = [4, 16], strides = [1, 1]} : vector<6x16xbf16> to vector<4x16xbf16>
    %37 = vector.extract_strided_slice %0 {offsets = [2, 0, 0, 0], sizes = [1, 1, 16, 8], strides = [1, 1, 1, 1]} : vector<3x3x16x8xbf16> to vector<1x1x16x8xbf16>
    %38 = vector.shape_cast %37 : vector<1x1x16x8xbf16> to vector<16x8xbf16>
    %cst_20 = arith.constant dense<0.000000e+00> : vector<4x8xf32>
    %39 = tpu.matmul %36, %38, %cst_20 {dimension_numbers = #tpu.dot_dimension_numbers<[1], [0], [0], [1], [0, 0, 1, 1], [], []>} : vector<4x16xbf16>, vector<16x8xbf16>, vector<4x8xf32> -> vector<4x8xf32>
    %40 = arith.addf %33, %39 : vector<4x8xf32>
    %41 = vector.extract_strided_slice %35 {offsets = [1, 0], sizes = [4, 16], strides = [1, 1]} : vector<6x16xbf16> to vector<4x16xbf16>
    %42 = vector.extract_strided_slice %0 {offsets = [2, 1, 0, 0], sizes = [1, 1, 16, 8], strides = [1, 1, 1, 1]} : vector<3x3x16x8xbf16> to vector<1x1x16x8xbf16>
    %43 = vector.shape_cast %42 : vector<1x1x16x8xbf16> to vector<16x8xbf16>
    %cst_21 = arith.constant dense<0.000000e+00> : vector<4x8xf32>
    %44 = tpu.matmul %41, %43, %cst_21 {dimension_numbers = #tpu.dot_dimension_numbers<[1], [0], [0], [1], [0, 0, 1, 1], [], []>} : vector<4x16xbf16>, vector<16x8xbf16>, vector<4x8xf32> -> vector<4x8xf32>
    %45 = arith.addf %40, %44 : vector<4x8xf32>
    %46 = vector.extract_strided_slice %35 {offsets = [2, 0], sizes = [4, 16], strides = [1, 1]} : vector<6x16xbf16> to vector<4x16xbf16>
    %47 = vector.extract_strided_slice %0 {offsets = [2, 2, 0, 0], sizes = [1, 1, 16, 8], strides = [1, 1, 1, 1]} : vector<3x3x16x8xbf16> to vector<1x1x16x8xbf16>
    %48 = vector.shape_cast %47 : vector<1x1x16x8xbf16> to vector<16x8xbf16>
    %cst_22 = arith.constant dense<0.000000e+00> : vector<4x8xf32>
    %49 = tpu.matmul %46, %48, %cst_22 {dimension_numbers = #tpu.dot_dimension_numbers<[1], [0], [0], [1], [0, 0, 1, 1], [], []>} : vector<4x16xbf16>, vector<16x8xbf16>, vector<4x8xf32> -> vector<4x8xf32>
    %50 = arith.addf %45, %49 : vector<4x8xf32>
    %51 = arith.truncf %50 : vector<4x8xf32> to vector<4x8xbf16>
    %c0_23 = arith.constant 0 : index
    %c0_24 = arith.constant 0 : index
    %c0_25 = arith.constant 0 : index
    %c0_26 = arith.constant 0 : index
    %52 = vector.load %arg6[%c0_23, %c0_24, %c0_25, %c0_26] : memref<1x1x4x16xbf16, #tpu.memory_space<vmem>>, vector<1x1x4x16xbf16>
    %53 = vector.shape_cast %52 : vector<1x1x4x16xbf16> to vector<4x16xbf16>
    %54 = tpu.concatenate %53, %51 in 1 : vector<4x16xbf16>, vector<4x8xbf16> -> vector<4x24xbf16>
    %c0_27 = arith.constant 0 : index
    %c0_28 = arith.constant 0 : index
    %c0_29 = arith.constant 0 : index
    %c0_30 = arith.constant 0 : index
    %55 = vector.load %arg7[%c0_27, %c0_28, %c0_29, %c0_30] : memref<1x1x4x24xbf16, #tpu.memory_space<vmem>>, vector<1x1x4x24xbf16>
    %56 = vector.shape_cast %55 : vector<1x1x4x24xbf16> to vector<4x24xbf16>
    %57 = vector.shape_cast %54 : vector<4x24xbf16> to vector<1x1x4x24xbf16>
    tpu.vector_store %arg7[%c0_27, %c0_28, %c0_29, %c0_30], %57 {strides = array<i32>} : memref<1x1x4x24xbf16, #tpu.memory_space<vmem>>, vector<1x1x4x24xbf16>,
    return
  }
  func.func @transform_0(%arg0: i32, %arg1: i32) -> (i32, i32, i32, i32) {
    %c0_i32 = arith.constant 0 : i32
    %0 = arith.addi %arg1, %c0_i32 : i32
    %c0_i32_0 = arith.constant 0 : i32
    %c0_i32_1 = arith.constant 0 : i32
    %c0_i32_2 = arith.constant 0 : i32
    return %arg0, %0, %c0_i32_0, %c0_i32_1 : i32, i32, i32, i32
  }
  func.func @transform_1(%arg0: i32, %arg1: i32) -> (i32, i32, i32, i32) {
    %c1_i32 = arith.constant 1 : i32
    %0 = arith.addi %arg1, %c1_i32 : i32
    %c0_i32 = arith.constant 0 : i32
    %c0_i32_0 = arith.constant 0 : i32
    %c0_i32_1 = arith.constant 0 : i32
    return %arg0, %0, %c0_i32, %c0_i32_0 : i32, i32, i32, i32
  }
  func.func @transform_2(%arg0: i32, %arg1: i32) -> (i32, i32, i32, i32) {
    %c2_i32 = arith.constant 2 : i32
    %0 = arith.addi %arg1, %c2_i32 : i32
    %c0_i32 = arith.constant 0 : i32
    %c0_i32_0 = arith.constant 0 : i32
    %c0_i32_1 = arith.constant 0 : i32
    return %arg0, %0, %c0_i32, %c0_i32_0 : i32, i32, i32, i32
  }
  func.func @transform_3(%arg0: i32, %arg1: i32) -> (i32, i32, i32, i32) {
    %c0_i32 = arith.constant 0 : i32
    %c0_i32_0 = arith.constant 0 : i32
    %c0_i32_1 = arith.constant 0 : i32
    %c0_i32_2 = arith.constant 0 : i32
    %c0_i32_3 = arith.constant 0 : i32
    return %c0_i32, %c0_i32_0, %c0_i32_1, %c0_i32_2 : i32, i32, i32, i32
  }
  func.func @transform_4(%arg0: i32, %arg1: i32) -> (i32, i32, i32, i32) {
    %c0_i32 = arith.constant 0 : i32
    %c0_i32_0 = arith.constant 0 : i32
    %c0_i32_1 = arith.constant 0 : i32
    return %arg0, %arg1, %c0_i32, %c0_i32_0 : i32, i32, i32, i32
  }
  func.func @transform_5(%arg0: i32, %arg1: i32) -> (i32, i32, i32, i32) {
    %c0_i32 = arith.constant 0 : i32
    %c0_i32_0 = arith.constant 0 : i32
    %c0_i32_1 = arith.constant 0 : i32
    return %arg0, %arg1, %c0_i32, %c0_i32_0 : i32, i32, i32, i32
  }
}

module attributes {stable_mosaic.version = 11 : i64} {
  func.func @_fused_matmul_kernel(%arg0: i32, %arg1: memref<16x24xbf16, #tpu.memory_space<vmem>>, %arg2: memref<24x16xbf16, #tpu.memory_space<vmem>>, %arg3: memref<1x24xf32, #tpu.memory_space<vmem>>, %arg4: memref<1x24xf32, #tpu.memory_space<vmem>>, %arg5: memref<1x16xf32, #tpu.memory_space<vmem>>, %arg6: memref<1x16xf32, #tpu.memory_space<vmem>>, %arg7: memref<16x16xbf16, #tpu.memory_space<vmem>>) attributes {dimension_semantics = [#tpu.dimension_semantics<parallel>], iteration_bounds = array<i64: 2>, scalar_prefetch = 0 : i64, scratch_operands = 0 : i64, tpu.core_type = #tpu.core_type<tc>, window_params = [{transform_indices = @transform_0, window_bounds = array<i64: 16, 24>}, {pipeline_mode = #tpu.pipeline_mode<synchronous>, transform_indices = @transform_1, window_bounds = array<i64: 24, 16>}, {pipeline_mode = #tpu.pipeline_mode<synchronous>, transform_indices = @transform_2, window_bounds = array<i64: 1, 24>}, {pipeline_mode = #tpu.pipeline_mode<synchronous>, transform_indices = @transform_3, window_bounds = array<i64: 1, 24>}, {pipeline_mode = #tpu.pipeline_mode<synchronous>, transform_indices = @transform_4, window_bounds = array<i64: 1, 16>}, {pipeline_mode = #tpu.pipeline_mode<synchronous>, transform_indices = @transform_5, window_bounds = array<i64: 1, 16>}, {transform_indices = @transform_6, window_bounds = array<i64: 16, 16>}]} {
    %c0 = arith.constant 0 : index
    %c0_0 = arith.constant 0 : index
    %0 = vector.load %arg1[%c0, %c0_0] : memref<16x24xbf16, #tpu.memory_space<vmem>>, vector<16x24xbf16>
    %1 = arith.extf %0 : vector<16x24xbf16> to vector<16x24xf32>
    %c0_1 = arith.constant 0 : index
    %c0_2 = arith.constant 0 : index
    %2 = vector.load %arg3[%c0_1, %c0_2] : memref<1x24xf32, #tpu.memory_space<vmem>>, vector<1x24xf32>
    %3 = vector.broadcast %2 : vector<1x24xf32> to vector<16x24xf32>
    %4 = arith.mulf %1, %3 : vector<16x24xf32>
    %c0_3 = arith.constant 0 : index
    %c0_4 = arith.constant 0 : index
    %5 = vector.load %arg4[%c0_3, %c0_4] : memref<1x24xf32, #tpu.memory_space<vmem>>, vector<1x24xf32>
    %6 = vector.broadcast %5 : vector<1x24xf32> to vector<16x24xf32>
    %7 = arith.addf %4, %6 : vector<16x24xf32>
    %cst = arith.constant 0.000000e+00 : f32
    %8 = vector.broadcast %cst : f32 to vector<16x24xf32>
    %9 = arith.maximumf %7, %8 : vector<16x24xf32>
    %10 = arith.truncf %9 : vector<16x24xf32> to vector<16x24xbf16>
    %c0_5 = arith.constant 0 : index
    %c0_6 = arith.constant 0 : index
    %11 = vector.load %arg2[%c0_5, %c0_6] : memref<24x16xbf16, #tpu.memory_space<vmem>>, vector<24x16xbf16>
    %cst_7 = arith.constant dense<0.000000e+00> : vector<16x16xf32>
    %12 = tpu.matmul %10, %11, %cst_7 {dimension_numbers = #tpu.dot_dimension_numbers<[1], [0], [0], [1], [0, 0, 1, 1], [], []>} : vector<16x24xbf16>, vector<24x16xbf16>, vector<16x16xf32> -> vector<16x16xf32>
    %c0_8 = arith.constant 0 : index
    %c0_9 = arith.constant 0 : index
    %13 = vector.load %arg5[%c0_8, %c0_9] : memref<1x16xf32, #tpu.memory_space<vmem>>, vector<1x16xf32>
    %14 = vector.broadcast %13 : vector<1x16xf32> to vector<16x16xf32>
    %15 = arith.mulf %12, %14 : vector<16x16xf32>
    %c0_10 = arith.constant 0 : index
    %c0_11 = arith.constant 0 : index
    %16 = vector.load %arg6[%c0_10, %c0_11] : memref<1x16xf32, #tpu.memory_space<vmem>>, vector<1x16xf32>
    %17 = vector.broadcast %16 : vector<1x16xf32> to vector<16x16xf32>
    %18 = arith.addf %15, %17 : vector<16x16xf32>
    %cst_12 = arith.constant 0.000000e+00 : f32
    %19 = vector.broadcast %cst_12 : f32 to vector<16x16xf32>
    %20 = arith.maximumf %18, %19 : vector<16x16xf32>
    %21 = arith.truncf %20 : vector<16x16xf32> to vector<16x16xbf16>
    %c0_13 = arith.constant 0 : index
    %c0_14 = arith.constant 0 : index
    %22 = vector.load %arg7[%c0_13, %c0_14] : memref<16x16xbf16, #tpu.memory_space<vmem>>, vector<16x16xbf16>
    tpu.vector_store %arg7[%c0_13, %c0_14], %21 {strides = array<i32>} : memref<16x16xbf16, #tpu.memory_space<vmem>>, vector<16x16xbf16>,
    return
  }
  func.func @transform_0(%arg0: i32) -> (i32, i32) {
    %c0_i32 = arith.constant 0 : i32
    %c0_i32_0 = arith.constant 0 : i32
    return %arg0, %c0_i32 : i32, i32
  }
  func.func @transform_1(%arg0: i32) -> (i32, i32) {
    %c0_i32 = arith.constant 0 : i32
    %c0_i32_0 = arith.constant 0 : i32
    %c0_i32_1 = arith.constant 0 : i32
    return %c0_i32, %c0_i32_0 : i32, i32
  }
  func.func @transform_2(%arg0: i32) -> (i32, i32) {
    %c0_i32 = arith.constant 0 : i32
    %c0_i32_0 = arith.constant 0 : i32
    %c0_i32_1 = arith.constant 0 : i32
    return %c0_i32, %c0_i32_0 : i32, i32
  }
  func.func @transform_3(%arg0: i32) -> (i32, i32) {
    %c0_i32 = arith.constant 0 : i32
    %c0_i32_0 = arith.constant 0 : i32
    %c0_i32_1 = arith.constant 0 : i32
    return %c0_i32, %c0_i32_0 : i32, i32
  }
  func.func @transform_4(%arg0: i32) -> (i32, i32) {
    %c0_i32 = arith.constant 0 : i32
    %c0_i32_0 = arith.constant 0 : i32
    %c0_i32_1 = arith.constant 0 : i32
    return %c0_i32, %c0_i32_0 : i32, i32
  }
  func.func @transform_5(%arg0: i32) -> (i32, i32) {
    %c0_i32 = arith.constant 0 : i32
    %c0_i32_0 = arith.constant 0 : i32
    %c0_i32_1 = arith.constant 0 : i32
    return %c0_i32, %c0_i32_0 : i32, i32
  }
  func.func @transform_6(%arg0: i32) -> (i32, i32) {
    %c0_i32 = arith.constant 0 : i32
    %c0_i32_0 = arith.constant 0 : i32
    return %arg0, %c0_i32 : i32, i32
  }
}

module attributes {stable_mosaic.version = 11 : i64} {
  func.func @_conv3x3_concat_kernel(%arg0: i32, %arg1: i32, %arg2: memref<1x1x6x16xbf16, #tpu.memory_space<vmem>>, %arg3: memref<1x1x6x16xbf16, #tpu.memory_space<vmem>>, %arg4: memref<1x1x6x16xbf16, #tpu.memory_space<vmem>>, %arg5: memref<3x3x16x8xbf16, #tpu.memory_space<vmem>>, %arg6: memref<1x1x4x24xbf16, #tpu.memory_space<vmem>>, %arg7: memref<1x1x4x32xbf16, #tpu.memory_space<vmem>>) attributes {dimension_semantics = [#tpu.dimension_semantics<parallel>, #tpu.dimension_semantics<parallel>], iteration_bounds = array<i64: 2, 4>, scalar_prefetch = 0 : i64, scratch_operands = 0 : i64, tpu.core_type = #tpu.core_type<tc>, window_params = [{transform_indices = @transform_0, window_bounds = array<i64: 1, 1, 6, 16>}, {transform_indices = @transform_1, window_bounds = array<i64: 1, 1, 6, 16>}, {transform_indices = @transform_2, window_bounds = array<i64: 1, 1, 6, 16>}, {pipeline_mode = #tpu.pipeline_mode<synchronous>, transform_indices = @transform_3, window_bounds = array<i64: 3, 3, 16, 8>}, {transform_indices = @transform_4, window_bounds = array<i64: 1, 1, 4, 24>}, {transform_indices = @transform_5, window_bounds = array<i64: 1, 1, 4, 32>}]} {
    %c0 = arith.constant 0 : index
    %c0_0 = arith.constant 0 : index
    %c0_1 = arith.constant 0 : index
    %c0_2 = arith.constant 0 : index
    %0 = vector.load %arg5[%c0, %c0_0, %c0_1, %c0_2] : memref<3x3x16x8xbf16, #tpu.memory_space<vmem>>, vector<3x3x16x8xbf16>
    %c0_3 = arith.constant 0 : index
    %c0_4 = arith.constant 0 : index
    %c0_5 = arith.constant 0 : index
    %c0_6 = arith.constant 0 : index
    %1 = vector.load %arg2[%c0_3, %c0_4, %c0_5, %c0_6] : memref<1x1x6x16xbf16, #tpu.memory_space<vmem>>, vector<1x1x6x16xbf16>
    %2 = vector.shape_cast %1 : vector<1x1x6x16xbf16> to vector<6x16xbf16>
    %3 = vector.extract_strided_slice %2 {offsets = [0, 0], sizes = [4, 16], strides = [1, 1]} : vector<6x16xbf16> to vector<4x16xbf16>
    %4 = vector.extract_strided_slice %0 {offsets = [0, 0, 0, 0], sizes = [1, 1, 16, 8], strides = [1, 1, 1, 1]} : vector<3x3x16x8xbf16> to vector<1x1x16x8xbf16>
    %5 = vector.shape_cast %4 : vector<1x1x16x8xbf16> to vector<16x8xbf16>
    %cst = arith.constant dense<0.000000e+00> : vector<4x8xf32>
    %6 = tpu.matmul %3, %5, %cst {dimension_numbers = #tpu.dot_dimension_numbers<[1], [0], [0], [1], [0, 0, 1, 1], [], []>} : vector<4x16xbf16>, vector<16x8xbf16>, vector<4x8xf32> -> vector<4x8xf32>
    %7 = vector.extract_strided_slice %2 {offsets = [1, 0], sizes = [4, 16], strides = [1, 1]} : vector<6x16xbf16> to vector<4x16xbf16>
    %8 = vector.extract_strided_slice %0 {offsets = [0, 1, 0, 0], sizes = [1, 1, 16, 8], strides = [1, 1, 1, 1]} : vector<3x3x16x8xbf16> to vector<1x1x16x8xbf16>
    %9 = vector.shape_cast %8 : vector<1x1x16x8xbf16> to vector<16x8xbf16>
    %cst_7 = arith.constant dense<0.000000e+00> : vector<4x8xf32>
    %10 = tpu.matmul %7, %9, %cst_7 {dimension_numbers = #tpu.dot_dimension_numbers<[1], [0], [0], [1], [0, 0, 1, 1], [], []>} : vector<4x16xbf16>, vector<16x8xbf16>, vector<4x8xf32> -> vector<4x8xf32>
    %11 = arith.addf %6, %10 : vector<4x8xf32>
    %12 = vector.extract_strided_slice %2 {offsets = [2, 0], sizes = [4, 16], strides = [1, 1]} : vector<6x16xbf16> to vector<4x16xbf16>
    %13 = vector.extract_strided_slice %0 {offsets = [0, 2, 0, 0], sizes = [1, 1, 16, 8], strides = [1, 1, 1, 1]} : vector<3x3x16x8xbf16> to vector<1x1x16x8xbf16>
    %14 = vector.shape_cast %13 : vector<1x1x16x8xbf16> to vector<16x8xbf16>
    %cst_8 = arith.constant dense<0.000000e+00> : vector<4x8xf32>
    %15 = tpu.matmul %12, %14, %cst_8 {dimension_numbers = #tpu.dot_dimension_numbers<[1], [0], [0], [1], [0, 0, 1, 1], [], []>} : vector<4x16xbf16>, vector<16x8xbf16>, vector<4x8xf32> -> vector<4x8xf32>
    %16 = arith.addf %11, %15 : vector<4x8xf32>
    %c0_9 = arith.constant 0 : index
    %c0_10 = arith.constant 0 : index
    %c0_11 = arith.constant 0 : index
    %c0_12 = arith.constant 0 : index
    %17 = vector.load %arg3[%c0_9, %c0_10, %c0_11, %c0_12] : memref<1x1x6x16xbf16, #tpu.memory_space<vmem>>, vector<1x1x6x16xbf16>
    %18 = vector.shape_cast %17 : vector<1x1x6x16xbf16> to vector<6x16xbf16>
    %19 = vector.extract_strided_slice %18 {offsets = [0, 0], sizes = [4, 16], strides = [1, 1]} : vector<6x16xbf16> to vector<4x16xbf16>
    %20 = vector.extract_strided_slice %0 {offsets = [1, 0, 0, 0], sizes = [1, 1, 16, 8], strides = [1, 1, 1, 1]} : vector<3x3x16x8xbf16> to vector<1x1x16x8xbf16>
    %21 = vector.shape_cast %20 : vector<1x1x16x8xbf16> to vector<16x8xbf16>
    %cst_13 = arith.constant dense<0.000000e+00> : vector<4x8xf32>
    %22 = tpu.matmul %19, %21, %cst_13 {dimension_numbers = #tpu.dot_dimension_numbers<[1], [0], [0], [1], [0, 0, 1, 1], [], []>} : vector<4x16xbf16>, vector<16x8xbf16>, vector<4x8xf32> -> vector<4x8xf32>
    %23 = arith.addf %16, %22 : vector<4x8xf32>
    %24 = vector.extract_strided_slice %18 {offsets = [1, 0], sizes = [4, 16], strides = [1, 1]} : vector<6x16xbf16> to vector<4x16xbf16>
    %25 = vector.extract_strided_slice %0 {offsets = [1, 1, 0, 0], sizes = [1, 1, 16, 8], strides = [1, 1, 1, 1]} : vector<3x3x16x8xbf16> to vector<1x1x16x8xbf16>
    %26 = vector.shape_cast %25 : vector<1x1x16x8xbf16> to vector<16x8xbf16>
    %cst_14 = arith.constant dense<0.000000e+00> : vector<4x8xf32>
    %27 = tpu.matmul %24, %26, %cst_14 {dimension_numbers = #tpu.dot_dimension_numbers<[1], [0], [0], [1], [0, 0, 1, 1], [], []>} : vector<4x16xbf16>, vector<16x8xbf16>, vector<4x8xf32> -> vector<4x8xf32>
    %28 = arith.addf %23, %27 : vector<4x8xf32>
    %29 = vector.extract_strided_slice %18 {offsets = [2, 0], sizes = [4, 16], strides = [1, 1]} : vector<6x16xbf16> to vector<4x16xbf16>
    %30 = vector.extract_strided_slice %0 {offsets = [1, 2, 0, 0], sizes = [1, 1, 16, 8], strides = [1, 1, 1, 1]} : vector<3x3x16x8xbf16> to vector<1x1x16x8xbf16>
    %31 = vector.shape_cast %30 : vector<1x1x16x8xbf16> to vector<16x8xbf16>
    %cst_15 = arith.constant dense<0.000000e+00> : vector<4x8xf32>
    %32 = tpu.matmul %29, %31, %cst_15 {dimension_numbers = #tpu.dot_dimension_numbers<[1], [0], [0], [1], [0, 0, 1, 1], [], []>} : vector<4x16xbf16>, vector<16x8xbf16>, vector<4x8xf32> -> vector<4x8xf32>
    %33 = arith.addf %28, %32 : vector<4x8xf32>
    %c0_16 = arith.constant 0 : index
    %c0_17 = arith.constant 0 : index
    %c0_18 = arith.constant 0 : index
    %c0_19 = arith.constant 0 : index
    %34 = vector.load %arg4[%c0_16, %c0_17, %c0_18, %c0_19] : memref<1x1x6x16xbf16, #tpu.memory_space<vmem>>, vector<1x1x6x16xbf16>
    %35 = vector.shape_cast %34 : vector<1x1x6x16xbf16> to vector<6x16xbf16>
    %36 = vector.extract_strided_slice %35 {offsets = [0, 0], sizes = [4, 16], strides = [1, 1]} : vector<6x16xbf16> to vector<4x16xbf16>
    %37 = vector.extract_strided_slice %0 {offsets = [2, 0, 0, 0], sizes = [1, 1, 16, 8], strides = [1, 1, 1, 1]} : vector<3x3x16x8xbf16> to vector<1x1x16x8xbf16>
    %38 = vector.shape_cast %37 : vector<1x1x16x8xbf16> to vector<16x8xbf16>
    %cst_20 = arith.constant dense<0.000000e+00> : vector<4x8xf32>
    %39 = tpu.matmul %36, %38, %cst_20 {dimension_numbers = #tpu.dot_dimension_numbers<[1], [0], [0], [1], [0, 0, 1, 1], [], []>} : vector<4x16xbf16>, vector<16x8xbf16>, vector<4x8xf32> -> vector<4x8xf32>
    %40 = arith.addf %33, %39 : vector<4x8xf32>
    %41 = vector.extract_strided_slice %35 {offsets = [1, 0], sizes = [4, 16], strides = [1, 1]} : vector<6x16xbf16> to vector<4x16xbf16>
    %42 = vector.extract_strided_slice %0 {offsets = [2, 1, 0, 0], sizes = [1, 1, 16, 8], strides = [1, 1, 1, 1]} : vector<3x3x16x8xbf16> to vector<1x1x16x8xbf16>
    %43 = vector.shape_cast %42 : vector<1x1x16x8xbf16> to vector<16x8xbf16>
    %cst_21 = arith.constant dense<0.000000e+00> : vector<4x8xf32>
    %44 = tpu.matmul %41, %43, %cst_21 {dimension_numbers = #tpu.dot_dimension_numbers<[1], [0], [0], [1], [0, 0, 1, 1], [], []>} : vector<4x16xbf16>, vector<16x8xbf16>, vector<4x8xf32> -> vector<4x8xf32>
    %45 = arith.addf %40, %44 : vector<4x8xf32>
    %46 = vector.extract_strided_slice %35 {offsets = [2, 0], sizes = [4, 16], strides = [1, 1]} : vector<6x16xbf16> to vector<4x16xbf16>
    %47 = vector.extract_strided_slice %0 {offsets = [2, 2, 0, 0], sizes = [1, 1, 16, 8], strides = [1, 1, 1, 1]} : vector<3x3x16x8xbf16> to vector<1x1x16x8xbf16>
    %48 = vector.shape_cast %47 : vector<1x1x16x8xbf16> to vector<16x8xbf16>
    %cst_22 = arith.constant dense<0.000000e+00> : vector<4x8xf32>
    %49 = tpu.matmul %46, %48, %cst_22 {dimension_numbers = #tpu.dot_dimension_numbers<[1], [0], [0], [1], [0, 0, 1, 1], [], []>} : vector<4x16xbf16>, vector<16x8xbf16>, vector<4x8xf32> -> vector<4x8xf32>
    %50 = arith.addf %45, %49 : vector<4x8xf32>
    %51 = arith.truncf %50 : vector<4x8xf32> to vector<4x8xbf16>
    %c0_23 = arith.constant 0 : index
    %c0_24 = arith.constant 0 : index
    %c0_25 = arith.constant 0 : index
    %c0_26 = arith.constant 0 : index
    %52 = vector.load %arg6[%c0_23, %c0_24, %c0_25, %c0_26] : memref<1x1x4x24xbf16, #tpu.memory_space<vmem>>, vector<1x1x4x24xbf16>
    %53 = vector.shape_cast %52 : vector<1x1x4x24xbf16> to vector<4x24xbf16>
    %54 = tpu.concatenate %53, %51 in 1 : vector<4x24xbf16>, vector<4x8xbf16> -> vector<4x32xbf16>
    %c0_27 = arith.constant 0 : index
    %c0_28 = arith.constant 0 : index
    %c0_29 = arith.constant 0 : index
    %c0_30 = arith.constant 0 : index
    %55 = vector.load %arg7[%c0_27, %c0_28, %c0_29, %c0_30] : memref<1x1x4x32xbf16, #tpu.memory_space<vmem>>, vector<1x1x4x32xbf16>
    %56 = vector.shape_cast %55 : vector<1x1x4x32xbf16> to vector<4x32xbf16>
    %57 = vector.shape_cast %54 : vector<4x32xbf16> to vector<1x1x4x32xbf16>
    tpu.vector_store %arg7[%c0_27, %c0_28, %c0_29, %c0_30], %57 {strides = array<i32>} : memref<1x1x4x32xbf16, #tpu.memory_space<vmem>>, vector<1x1x4x32xbf16>,
    return
  }
  func.func @transform_0(%arg0: i32, %arg1: i32) -> (i32, i32, i32, i32) {
    %c0_i32 = arith.constant 0 : i32
    %0 = arith.addi %arg1, %c0_i32 : i32
    %c0_i32_0 = arith.constant 0 : i32
    %c0_i32_1 = arith.constant 0 : i32
    %c0_i32_2 = arith.constant 0 : i32
    return %arg0, %0, %c0_i32_0, %c0_i32_1 : i32, i32, i32, i32
  }
  func.func @transform_1(%arg0: i32, %arg1: i32) -> (i32, i32, i32, i32) {
    %c1_i32 = arith.constant 1 : i32
    %0 = arith.addi %arg1, %c1_i32 : i32
    %c0_i32 = arith.constant 0 : i32
    %c0_i32_0 = arith.constant 0 : i32
    %c0_i32_1 = arith.constant 0 : i32
    return %arg0, %0, %c0_i32, %c0_i32_0 : i32, i32, i32, i32
  }
  func.func @transform_2(%arg0: i32, %arg1: i32) -> (i32, i32, i32, i32) {
    %c2_i32 = arith.constant 2 : i32
    %0 = arith.addi %arg1, %c2_i32 : i32
    %c0_i32 = arith.constant 0 : i32
    %c0_i32_0 = arith.constant 0 : i32
    %c0_i32_1 = arith.constant 0 : i32
    return %arg0, %0, %c0_i32, %c0_i32_0 : i32, i32, i32, i32
  }
  func.func @transform_3(%arg0: i32, %arg1: i32) -> (i32, i32, i32, i32) {
    %c0_i32 = arith.constant 0 : i32
    %c0_i32_0 = arith.constant 0 : i32
    %c0_i32_1 = arith.constant 0 : i32
    %c0_i32_2 = arith.constant 0 : i32
    %c0_i32_3 = arith.constant 0 : i32
    return %c0_i32, %c0_i32_0, %c0_i32_1, %c0_i32_2 : i32, i32, i32, i32
  }
  func.func @transform_4(%arg0: i32, %arg1: i32) -> (i32, i32, i32, i32) {
    %c0_i32 = arith.constant 0 : i32
    %c0_i32_0 = arith.constant 0 : i32
    %c0_i32_1 = arith.constant 0 : i32
    return %arg0, %arg1, %c0_i32, %c0_i32_0 : i32, i32, i32, i32
  }
  func.func @transform_5(%arg0: i32, %arg1: i32) -> (i32, i32, i32, i32) {
    %c0_i32 = arith.constant 0 : i32
    %c0_i32_0 = arith.constant 0 : i32
    %c0_i32_1 = arith.constant 0 : i32
    return %arg0, %arg1, %c0_i32, %c0_i32_0 : i32, i32, i32, i32
  }
}

module attributes {stable_mosaic.version = 11 : i64} {
  func.func @_global_pool_bn_kernel(%arg0: i32, %arg1: memref<1x4x4x32xbf16, #tpu.memory_space<vmem>>, %arg2: memref<1x32xf32, #tpu.memory_space<vmem>>, %arg3: memref<1x32xf32, #tpu.memory_space<vmem>>, %arg4: memref<1x1x32xf32, #tpu.memory_space<vmem>>) attributes {dimension_semantics = [#tpu.dimension_semantics<parallel>], iteration_bounds = array<i64: 2>, scalar_prefetch = 0 : i64, scratch_operands = 0 : i64, tpu.core_type = #tpu.core_type<tc>, window_params = [{transform_indices = @transform_0, window_bounds = array<i64: 1, 4, 4, 32>}, {pipeline_mode = #tpu.pipeline_mode<synchronous>, transform_indices = @transform_1, window_bounds = array<i64: 1, 32>}, {pipeline_mode = #tpu.pipeline_mode<synchronous>, transform_indices = @transform_2, window_bounds = array<i64: 1, 32>}, {transform_indices = @transform_3, window_bounds = array<i64: 1, 1, 32>}]} {
    %c0 = arith.constant 0 : index
    %c0_0 = arith.constant 0 : index
    %c0_1 = arith.constant 0 : index
    %c0_2 = arith.constant 0 : index
    %0 = vector.load %arg1[%c0, %c0_0, %c0_1, %c0_2] : memref<1x4x4x32xbf16, #tpu.memory_space<vmem>>, vector<1x4x4x32xbf16>
    %1 = vector.shape_cast %0 : vector<1x4x4x32xbf16> to vector<4x4x32xbf16>
    %2 = arith.extf %1 : vector<4x4x32xbf16> to vector<4x4x32xf32>
    %cst = arith.constant dense<0.000000e+00> : vector<4x32xf32>
    %3 = vector.multi_reduction <add>, %2, %cst [0] : vector<4x4x32xf32> to vector<4x32xf32>
    %cst_3 = arith.constant dense<0.000000e+00> : vector<32xf32>
    %4 = vector.multi_reduction <add>, %3, %cst_3 [0] : vector<4x32xf32> to vector<32xf32>
    %5 = vector.shape_cast %4 : vector<32xf32> to vector<1x32xf32>
    %cst_4 = arith.constant 6.250000e-02 : f32
    %6 = vector.broadcast %cst_4 : f32 to vector<1x32xf32>
    %7 = arith.mulf %5, %6 : vector<1x32xf32>
    %c0_5 = arith.constant 0 : index
    %c0_6 = arith.constant 0 : index
    %8 = vector.load %arg2[%c0_5, %c0_6] : memref<1x32xf32, #tpu.memory_space<vmem>>, vector<1x32xf32>
    %9 = arith.mulf %7, %8 : vector<1x32xf32>
    %c0_7 = arith.constant 0 : index
    %c0_8 = arith.constant 0 : index
    %10 = vector.load %arg3[%c0_7, %c0_8] : memref<1x32xf32, #tpu.memory_space<vmem>>, vector<1x32xf32>
    %11 = arith.addf %9, %10 : vector<1x32xf32>
    %c0_9 = arith.constant 0 : index
    %c0_10 = arith.constant 0 : index
    %c0_11 = arith.constant 0 : index
    %12 = vector.load %arg4[%c0_9, %c0_10, %c0_11] : memref<1x1x32xf32, #tpu.memory_space<vmem>>, vector<1x1x32xf32>
    %13 = vector.shape_cast %12 : vector<1x1x32xf32> to vector<1x32xf32>
    %14 = vector.shape_cast %11 : vector<1x32xf32> to vector<1x1x32xf32>
    tpu.vector_store %arg4[%c0_9, %c0_10, %c0_11], %14 {strides = array<i32>} : memref<1x1x32xf32, #tpu.memory_space<vmem>>, vector<1x1x32xf32>,
    return
  }
  func.func @transform_0(%arg0: i32) -> (i32, i32, i32, i32) {
    %c0_i32 = arith.constant 0 : i32
    %c0_i32_0 = arith.constant 0 : i32
    %c0_i32_1 = arith.constant 0 : i32
    %c0_i32_2 = arith.constant 0 : i32
    return %arg0, %c0_i32, %c0_i32_0, %c0_i32_1 : i32, i32, i32, i32
  }
  func.func @transform_1(%arg0: i32) -> (i32, i32) {
    %c0_i32 = arith.constant 0 : i32
    %c0_i32_0 = arith.constant 0 : i32
    %c0_i32_1 = arith.constant 0 : i32
    return %c0_i32, %c0_i32_0 : i32, i32
  }
  func.func @transform_2(%arg0: i32) -> (i32, i32) {
    %c0_i32 = arith.constant 0 : i32
    %c0_i32_0 = arith.constant 0 : i32
    %c0_i32_1 = arith.constant 0 : i32
    return %c0_i32, %c0_i32_0 : i32, i32
  }
  func.func @transform_3(%arg0: i32) -> (i32, i32, i32) {
    %c0_i32 = arith.constant 0 : i32
    %c0_i32_0 = arith.constant 0 : i32
    %c0_i32_1 = arith.constant 0 : i32
    return %arg0, %c0_i32, %c0_i32_0 : i32, i32, i32
  }
}

</mosaic_0001>

<bundles_post_ra>
// kernel: densenet_backbone_forward.15
= control target key start
LH: loop header
LB: loop body
LE: loop exit
PB: predicated region body
PF: predicated region fallthrough
CT: control target
= control target key end

     0   :  { %s659_s21 = smov 0   ;;  %s710_s0 = inlined_call_operand.vmem [shape: bf16[128,16], index: 0, kind: input, shape index: {}]   ;;  %s711_s1 = inlined_call_operand.vmem [shape: bf16[16,16], index: 1, kind: input, shape index: {}]   ;;  %s712_s2 = inlined_call_operand.vmem [shape: f32[1,16], index: 2, kind: input, shape index: {}]   ;;  %s713_s3 = inlined_call_operand.vmem [shape: f32[1,16], index: 3, kind: input, shape index: {}]   ;;  %s714_s4 = inlined_call_operand.vmem [shape: f32[1,16], index: 4, kind: input, shape index: {}]   ;;  %s715_s5 = inlined_call_operand.vmem [shape: f32[1,16], index: 5, kind: input, shape index: {}]   ;;  %s716_s6 = inlined_call_operand.vmem [shape: bf16[128,16], index: 6, kind: output, shape index: {}]  }
   0x1 LB: > { %s535_s22 = sadd.s32 4294967295, %s622_s21   ;;  %p539_p0 = scmp.ge.s32.totalorder %s622_s21, 1  ;;  %s622_s21 = sphi %s659_s21, %s16_s21  }
   0x2   : > { %p213_p1 = scmp.lt.s32.totalorder %s622_s21, 3 }
   0x4   : > { %p214_p2 = pnand %p539_p0, %p213_p1 }
   0x5   : > { %v615_v0 = vld [vmem:[%s711_s1] sm:$0xff] (!%p214_p2)   ;;  %s540_s25 = sshll.u32 (!%p214_p2), %s535_s22, 3  ;;  %vm322_vm0 = vcmask (!%p214_p2), 130048   ;;  %vm470_vm1 = vcmask (!%p214_p2), 125952  }
   0x6   : > { %217 = sbr.rel (%p214_p2) target bundleno = 252 (0xfc), region = 44  ;;  %p244_p3 = scmp.lt.s32.totalorder (!%p214_p2), %s540_s25, 15  ;;  %595 = vmatprep.subr.bf16.mxu0 (!%p214_p2), %v615_v0  ;;  %605 = vmatprep.subr.bf16.mxu1 (!%p214_p2), %v615_v0  ;;  %v544_v1 = vld [vmem:[%s712_s2] ss:$0 sm:$0xff] (!%p214_p2) }
   0x7   : > { %596 = vmatpush3.bf16.msra.mxu0 (!%p214_p2), %v615_v0  ;;  %606 = vmatpush3.bf16.msra.mxu1 (!%p214_p2), %v615_v0  ;;  %v545_v10 = vld [vmem:[%s713_s3] ss:$0 sm:$0xff] (!%p214_p2) }
   0x8   : > { %v551_v43 = vld [vmem:[%s714_s4] ss:$0 sm:$0xff] (!%p214_p2) }
   0x9   : > { %v552_v45 = vld [vmem:[%s715_s5] ss:$0 sm:$0xff] (!%p214_p2) }
   0xd   : > { %s718_s25 = smov (!%p244_p3, %s540_s25), 15 }
   0xe   : > { %s541_s26 = sshll.u32 %s718_s25, 2 }
   0xf   : > { %s247_s29 = scalar_lea.vmem %s710_s0, %s541_s26  ;;  %s253_s16 = scalar_lea.vmem %s716_s6, %s541_s26 }
  0x10   : > { %v572_v2 = vld [vmem:[%s247_s29] sm:$0xff]   ;;  %v588_v3 = vld [vmem:[%s247_s29 + $0x10] sm:$0xff]   ;;  %v587_v4 = vld [vmem:[%s247_s29 + $0x8] sm:$0xff]  }
  0x11   : > { %v573_v5 = vunpack.c.l.bf16 %v572_v2  ;;  %v574_v6 = vunpack.c.h.bf16 %v572_v2  ;;  %v581_v7 = vunpack.c.l.bf16 %v588_v3  ;;  %v582_v8 = vunpack.c.h.bf16 %v588_v3  ;;  %v589_v9 = vld [vmem:[%s247_s29 + $0x18] sm:$0xff]  }
  0x12   : > { %v577_v11 = vunpack.c.l.bf16 %v587_v4  ;;  %v578_v12 = vunpack.c.h.bf16 %v587_v4  ;;  %v585_v13 = vunpack.c.l.bf16 %v589_v9  ;;  %v586_v14 = vunpack.c.h.bf16 %v589_v9 }
  0x13   : > { %v279_v15 = vmul.f32 %v573_v5, %v544_v1  ;;  %v280_v16 = vmul.f32 %v574_v6, %v544_v1  ;;  %v283_v17 = vmul.f32 %v581_v7, %v544_v1  ;;  %v284_v18 = vmul.f32 %v582_v8, %v544_v1 }
  0x14   : > { %v281_v19 = vmul.f32 %v577_v11, %v544_v1  ;;  %v282_v20 = vmul.f32 %v578_v12, %v544_v1  ;;  %v285_v21 = vmul.f32 %v585_v13, %v544_v1  ;;  %v286_v22 = vmul.f32 %v586_v14, %v544_v1 }
  0x15   : > { %v294_v23 = vadd.f32 %v545_v10, %v279_v15  ;;  %v295_v24 = vadd.f32 %v545_v10, %v280_v16  ;;  %v298_v25 = vadd.f32 %v545_v10, %v283_v17  ;;  %v299_v26 = vadd.f32 %v545_v10, %v284_v18 }
  0x16   : > { %v296_v27 = vadd.f32 %v545_v10, %v281_v19  ;;  %v297_v28 = vadd.f32 %v545_v10, %v282_v20  ;;  %v300_v29 = vadd.f32 %v545_v10, %v285_v21  ;;  %v301_v30 = vadd.f32 %v545_v10, %v286_v22 }
  0x17   : > { %v302_v31 = vmax.f32 %v294_v23, 0.0  ;;  %v303_v32 = vmax.f32 %v295_v24, 0.0  ;;  %v306_v33 = vmax.f32 %v298_v25, 0.0  ;;  %v307_v34 = vmax.f32 %v299_v26, 0.0 }
  0x18   : > { %v304_v35 = vmax.f32 %v296_v27, 0.0  ;;  %v305_v36 = vmax.f32 %v297_v28, 0.0  ;;  %v308_v37 = vmax.f32 %v300_v29, 0.0  ;;  %v309_v38 = vmax.f32 %v301_v30, 0.0 }
  0x19   : > { %v310_v39 = vpack.c.bf16 %v303_v32, %v302_v31  ;;  %v312_v40 = vpack.c.bf16 %v307_v34, %v306_v33 }
  0x1a   : > { %v311_v41 = vpack.c.bf16 %v305_v36, %v304_v35  ;;  %v313_v42 = vpack.c.bf16 %v309_v38, %v308_v37 }
  0x1b   : > { %597 = vmatprep.mubr.msk.bf16.mxu0 %vm322_vm0, %v310_v39  ;;  %601 = vmatprep.mubr.msk.bf16.mxu1 %vm322_vm0, %v312_v40 }
  0x1c   : > { %598 = vmatmul.mubr.msk.bf16.vlgmr.msra.gmra.mrb[0].mxu0 %vm322_vm0, %v311_v41  ;;  %602 = vmatmul.mubr.msk.bf16.vlgmr.msra.gmra.mrb[0].mxu1 %vm322_vm0, %v313_v42 }
  0xef   : > { %v599_v44 = vpop.f32.mrb[0].mxu0  ;;  %v603_v46 = vpop.f32.mrb[0].mxu1 }
  0xf0   : > { %v409_v47 = vmul.f32 %v599_v44, %v551_v43  ;;  %v413_v48 = vmul.f32 %v603_v46, %v551_v43  ;;  %v369_v49 = vpop.f32.mrb[1].mxu0  ;;  %v385_v50 = vpop.f32.mrb[1].mxu1 }
  0xf1   : > { %v407_v51 = vmul.f32 %v551_v43, %v369_v49  ;;  %v411_v52 = vmul.f32 %v551_v43, %v385_v50  ;;  %v600_v53 = vpop.f32.mrb[2].mxu0  ;;  %v604_v54 = vpop.f32.mrb[2].mxu1 }
  0xf2   : > { %v424_v55 = vadd.f32 %v552_v45, %v409_v47  ;;  %v428_v56 = vadd.f32 %v552_v45, %v413_v48  ;;  %v410_v57 = vmul.f32 %v600_v53, %v551_v43  ;;  %v414_v58 = vmul.f32 %v604_v54, %v551_v43  ;;  %v372_v59 = vpop.f32.mrb[3].mxu0  ;;  %v388_v60 = vpop.f32.mrb[3].mxu1 }
  0xf3   : > { %v422_v61 = vadd.f32 %v552_v45, %v407_v51  ;;  %v426_v62 = vadd.f32 %v552_v45, %v411_v52  ;;  %v408_v63 = vmul.f32 %v551_v43, %v372_v59  ;;  %v412_v0 = vmul.f32 %v551_v43, %v388_v60 }
  0xf4   : > { %v432_v1 = vmax.f32 %v424_v55, 0.0  ;;  %v436_v2 = vmax.f32 %v428_v56, 0.0  ;;  %v425_v3 = vadd.f32 %v552_v45, %v410_v57  ;;  %v429_v4 = vadd.f32 %v552_v45, %v414_v58 }
  0xf5   : > { %v430_v5 = vmax.f32 %v422_v61, 0.0  ;;  %v434_v6 = vmax.f32 %v426_v62, 0.0  ;;  %v423_v7 = vadd.f32 %v552_v45, %v408_v63  ;;  %v427_v8 = vadd.f32 %v552_v45, %v412_v0 }
  0xf6   : > { %v565_v9 = vpack.c.bf16 %v432_v1, %v432_v1  ;;  %v569_v10 = vpack.c.bf16 %v436_v2, %v436_v2  ;;  %v433_v11 = vmax.f32 %v425_v3, 0.0  ;;  %v437_v12 = vmax.f32 %v429_v4, 0.0 }
  0xf7   : > { %v563_v13 = vpack.c.bf16 %v430_v5, %v430_v5  ;;  %v567_v14 = vpack.c.bf16 %v434_v6, %v434_v6  ;;  %v431_v15 = vmax.f32 %v423_v7, 0.0  ;;  %v435_v16 = vmax.f32 %v427_v8, 0.0 }
  0xf8   : > { %473 = vst.msk [vmem:[%s253_s16 + $0x8] sm:$0xf] %vm470_vm1, %v565_v9  ;;  %477 = vst.msk [vmem:[%s253_s16 + $0x18] sm:$0xf] %vm470_vm1, %v569_v10  ;;  %v566_v17 = vpack.c.bf16 %v433_v11, %v433_v11  ;;  %v570_v18 = vpack.c.bf16 %v437_v12, %v437_v12 }
  0xf9   : > { %471 = vst.msk [vmem:[%s253_s16] sm:$0xf] %vm470_vm1, %v563_v13  ;;  %475 = vst.msk [vmem:[%s253_s16 + $0x10] sm:$0xf] %vm470_vm1, %v567_v14  ;;  %v564_v19 = vpack.c.bf16 %v431_v15, %v431_v15  ;;  %v568_v20 = vpack.c.bf16 %v435_v16, %v435_v16 }
  0xfa   : > { %474 = vst.msk [vmem:[%s253_s16 + $0xc] sm:$0xf] %vm470_vm1, %v566_v17  ;;  %478 = vst.msk [vmem:[%s253_s16 + $0x1c] sm:$0xf] %vm470_vm1, %v570_v18 }
  0xfb   : > { %472 = vst.msk [vmem:[%s253_s16 + $0x4] sm:$0xf] %vm470_vm1, %v564_v19  ;;  %476 = vst.msk [vmem:[%s253_s16 + $0x14] sm:$0xf] %vm470_vm1, %v568_v20 }
  0xfc PF: > { %s16_s21 = sadd.s32 1, %s622_s21  }
  0xfd   : > { %p13_p4 = scmp.ge.s32.totalorder %s16_s21, 4  }
  0xff   :  { %15 = sbr.rel (!%p13_p4) target bundleno = 1 (0x1), region = 74 }

// kernel: densenet_backbone_forward.14
= control target key start
LH: loop header
LB: loop body
LE: loop exit
PB: predicated region body
PF: predicated region fallthrough
CT: control target
= control target key end

     0   :  { %s957_s12 = smov 0   ;;  %s959_s13 = smov 0   ;;  %s1090_s0 = inlined_call_operand.vmem [shape: bf16[2,18,9,2,16], index: 0, kind: input, shape index: {}, may-alias: {0,1,2}]   ;;  %s1091_s1 = inlined_call_operand.vmem [shape: bf16[2,18,9,2,16], index: 1, kind: input, shape index: {}, may-alias: {0,1,2}]   ;;  %s1092_s2 = inlined_call_operand.vmem [shape: bf16[2,18,9,2,16], index: 2, kind: input, shape index: {}, may-alias: {0,1,2}]   ;;  %s1093_s3 = inlined_call_operand.vmem [shape: bf16[2,8,8,16], index: 3, kind: output, shape index: {}]  }
   0x1   :  { %s961_s14 = smov 0   ;;  %s963_s15 = smov 0  }
   0x2   :  { %s965_s16 = smov 0  }
   0x3 LB: > { %s22_s17 = sadd.s32 1, %s926_s14  ;;  %s25_s18 = sadd.s32 1, %s930_s15  ;;  %s934_s16 = sphi %s965_s16, %s13_s16   ;;  %s930_s15 = sphi %s963_s15, %s1097_s15   ;;  %s926_s14 = sphi %s961_s14, %s1096_s14   ;;  %s922_s13 = sphi %s959_s13, %s1095_s13   ;;  %s918_s12 = sphi %s957_s12, %s1094_s12  }
   0x4   : > { %p23_p0 = scmp.ge.s32.totalorder %s22_s17, 8  ;;  %p819_p1 = scmp.ge.s32.totalorder %s934_s16, 1 }
   0x5   : > { %p206_p2 = scmp.lt.s32.totalorder %s934_s16, 17 }
   0x6   : > { %s1099_s17 = smov (%p23_p0, %s22_s17), 0  ;;  %s1101_s18 = smov (!%p23_p0, %s25_s18), %s930_s15 }
   0x7   : > { %p207_p3 = pnand %p819_p1, %p206_p2  ;;  %p27_p4 = scmp.ge.s32.totalorder %s1101_s18, 2 }
   0x8   : > { %s820_s19 = sshll.u32 (!%p207_p3), %s918_s12, 1  ;;  %p258_p5 = scmp.lt.s32.totalorder (!%p207_p3), %s922_s13, 1  ;;  %v936_v0 = vmov (!%p207_p3), 1935823168   ;;  %v545_v2 = vlaneseq (!%p207_p3)  ;;  %vm663_vm0 = vcmask (!%p207_p3), 1041409   ;;  %vm666_vm1 = vcmask (!%p207_p3), 1042434  }
   0x9   : > { %s1103_s18 = smov (%p27_p4, %s1101_s18), 0  ;;  %210 = sbr.rel (%p207_p3) target bundleno = 65 (0x41), region = 32 }
   0xa   : > { %p260_p6 = scmp.lt.s32.totalorder (!%p207_p3), %s820_s19, 17  ;;  %s268_s20 = sadd.s32 (!%p207_p3), 1, %s820_s19  ;;  %v543_v1 = vunpack.c.l.s4 (!%p207_p3), %v936_v0  ;;  %v546_v4 = vshrl.u32 (!%p207_p3), %v545_v2, 7  ;;  %vm669_vm2 = vcmask (!%p207_p3), 1043459   ;;  %vm672_vm3 = vcmask (!%p207_p3), 1044484  }
   0xb   : > { %p271_p7 = scmp.lt.s32.totalorder (!%p207_p3), %s268_s20, 17  ;;  %s280_s24 = sadd.s32 (!%p207_p3), 2, %s820_s19  ;;  %vm675_vm4 = vcmask (!%p207_p3), 1045509   ;;  %vm678_vm5 = vcmask (!%p207_p3), 1046534   ;;  %vm681_vm6 = vcmask (!%p207_p3), 1047559   ;;  %vm685_vm7 = vcmask (!%p207_p3), 125952  }
   0xc   : > { %p283_p8 = scmp.lt.s32.totalorder (!%p207_p3), %s280_s24, 17  ;;  %v544_v3 = vunpack.c.0.s8 (!%p207_p3), %v543_v1  ;;  %p293_p9 = scmp.lt.s32.totalorder (!%p207_p3), %s918_s12, 7 }
   0xe   : > { %v1018_v17 = vsub.s32 (!%p207_p3), %v544_v3, %v546_v4 }
  0x10   : > { %s1105_s13 = smov (!%p258_p5, %s922_s13), 1  ;;  %s1107_s20 = smov (!%p271_p7, %s268_s20), 17 }
  0x11   : > { %s261_s21 = scalar_select %p260_p6, %s820_s19, 17 }
  0x12   : > { %s993_s22 = smul.u32 162, %s1105_s13  ;;  %s1109_s24 = smov (!%p283_p8, %s280_s24), 17 }
  0x13   : > { %s851_s23 = smul.u32 9, %s261_s21  ;;  %s1111_s12 = smov (!%p293_p9, %s918_s12), 7 }
  0x14   : > { %s853_s29 = smul.u32 9, %s1107_s20  ;;  %s823_s19 = sshll.u32 %s1105_s13, 3 }
  0x15   : > { %s264_s25 = sadd.s32 %s993_s22, %s851_s23  ;;  %s854_s7 = smul.u32 9, %s1109_s24 }
  0x16   : > { %s999_s28 = scalar_lea.vmem %s1090_s0, %s264_s25  ;;  %s275_s30 = sadd.s32 %s853_s29, %s993_s22 }
  0x17   : > { %v299_v5 = vld [vmem:[%s999_s28] sm:$0x1]  ;;  %v300_v6 = vld [vmem:[%s999_s28 + $0x1] sm:$0x1]  ;;  %v301_v7 = vld [vmem:[%s999_s28 + $0x2] sm:$0x1]  ;;  %s1011_s6 = scalar_lea.vmem %s1091_s1, %s275_s30  ;;  %s287_s8 = sadd.s32 %s854_s7, %s993_s22 }
  0x18   : > { %v302_v8 = vld [vmem:[%s999_s28 + $0x3] sm:$0x1]  ;;  %v309_v9 = vshrl.u32 %v299_v5, 16  ;;  %v303_v10 = vld [vmem:[%s999_s28 + $0x4] sm:$0x1]  ;;  %v314_v12 = vshrl.u32 %v300_v6, 16  ;;  %s1036_s11 = scalar_lea.vmem %s1092_s2, %s287_s8  ;;  %s296_s20 = sadd.s32 %s823_s19, %s1111_s12 }
  0x19   : > { %v304_v11 = vld [vmem:[%s999_s28 + $0x5] sm:$0x1]  ;;  %v305_v13 = vld [vmem:[%s999_s28 + $0x6] sm:$0x1]  ;;  %v306_v14 = vld [vmem:[%s999_s28 + $0x7] sm:$0x1] }
  0x1a   : > { %v319_v15 = vshrl.u32 %v301_v7, 16  ;;  %v356_v16 = vmax.bf16 %v309_v9, %v299_v5  ;;  %v324_v18 = vshrl.u32 %v302_v8, 16  ;;  %v329_v19 = vshrl.u32 %v303_v10, 16  ;;  %v372_v26 = vld [vmem:[%s1011_s6] sm:$0x1]  ;;  %s824_s13 = sshll.u32 %s296_s20, 2 }
  0x1b   : > { %v334_v20 = vshrl.u32 %v304_v11, 16  ;;  %v357_v21 = vmax.bf16 %v314_v12, %v300_v6  ;;  %v339_v22 = vshrl.u32 %v305_v13, 16  ;;  %v344_v23 = vshrl.u32 %v306_v14, 16  ;;  %v1022_v27 = vld [vmem:[%s1011_s6 + $0x1] sm:$0x1]  ;;  %s298_s23 = scalar_lea.vmem %s1093_s3, %s824_s13 }
  0x1c   : > { %v358_v24 = vmax.bf16 %v319_v15, %v301_v7  ;;  %v364_v25 = vmax.bf16 %v356_v16, %v300_v6  ;;  %v307_v28 = vld [vmem:[%s999_s28 + $0x8] sm:$0x1]  ;;  %v359_v29 = vmax.bf16 %v324_v18, %v302_v8  ;;  %v360_v30 = vmax.bf16 %v329_v19, %v303_v10  ;;  %v374_v33 = vld [vmem:[%s1011_s6 + $0x2] sm:$0x1]  ;;  %v375_v37 = vld [vmem:[%s1011_s6 + $0x3] sm:$0x1] }
  0x1d   : > { %v361_v31 = vmax.bf16 %v334_v20, %v304_v11  ;;  %v365_v32 = vmax.bf16 %v357_v21, %v301_v7  ;;  %v362_v34 = vmax.bf16 %v339_v22, %v305_v13  ;;  %v363_v35 = vmax.bf16 %v344_v23, %v306_v14  ;;  %v376_v38 = vld [vmem:[%s1011_s6 + $0x4] sm:$0x1]  ;;  %v377_v39 = vld [vmem:[%s1011_s6 + $0x5] sm:$0x1]  ;;  %v378_v44 = vld [vmem:[%s1011_s6 + $0x6] sm:$0x1] }
  0x1e   : > { %v366_v36 = vmax.bf16 %v358_v24, %v302_v8  ;;  %v381_v40 = vmax.bf16 %v372_v26, %v364_v25  ;;  %v367_v41 = vmax.bf16 %v359_v29, %v303_v10  ;;  %v368_v42 = vmax.bf16 %v360_v30, %v304_v11  ;;  %v379_v45 = vld [vmem:[%s1011_s6 + $0x7] sm:$0x1]  ;;  %v380_v63 = vld [vmem:[%s1011_s6 + $0x8] sm:$0x1]  ;;  %v453_v4 = vld [vmem:[%s1036_s11] sm:$0x1] }
  0x1f   : > { %v369_v43 = vmax.bf16 %v361_v31, %v305_v13  ;;  %v382_v46 = vmax.bf16 %v1022_v27, %v365_v32  ;;  %v370_v47 = vmax.bf16 %v362_v34, %v306_v14  ;;  %v371_v48 = vmax.bf16 %v363_v35, %v307_v28  ;;  %v454_v5 = vld [vmem:[%s1036_s11 + $0x1] sm:$0x1]  ;;  %v455_v10 = vld [vmem:[%s1036_s11 + $0x2] sm:$0x1]  ;;  %v456_v11 = vld [vmem:[%s1036_s11 + $0x3] sm:$0x1] }
  0x20   : > { %v383_v49 = vmax.bf16 %v374_v33, %v366_v36  ;;  %v390_v50 = vshrl.u32 %v372_v26, 16  ;;  %v384_v51 = vmax.bf16 %v375_v37, %v367_v41  ;;  %v385_v52 = vmax.bf16 %v376_v38, %v368_v42  ;;  %v457_v12 = vld [vmem:[%s1036_s11 + $0x4] sm:$0x1]  ;;  %v458_v18 = vld [vmem:[%s1036_s11 + $0x5] sm:$0x1] }
  0x21   : > { %v386_v53 = vmax.bf16 %v377_v39, %v369_v43  ;;  %v395_v54 = vshrl.u32 %v1022_v27, 16  ;;  %v387_v55 = vmax.bf16 %v378_v44, %v370_v47  ;;  %v388_v56 = vmax.bf16 %v379_v45, %v371_v48  ;;  %v459_v19 = vld [vmem:[%s1036_s11 + $0x6] sm:$0x1]  ;;  %v460_v20 = vld [vmem:[%s1036_s11 + $0x7] sm:$0x1] }
  0x22   : > { %v400_v57 = vshrl.u32 %v374_v33, 16  ;;  %v405_v58 = vshrl.u32 %v375_v37, 16  ;;  %v410_v59 = vshrl.u32 %v376_v38, 16  ;;  %v415_v60 = vshrl.u32 %v377_v39, 16  ;;  %v461_v41 = vld [vmem:[%s1036_s11 + $0x8] sm:$0x1] }
  0x23   : > { %v420_v61 = vshrl.u32 %v378_v44, 16  ;;  %v425_v62 = vshrl.u32 %v379_v45, 16  ;;  %v437_v0 = vmax.bf16 %v390_v50, %v381_v40  ;;  %v438_v1 = vmax.bf16 %v395_v54, %v382_v46 }
  0x24   : > { %v439_v2 = vmax.bf16 %v400_v57, %v383_v49  ;;  %v440_v3 = vmax.bf16 %v405_v58, %v384_v51  ;;  %v441_v6 = vmax.bf16 %v410_v59, %v385_v52  ;;  %v442_v7 = vmax.bf16 %v415_v60, %v386_v53 }
  0x25   : > { %v443_v8 = vmax.bf16 %v420_v61, %v387_v55  ;;  %v444_v9 = vmax.bf16 %v425_v62, %v388_v56  ;;  %v445_v13 = vmax.bf16 %v437_v0, %v1022_v27  ;;  %v446_v14 = vmax.bf16 %v438_v1, %v374_v33 }
  0x26   : > { %v447_v15 = vmax.bf16 %v439_v2, %v375_v37  ;;  %v448_v16 = vmax.bf16 %v440_v3, %v376_v38  ;;  %v449_v21 = vmax.bf16 %v441_v6, %v377_v39  ;;  %v450_v22 = vmax.bf16 %v442_v7, %v378_v44 }
  0x27   : > { %v451_v23 = vmax.bf16 %v443_v8, %v379_v45  ;;  %v452_v24 = vmax.bf16 %v444_v9, %v380_v63  ;;  %v462_v25 = vmax.bf16 %v453_v4, %v445_v13  ;;  %v463_v26 = vmax.bf16 %v454_v5, %v446_v14 }
  0x28   : > { %v464_v28 = vmax.bf16 %v455_v10, %v447_v15  ;;  %v465_v29 = vmax.bf16 %v456_v11, %v448_v16  ;;  %v466_v30 = vmax.bf16 %v457_v12, %v449_v21  ;;  %v467_v31 = vmax.bf16 %v458_v18, %v450_v22 }
  0x29   : > { %v468_v32 = vmax.bf16 %v459_v19, %v451_v23  ;;  %v469_v34 = vmax.bf16 %v460_v20, %v452_v24  ;;  %v471_v27 = vshrl.u32 %v453_v4, 16  ;;  %v476_v33 = vshrl.u32 %v454_v5, 16 }
  0x2a   : > { %v481_v35 = vshrl.u32 %v455_v10, 16  ;;  %v486_v36 = vshrl.u32 %v456_v11, 16  ;;  %v491_v37 = vshrl.u32 %v457_v12, 16  ;;  %v496_v38 = vshrl.u32 %v458_v18, 16 }
  0x2b   : > { %v501_v40 = vshrl.u32 %v459_v19, 16  ;;  %v506_v39 = vshrl.u32 %v460_v20, 16  ;;  %v518_v42 = vmax.bf16 %v471_v27, %v462_v25  ;;  %v519_v43 = vmax.bf16 %v476_v33, %v463_v26 }
  0x2c   : > { %v520_v44 = vmax.bf16 %v481_v35, %v464_v28  ;;  %v521_v45 = vmax.bf16 %v486_v36, %v465_v29  ;;  %v522_v46 = vmax.bf16 %v491_v37, %v466_v30  ;;  %v523_v47 = vmax.bf16 %v496_v38, %v467_v31 }
  0x2d   : > { %v524_v48 = vmax.bf16 %v501_v40, %v468_v32  ;;  %v525_v49 = vmax.bf16 %v506_v39, %v469_v34  ;;  %v526_v50 = vmax.bf16 %v518_v42, %v454_v5  ;;  %v527_v51 = vmax.bf16 %v519_v43, %v455_v10 }
  0x2e   : > { %v528_v52 = vmax.bf16 %v520_v44, %v456_v11  ;;  %v529_v53 = vmax.bf16 %v521_v45, %v457_v12  ;;  %v530_v54 = vmax.bf16 %v522_v46, %v458_v18  ;;  %v531_v55 = vmax.bf16 %v523_v47, %v459_v19 }
  0x2f   : > { %v532_v56 = vmax.bf16 %v524_v48, %v460_v20  ;;  %v533_v57 = vmax.bf16 %v525_v49, %v461_v41  ;;  %v548_v58 = vrot.slane %v526_v50, %v1018_v17  ;;  %v562_v59 = vrot.slane %v527_v51, %v1018_v17 }
  0x30   : > { %v576_v60 = vrot.slane %v528_v52, %v1018_v17  ;;  %v590_v61 = vrot.slane %v529_v53, %v1018_v17  ;;  %v604_v62 = vrot.slane %v530_v54, %v1018_v17  ;;  %v618_v63 = vrot.slane %v531_v55, %v1018_v17 }
  0x31   : > { %v632_v0 = vrot.slane %v532_v56, %v1018_v17  ;;  %v646_v1 = vrot.slane %v533_v57, %v1018_v17  ;;  %v555_v2 = vrot.slane %v548_v58, %v1018_v17  ;;  %v569_v3 = vrot.slane %v562_v59, %v1018_v17 }
  0x32   : > { %v583_v4 = vrot.slane %v576_v60, %v1018_v17  ;;  %v597_v5 = vrot.slane %v590_v61, %v1018_v17  ;;  %v611_v6 = vrot.slane %v604_v62, %v1018_v17  ;;  %v625_v7 = vrot.slane %v618_v63, %v1018_v17 }
  0x33   : > { %v639_v8 = vrot.slane %v632_v0, %v1018_v17  ;;  %v653_v9 = vrot.slane %v646_v1, %v1018_v17  ;;  %v654_v10 = vunpack.c.l.b16 %v555_v2  ;;  %v655_v11 = vunpack.c.l.b16 %v569_v3 }
  0x34   : > { %v656_v12 = vunpack.c.l.b16 %v583_v4  ;;  %v657_v13 = vunpack.c.l.b16 %v597_v5  ;;  %v658_v14 = vunpack.c.l.b16 %v611_v6  ;;  %v659_v15 = vunpack.c.l.b16 %v625_v7 }
  0x35   : > { %v660_v16 = vunpack.c.l.b16 %v639_v8  ;;  %v661_v18 = vunpack.c.l.b16 %v653_v9  ;;  %v662_v19 = vrot.slane %v655_v11, 7 }
  0x36   : > { %v665_v20 = vrot.slane %v656_v12, 6  ;;  %v668_v21 = vrot.slane %v657_v13, 5  ;;  %v671_v22 = vrot.slane %v658_v14, 4  ;;  %v674_v23 = vrot.slane %v659_v15, 3 }
  0x37   : > { %v664_v17 = vsel %vm663_vm0, %v662_v19, %v654_v10  ;;  %v677_v25 = vrot.slane %v660_v16, 2  ;;  %v680_v28 = vrot.slane %v661_v18, 1 }
  0x38   : > { %v667_v24 = vsel %vm666_vm1, %v665_v20, %v664_v17 }
  0x39   : > { %v670_v26 = vsel %vm669_vm2, %v668_v21, %v667_v24 }
  0x3a   : > { %v673_v29 = vsel %vm672_vm3, %v671_v22, %v670_v26 }
  0x3b   : > { %v676_v30 = vsel %vm675_vm4, %v674_v23, %v673_v29 }
  0x3c   : > { %v679_v31 = vsel %vm678_vm5, %v677_v25, %v676_v30 }
  0x3d   : > { %v682_v32 = vsel %vm681_vm6, %v680_v28, %v679_v31 }
  0x3e   : > { %v683_v34 = vpack.c.b16 %v682_v32, %v682_v32 }
  0x40   : > { %686 = vst.msk [vmem:[%s298_s23] sm:$0xf] %vm685_vm7, %v683_v34 }
  0x41 PF: > { %s13_s16 = sadd.s32 1, %s934_s16   ;;  %s1094_s12 = smov %s926_s14 }
  0x42   : > { %p10_p10 = scmp.ge.s32.totalorder %s13_s16, 18   ;;  %s1095_s13 = smov %s930_s15 }
  0x43   : > { %s1096_s14 = smov %s1099_s17  ;;  %s1097_s15 = smov %s1103_s18 }
  0x44   :  { %12 = sbr.rel (!%p10_p10) target bundleno = 3 (0x3), region = 68 }

// kernel: densenet_backbone_forward.16
= control target key start
LH: loop header
LB: loop body
LE: loop exit
PB: predicated region body
PF: predicated region fallthrough
CT: control target
= control target key end

     0   :  { %s1313_s18 = smov 0   ;;  %s1315_s19 = smov 0   ;;  %s1454_s0 = inlined_call_operand.vmem [shape: bf16[2,10,10,16], index: 0, kind: input, shape index: {}, may-alias: {0,1,2}]   ;;  %s1455_s1 = inlined_call_operand.vmem [shape: bf16[2,10,10,16], index: 1, kind: input, shape index: {}, may-alias: {0,1,2}]   ;;  %s1456_s2 = inlined_call_operand.vmem [shape: bf16[2,10,10,16], index: 2, kind: input, shape index: {}, may-alias: {0,1,2}]   ;;  %s1457_s3 = inlined_call_operand.vmem [shape: bf16[3,3,16,8], index: 3, kind: input, shape index: {}]   ;;  %s1458_s4 = inlined_call_operand.vmem [shape: bf16[2,8,8,16], index: 4, kind: input, shape index: {}]   ;;  %s1459_s5 = inlined_call_operand.vmem [shape: bf16[2,8,8,24], index: 5, kind: output, shape index: {}]  }
   0x1   :  { %s1317_s20 = smov 0   ;;  %s1319_s21 = smov 0  }
   0x2   :  { %s1321_s22 = smov 0  }
   0x3 LB: > { %s24_s23 = sadd.s32 1, %s1270_s20  ;;  %s27_s24 = sadd.s32 1, %s1274_s21  ;;  %s1278_s22 = sphi %s1321_s22, %s15_s22   ;;  %s1274_s21 = sphi %s1319_s21, %s1463_s21   ;;  %s1270_s20 = sphi %s1317_s20, %s1462_s20   ;;  %s1266_s19 = sphi %s1315_s19, %s1461_s19   ;;  %s1262_s18 = sphi %s1313_s18, %s1460_s18  }
   0x4   : > { %p25_p0 = scmp.ge.s32.totalorder %s24_s23, 8  ;;  %p1049_p1 = scmp.ge.s32.totalorder %s1278_s22, 1 }
   0x5   : > { %p262_p2 = scmp.lt.s32.totalorder %s1278_s22, 17 }
   0x6   : > { %s1465_s23 = smov (%p25_p0, %s24_s23), 0  ;;  %s1467_s24 = smov (!%p25_p0, %s27_s24), %s1274_s21 }
   0x7   : > { %p263_p3 = pnand %p1049_p1, %p262_p2  ;;  %p29_p4 = scmp.ge.s32.totalorder %s1467_s24, 2 }
   0x8   : > { %v1228_v0 = vld [vmem:[%s1457_s3 + $0x20] sm:$0xff] (!%p263_p3)   ;;  %v1280_v1 = vmov (!%p263_p3), 0.0   ;;  %v1229_v2 = vld [vmem:[%s1457_s3 + $0x8] sm:$0xff] (!%p263_p3)   ;;  %vm1281_vm0 = vmmov (!%p263_p3), 0   ;;  %p325_p5 = scmp.lt.s32.totalorder (!%p263_p3), %s1266_s19, 1  ;;  %p327_p6 = scmp.lt.s32.totalorder (!%p263_p3), %s1262_s18, 9 }
   0x9   : > { %s1469_s24 = smov (%p29_p4, %s1467_s24), 0  ;;  %266 = sbr.rel (%p263_p3) target bundleno = 415 (0x19f), region = 40 }
   0xa   : > { %1125 = vmatprep.subr.bf16.mxu0 (!%p263_p3), %v1280_v1  ;;  %1101 = vmatprep.subr.bf16.mxu1 (!%p263_p3), %v1280_v1  ;;  %s334_s29 = sadd.s32 (!%p263_p3), 1, %s1262_s18  ;;  %vm411_vm1 = vcmask (!%p263_p3), 130048   ;;  %v1233_v11 = vld [vmem:[%s1457_s3] sm:$0xff] (!%p263_p3)   ;;  %s345_s28 = sadd.s32 (!%p263_p3), 2, %s1262_s18  ;;  %v1232_v17 = vld [vmem:[%s1457_s3 + $0x28] sm:$0xff] (!%p263_p3)   ;;  %v1235_v19 = vld [vmem:[%s1457_s3 + $0x10] sm:$0xff] (!%p263_p3)  }
   0xb   : > { %1126 = vmatpush3.bf16.msra.mxu0 (!%p263_p3), %v1228_v0  ;;  %1103 = vmatprep.mubr.msk.bf16.mxu1 (!%p263_p3), %vm1281_vm0, %v1280_v1  ;;  %p337_p7 = scmp.lt.s32.totalorder (!%p263_p3), %s334_s29, 9  ;;  %p348_p8 = scmp.lt.s32.totalorder (!%p263_p3), %s345_s28, 9  ;;  %v1234_v21 = vld [vmem:[%s1457_s3 + $0x30] sm:$0xff] (!%p263_p3)   ;;  %v1238_v23 = vld [vmem:[%s1457_s3 + $0x18] sm:$0xff] (!%p263_p3)   ;;  %v1239_v32 = vld [vmem:[%s1457_s3 + $0x40] sm:$0xff] (!%p263_p3)   ;;  %vm894_vm2 = vcmask (!%p263_p3), 191488  }
   0xc   : > { %1102 = vmatpush3.bf16.msra.mxu1 (!%p263_p3), %v1229_v2  ;;  %1127 = vmatprep.mubr.msk.bf16.mxu0 (!%p263_p3), %vm1281_vm0, %v1280_v1  ;;  %v1237_v27 = vld [vmem:[%s1457_s3 + $0x38] sm:$0xff] (!%p263_p3)   ;;  %p358_p9 = scmp.lt.s32.totalorder (!%p263_p3), %s1262_s18, 7 }
   0xd   : > { %1131 = vmatprep.subr.bf16.mxu0 (!%p263_p3), %v1280_v1  ;;  %1107 = vmatprep.subr.bf16.mxu1 (!%p263_p3), %v1280_v1 }
  0x10   : > { %s1471_s19 = smov (!%p325_p5, %s1266_s19), 1  ;;  %s1473_s29 = smov (!%p337_p7, %s334_s29), 9 }
  0x11   : > { %s328_s30 = scalar_select %p327_p6, %s1262_s18, 9 }
  0x12   : > { %s1365_s6 = smul.u32 20, %s1471_s19  ;;  %s1052_s13 = sshll.u32 %s1473_s29, 1 }
  0x13   : > { %s1050_s7 = sshll.u32 %s328_s30, 1  ;;  %s1475_s28 = smov (!%p348_p8, %s345_s28), 9 }
  0x14   : > { %s331_s8 = sadd.s32 %s1365_s6, %s1050_s7  ;;  %s341_s14 = sadd.s32 %s1365_s6, %s1052_s13 }
  0x15   : > { %s1051_s9 = sshll.u32 %s331_s8, 2  ;;  %s1053_s15 = sshll.u32 %s341_s14, 2 }
  0x16   : > { %s333_s12 = scalar_lea.vmem %s1454_s0, %s1051_s9  ;;  %s343_s25 = scalar_lea.vmem %s1455_s1, %s1053_s15 }
  0x17   : > { %v391_v3 = vld [vmem:[%s333_s12] sm:$0xf]  ;;  %v392_v4 = vld [vmem:[%s333_s12 + $0x4] sm:$0x1]  ;;  %s1054_s9 = sshll.u32 %s1475_s28, 1  ;;  %s1282_s29 = smov 16  }
  0x18   : > { %v1060_v5 = vcombine.low %v391_v3, %v392_v4  ;;  %v555_v9 = vld [vmem:[%s343_s25] sm:$0xf]  ;;  %v556_v10 = vld [vmem:[%s343_s25 + $0x4] sm:$0x1]  ;;  %s352_s12 = sadd.s32 %s1365_s6, %s1054_s9  ;;  %s1477_s18 = smov (!%p358_p9, %s1262_s18), 7 }
  0x19   : > { %v1069_v13 = vcombine.low %v555_v9, %v556_v10  ;;  %s1055_s13 = sshll.u32 %s352_s12, 2  ;;  %s1056_s30 = sshll.u32 %s1471_s19, 3 }
  0x1a   : > { %v399_v6 = vshrl.u32 %v1060_v5, 16  ;;  %v401_v7 = vshll.u32 %v1060_v5, 16  ;;  %v504_v22 = vrot.slane %v1060_v5, 1  ;;  %s354_s25 = scalar_lea.vmem %s1456_s2, %s1055_s13  ;;  %s361_s7 = sadd.s32 %s1056_s30, %s1477_s18 }
  0x1b   : > { %v613_v14 = vshrl.u32 %v1069_v13, 16  ;;  %v615_v15 = vshll.u32 %v1069_v13, 16  ;;  %v669_v20 = vrot.slane %v1069_v13, 1  ;;  %v721_v24 = vld [vmem:[%s354_s25 + $0x4] sm:$0x1]  ;;  %s1057_s8 = sshll.u32 %s361_s7, 2 }
  0x1c   : > { %v403_v8 = vrot.slane %v401_v7, 1  ;;  %v720_v25 = vld [vmem:[%s354_s25] sm:$0xf]  ;;  %s363_s11 = scalar_lea.vmem %s1458_s4, %s1057_s8  ;;  %s371_s14 = scalar_lea.vmem %s1459_s5, %s1057_s8 }
  0x1d   : > { %v617_v16 = vrot.slane %v615_v15, 1  ;;  %v1076_v26 = vcombine.low %v720_v25, %v721_v24  ;;  %v886_v44 = vld [vmem:[%s363_s11] sm:$0xf] }
  0x1e   : > { %v404_v12 = vor.u32 %v403_v8, %v399_v6 }
  0x1f   : > { %v618_v18 = vor.u32 %v617_v16, %v613_v14  ;;  %v780_v28 = vshll.u32 %v1076_v26, 16  ;;  %v778_v29 = vshrl.u32 %v1076_v26, 16  ;;  %v834_v33 = vrot.slane %v1076_v26, 1 }
  0x20   : > { %1104 = vmatmul.mubr.msk.bf16.vlgmr.msra.gmra.mrb[0].mxu1 %vm411_vm1, %v404_v12 }
  0x21   : > { %1108 = vmatpush3.bf16.msra.mxu1 %v1233_v11  ;;  %1109 = vmatprep.mubr.msk.bf16.mxu1 %vm1281_vm0, %v1280_v1  ;;  %v782_v30 = vrot.slane %v780_v28, 1 }
  0x22   : > { %1113 = vmatprep.subr.bf16.mxu1 %v1280_v1  ;;  %1128 = vmatmul.mubr.msk.bf16.vlgmr.msra.gmra.mrb[0].mxu0 %vm411_vm1, %v618_v18 }
  0x23   : > { %1132 = vmatpush3.bf16.msra.mxu0 %v1232_v17  ;;  %1133 = vmatprep.mubr.msk.bf16.mxu0 %vm1281_vm0, %v1280_v1  ;;  %v783_v31 = vor.u32 %v782_v30, %v778_v29 }
  0x24   : > { %1137 = vmatprep.subr.bf16.mxu0 %v1280_v1 }
  0x2c   : > { %1110 = vmatmul.mubr.msk.bf16.vlgmr.msra.gmra.mrb[0].mxu1 %vm411_vm1, %v391_v3 }
  0x2d   : > { %1114 = vmatpush3.bf16.msra.mxu1 %v1235_v19  ;;  %1115 = vmatprep.mubr.msk.bf16.mxu1 %vm1281_vm0, %v1280_v1 }
  0x2e   : > { %1119 = vmatprep.subr.bf16.mxu1 %v1280_v1  ;;  %1134 = vmatmul.mubr.msk.bf16.vlgmr.msra.gmra.mrb[0].mxu0 %vm411_vm1, %v669_v20 }
  0x2f   : > { %1138 = vmatpush3.bf16.msra.mxu0 %v1234_v21  ;;  %1139 = vmatprep.mubr.msk.bf16.mxu0 %vm1281_vm0, %v1280_v1 }
  0x30   : > { %1143 = vmatprep.subr.bf16.mxu0 %v1280_v1 }
  0x38   : > { %1116 = vmatmul.mubr.msk.bf16.vlgmr.msra.gmra.mrb[0].mxu1 %vm411_vm1, %v504_v22 }
  0x39   : > { %1120 = vmatpush3.bf16.msra.mxu1 %v1238_v23  ;;  %1121 = vmatprep.mubr.msk.bf16.mxu1 %vm1281_vm0, %v1280_v1 }
  0x3a   : > { %1140 = vmatmul.mubr.msk.bf16.vlgmr.msra.gmra.mrb[0].mxu0 %vm411_vm1, %v720_v25 }
  0x3b   : > { %1144 = vmatpush3.bf16.msra.mxu0 %v1237_v27  ;;  %1145 = vmatprep.mubr.msk.bf16.mxu0 %vm1281_vm0, %v1280_v1 }
  0x3c   : > { %1149 = vmatprep.subr.bf16.mxu0 %v1280_v1 }
  0x44   : > { %1122 = vmatmul.mubr.msk.bf16.vlgmr.msra.gmra.mrb[0].mxu1 %vm411_vm1, %v555_v9 }
  0x46   : > { %1146 = vmatmul.mubr.msk.bf16.vlgmr.msra.gmra.mrb[0].mxu0 %vm411_vm1, %v783_v31 }
  0x47   : > { %1150 = vmatpush3.bf16.msra.mxu0 %v1239_v32  ;;  %1151 = vmatprep.mubr.msk.bf16.mxu0 %vm1281_vm0, %v1280_v1 }
  0x52   : > { %1152 = vmatmul.mubr.msk.bf16.vlgmr.msra.gmra.mrb[0].mxu0 %vm411_vm1, %v834_v33 }
 0x117   : > { %v600_v34 = vpop.f32.mrb[0].mxu1 }
 0x118   : > { %v1123_v35 = vpop.f32.mrb[1].mxu1 }
 0x119   : > { %v603_v36 = vpop.f32.mrb[2].mxu1 }
 0x11a   : > { %v1124_v37 = vpop.f32.mrb[3].mxu1 }
 0x125   : > { %v878_v38 = vpop.f32.mrb[0].mxu0 }
 0x126   : > { %v1155_v39 = vadd.f32 %v878_v38, %v600_v34  ;;  %v1153_v40 = vpop.f32.mrb[1].mxu0 }
 0x127   : > { %v881_v41 = vpop.f32.mrb[2].mxu0 }
 0x128   : > { %v885_v42 = vpack.c.bf16 %v1155_v39, %v1155_v39  ;;  %v1154_v43 = vpop.f32.mrb[3].mxu0 }
 0x12a   : > { %888 = vrot.lane.b32.xlu0 %v885_v42, %s1282_s29 }
 0x19c   : > { %v889_v45 = vpop.permute.xlu0 %888 }
 0x19d   : > { %v892_v46 = vsel %vm411_vm1, %v886_v44, %v889_v45 }
 0x19e   : > { %895 = vst.msk [vmem:[%s371_s14] sm:$0xf] %vm894_vm2, %v892_v46 }
 0x19f PF: > { %s15_s22 = sadd.s32 1, %s1278_s22   ;;  %s1460_s18 = smov %s1270_s20 }
 0x1a0   : > { %p12_p10 = scmp.ge.s32.totalorder %s15_s22, 18   ;;  %s1461_s19 = smov %s1274_s21 }
 0x1a1   : > { %s1462_s20 = smov %s1465_s23  ;;  %s1463_s21 = smov %s1469_s24 }
 0x1a2   :  { %14 = sbr.rel (!%p12_p10) target bundleno = 3 (0x3), region = 79 }

// kernel: densenet_backbone_forward.17
= control target key start
LH: loop header
LB: loop body
LE: loop exit
PB: predicated region body
PF: predicated region fallthrough
CT: control target
= control target key end

     0   :  { %s676_s21 = smov 0   ;;  %s730_s0 = inlined_call_operand.vmem [shape: bf16[128,24], index: 0, kind: input, shape index: {}]   ;;  %s731_s1 = inlined_call_operand.vmem [shape: bf16[24,16], index: 1, kind: input, shape index: {}]   ;;  %s732_s2 = inlined_call_operand.vmem [shape: f32[1,24], index: 2, kind: input, shape index: {}]   ;;  %s733_s3 = inlined_call_operand.vmem [shape: f32[1,24], index: 3, kind: input, shape index: {}]   ;;  %s734_s4 = inlined_call_operand.vmem [shape: f32[1,16], index: 4, kind: input, shape index: {}]   ;;  %s735_s5 = inlined_call_operand.vmem [shape: f32[1,16], index: 5, kind: input, shape index: {}]   ;;  %s736_s6 = inlined_call_operand.vmem [shape: bf16[128,16], index: 6, kind: output, shape index: {}]  }
   0x1 LB: > { %s543_s22 = sadd.s32 4294967295, %s639_s21   ;;  %p547_p0 = scmp.ge.s32.totalorder %s639_s21, 1  ;;  %s639_s21 = sphi %s676_s21, %s16_s21  }
   0x2   : > { %p213_p1 = scmp.lt.s32.totalorder %s639_s21, 3 }
   0x4   : > { %p214_p2 = pnand %p547_p0, %p213_p1 }
   0x5   : > { %v631_v0 = vld [vmem:[%s731_s1] sm:$0xff] (!%p214_p2)   ;;  %v632_v1 = vld [vmem:[%s731_s1 + $0x8] ss:$0 sps:$4 sm:$0xff] (!%p214_p2)   ;;  %vm339_vm0 = vcmask (!%p214_p2), 1043456   ;;  %s548_s27 = sshll.u32 (!%p214_p2), %s543_s22, 3  ;;  %vm326_vm1 = vcmask (!%p214_p2), 195584  }
   0x6   : > { %217 = sbr.rel (%p214_p2) target bundleno = 252 (0xfc), region = 44  ;;  %605 = vmatprep.subr.bf16.mxu0 (!%p214_p2), %v631_v0  ;;  %617 = vmatprep.subr.bf16.mxu1 (!%p214_p2), %v631_v0  ;;  %p244_p3 = scmp.lt.s32.totalorder (!%p214_p2), %s548_s27, 15  ;;  %v341_v2 = vsel (!%p214_p2), %vm339_vm0, %v632_v1, 0  ;;  %v552_v3 = vld [vmem:[%s732_s2] ss:$0 sm:$0xff] (!%p214_p2)  ;;  %vm478_vm2 = vcmask (!%p214_p2), 125952  }
   0x7   : > { %606 = vmatpush3.bf16.msra.mxu0 (!%p214_p2), %v631_v0  ;;  %619 = vmatpush3.bf16.msra.mxu1 (!%p214_p2), %v631_v0  ;;  %v553_v12 = vld [vmem:[%s733_s3] ss:$0 sm:$0xff] (!%p214_p2) }
   0x8   : > { %621 = vmatprep.subr.msk.bf16.mxu0 (!%p214_p2), %vm339_vm0, %v632_v1  ;;  %622 = vmatprep.subr.msk.bf16.mxu1 (!%p214_p2), %vm339_vm0, %v632_v1  ;;  %v560_v45 = vld [vmem:[%s734_s4] ss:$0 sm:$0xff] (!%p214_p2) }
   0x9   : > { %v561_v47 = vld [vmem:[%s735_s5] ss:$0 sm:$0xff] (!%p214_p2) }
   0xb   : > { %608 = vmatpush3.bf16.msra.mxu0 (!%p214_p2), %v341_v2  ;;  %620 = vmatpush3.bf16.msra.mxu1 (!%p214_p2), %v341_v2 }
   0xd   : > { %s738_s27 = smov (!%p244_p3, %s548_s27), 15 }
   0xe   : > { %s549_s28 = sshll.u32 %s738_s27, 2 }
   0xf   : > { %s247_s7 = scalar_lea.vmem %s730_s0, %s549_s28  ;;  %s253_s18 = scalar_lea.vmem %s736_s6, %s549_s28 }
  0x10   : > { %v581_v4 = vld [vmem:[%s247_s7] sm:$0xff]   ;;  %v597_v5 = vld [vmem:[%s247_s7 + $0x10] sm:$0xff]   ;;  %v596_v6 = vld [vmem:[%s247_s7 + $0x8] sm:$0xff]  }
  0x11   : > { %v582_v7 = vunpack.c.l.bf16 %v581_v4  ;;  %v583_v8 = vunpack.c.h.bf16 %v581_v4  ;;  %v590_v9 = vunpack.c.l.bf16 %v597_v5  ;;  %v591_v10 = vunpack.c.h.bf16 %v597_v5  ;;  %v598_v11 = vld [vmem:[%s247_s7 + $0x18] sm:$0xff]  }
  0x12   : > { %v586_v13 = vunpack.c.l.bf16 %v596_v6  ;;  %v587_v14 = vunpack.c.h.bf16 %v596_v6  ;;  %v594_v15 = vunpack.c.l.bf16 %v598_v11  ;;  %v595_v16 = vunpack.c.h.bf16 %v598_v11 }
  0x13   : > { %v279_v17 = vmul.f32 %v582_v7, %v552_v3  ;;  %v280_v18 = vmul.f32 %v583_v8, %v552_v3  ;;  %v283_v19 = vmul.f32 %v590_v9, %v552_v3  ;;  %v284_v20 = vmul.f32 %v591_v10, %v552_v3 }
  0x14   : > { %v281_v21 = vmul.f32 %v586_v13, %v552_v3  ;;  %v282_v22 = vmul.f32 %v587_v14, %v552_v3  ;;  %v285_v23 = vmul.f32 %v594_v15, %v552_v3  ;;  %v286_v24 = vmul.f32 %v595_v16, %v552_v3 }
  0x15   : > { %v294_v25 = vadd.f32 %v553_v12, %v279_v17  ;;  %v295_v26 = vadd.f32 %v553_v12, %v280_v18  ;;  %v298_v27 = vadd.f32 %v553_v12, %v283_v19  ;;  %v299_v28 = vadd.f32 %v553_v12, %v284_v20 }
  0x16   : > { %v296_v29 = vadd.f32 %v553_v12, %v281_v21  ;;  %v297_v30 = vadd.f32 %v553_v12, %v282_v22  ;;  %v300_v31 = vadd.f32 %v553_v12, %v285_v23  ;;  %v301_v32 = vadd.f32 %v553_v12, %v286_v24 }
  0x17   : > { %v302_v33 = vmax.f32 %v294_v25, 0.0  ;;  %v303_v34 = vmax.f32 %v295_v26, 0.0  ;;  %v306_v35 = vmax.f32 %v298_v27, 0.0  ;;  %v307_v36 = vmax.f32 %v299_v28, 0.0 }
  0x18   : > { %v304_v37 = vmax.f32 %v296_v29, 0.0  ;;  %v305_v38 = vmax.f32 %v297_v30, 0.0  ;;  %v308_v39 = vmax.f32 %v300_v31, 0.0  ;;  %v309_v40 = vmax.f32 %v301_v32, 0.0 }
  0x19   : > { %v310_v41 = vpack.c.bf16 %v303_v34, %v302_v33  ;;  %v312_v42 = vpack.c.bf16 %v307_v36, %v306_v35 }
  0x1a   : > { %v311_v43 = vpack.c.bf16 %v305_v38, %v304_v37  ;;  %v313_v44 = vpack.c.bf16 %v309_v40, %v308_v39 }
  0x1b   : > { %609 = vmatprep.mubr.msk.bf16.mxu0 %vm326_vm1, %v310_v41  ;;  %613 = vmatprep.mubr.msk.bf16.mxu1 %vm326_vm1, %v312_v42 }
  0x1c   : > { %610 = vmatmul.mubr.msk.bf16.vlgmr.msra.gmra.mrb[0].mxu0 %vm326_vm1, %v311_v43  ;;  %614 = vmatmul.mubr.msk.bf16.vlgmr.msra.gmra.mrb[0].mxu1 %vm326_vm1, %v313_v44 }
  0xef   : > { %v611_v46 = vpop.f32.mrb[0].mxu0  ;;  %v615_v48 = vpop.f32.mrb[0].mxu1 }
  0xf0   : > { %v417_v49 = vmul.f32 %v611_v46, %v560_v45  ;;  %v421_v50 = vmul.f32 %v615_v48, %v560_v45  ;;  %v377_v51 = vpop.f32.mrb[1].mxu0  ;;  %v393_v52 = vpop.f32.mrb[1].mxu1 }
  0xf1   : > { %v415_v53 = vmul.f32 %v560_v45, %v377_v51  ;;  %v419_v54 = vmul.f32 %v560_v45, %v393_v52  ;;  %v612_v55 = vpop.f32.mrb[2].mxu0  ;;  %v616_v56 = vpop.f32.mrb[2].mxu1 }
  0xf2   : > { %v432_v57 = vadd.f32 %v561_v47, %v417_v49  ;;  %v436_v58 = vadd.f32 %v561_v47, %v421_v50  ;;  %v418_v59 = vmul.f32 %v612_v55, %v560_v45  ;;  %v422_v60 = vmul.f32 %v616_v56, %v560_v45  ;;  %v380_v61 = vpop.f32.mrb[3].mxu0  ;;  %v396_v62 = vpop.f32.mrb[3].mxu1 }
  0xf3   : > { %v430_v63 = vadd.f32 %v561_v47, %v415_v53  ;;  %v434_v0 = vadd.f32 %v561_v47, %v419_v54  ;;  %v416_v1 = vmul.f32 %v560_v45, %v380_v61  ;;  %v420_v2 = vmul.f32 %v560_v45, %v396_v62 }
  0xf4   : > { %v440_v3 = vmax.f32 %v432_v57, 0.0  ;;  %v444_v4 = vmax.f32 %v436_v58, 0.0  ;;  %v433_v5 = vadd.f32 %v561_v47, %v418_v59  ;;  %v437_v6 = vadd.f32 %v561_v47, %v422_v60 }
  0xf5   : > { %v438_v7 = vmax.f32 %v430_v63, 0.0  ;;  %v442_v8 = vmax.f32 %v434_v0, 0.0  ;;  %v431_v9 = vadd.f32 %v561_v47, %v416_v1  ;;  %v435_v10 = vadd.f32 %v561_v47, %v420_v2 }
  0xf6   : > { %v574_v11 = vpack.c.bf16 %v440_v3, %v440_v3  ;;  %v578_v12 = vpack.c.bf16 %v444_v4, %v444_v4  ;;  %v441_v13 = vmax.f32 %v433_v5, 0.0  ;;  %v445_v14 = vmax.f32 %v437_v6, 0.0 }
  0xf7   : > { %v572_v15 = vpack.c.bf16 %v438_v7, %v438_v7  ;;  %v576_v16 = vpack.c.bf16 %v442_v8, %v442_v8  ;;  %v439_v17 = vmax.f32 %v431_v9, 0.0  ;;  %v443_v18 = vmax.f32 %v435_v10, 0.0 }
  0xf8   : > { %481 = vst.msk [vmem:[%s253_s18 + $0x8] sm:$0xf] %vm478_vm2, %v574_v11  ;;  %485 = vst.msk [vmem:[%s253_s18 + $0x18] sm:$0xf] %vm478_vm2, %v578_v12  ;;  %v575_v19 = vpack.c.bf16 %v441_v13, %v441_v13  ;;  %v579_v20 = vpack.c.bf16 %v445_v14, %v445_v14 }
  0xf9   : > { %479 = vst.msk [vmem:[%s253_s18] sm:$0xf] %vm478_vm2, %v572_v15  ;;  %483 = vst.msk [vmem:[%s253_s18 + $0x10] sm:$0xf] %vm478_vm2, %v576_v16  ;;  %v573_v21 = vpack.c.bf16 %v439_v17, %v439_v17  ;;  %v577_v22 = vpack.c.bf16 %v443_v18, %v443_v18 }
  0xfa   : > { %482 = vst.msk [vmem:[%s253_s18 + $0xc] sm:$0xf] %vm478_vm2, %v575_v19  ;;  %486 = vst.msk [vmem:[%s253_s18 + $0x1c] sm:$0xf] %vm478_vm2, %v579_v20 }
  0xfb   : > { %480 = vst.msk [vmem:[%s253_s18 + $0x4] sm:$0xf] %vm478_vm2, %v573_v21  ;;  %484 = vst.msk [vmem:[%s253_s18 + $0x14] sm:$0xf] %vm478_vm2, %v577_v22 }
  0xfc PF: > { %s16_s21 = sadd.s32 1, %s639_s21  }
  0xfd   : > { %p13_p4 = scmp.ge.s32.totalorder %s16_s21, 4  }
  0xff   :  { %15 = sbr.rel (!%p13_p4) target bundleno = 1 (0x1), region = 74 }

// kernel: densenet_backbone_forward.19
= control target key start
LH: loop header
LB: loop body
LE: loop exit
PB: predicated region body
PF: predicated region fallthrough
CT: control target
= control target key end

     0   :  { %s570_s15 = smov 0   ;;  %s618_s0 = inlined_call_operand.vmem [shape: bf16[128,32], index: 0, kind: input, shape index: {}]   ;;  %s619_s1 = inlined_call_operand.vmem [shape: bf16[32,16], index: 1, kind: input, shape index: {}]   ;;  %s620_s2 = inlined_call_operand.vmem [shape: f32[1,32], index: 2, kind: input, shape index: {}]   ;;  %s621_s3 = inlined_call_operand.vmem [shape: f32[1,32], index: 3, kind: input, shape index: {}]   ;;  %s622_s4 = inlined_call_operand.vmem [shape: bf16[128,16], index: 4, kind: output, shape index: {}]  }
   0x1 LB: > { %s451_s16 = sadd.s32 4294967295, %s543_s15   ;;  %p455_p0 = scmp.ge.s32.totalorder %s543_s15, 1  ;;  %s543_s15 = sphi %s570_s15, %s14_s15  }
   0x2   : > { %p163_p1 = scmp.lt.s32.totalorder %s543_s15, 3 }
   0x4   : > { %p164_p2 = pnand %p455_p0, %p163_p1 }
   0x5   : > { %v535_v0 = vld [vmem:[%s619_s1] sm:$0xff] (!%p164_p2)   ;;  %s456_s19 = sshll.u32 (!%p164_p2), %s451_s16, 3  ;;  %v536_v1 = vld [vmem:[%s619_s1 + $0x8] sm:$0xff] (!%p164_p2)   ;;  %vm276_vm0 = vcmask (!%p164_p2), 261120   ;;  %vm386_vm1 = vcmask (!%p164_p2), 125952  }
   0x6   : > { %167 = sbr.rel (%p164_p2) target bundleno = 246 (0xf6), region = 36  ;;  %p190_p3 = scmp.lt.s32.totalorder (!%p164_p2), %s456_s19, 15  ;;  %511 = vmatprep.subr.bf16.mxu0 (!%p164_p2), %v535_v0  ;;  %523 = vmatprep.subr.bf16.mxu1 (!%p164_p2), %v535_v0  ;;  %v460_v2 = vld [vmem:[%s620_s2] ss:$0 sm:$0xff] (!%p164_p2) }
   0x7   : > { %512 = vmatpush3.bf16.msra.mxu0 (!%p164_p2), %v535_v0  ;;  %525 = vmatpush3.bf16.msra.mxu1 (!%p164_p2), %v535_v0  ;;  %v461_v11 = vld [vmem:[%s621_s3] ss:$0 sm:$0xff] (!%p164_p2) }
   0x8   : > { %513 = vmatprep.subr.bf16.mxu0 (!%p164_p2), %v536_v1  ;;  %524 = vmatprep.subr.bf16.mxu1 (!%p164_p2), %v536_v1 }
   0xb   : > { %514 = vmatpush3.bf16.msra.mxu0 (!%p164_p2), %v536_v1  ;;  %526 = vmatpush3.bf16.msra.mxu1 (!%p164_p2), %v536_v1 }
   0xd   : > { %s624_s19 = smov (!%p190_p3, %s456_s19), 15 }
   0xe   : > { %s457_s22 = sshll.u32 %s624_s19, 2 }
   0xf   : > { %s193_s25 = scalar_lea.vmem %s618_s0, %s457_s22  ;;  %s199_s6 = scalar_lea.vmem %s622_s4, %s457_s22 }
  0x10   : > { %v487_v3 = vld [vmem:[%s193_s25] sm:$0xff]   ;;  %v503_v4 = vld [vmem:[%s193_s25 + $0x10] sm:$0xff]   ;;  %v502_v5 = vld [vmem:[%s193_s25 + $0x8] sm:$0xff]  }
  0x11   : > { %v488_v6 = vunpack.c.l.bf16 %v487_v3  ;;  %v489_v7 = vunpack.c.h.bf16 %v487_v3  ;;  %v496_v8 = vunpack.c.l.bf16 %v503_v4  ;;  %v497_v9 = vunpack.c.h.bf16 %v503_v4  ;;  %v504_v10 = vld [vmem:[%s193_s25 + $0x18] sm:$0xff]  }
  0x12   : > { %v492_v12 = vunpack.c.l.bf16 %v502_v5  ;;  %v493_v13 = vunpack.c.h.bf16 %v502_v5  ;;  %v500_v14 = vunpack.c.l.bf16 %v504_v10  ;;  %v501_v15 = vunpack.c.h.bf16 %v504_v10 }
  0x13   : > { %v225_v16 = vmul.f32 %v488_v6, %v460_v2  ;;  %v226_v17 = vmul.f32 %v489_v7, %v460_v2  ;;  %v229_v18 = vmul.f32 %v496_v8, %v460_v2  ;;  %v230_v19 = vmul.f32 %v497_v9, %v460_v2 }
  0x14   : > { %v227_v20 = vmul.f32 %v492_v12, %v460_v2  ;;  %v228_v21 = vmul.f32 %v493_v13, %v460_v2  ;;  %v231_v22 = vmul.f32 %v500_v14, %v460_v2  ;;  %v232_v23 = vmul.f32 %v501_v15, %v460_v2 }
  0x15   : > { %v240_v24 = vadd.f32 %v461_v11, %v225_v16  ;;  %v241_v25 = vadd.f32 %v461_v11, %v226_v17  ;;  %v244_v26 = vadd.f32 %v461_v11, %v229_v18  ;;  %v245_v27 = vadd.f32 %v461_v11, %v230_v19 }
  0x16   : > { %v242_v28 = vadd.f32 %v461_v11, %v227_v20  ;;  %v243_v29 = vadd.f32 %v461_v11, %v228_v21  ;;  %v246_v30 = vadd.f32 %v461_v11, %v231_v22  ;;  %v247_v31 = vadd.f32 %v461_v11, %v232_v23 }
  0x17   : > { %v248_v32 = vmax.f32 %v240_v24, 0.0  ;;  %v249_v33 = vmax.f32 %v241_v25, 0.0  ;;  %v252_v34 = vmax.f32 %v244_v26, 0.0  ;;  %v253_v35 = vmax.f32 %v245_v27, 0.0 }
  0x18   : > { %v250_v36 = vmax.f32 %v242_v28, 0.0  ;;  %v251_v37 = vmax.f32 %v243_v29, 0.0  ;;  %v254_v38 = vmax.f32 %v246_v30, 0.0  ;;  %v255_v39 = vmax.f32 %v247_v31, 0.0 }
  0x19   : > { %v256_v40 = vpack.c.bf16 %v249_v33, %v248_v32  ;;  %v258_v41 = vpack.c.bf16 %v253_v35, %v252_v34 }
  0x1a   : > { %v257_v42 = vpack.c.bf16 %v251_v37, %v250_v36  ;;  %v259_v43 = vpack.c.bf16 %v255_v39, %v254_v38 }
  0x1b   : > { %515 = vmatprep.mubr.msk.bf16.mxu0 %vm276_vm0, %v256_v40  ;;  %519 = vmatprep.mubr.msk.bf16.mxu1 %vm276_vm0, %v258_v41 }
  0x1c   : > { %516 = vmatmul.mubr.msk.bf16.vlgmr.msra.gmra.mrb[0].mxu0 %vm276_vm0, %v257_v42  ;;  %520 = vmatmul.mubr.msk.bf16.vlgmr.msra.gmra.mrb[0].mxu1 %vm276_vm0, %v259_v43 }
  0xef   : > { %v517_v44 = vpop.f32.mrb[0].mxu0  ;;  %v521_v45 = vpop.f32.mrb[0].mxu1 }
  0xf0   : > { %v480_v46 = vpack.c.bf16 %v517_v44, %v517_v44  ;;  %v484_v47 = vpack.c.bf16 %v521_v45, %v521_v45  ;;  %v323_v48 = vpop.f32.mrb[1].mxu0  ;;  %v339_v49 = vpop.f32.mrb[1].mxu1 }
  0xf1   : > { %v478_v50 = vpack.c.bf16 %v323_v48, %v323_v48  ;;  %v482_v51 = vpack.c.bf16 %v339_v49, %v339_v49  ;;  %v518_v52 = vpop.f32.mrb[2].mxu0  ;;  %v522_v53 = vpop.f32.mrb[2].mxu1 }
  0xf2   : > { %389 = vst.msk [vmem:[%s199_s6 + $0x8] sm:$0xf] %vm386_vm1, %v480_v46  ;;  %393 = vst.msk [vmem:[%s199_s6 + $0x18] sm:$0xf] %vm386_vm1, %v484_v47  ;;  %v481_v54 = vpack.c.bf16 %v518_v52, %v518_v52  ;;  %v485_v55 = vpack.c.bf16 %v522_v53, %v522_v53  ;;  %v326_v56 = vpop.f32.mrb[3].mxu0  ;;  %v342_v57 = vpop.f32.mrb[3].mxu1 }
  0xf3   : > { %387 = vst.msk [vmem:[%s199_s6] sm:$0xf] %vm386_vm1, %v478_v50  ;;  %391 = vst.msk [vmem:[%s199_s6 + $0x10] sm:$0xf] %vm386_vm1, %v482_v51  ;;  %v479_v58 = vpack.c.bf16 %v326_v56, %v326_v56  ;;  %v483_v59 = vpack.c.bf16 %v342_v57, %v342_v57 }
  0xf4   : > { %390 = vst.msk [vmem:[%s199_s6 + $0xc] sm:$0xf] %vm386_vm1, %v481_v54  ;;  %394 = vst.msk [vmem:[%s199_s6 + $0x1c] sm:$0xf] %vm386_vm1, %v485_v55 }
  0xf5   : > { %388 = vst.msk [vmem:[%s199_s6 + $0x4] sm:$0xf] %vm386_vm1, %v479_v58  ;;  %392 = vst.msk [vmem:[%s199_s6 + $0x14] sm:$0xf] %vm386_vm1, %v483_v59 }
  0xf6 PF: > { %s14_s15 = sadd.s32 1, %s543_s15  }
  0xf7   : > { %p11_p4 = scmp.ge.s32.totalorder %s14_s15, 4  }
  0xf9   :  { %13 = sbr.rel (!%p11_p4) target bundleno = 1 (0x1), region = 66 }

// kernel: densenet_backbone_forward.18
= control target key start
LH: loop header
LB: loop body
LE: loop exit
PB: predicated region body
PF: predicated region fallthrough
CT: control target
= control target key end

     0   :  { %s1314_s18 = smov 0   ;;  %s1316_s19 = smov 0   ;;  %s1454_s0 = inlined_call_operand.vmem [shape: bf16[2,10,10,16], index: 0, kind: input, shape index: {}, may-alias: {0,1,2}]   ;;  %s1455_s1 = inlined_call_operand.vmem [shape: bf16[2,10,10,16], index: 1, kind: input, shape index: {}, may-alias: {0,1,2}]   ;;  %s1456_s2 = inlined_call_operand.vmem [shape: bf16[2,10,10,16], index: 2, kind: input, shape index: {}, may-alias: {0,1,2}]   ;;  %s1457_s3 = inlined_call_operand.vmem [shape: bf16[3,3,16,8], index: 3, kind: input, shape index: {}]   ;;  %s1458_s4 = inlined_call_operand.vmem [shape: bf16[2,8,8,24], index: 4, kind: input, shape index: {}]   ;;  %s1459_s5 = inlined_call_operand.vmem [shape: bf16[2,8,8,32], index: 5, kind: output, shape index: {}]  }
   0x1   :  { %s1318_s20 = smov 0   ;;  %s1320_s21 = smov 0  }
   0x2   :  { %s1322_s22 = smov 0  }
   0x3 LB: > { %s24_s23 = sadd.s32 1, %s1271_s20  ;;  %s27_s24 = sadd.s32 1, %s1275_s21  ;;  %s1279_s22 = sphi %s1322_s22, %s15_s22   ;;  %s1275_s21 = sphi %s1320_s21, %s1463_s21   ;;  %s1271_s20 = sphi %s1318_s20, %s1462_s20   ;;  %s1267_s19 = sphi %s1316_s19, %s1461_s19   ;;  %s1263_s18 = sphi %s1314_s18, %s1460_s18  }
   0x4   : > { %p25_p0 = scmp.ge.s32.totalorder %s24_s23, 8  ;;  %p1050_p1 = scmp.ge.s32.totalorder %s1279_s22, 1 }
   0x5   : > { %p262_p2 = scmp.lt.s32.totalorder %s1279_s22, 17 }
   0x6   : > { %s1465_s23 = smov (%p25_p0, %s24_s23), 0  ;;  %s1467_s24 = smov (!%p25_p0, %s27_s24), %s1275_s21 }
   0x7   : > { %p263_p3 = pnand %p1050_p1, %p262_p2  ;;  %p29_p4 = scmp.ge.s32.totalorder %s1467_s24, 2 }
   0x8   : > { %v1229_v0 = vld [vmem:[%s1457_s3 + $0x20] sm:$0xff] (!%p263_p3)   ;;  %v1281_v1 = vmov (!%p263_p3), 0.0   ;;  %v1230_v2 = vld [vmem:[%s1457_s3 + $0x8] sm:$0xff] (!%p263_p3)   ;;  %vm1282_vm0 = vmmov (!%p263_p3), 0   ;;  %p325_p5 = scmp.lt.s32.totalorder (!%p263_p3), %s1267_s19, 1  ;;  %p327_p6 = scmp.lt.s32.totalorder (!%p263_p3), %s1263_s18, 9 }
   0x9   : > { %s1469_s24 = smov (%p29_p4, %s1467_s24), 0  ;;  %266 = sbr.rel (%p263_p3) target bundleno = 415 (0x19f), region = 40 }
   0xa   : > { %1126 = vmatprep.subr.bf16.mxu0 (!%p263_p3), %v1281_v1  ;;  %1102 = vmatprep.subr.bf16.mxu1 (!%p263_p3), %v1281_v1  ;;  %s334_s29 = sadd.s32 (!%p263_p3), 1, %s1263_s18  ;;  %vm411_vm1 = vcmask (!%p263_p3), 130048   ;;  %v1234_v11 = vld [vmem:[%s1457_s3] sm:$0xff] (!%p263_p3)   ;;  %s345_s28 = sadd.s32 (!%p263_p3), 2, %s1263_s18  ;;  %v1233_v17 = vld [vmem:[%s1457_s3 + $0x28] sm:$0xff] (!%p263_p3)   ;;  %v1236_v19 = vld [vmem:[%s1457_s3 + $0x10] sm:$0xff] (!%p263_p3)  }
   0xb   : > { %1127 = vmatpush3.bf16.msra.mxu0 (!%p263_p3), %v1229_v0  ;;  %1104 = vmatprep.mubr.msk.bf16.mxu1 (!%p263_p3), %vm1282_vm0, %v1281_v1  ;;  %p337_p7 = scmp.lt.s32.totalorder (!%p263_p3), %s334_s29, 9  ;;  %p348_p8 = scmp.lt.s32.totalorder (!%p263_p3), %s345_s28, 9  ;;  %v1235_v21 = vld [vmem:[%s1457_s3 + $0x30] sm:$0xff] (!%p263_p3)   ;;  %v1239_v23 = vld [vmem:[%s1457_s3 + $0x18] sm:$0xff] (!%p263_p3)   ;;  %v1240_v32 = vld [vmem:[%s1457_s3 + $0x40] sm:$0xff] (!%p263_p3)   ;;  %vm890_vm2 = vcmask (!%p263_p3), 195584  }
   0xc   : > { %1103 = vmatpush3.bf16.msra.mxu1 (!%p263_p3), %v1230_v2  ;;  %1128 = vmatprep.mubr.msk.bf16.mxu0 (!%p263_p3), %vm1282_vm0, %v1281_v1  ;;  %v1238_v27 = vld [vmem:[%s1457_s3 + $0x38] sm:$0xff] (!%p263_p3)   ;;  %p358_p9 = scmp.lt.s32.totalorder (!%p263_p3), %s1263_s18, 7  ;;  %vm895_vm3 = vcmask (!%p263_p3), 257024  }
   0xd   : > { %1132 = vmatprep.subr.bf16.mxu0 (!%p263_p3), %v1281_v1  ;;  %1108 = vmatprep.subr.bf16.mxu1 (!%p263_p3), %v1281_v1 }
  0x10   : > { %s1471_s19 = smov (!%p325_p5, %s1267_s19), 1  ;;  %s1473_s29 = smov (!%p337_p7, %s334_s29), 9 }
  0x11   : > { %s328_s30 = scalar_select %p327_p6, %s1263_s18, 9 }
  0x12   : > { %s1366_s6 = smul.u32 20, %s1471_s19  ;;  %s1053_s13 = sshll.u32 %s1473_s29, 1 }
  0x13   : > { %s1051_s7 = sshll.u32 %s328_s30, 1  ;;  %s1475_s28 = smov (!%p348_p8, %s345_s28), 9 }
  0x14   : > { %s331_s8 = sadd.s32 %s1366_s6, %s1051_s7  ;;  %s341_s14 = sadd.s32 %s1366_s6, %s1053_s13 }
  0x15   : > { %s1052_s9 = sshll.u32 %s331_s8, 2  ;;  %s1054_s15 = sshll.u32 %s341_s14, 2 }
  0x16   : > { %s333_s12 = scalar_lea.vmem %s1454_s0, %s1052_s9  ;;  %s343_s25 = scalar_lea.vmem %s1455_s1, %s1054_s15 }
  0x17   : > { %v391_v3 = vld [vmem:[%s333_s12] sm:$0xf]  ;;  %v392_v4 = vld [vmem:[%s333_s12 + $0x4] sm:$0x1]  ;;  %s1055_s9 = sshll.u32 %s1475_s28, 1  ;;  %s1283_s29 = smov 24  }
  0x18   : > { %v1061_v5 = vcombine.low %v391_v3, %v392_v4  ;;  %v555_v9 = vld [vmem:[%s343_s25] sm:$0xf]  ;;  %v556_v10 = vld [vmem:[%s343_s25 + $0x4] sm:$0x1]  ;;  %s352_s12 = sadd.s32 %s1366_s6, %s1055_s9  ;;  %s1477_s18 = smov (!%p358_p9, %s1263_s18), 7 }
  0x19   : > { %v1070_v13 = vcombine.low %v555_v9, %v556_v10  ;;  %s1056_s13 = sshll.u32 %s352_s12, 2  ;;  %s1057_s30 = sshll.u32 %s1471_s19, 3 }
  0x1a   : > { %v399_v6 = vshrl.u32 %v1061_v5, 16  ;;  %v401_v7 = vshll.u32 %v1061_v5, 16  ;;  %v504_v22 = vrot.slane %v1061_v5, 1  ;;  %s354_s25 = scalar_lea.vmem %s1456_s2, %s1056_s13  ;;  %s361_s7 = sadd.s32 %s1057_s30, %s1477_s18 }
  0x1b   : > { %v613_v14 = vshrl.u32 %v1070_v13, 16  ;;  %v615_v15 = vshll.u32 %v1070_v13, 16  ;;  %v669_v20 = vrot.slane %v1070_v13, 1  ;;  %v721_v24 = vld [vmem:[%s354_s25 + $0x4] sm:$0x1]  ;;  %s1058_s8 = sshll.u32 %s361_s7, 2 }
  0x1c   : > { %v403_v8 = vrot.slane %v401_v7, 1  ;;  %v720_v25 = vld [vmem:[%s354_s25] sm:$0xf]  ;;  %s363_s11 = scalar_lea.vmem %s1458_s4, %s1058_s8  ;;  %s371_s14 = scalar_lea.vmem %s1459_s5, %s1058_s8 }
  0x1d   : > { %v617_v16 = vrot.slane %v615_v15, 1  ;;  %v1077_v26 = vcombine.low %v720_v25, %v721_v24  ;;  %v886_v44 = vld [vmem:[%s363_s11] sm:$0xf] }
  0x1e   : > { %v404_v12 = vor.u32 %v403_v8, %v399_v6 }
  0x1f   : > { %v618_v18 = vor.u32 %v617_v16, %v613_v14  ;;  %v780_v28 = vshll.u32 %v1077_v26, 16  ;;  %v778_v29 = vshrl.u32 %v1077_v26, 16  ;;  %v834_v33 = vrot.slane %v1077_v26, 1 }
  0x20   : > { %1105 = vmatmul.mubr.msk.bf16.vlgmr.msra.gmra.mrb[0].mxu1 %vm411_vm1, %v404_v12 }
  0x21   : > { %1109 = vmatpush3.bf16.msra.mxu1 %v1234_v11  ;;  %1110 = vmatprep.mubr.msk.bf16.mxu1 %vm1282_vm0, %v1281_v1  ;;  %v782_v30 = vrot.slane %v780_v28, 1 }
  0x22   : > { %1114 = vmatprep.subr.bf16.mxu1 %v1281_v1  ;;  %1129 = vmatmul.mubr.msk.bf16.vlgmr.msra.gmra.mrb[0].mxu0 %vm411_vm1, %v618_v18 }
  0x23   : > { %1133 = vmatpush3.bf16.msra.mxu0 %v1233_v17  ;;  %1134 = vmatprep.mubr.msk.bf16.mxu0 %vm1282_vm0, %v1281_v1  ;;  %v783_v31 = vor.u32 %v782_v30, %v778_v29 }
  0x24   : > { %1138 = vmatprep.subr.bf16.mxu0 %v1281_v1 }
  0x2c   : > { %1111 = vmatmul.mubr.msk.bf16.vlgmr.msra.gmra.mrb[0].mxu1 %vm411_vm1, %v391_v3 }
  0x2d   : > { %1115 = vmatpush3.bf16.msra.mxu1 %v1236_v19  ;;  %1116 = vmatprep.mubr.msk.bf16.mxu1 %vm1282_vm0, %v1281_v1 }
  0x2e   : > { %1120 = vmatprep.subr.bf16.mxu1 %v1281_v1  ;;  %1135 = vmatmul.mubr.msk.bf16.vlgmr.msra.gmra.mrb[0].mxu0 %vm411_vm1, %v669_v20 }
  0x2f   : > { %1139 = vmatpush3.bf16.msra.mxu0 %v1235_v21  ;;  %1140 = vmatprep.mubr.msk.bf16.mxu0 %vm1282_vm0, %v1281_v1 }
  0x30   : > { %1144 = vmatprep.subr.bf16.mxu0 %v1281_v1 }
  0x38   : > { %1117 = vmatmul.mubr.msk.bf16.vlgmr.msra.gmra.mrb[0].mxu1 %vm411_vm1, %v504_v22 }
  0x39   : > { %1121 = vmatpush3.bf16.msra.mxu1 %v1239_v23  ;;  %1122 = vmatprep.mubr.msk.bf16.mxu1 %vm1282_vm0, %v1281_v1 }
  0x3a   : > { %1141 = vmatmul.mubr.msk.bf16.vlgmr.msra.gmra.mrb[0].mxu0 %vm411_vm1, %v720_v25 }
  0x3b   : > { %1145 = vmatpush3.bf16.msra.mxu0 %v1238_v27  ;;  %1146 = vmatprep.mubr.msk.bf16.mxu0 %vm1282_vm0, %v1281_v1 }
  0x3c   : > { %1150 = vmatprep.subr.bf16.mxu0 %v1281_v1 }
  0x44   : > { %1123 = vmatmul.mubr.msk.bf16.vlgmr.msra.gmra.mrb[0].mxu1 %vm411_vm1, %v555_v9 }
  0x46   : > { %1147 = vmatmul.mubr.msk.bf16.vlgmr.msra.gmra.mrb[0].mxu0 %vm411_vm1, %v783_v31 }
  0x47   : > { %1151 = vmatpush3.bf16.msra.mxu0 %v1240_v32  ;;  %1152 = vmatprep.mubr.msk.bf16.mxu0 %vm1282_vm0, %v1281_v1 }
  0x52   : > { %1153 = vmatmul.mubr.msk.bf16.vlgmr.msra.gmra.mrb[0].mxu0 %vm411_vm1, %v834_v33 }
 0x117   : > { %v600_v34 = vpop.f32.mrb[0].mxu1 }
 0x118   : > { %v1124_v35 = vpop.f32.mrb[1].mxu1 }
 0x119   : > { %v603_v36 = vpop.f32.mrb[2].mxu1 }
 0x11a   : > { %v1125_v37 = vpop.f32.mrb[3].mxu1 }
 0x125   : > { %v878_v38 = vpop.f32.mrb[0].mxu0 }
 0x126   : > { %v1156_v39 = vadd.f32 %v878_v38, %v600_v34  ;;  %v1154_v40 = vpop.f32.mrb[1].mxu0 }
 0x127   : > { %v881_v41 = vpop.f32.mrb[2].mxu0 }
 0x128   : > { %v885_v42 = vpack.c.bf16 %v1156_v39, %v1156_v39  ;;  %v1155_v43 = vpop.f32.mrb[3].mxu0 }
 0x12a   : > { %888 = vrot.lane.b32.xlu0 %v885_v42, %s1283_s29 }
 0x19c   : > { %v889_v45 = vpop.permute.xlu0 %888 }
 0x19d   : > { %v893_v46 = vsel %vm890_vm2, %v886_v44, %v889_v45 }
 0x19e   : > { %896 = vst.msk [vmem:[%s371_s14] sm:$0xf] %vm895_vm3, %v893_v46 }
 0x19f PF: > { %s15_s22 = sadd.s32 1, %s1279_s22   ;;  %s1460_s18 = smov %s1271_s20 }
 0x1a0   : > { %p12_p10 = scmp.ge.s32.totalorder %s15_s22, 18   ;;  %s1461_s19 = smov %s1275_s21 }
 0x1a1   : > { %s1462_s20 = smov %s1465_s23  ;;  %s1463_s21 = smov %s1469_s24 }
 0x1a2   :  { %14 = sbr.rel (!%p12_p10) target bundleno = 3 (0x3), region = 79 }

// kernel: densenet_backbone_forward.20
= control target key start
LH: loop header
LB: loop body
LE: loop exit
PB: predicated region body
PF: predicated region fallthrough
CT: control target
= control target key end

     0   :  { %s607_s9 = smov 0   ;;  %s609_s10 = smov 0   ;;  %s670_s0 = inlined_call_operand.vmem [shape: bf16[2,8,4,2,16], index: 0, kind: input, shape index: {}, may-alias: {0,1}]   ;;  %s671_s1 = inlined_call_operand.vmem [shape: bf16[2,8,4,2,16], index: 1, kind: input, shape index: {}, may-alias: {0,1}]   ;;  %s672_s2 = inlined_call_operand.vmem [shape: bf16[2,4,4,16], index: 2, kind: output, shape index: {}]  }
   0x1   :  { %s611_s11 = smov 0   ;;  %s613_s12 = smov 0  }
   0x2   :  { %s615_s13 = smov 0  }
   0x3 LB: > { %s21_s14 = sadd.s32 1, %s581_s11  ;;  %s24_s15 = sadd.s32 1, %s585_s12  ;;  %s589_s13 = sphi %s615_s13, %s12_s13   ;;  %s585_s12 = sphi %s613_s12, %s676_s12   ;;  %s581_s11 = sphi %s611_s11, %s675_s11   ;;  %s577_s10 = sphi %s609_s10, %s674_s10   ;;  %s573_s9 = sphi %s607_s9, %s673_s9  }
   0x4   : > { %p22_p0 = scmp.ge.s32.totalorder %s21_s14, 4  ;;  %p491_p1 = scmp.ge.s32.totalorder %s589_s13, 1 }
   0x5   : > { %p158_p2 = scmp.lt.s32.totalorder %s589_s13, 9 }
   0x6   : > { %s678_s14 = smov (%p22_p0, %s21_s14), 0  ;;  %s680_s15 = smov (!%p22_p0, %s24_s15), %s585_s12 }
   0x7   : > { %p159_p3 = pnand %p491_p1, %p158_p2  ;;  %p26_p4 = scmp.ge.s32.totalorder %s680_s15, 2 }
   0x8   : > { %s492_s16 = sshll.u32 (!%p159_p3), %s573_s9, 1  ;;  %p198_p5 = scmp.lt.s32.totalorder (!%p159_p3), %s577_s10, 1  ;;  %v591_v10 = vmov (!%p159_p3), 1983009808   ;;  %v302_v12 = vlaneseq (!%p159_p3)  ;;  %vm360_vm0 = vcmask (!%p159_p3), 1041409   ;;  %vm363_vm1 = vcmask (!%p159_p3), 1042434  }
   0x9   : > { %s682_s15 = smov (%p26_p4, %s680_s15), 0  ;;  %162 = sbr.rel (%p159_p3) target bundleno = 51 (0x33), region = 28 }
   0xa   : > { %p200_p6 = scmp.lt.s32.totalorder (!%p159_p3), %s492_s16, 7  ;;  %s208_s17 = sadd.s32 (!%p159_p3), 1, %s492_s16  ;;  %v300_v11 = vunpack.c.l.s4 (!%p159_p3), %v591_v10  ;;  %v303_v28 = vshrl.u32 (!%p159_p3), %v302_v12, 7  ;;  %vm366_vm2 = vcmask (!%p159_p3), 1043459   ;;  %vm377_vm3 = vcmask (!%p159_p3), 123904  }
   0xb   : > { %p211_p7 = scmp.lt.s32.totalorder (!%p159_p3), %s208_s17, 7  ;;  %p221_p8 = scmp.lt.s32.totalorder (!%p159_p3), %s573_s9, 3 }
   0xc   : > { %v301_v27 = vunpack.c.0.s8 (!%p159_p3), %v300_v11 }
   0xe   : > { %v304_v45 = vsub.s32 (!%p159_p3), %v301_v27, %v303_v28 }
  0x10   : > { %s684_s10 = smov (!%p198_p5, %s577_s10), 1  ;;  %s686_s16 = smov (!%p200_p6, %s492_s16), 7 }
  0x11   : > { %s494_s18 = sshll.u32 %s684_s10, 5  ;;  %s493_s19 = sshll.u32 %s686_s16, 2 }
  0x12   : > { %s204_s20 = sadd.s32 %s494_s18, %s493_s19  ;;  %s688_s17 = smov (!%p211_p7, %s208_s17), 7 }
  0x13   : > { %s205_s23 = scalar_lea.vmem %s670_s0, %s204_s20  ;;  %s496_s24 = sshll.u32 %s688_s17, 2 }
  0x14   : > { %v227_v0 = vld [vmem:[%s205_s23] sm:$0x1]  ;;  %v228_v1 = vld [vmem:[%s205_s23 + $0x1] sm:$0x1]  ;;  %v229_v2 = vld [vmem:[%s205_s23 + $0x2] sm:$0x1]  ;;  %s215_s25 = sadd.s32 %s496_s24, %s494_s18 }
  0x15   : > { %v230_v3 = vld [vmem:[%s205_s23 + $0x3] sm:$0x1]  ;;  %v231_v4 = vunpack.c.l.bf16 %v227_v0  ;;  %v232_v5 = vunpack.c.l.bf16 %v228_v1  ;;  %v233_v6 = vunpack.c.l.bf16 %v229_v2  ;;  %s216_s28 = scalar_lea.vmem %s671_s1, %s215_s25  ;;  %s690_s9 = smov (!%p221_p8, %s573_s9), 3 }
  0x16   : > { %v234_v7 = vunpack.c.l.bf16 %v230_v3  ;;  %v235_v15 = vld [vmem:[%s216_s28] sm:$0x1]  ;;  %v236_v16 = vld [vmem:[%s216_s28 + $0x1] sm:$0x1]  ;;  %v237_v17 = vld [vmem:[%s216_s28 + $0x2] sm:$0x1] }
  0x17   : > { %v500_v8 = vrot.slane %v231_v4, 9  ;;  %v501_v9 = vrot.slane %v232_v5, 9  ;;  %v502_v13 = vrot.slane %v233_v6, 9  ;;  %v238_v20 = vld [vmem:[%s216_s28 + $0x3] sm:$0x1]  ;;  %v239_v21 = vunpack.c.l.bf16 %v235_v15  ;;  %s498_s29 = sshll.u32 %s684_s10, 2 }
  0x18   : > { %v503_v14 = vrot.slane %v234_v7, 9  ;;  %v240_v22 = vunpack.c.l.bf16 %v236_v16  ;;  %v241_v23 = vunpack.c.l.bf16 %v237_v17  ;;  %v242_v25 = vunpack.c.l.bf16 %v238_v20  ;;  %s224_s30 = sadd.s32 %s498_s29, %s690_s9 }
  0x19   : > { %v259_v18 = vadd.f32 %v500_v8, %v231_v4  ;;  %v260_v19 = vadd.f32 %v501_v9, %v232_v5  ;;  %v261_v24 = vadd.f32 %v502_v13, %v233_v6  ;;  %v504_v32 = vrot.slane %v239_v21, 9  ;;  %s499_s3 = sshll.u32 %s224_s30, 1 }
  0x1a   : > { %v262_v26 = vadd.f32 %v503_v14, %v234_v7  ;;  %v505_v34 = vrot.slane %v240_v22, 9  ;;  %v506_v35 = vrot.slane %v241_v23, 9  ;;  %v507_v36 = vrot.slane %v242_v25, 9  ;;  %s226_s6 = scalar_lea.vmem %s672_s2, %s499_s3 }
  0x1b   : > { %v263_v29 = vadd.f32 %v259_v18, %v239_v21  ;;  %v264_v30 = vadd.f32 %v260_v19, %v240_v22  ;;  %v265_v31 = vadd.f32 %v261_v24, %v241_v23 }
  0x1c   : > { %v266_v33 = vadd.f32 %v262_v26, %v242_v25 }
  0x1d   : > { %v283_v37 = vadd.f32 %v504_v32, %v263_v29  ;;  %v284_v38 = vadd.f32 %v505_v34, %v264_v30  ;;  %v285_v39 = vadd.f32 %v506_v35, %v265_v31 }
  0x1e   : > { %v286_v40 = vadd.f32 %v507_v36, %v266_v33 }
  0x1f   : > { %v287_v41 = vmul.f32 0.25, %v283_v37  ;;  %v288_v42 = vmul.f32 0.25, %v284_v38  ;;  %v289_v43 = vmul.f32 0.25, %v285_v39 }
  0x20   : > { %v290_v44 = vmul.f32 0.25, %v286_v40 }
  0x21   : > { %v291_v46 = vpack.c.bf16 %v287_v41, %v287_v41  ;;  %v292_v47 = vpack.c.bf16 %v288_v42, %v288_v42  ;;  %v293_v48 = vpack.c.bf16 %v289_v43, %v289_v43 }
  0x22   : > { %v294_v49 = vpack.c.bf16 %v290_v44, %v290_v44 }
  0x23   : > { %v305_v50 = vrot.slane %v291_v46, %v304_v45  ;;  %v312_v51 = vrot.slane %v292_v47, %v304_v45  ;;  %v319_v52 = vrot.slane %v293_v48, %v304_v45 }
  0x24   : > { %v326_v53 = vrot.slane %v294_v49, %v304_v45 }
  0x25   : > { %v333_v54 = vrot.slane %v305_v50, %v304_v45  ;;  %v340_v55 = vrot.slane %v312_v51, %v304_v45  ;;  %v347_v56 = vrot.slane %v319_v52, %v304_v45 }
  0x26   : > { %v354_v57 = vrot.slane %v326_v53, %v304_v45 }
  0x27   : > { %v355_v58 = vunpack.c.l.b16 %v333_v54  ;;  %v356_v59 = vunpack.c.l.b16 %v340_v55  ;;  %v357_v60 = vunpack.c.l.b16 %v347_v56 }
  0x28   : > { %v358_v61 = vunpack.c.l.b16 %v354_v57 }
  0x29   : > { %v359_v62 = vrot.slane %v356_v59, 7  ;;  %v362_v63 = vrot.slane %v357_v60, 6 }
  0x2a   : > { %v365_v0 = vrot.slane %v358_v61, 5 }
  0x2b   : > { %v361_v1 = vsel %vm360_vm0, %v359_v62, %v355_v58 }
  0x2c   : > { %v364_v2 = vsel %vm363_vm1, %v362_v63, %v361_v1 }
  0x2d   : > { %v367_v3 = vsel %vm366_vm2, %v365_v0, %v364_v2 }
  0x2e   : > { %v368_v4 = vpack.c.b16 %v367_v3, %v367_v3 }
  0x30   : > { %v375_v5 = vrot.slane %v368_v4, %v304_v45 }
  0x32   : > { %378 = vst.msk [vmem:[%s226_s6] sm:$0x3] %vm377_vm3, %v375_v5 }
  0x33 PF: > { %s12_s13 = sadd.s32 1, %s589_s13   ;;  %s673_s9 = smov %s581_s11 }
  0x34   : > { %p9_p9 = scmp.ge.s32.totalorder %s12_s13, 10   ;;  %s674_s10 = smov %s585_s12 }
  0x35   : > { %s675_s11 = smov %s678_s14  ;;  %s676_s12 = smov %s682_s15 }
  0x36   :  { %11 = sbr.rel (!%p9_p9) target bundleno = 3 (0x3), region = 61 }

// kernel: densenet_backbone_forward.21
= control target key start
LH: loop header
LB: loop body
LE: loop exit
PB: predicated region body
PF: predicated region fallthrough
CT: control target
= control target key end

     0   :  { %s510_s21 = smov 0   ;;  %s545_s0 = inlined_call_operand.vmem [shape: bf16[32,16], index: 0, kind: input, shape index: {}]   ;;  %s546_s1 = inlined_call_operand.vmem [shape: bf16[16,16], index: 1, kind: input, shape index: {}]   ;;  %s547_s2 = inlined_call_operand.vmem [shape: f32[1,16], index: 2, kind: input, shape index: {}]   ;;  %s548_s3 = inlined_call_operand.vmem [shape: f32[1,16], index: 3, kind: input, shape index: {}]   ;;  %s549_s4 = inlined_call_operand.vmem [shape: f32[1,16], index: 4, kind: input, shape index: {}]   ;;  %s550_s5 = inlined_call_operand.vmem [shape: f32[1,16], index: 5, kind: input, shape index: {}]   ;;  %s551_s6 = inlined_call_operand.vmem [shape: bf16[32,16], index: 6, kind: output, shape index: {}]  }
   0x1 LB: > { %s421_s22 = sadd.s32 4294967295, %s471_s21   ;;  %p425_p0 = scmp.ge.s32.totalorder %s471_s21, 1  ;;  %s471_s21 = sphi %s510_s21, %s16_s21  }
   0x2   : > { %p213_p1 = scmp.lt.s32.totalorder %s471_s21, 3 }
   0x4   : > { %p214_p2 = pnand %p425_p0, %p213_p1 }
   0x5   : > { %v464_v0 = vld [vmem:[%s546_s1] sm:$0xff] (!%p214_p2)   ;;  %v473_v1 = vmov (!%p214_p2), 0.0   ;;  %s426_s25 = sshll.u32 (!%p214_p2), %s421_s22, 1  ;;  %vm474_vm0 = vmmov (!%p214_p2), 0   ;;  %vm289_vm1 = vcmask (!%p214_p2), 130048   ;;  %vm362_vm2 = vcmask (!%p214_p2), 125952  }
   0x6   : > { %217 = sbr.rel (%p214_p2) target bundleno = 250 (0xfa), region = 44  ;;  %448 = vmatprep.subr.bf16.mxu0 (!%p214_p2), %v473_v1  ;;  %450 = vmatprep.mubr.msk.bf16.mxu0 (!%p214_p2), %vm474_vm0, %v473_v1  ;;  %p244_p3 = scmp.lt.s32.totalorder (!%p214_p2), %s426_s25, 3  ;;  %v430_v3 = vld [vmem:[%s547_s2] ss:$0 sm:$0xff] (!%p214_p2) }
   0x7   : > { %449 = vmatpush3.bf16.msra.mxu0 (!%p214_p2), %v464_v0  ;;  %v431_v6 = vld [vmem:[%s548_s3] ss:$0 sm:$0xff] (!%p214_p2) }
   0x8   : > { %v434_v14 = vld [vmem:[%s549_s4] ss:$0 sm:$0xff] (!%p214_p2) }
   0x9   : > { %v435_v16 = vld [vmem:[%s550_s5] ss:$0 sm:$0xff] (!%p214_p2) }
   0xd   : > { %s553_s25 = smov (!%p244_p3, %s426_s25), 3 }
   0xe   : > { %s427_s26 = sshll.u32 %s553_s25, 2 }
   0xf   : > { %s247_s29 = scalar_lea.vmem %s545_s0, %s427_s26  ;;  %s253_s16 = scalar_lea.vmem %s551_s6, %s427_s26 }
  0x10   : > { %v443_v2 = vld [vmem:[%s247_s29] sm:$0xff]  }
  0x11   : > { %v444_v4 = vunpack.c.l.bf16 %v443_v2  ;;  %v445_v5 = vunpack.c.h.bf16 %v443_v2 }
  0x13   : > { %v267_v7 = vmul.f32 %v444_v4, %v430_v3  ;;  %v268_v8 = vmul.f32 %v445_v5, %v430_v3 }
  0x15   : > { %v276_v9 = vadd.f32 %v431_v6, %v267_v7  ;;  %v277_v10 = vadd.f32 %v431_v6, %v268_v8 }
  0x17   : > { %v278_v11 = vmax.f32 %v276_v9, 0.0  ;;  %v279_v12 = vmax.f32 %v277_v10, 0.0 }
  0x19   : > { %v280_v13 = vpack.c.bf16 %v279_v12, %v278_v11 }
  0x1b   : > { %451 = vmatmul.mubr.msk.bf16.vlgmr.msra.gmra.mrb[0].mxu0 %vm289_vm1, %v280_v13 }
  0xee   : > { %v327_v15 = vpop.f32.mrb[0].mxu0 }
  0xef   : > { %v341_v17 = vmul.f32 %v434_v14, %v327_v15  ;;  %v452_v18 = vpop.f32.mrb[1].mxu0 }
  0xf0   : > { %v330_v19 = vpop.f32.mrb[2].mxu0 }
  0xf1   : > { %v350_v20 = vadd.f32 %v435_v16, %v341_v17  ;;  %v342_v21 = vmul.f32 %v434_v14, %v330_v19  ;;  %v453_v22 = vpop.f32.mrb[3].mxu0 }
  0xf3   : > { %v352_v23 = vmax.f32 %v350_v20, 0.0  ;;  %v351_v24 = vadd.f32 %v435_v16, %v342_v21 }
  0xf5   : > { %v440_v25 = vpack.c.bf16 %v352_v23, %v352_v23  ;;  %v353_v26 = vmax.f32 %v351_v24, 0.0 }
  0xf7   : > { %363 = vst.msk [vmem:[%s253_s16] sm:$0xf] %vm362_vm2, %v440_v25  ;;  %v441_v27 = vpack.c.bf16 %v353_v26, %v353_v26 }
  0xf9   : > { %364 = vst.msk [vmem:[%s253_s16 + $0x4] sm:$0xf] %vm362_vm2, %v441_v27 }
  0xfa PF: > { %s16_s21 = sadd.s32 1, %s471_s21  }
  0xfb   : > { %p13_p4 = scmp.ge.s32.totalorder %s16_s21, 4  }
  0xfd   :  { %15 = sbr.rel (!%p13_p4) target bundleno = 1 (0x1), region = 74 }

// kernel: densenet_backbone_forward.22
= control target key start
LH: loop header
LB: loop body
LE: loop exit
PB: predicated region body
PF: predicated region fallthrough
CT: control target
= control target key end

     0   :  { %s1283_s18 = smov 0   ;;  %s1285_s19 = smov 0   ;;  %s1424_s0 = inlined_call_operand.vmem [shape: bf16[2,6,6,16], index: 0, kind: input, shape index: {}, may-alias: {0,1,2}]   ;;  %s1425_s1 = inlined_call_operand.vmem [shape: bf16[2,6,6,16], index: 1, kind: input, shape index: {}, may-alias: {0,1,2}]   ;;  %s1426_s2 = inlined_call_operand.vmem [shape: bf16[2,6,6,16], index: 2, kind: input, shape index: {}, may-alias: {0,1,2}]   ;;  %s1427_s3 = inlined_call_operand.vmem [shape: bf16[3,3,16,8], index: 3, kind: input, shape index: {}]   ;;  %s1428_s4 = inlined_call_operand.vmem [shape: bf16[2,4,4,16], index: 4, kind: input, shape index: {}]   ;;  %s1429_s5 = inlined_call_operand.vmem [shape: bf16[2,4,4,24], index: 5, kind: output, shape index: {}]  }
   0x1   :  { %s1287_s20 = smov 0   ;;  %s1289_s21 = smov 0  }
   0x2   :  { %s1291_s22 = smov 0  }
   0x3 LB: > { %s24_s23 = sadd.s32 1, %s1240_s20  ;;  %s27_s24 = sadd.s32 1, %s1244_s21  ;;  %s1248_s22 = sphi %s1291_s22, %s15_s22   ;;  %s1244_s21 = sphi %s1289_s21, %s1433_s21   ;;  %s1240_s20 = sphi %s1287_s20, %s1432_s20   ;;  %s1236_s19 = sphi %s1285_s19, %s1431_s19   ;;  %s1232_s18 = sphi %s1283_s18, %s1430_s18  }
   0x4   : > { %p25_p0 = scmp.ge.s32.totalorder %s24_s23, 4  ;;  %p1022_p1 = scmp.ge.s32.totalorder %s1248_s22, 1 }
   0x5   : > { %p259_p2 = scmp.lt.s32.totalorder %s1248_s22, 9 }
   0x6   : > { %s1435_s23 = smov (%p25_p0, %s24_s23), 0  ;;  %s1437_s24 = smov (!%p25_p0, %s27_s24), %s1244_s21 }
   0x7   : > { %p260_p3 = pnand %p1022_p1, %p259_p2  ;;  %p29_p4 = scmp.ge.s32.totalorder %s1437_s24, 2 }
   0x8   : > { %v1198_v0 = vld [vmem:[%s1427_s3 + $0x20] sm:$0xff] (!%p260_p3)   ;;  %v1250_v1 = vmov (!%p260_p3), 0.0   ;;  %v1199_v2 = vld [vmem:[%s1427_s3 + $0x8] sm:$0xff] (!%p260_p3)   ;;  %vm1251_vm0 = vmmov (!%p260_p3), 0   ;;  %p319_p5 = scmp.lt.s32.totalorder (!%p260_p3), %s1236_s19, 1  ;;  %p321_p6 = scmp.lt.s32.totalorder (!%p260_p3), %s1232_s18, 5 }
   0x9   : > { %s1439_s24 = smov (%p29_p4, %s1437_s24), 0  ;;  %263 = sbr.rel (%p260_p3) target bundleno = 415 (0x19f), region = 40 }
   0xa   : > { %1095 = vmatprep.subr.bf16.mxu0 (!%p260_p3), %v1250_v1  ;;  %1071 = vmatprep.subr.bf16.mxu1 (!%p260_p3), %v1250_v1  ;;  %s327_s29 = sadd.s32 (!%p260_p3), 1, %s1232_s18  ;;  %vm399_vm1 = vcmask (!%p260_p3), 130048   ;;  %v1203_v10 = vld [vmem:[%s1427_s3] sm:$0xff] (!%p260_p3)   ;;  %v1202_v15 = vld [vmem:[%s1427_s3 + $0x28] sm:$0xff] (!%p260_p3)   ;;  %s337_s28 = sadd.s32 (!%p260_p3), 2, %s1232_s18  ;;  %v1205_v17 = vld [vmem:[%s1427_s3 + $0x10] sm:$0xff] (!%p260_p3)  }
   0xb   : > { %1096 = vmatpush3.bf16.msra.mxu0 (!%p260_p3), %v1198_v0  ;;  %1073 = vmatprep.mubr.msk.bf16.mxu1 (!%p260_p3), %vm1251_vm0, %v1250_v1  ;;  %p330_p7 = scmp.lt.s32.totalorder (!%p260_p3), %s327_s29, 5  ;;  %p340_p8 = scmp.lt.s32.totalorder (!%p260_p3), %s337_s28, 5  ;;  %v1204_v19 = vld [vmem:[%s1427_s3 + $0x30] sm:$0xff] (!%p260_p3)   ;;  %v1208_v21 = vld [vmem:[%s1427_s3 + $0x18] sm:$0xff] (!%p260_p3)   ;;  %v1209_v29 = vld [vmem:[%s1427_s3 + $0x40] sm:$0xff] (!%p260_p3)   ;;  %vm876_vm2 = vcmask (!%p260_p3), 189440  }
   0xc   : > { %1072 = vmatpush3.bf16.msra.mxu1 (!%p260_p3), %v1199_v2  ;;  %1097 = vmatprep.mubr.msk.bf16.mxu0 (!%p260_p3), %vm1251_vm0, %v1250_v1  ;;  %v1207_v24 = vld [vmem:[%s1427_s3 + $0x38] sm:$0xff] (!%p260_p3)   ;;  %s1252_s26 = smov (!%p260_p3), 16   ;;  %p349_p9 = scmp.lt.s32.totalorder (!%p260_p3), %s1232_s18, 3 }
   0xd   : > { %1101 = vmatprep.subr.bf16.mxu0 (!%p260_p3), %v1250_v1  ;;  %1077 = vmatprep.subr.bf16.mxu1 (!%p260_p3), %v1250_v1 }
  0x10   : > { %s1441_s19 = smov (!%p319_p5, %s1236_s19), 1  ;;  %s1443_s29 = smov (!%p330_p7, %s327_s29), 5 }
  0x11   : > { %s322_s30 = scalar_select %p321_p6, %s1232_s18, 5 }
  0x12   : > { %s1335_s6 = smul.u32 6, %s1441_s19  ;;  %s1445_s28 = smov (!%p340_p8, %s337_s28), 5 }
  0x13   : > { %s1447_s18 = smov (!%p349_p9, %s1232_s18), 3  ;;  %s1026_s27 = sshll.u32 %s1441_s19, 2 }
  0x14   : > { %s324_s7 = sadd.s32 %s1335_s6, %s322_s30  ;;  %s333_s12 = sadd.s32 %s1335_s6, %s1443_s29 }
  0x15   : > { %s1023_s8 = sshll.u32 %s324_s7, 2  ;;  %s1024_s13 = sshll.u32 %s333_s12, 2 }
  0x16   : > { %s326_s11 = scalar_lea.vmem %s1424_s0, %s1023_s8  ;;  %s335_s16 = scalar_lea.vmem %s1425_s1, %s1024_s13 }
  0x17   : > { %v382_v3 = vld [vmem:[%s326_s11] sm:$0x7]  ;;  %s343_s9 = sadd.s32 %s1335_s6, %s1445_s28  ;;  %s352_s28 = sadd.s32 %s1026_s27, %s1447_s18 }
  0x18   : > { %v1030_v4 = vcombine.low %v382_v3, %v382_v3  ;;  %v543_v8 = vld [vmem:[%s335_s16] sm:$0x7]  ;;  %s1025_s10 = sshll.u32 %s343_s9, 2  ;;  %s1027_s29 = sshll.u32 %s352_s28, 1 }
  0x19   : > { %v1039_v9 = vcombine.low %v543_v8, %v543_v8  ;;  %s345_s13 = scalar_lea.vmem %s1426_s2, %s1025_s10  ;;  %s354_s8 = scalar_lea.vmem %s1428_s4, %s1027_s29 }
  0x1a   : > { %v387_v5 = vshrl.u32 %v1030_v4, 16  ;;  %v389_v6 = vshll.u32 %v1030_v4, 16  ;;  %v492_v20 = vrot.slane %v1030_v4, 1  ;;  %v705_v22 = vld [vmem:[%s345_s13] sm:$0x7]  ;;  %s362_s11 = scalar_lea.vmem %s1429_s5, %s1027_s29 }
  0x1b   : > { %v598_v12 = vshrl.u32 %v1039_v9, 16  ;;  %v600_v13 = vshll.u32 %v1039_v9, 16  ;;  %v654_v18 = vrot.slane %v1039_v9, 1  ;;  %v1046_v23 = vcombine.low %v705_v22, %v705_v22  ;;  %v868_v41 = vld [vmem:[%s354_s8] sm:$0x3] }
  0x1c   : > { %v391_v7 = vrot.slane %v389_v6, 1 }
  0x1d   : > { %v602_v14 = vrot.slane %v600_v13, 1  ;;  %v762_v25 = vshll.u32 %v1046_v23, 16  ;;  %v760_v26 = vshrl.u32 %v1046_v23, 16  ;;  %v816_v30 = vrot.slane %v1046_v23, 1 }
  0x1e   : > { %v392_v11 = vor.u32 %v391_v7, %v387_v5 }
  0x1f   : > { %v603_v16 = vor.u32 %v602_v14, %v598_v12  ;;  %v764_v27 = vrot.slane %v762_v25, 1 }
  0x20   : > { %1074 = vmatmul.mubr.msk.bf16.vlgmr.msra.gmra.mrb[0].mxu1 %vm399_vm1, %v392_v11 }
  0x21   : > { %1078 = vmatpush3.bf16.msra.mxu1 %v1203_v10  ;;  %1079 = vmatprep.mubr.msk.bf16.mxu1 %vm1251_vm0, %v1250_v1  ;;  %v765_v28 = vor.u32 %v764_v27, %v760_v26 }
  0x22   : > { %1083 = vmatprep.subr.bf16.mxu1 %v1250_v1  ;;  %1098 = vmatmul.mubr.msk.bf16.vlgmr.msra.gmra.mrb[0].mxu0 %vm399_vm1, %v603_v16 }
  0x23   : > { %1102 = vmatpush3.bf16.msra.mxu0 %v1202_v15  ;;  %1103 = vmatprep.mubr.msk.bf16.mxu0 %vm1251_vm0, %v1250_v1 }
  0x24   : > { %1107 = vmatprep.subr.bf16.mxu0 %v1250_v1 }
  0x2c   : > { %1080 = vmatmul.mubr.msk.bf16.vlgmr.msra.gmra.mrb[0].mxu1 %vm399_vm1, %v382_v3 }
  0x2d   : > { %1084 = vmatpush3.bf16.msra.mxu1 %v1205_v17  ;;  %1085 = vmatprep.mubr.msk.bf16.mxu1 %vm1251_vm0, %v1250_v1 }
  0x2e   : > { %1089 = vmatprep.subr.bf16.mxu1 %v1250_v1  ;;  %1104 = vmatmul.mubr.msk.bf16.vlgmr.msra.gmra.mrb[0].mxu0 %vm399_vm1, %v654_v18 }
  0x2f   : > { %1108 = vmatpush3.bf16.msra.mxu0 %v1204_v19  ;;  %1109 = vmatprep.mubr.msk.bf16.mxu0 %vm1251_vm0, %v1250_v1 }
  0x30   : > { %1113 = vmatprep.subr.bf16.mxu0 %v1250_v1 }
  0x38   : > { %1086 = vmatmul.mubr.msk.bf16.vlgmr.msra.gmra.mrb[0].mxu1 %vm399_vm1, %v492_v20 }
  0x39   : > { %1090 = vmatpush3.bf16.msra.mxu1 %v1208_v21  ;;  %1091 = vmatprep.mubr.msk.bf16.mxu1 %vm1251_vm0, %v1250_v1 }
  0x3a   : > { %1110 = vmatmul.mubr.msk.bf16.vlgmr.msra.gmra.mrb[0].mxu0 %vm399_vm1, %v705_v22 }
  0x3b   : > { %1114 = vmatpush3.bf16.msra.mxu0 %v1207_v24  ;;  %1115 = vmatprep.mubr.msk.bf16.mxu0 %vm1251_vm0, %v1250_v1 }
  0x3c   : > { %1119 = vmatprep.subr.bf16.mxu0 %v1250_v1 }
  0x44   : > { %1092 = vmatmul.mubr.msk.bf16.vlgmr.msra.gmra.mrb[0].mxu1 %vm399_vm1, %v543_v8 }
  0x46   : > { %1116 = vmatmul.mubr.msk.bf16.vlgmr.msra.gmra.mrb[0].mxu0 %vm399_vm1, %v765_v28 }
  0x47   : > { %1120 = vmatpush3.bf16.msra.mxu0 %v1209_v29  ;;  %1121 = vmatprep.mubr.msk.bf16.mxu0 %vm1251_vm0, %v1250_v1 }
  0x52   : > { %1122 = vmatmul.mubr.msk.bf16.vlgmr.msra.gmra.mrb[0].mxu0 %vm399_vm1, %v816_v30 }
 0x117   : > { %v587_v31 = vpop.f32.mrb[0].mxu1 }
 0x118   : > { %v1093_v32 = vpop.f32.mrb[1].mxu1 }
 0x119   : > { %v590_v33 = vpop.f32.mrb[2].mxu1 }
 0x11a   : > { %v1094_v34 = vpop.f32.mrb[3].mxu1 }
 0x125   : > { %v860_v35 = vpop.f32.mrb[0].mxu0 }
 0x126   : > { %v1125_v36 = vadd.f32 %v860_v35, %v587_v31  ;;  %v1123_v37 = vpop.f32.mrb[1].mxu0 }
 0x127   : > { %v863_v38 = vpop.f32.mrb[2].mxu0 }
 0x128   : > { %v867_v39 = vpack.c.bf16 %v1125_v36, %v1125_v36  ;;  %v1124_v40 = vpop.f32.mrb[3].mxu0 }
 0x12a   : > { %870 = vrot.lane.b32.xlu0 %v867_v39, %s1252_s26 }
 0x19c   : > { %v871_v42 = vpop.permute.xlu0 %870 }
 0x19d   : > { %v874_v43 = vsel %vm399_vm1, %v868_v41, %v871_v42 }
 0x19e   : > { %877 = vst.msk [vmem:[%s362_s11] sm:$0x3] %vm876_vm2, %v874_v43 }
 0x19f PF: > { %s15_s22 = sadd.s32 1, %s1248_s22   ;;  %s1430_s18 = smov %s1240_s20 }
 0x1a0   : > { %p12_p10 = scmp.ge.s32.totalorder %s15_s22, 10   ;;  %s1431_s19 = smov %s1244_s21 }
 0x1a1   : > { %s1432_s20 = smov %s1435_s23  ;;  %s1433_s21 = smov %s1439_s24 }
 0x1a2   :  { %14 = sbr.rel (!%p12_p10) target bundleno = 3 (0x3), region = 79 }

// kernel: densenet_backbone_forward.23
= control target key start
LH: loop header
LB: loop body
LE: loop exit
PB: predicated region body
PF: predicated region fallthrough
CT: control target
= control target key end

     0   :  { %s523_s21 = smov 0   ;;  %s561_s0 = inlined_call_operand.vmem [shape: bf16[32,24], index: 0, kind: input, shape index: {}]   ;;  %s562_s1 = inlined_call_operand.vmem [shape: bf16[24,16], index: 1, kind: input, shape index: {}]   ;;  %s563_s2 = inlined_call_operand.vmem [shape: f32[1,24], index: 2, kind: input, shape index: {}]   ;;  %s564_s3 = inlined_call_operand.vmem [shape: f32[1,24], index: 3, kind: input, shape index: {}]   ;;  %s565_s4 = inlined_call_operand.vmem [shape: f32[1,16], index: 4, kind: input, shape index: {}]   ;;  %s566_s5 = inlined_call_operand.vmem [shape: f32[1,16], index: 5, kind: input, shape index: {}]   ;;  %s567_s6 = inlined_call_operand.vmem [shape: bf16[32,16], index: 6, kind: output, shape index: {}]  }
   0x1 LB: > { %s429_s22 = sadd.s32 4294967295, %s484_s21   ;;  %p433_p0 = scmp.ge.s32.totalorder %s484_s21, 1  ;;  %s484_s21 = sphi %s523_s21, %s16_s21  }
   0x2   : > { %p213_p1 = scmp.lt.s32.totalorder %s484_s21, 3 }
   0x4   : > { %p214_p2 = pnand %p433_p0, %p213_p1 }
   0x5   : > { %v476_v0 = vld [vmem:[%s562_s1] sm:$0xff] (!%p214_p2)   ;;  %v486_v1 = vmov (!%p214_p2), 0.0   ;;  %v477_v2 = vld [vmem:[%s562_s1 + $0x8] ss:$0 sps:$4 sm:$0xff] (!%p214_p2)   ;;  %vm297_vm0 = vcmask (!%p214_p2), 1043456   ;;  %vm487_vm1 = vmmov (!%p214_p2), 0  }
   0x6   : > { %217 = sbr.rel (%p214_p2) target bundleno = 250 (0xfa), region = 44  ;;  %458 = vmatprep.subr.bf16.mxu0 (!%p214_p2), %v486_v1  ;;  %462 = vmatprep.mubr.msk.bf16.mxu0 (!%p214_p2), %vm487_vm1, %v486_v1  ;;  %s434_s27 = sshll.u32 (!%p214_p2), %s429_s22, 1  ;;  %v299_v3 = vsel (!%p214_p2), %vm297_vm0, %v477_v2, 0  ;;  %v438_v5 = vld [vmem:[%s563_s2] ss:$0 sm:$0xff] (!%p214_p2)  ;;  %vm293_vm2 = vcmask (!%p214_p2), 195584  }
   0x7   : > { %459 = vmatpush3.bf16.msra.mxu0 (!%p214_p2), %v476_v0  ;;  %p244_p3 = scmp.lt.s32.totalorder (!%p214_p2), %s434_s27, 3  ;;  %v439_v8 = vld [vmem:[%s564_s3] ss:$0 sm:$0xff] (!%p214_p2)  ;;  %vm370_vm3 = vcmask (!%p214_p2), 125952  }
   0x8   : > { %460 = vmatprep.subr.bf16.mxu0 (!%p214_p2), %v486_v1  ;;  %v443_v16 = vld [vmem:[%s565_s4] ss:$0 sm:$0xff] (!%p214_p2) }
   0x9   : > { %v444_v18 = vld [vmem:[%s566_s5] ss:$0 sm:$0xff] (!%p214_p2) }
   0xb   : > { %461 = vmatpush3.bf16.msra.mxu0 (!%p214_p2), %v299_v3 }
   0xd   : > { %s569_s27 = smov (!%p244_p3, %s434_s27), 3 }
   0xe   : > { %s435_s28 = sshll.u32 %s569_s27, 2 }
   0xf   : > { %s247_s7 = scalar_lea.vmem %s561_s0, %s435_s28  ;;  %s253_s18 = scalar_lea.vmem %s567_s6, %s435_s28 }
  0x10   : > { %v452_v4 = vld [vmem:[%s247_s7] sm:$0xff]  }
  0x11   : > { %v453_v6 = vunpack.c.l.bf16 %v452_v4  ;;  %v454_v7 = vunpack.c.h.bf16 %v452_v4 }
  0x13   : > { %v267_v9 = vmul.f32 %v453_v6, %v438_v5  ;;  %v268_v10 = vmul.f32 %v454_v7, %v438_v5 }
  0x15   : > { %v276_v11 = vadd.f32 %v439_v8, %v267_v9  ;;  %v277_v12 = vadd.f32 %v439_v8, %v268_v10 }
  0x17   : > { %v278_v13 = vmax.f32 %v276_v11, 0.0  ;;  %v279_v14 = vmax.f32 %v277_v12, 0.0 }
  0x19   : > { %v280_v15 = vpack.c.bf16 %v279_v14, %v278_v13 }
  0x1b   : > { %463 = vmatmul.mubr.msk.bf16.vlgmr.msra.gmra.mrb[0].mxu0 %vm293_vm2, %v280_v15 }
  0xee   : > { %v335_v17 = vpop.f32.mrb[0].mxu0 }
  0xef   : > { %v349_v19 = vmul.f32 %v443_v16, %v335_v17  ;;  %v464_v20 = vpop.f32.mrb[1].mxu0 }
  0xf0   : > { %v338_v21 = vpop.f32.mrb[2].mxu0 }
  0xf1   : > { %v358_v22 = vadd.f32 %v444_v18, %v349_v19  ;;  %v350_v23 = vmul.f32 %v443_v16, %v338_v21  ;;  %v465_v24 = vpop.f32.mrb[3].mxu0 }
  0xf3   : > { %v360_v25 = vmax.f32 %v358_v22, 0.0  ;;  %v359_v26 = vadd.f32 %v444_v18, %v350_v23 }
  0xf5   : > { %v449_v27 = vpack.c.bf16 %v360_v25, %v360_v25  ;;  %v361_v28 = vmax.f32 %v359_v26, 0.0 }
  0xf7   : > { %371 = vst.msk [vmem:[%s253_s18] sm:$0xf] %vm370_vm3, %v449_v27  ;;  %v450_v29 = vpack.c.bf16 %v361_v28, %v361_v28 }
  0xf9   : > { %372 = vst.msk [vmem:[%s253_s18 + $0x4] sm:$0xf] %vm370_vm3, %v450_v29 }
  0xfa PF: > { %s16_s21 = sadd.s32 1, %s484_s21  }
  0xfb   : > { %p13_p4 = scmp.ge.s32.totalorder %s16_s21, 4  }
  0xfd   :  { %15 = sbr.rel (!%p13_p4) target bundleno = 1 (0x1), region = 74 }

// kernel: densenet_backbone_forward.25
= control target key start
LH: loop header
LB: loop body
LE: loop exit
PB: predicated region body
PF: predicated region fallthrough
CT: control target
= control target key end

     0   :  { %8 = vsyncpa [#allocation3], 0  ;;  %s511_s0 = inlined_call_operand.vmem [shape: bf16[2,4,4,32], index: 0, kind: input, shape index: {}]   ;;  %s512_s1 = inlined_call_operand.vmem [shape: f32[1,32], index: 1, kind: input, shape index: {}]   ;;  %s513_s2 = inlined_call_operand.vmem [shape: f32[1,32], index: 2, kind: input, shape index: {}]   ;;  %s514_s3 = inlined_call_operand.hbm [shape: f32[2,1,32], index: 3, kind: output, shape index: {}]  }
   0x1   :  { %10 = vsyncpa [#allocation3 + $0x1], 0  ;;  %s400_s12 = smov 0   ;;  %s402_s13 = smov 0  }
   0x2   :  { %s404_s14 = smov 0   ;;  %s406_s15 = smov 0  }
   0x3 LB: > { %s421_s16 = sadd.s32 4294967295, %s377_s15   ;;  %s266_s17 = sadd.s32 4294967294, %s377_s15   ;;  %s377_s15 = sphi %s406_s15, %s520_s15   ;;  %s373_s14 = sphi %s404_s14, %s519_s14   ;;  %s369_s13 = sphi %s402_s13, %s518_s13   ;;  %s365_s12 = sphi %s400_s12, %s517_s12  }
   0x4   : > { %s425_s18 = sadd.s32 1, %s377_s15   ;;  %s91_s19 = sadd.s32 1, %s373_s14 }
   0x5   : > { %s88_s20 = ssub.s32 %s377_s15, %s425_s18  ;;  %p101_p0 = scmp.ne.s32.totalorder %s373_s14, %s369_s13 }
   0x6   : > { %p89_p1 = scmp.eq.s32.totalorder %s88_s20, 0  ;;  %p102_p2 = scmp.eq.s32.totalorder %s421_s16, 1 }
   0x7   : > { %p107_p3 = scmp.ne.s32.totalorder %s369_s13, %s365_s12  ;;  %p108_p4 = scmp.eq.s32.totalorder %s266_s17, 1 }
   0x8   : > { %s436_s21 = scalar_select %p89_p1, %s373_s14, %s91_s19  }
   0x9   : > { %p438_p5 = por %p102_p2, %p101_p0  ;;  %p442_p6 = por %p108_p4, %p107_p3 }
   0xa   : > { %p269_p7 = scmp.ge.s32.totalorder %s377_s15, 1  ;;  %p140_p8 = scmp.lt.s32.totalorder %s377_s15, 3 }
   0xc   : > { %p141_p9 = pnand %p269_p7, %p140_p8 }
   0xd   : > { %p163_p10 = scmp.lt.s32.totalorder (!%p141_p9), %s421_s16, 1  ;;  %vm176_vm0 = vcmask (!%p141_p9), 257024   ;;  %s161_s29 = sand.u32 (!%p141_p9), 1, %s369_s13   ;;  %v192_v22 = vld [vmem:[%s512_s1] sm:$0x1] (!%p141_p9)  ;;  %vm196_vm1 = vcmask (!%p141_p9), 253952  }
   0xe   : > { %144 = sbr.rel (%p141_p9) target bundleno = 68 (0x44), region = 32  ;;  %v194_v24 = vld [vmem:[%s513_s2] sm:$0x1] (!%p141_p9)  ;;  %s162_s7 = scalar_lea.vmem (!%p141_p9), [#allocation2], %s161_s29 }
   0xf   : > { %s211_s8 = sshll.u32 (!%p141_p9), %s162_s7, 4  ;;  %s272_s9 = sshll.u32 (!%p141_p9), %s421_s16, 4  ;;  %s466_s8 = int_to_ptr.vmem [resolvable:$true] %s211_s8 }
  0x10   : > { %s471_s17 = scalar_lea.hbm (!%p141_p9), %s514_s3, %s272_s9  ;;  %s199_s19 = scalar_lea.sflag (!%p141_p9), [#allocation3], %s161_s29 }
  0x11   : > { %s315_s20 = scalar_lea.vmem (!%p141_p9), %s466_s8, 16 }
  0x12   : > { %p316_p11 = scmp.ne.s32.totalorder (!%p141_p9), %s466_s8, %s315_s20 }
  0x14   : > { %p317_p12 = pnand (!%p141_p9), %p316_p11, %p438_p5 }
  0x15   : > { %s164_s24 = scalar_select %p163_p10, %s421_s16, 1 }
  0x16   : > { %p318_p13 = pneg %p317_p12  ;;  %s379_s16 = smov [#allocation2]  }
  0x17   : > { %s275_s25 = sshll.u32 %s164_s24, 3  ;;  %s319_s24 = sshll.u32 %s379_s16, 4  ;;  %s320_s24 = int_to_ptr.vmem [resolvable:$false] %s319_s24 }
  0x18   : > { %s167_s28 = scalar_lea.vmem %s511_s0, %s275_s25  ;;  %s321_s25 = scalar_lea.vmem %s320_s24, 32 }
  0x19   : > { %v168_v0 = vld [vmem:[%s167_s28] sm:$0x3]  ;;  %v169_v1 = vld [vmem:[%s167_s28 + $0x2] sm:$0x3]  ;;  %v170_v2 = vld [vmem:[%s167_s28 + $0x4] sm:$0x3]  ;;  %p322_p0 = scmp.lt.s32.totalorder %s466_s8, %s320_s24  ;;  %p323_p1 = scmp.lt.s32.totalorder %s321_s25, %s315_s20 }
  0x1a   : > { %v171_v3 = vld [vmem:[%s167_s28 + $0x6] sm:$0x3]  ;;  %v172_v4 = vunpack.c.l.bf16 %v168_v0  ;;  %v173_v5 = vunpack.c.l.bf16 %v169_v1  ;;  %v174_v6 = vunpack.c.l.bf16 %v170_v2 }
  0x1b   : > { %v175_v7 = vunpack.c.l.bf16 %v171_v3  ;;  %p324_p2 = por %p323_p1, %p322_p0 }
  0x1c   : > { %v177_v8 = vsel %vm176_vm0, %v172_v4, 0.0  ;;  %v178_v9 = vsel %vm176_vm0, %v173_v5, 0.0  ;;  %v180_v10 = vsel %vm176_vm0, %v174_v6, 0.0 }
  0x1d   : > { %v179_v11 = vadd.f32 %v178_v9, %v177_v8  ;;  %v182_v12 = vsel %vm176_vm0, %v175_v7, 0.0  ;;  %p325_p3 = pnand %p324_p2, %p318_p13 }
  0x1f   : > { %v181_v13 = vadd.f32 %v180_v10, %v179_v11 }
  0x21   : > { %v183_v14 = vadd.f32 %v182_v12, %v181_v13 }
  0x23   : > { %v184_v15 = vsel %vm176_vm0, %v183_v14, 0.0 }
  0x24   : > { %v185_v16 = vrot.slane %v184_v15, 4 }
  0x26   : > { %v186_v17 = vadd.f32 %v185_v16, %v184_v15 }
  0x28   : > { %v187_v18 = vrot.slane %v186_v17, 2 }
  0x2a   : > { %v188_v19 = vadd.f32 %v187_v18, %v186_v17 }
  0x2c   : > { %v189_v20 = vrot.slane %v188_v19, 1 }
  0x2e   : > { %v190_v21 = vadd.f32 %v189_v20, %v188_v19 }
  0x30   : > { %v191_v23 = vmul.f32 0.0625, %v190_v21 }
  0x32   : > { %v193_v25 = vmul.f32 %v192_v22, %v191_v23 }
  0x34   : > { %v195_v26 = vadd.f32 %v194_v24, %v193_v25 }
  0x36   : > { %197 = vst.msk [vmem:[%s162_s7] sm:$0x1] %vm196_vm1, %v195_v26 }
  0x37   : > { %328 = shalt.err (!%p325_p3)
}
  0x38   : > { %s329_s26 = scalar_lea.hbm %s471_s17, 16  ;;  %s333_s29 = scalar_lea.hbm %s514_s3, 32 }
  0x39   : > { %p330_p4 = scmp.ne.s32.totalorder %s471_s17, %s329_s26  ;;  %p334_p9 = scmp.lt.u32.totalorder %s471_s17, %s514_s3 }
  0x3a   : > { %p335_p10 = scmp.lt.u32.totalorder %s333_s29, %s329_s26  ;;  %p337_p12 = scmp.lt.u32.totalorder %s329_s26, %s471_s17 }
  0x3b   : > { %p331_p7 = pnand %p330_p4, %p438_p5 }
  0x3c   : > { %p336_p11 = por %p335_p10, %p334_p9 }
  0x3d   : > { %p332_p8 = pneg %p331_p7 }
  0x3e   : > { %p338_p13 = por %p337_p12, %p336_p11 }
  0x40   : > { %p339_p0 = pnand %p338_p13, %p332_p8 }
  0x42   : > { %342 = shalt.err (!%p339_p0)
}
  0x43   : > { %276 = dma.vmem_to_hbm [thread:$0]  (%p438_p5), %s466_s8, 16, %s471_s17, %s199_s19  }
  0x44 PF: > { %p282_p1 = scmp.ge.s32.totalorder %s377_s15, 2  ;;  %s223_s5 = sand.u32 1, %s365_s12  }
  0x45   : > { %s224_s6 = scalar_lea.sflag [#allocation3], %s223_s5 }
  0x46   : > { %p279_p2 = pnand %p282_p1, %p442_p6 }
  0x48   : > { %360 = dma.done.wait (!%p279_p2), %s224_s6, 16  }
  0x49   : > { %362 = vsyncadd (!%p279_p2), %s224_s6, 4294967280  ;;  %p13_p3 = scmp.ge.s32.totalorder %s425_s18, 4   ;;  %s517_s12 = smov %s369_s13 }
  0x4a   : > { %s518_s13 = smov %s373_s14  ;;  %s519_s14 = smov %s436_s21 }
  0x4b   : > { %s520_s15 = smov %s425_s18  ;;  %15 = sbr.rel (!%p13_p3) target bundleno = 3 (0x3), region = 67 }
  0x52   :  { %228 = vsyncpa [#allocation3], 1 }
  0x53   :  { %230 = vsyncpa [#allocation3 + $0x1], 1 }

// kernel: densenet_backbone_forward.24
= control target key start
LH: loop header
LB: loop body
LE: loop exit
PB: predicated region body
PF: predicated region fallthrough
CT: control target
= control target key end

     0   :  { %s1284_s18 = smov 0   ;;  %s1286_s19 = smov 0   ;;  %s1424_s0 = inlined_call_operand.vmem [shape: bf16[2,6,6,16], index: 0, kind: input, shape index: {}, may-alias: {0,1,2}]   ;;  %s1425_s1 = inlined_call_operand.vmem [shape: bf16[2,6,6,16], index: 1, kind: input, shape index: {}, may-alias: {0,1,2}]   ;;  %s1426_s2 = inlined_call_operand.vmem [shape: bf16[2,6,6,16], index: 2, kind: input, shape index: {}, may-alias: {0,1,2}]   ;;  %s1427_s3 = inlined_call_operand.vmem [shape: bf16[3,3,16,8], index: 3, kind: input, shape index: {}]   ;;  %s1428_s4 = inlined_call_operand.vmem [shape: bf16[2,4,4,24], index: 4, kind: input, shape index: {}]   ;;  %s1429_s5 = inlined_call_operand.vmem [shape: bf16[2,4,4,32], index: 5, kind: output, shape index: {}]  }
   0x1   :  { %s1288_s20 = smov 0   ;;  %s1290_s21 = smov 0  }
   0x2   :  { %s1292_s22 = smov 0  }
   0x3 LB: > { %s24_s23 = sadd.s32 1, %s1241_s20  ;;  %s27_s24 = sadd.s32 1, %s1245_s21  ;;  %s1249_s22 = sphi %s1292_s22, %s15_s22   ;;  %s1245_s21 = sphi %s1290_s21, %s1433_s21   ;;  %s1241_s20 = sphi %s1288_s20, %s1432_s20   ;;  %s1237_s19 = sphi %s1286_s19, %s1431_s19   ;;  %s1233_s18 = sphi %s1284_s18, %s1430_s18  }
   0x4   : > { %p25_p0 = scmp.ge.s32.totalorder %s24_s23, 4  ;;  %p1023_p1 = scmp.ge.s32.totalorder %s1249_s22, 1 }
   0x5   : > { %p259_p2 = scmp.lt.s32.totalorder %s1249_s22, 9 }
   0x6   : > { %s1435_s23 = smov (%p25_p0, %s24_s23), 0  ;;  %s1437_s24 = smov (!%p25_p0, %s27_s24), %s1245_s21 }
   0x7   : > { %p260_p3 = pnand %p1023_p1, %p259_p2  ;;  %p29_p4 = scmp.ge.s32.totalorder %s1437_s24, 2 }
   0x8   : > { %v1199_v0 = vld [vmem:[%s1427_s3 + $0x20] sm:$0xff] (!%p260_p3)   ;;  %v1251_v1 = vmov (!%p260_p3), 0.0   ;;  %v1200_v2 = vld [vmem:[%s1427_s3 + $0x8] sm:$0xff] (!%p260_p3)   ;;  %vm1252_vm0 = vmmov (!%p260_p3), 0   ;;  %p319_p5 = scmp.lt.s32.totalorder (!%p260_p3), %s1237_s19, 1  ;;  %p321_p6 = scmp.lt.s32.totalorder (!%p260_p3), %s1233_s18, 5 }
   0x9   : > { %s1439_s24 = smov (%p29_p4, %s1437_s24), 0  ;;  %263 = sbr.rel (%p260_p3) target bundleno = 415 (0x19f), region = 40 }
   0xa   : > { %1096 = vmatprep.subr.bf16.mxu0 (!%p260_p3), %v1251_v1  ;;  %1072 = vmatprep.subr.bf16.mxu1 (!%p260_p3), %v1251_v1  ;;  %s327_s29 = sadd.s32 (!%p260_p3), 1, %s1233_s18  ;;  %vm399_vm1 = vcmask (!%p260_p3), 130048   ;;  %v1204_v10 = vld [vmem:[%s1427_s3] sm:$0xff] (!%p260_p3)   ;;  %v1203_v15 = vld [vmem:[%s1427_s3 + $0x28] sm:$0xff] (!%p260_p3)   ;;  %s337_s28 = sadd.s32 (!%p260_p3), 2, %s1233_s18  ;;  %v1206_v17 = vld [vmem:[%s1427_s3 + $0x10] sm:$0xff] (!%p260_p3)  }
   0xb   : > { %1097 = vmatpush3.bf16.msra.mxu0 (!%p260_p3), %v1199_v0  ;;  %1074 = vmatprep.mubr.msk.bf16.mxu1 (!%p260_p3), %vm1252_vm0, %v1251_v1  ;;  %p330_p7 = scmp.lt.s32.totalorder (!%p260_p3), %s327_s29, 5  ;;  %p340_p8 = scmp.lt.s32.totalorder (!%p260_p3), %s337_s28, 5  ;;  %v1205_v19 = vld [vmem:[%s1427_s3 + $0x30] sm:$0xff] (!%p260_p3)   ;;  %v1209_v21 = vld [vmem:[%s1427_s3 + $0x18] sm:$0xff] (!%p260_p3)   ;;  %v1210_v29 = vld [vmem:[%s1427_s3 + $0x40] sm:$0xff] (!%p260_p3)   ;;  %vm872_vm2 = vcmask (!%p260_p3), 195584  }
   0xc   : > { %1073 = vmatpush3.bf16.msra.mxu1 (!%p260_p3), %v1200_v2  ;;  %1098 = vmatprep.mubr.msk.bf16.mxu0 (!%p260_p3), %vm1252_vm0, %v1251_v1  ;;  %v1208_v24 = vld [vmem:[%s1427_s3 + $0x38] sm:$0xff] (!%p260_p3)   ;;  %s1253_s26 = smov (!%p260_p3), 24   ;;  %p349_p9 = scmp.lt.s32.totalorder (!%p260_p3), %s1233_s18, 3  ;;  %vm877_vm3 = vcmask (!%p260_p3), 254976  }
   0xd   : > { %1102 = vmatprep.subr.bf16.mxu0 (!%p260_p3), %v1251_v1  ;;  %1078 = vmatprep.subr.bf16.mxu1 (!%p260_p3), %v1251_v1 }
  0x10   : > { %s1441_s19 = smov (!%p319_p5, %s1237_s19), 1  ;;  %s1443_s29 = smov (!%p330_p7, %s327_s29), 5 }
  0x11   : > { %s322_s30 = scalar_select %p321_p6, %s1233_s18, 5 }
  0x12   : > { %s1336_s6 = smul.u32 6, %s1441_s19  ;;  %s1445_s28 = smov (!%p340_p8, %s337_s28), 5 }
  0x13   : > { %s1447_s18 = smov (!%p349_p9, %s1233_s18), 3  ;;  %s1027_s27 = sshll.u32 %s1441_s19, 2 }
  0x14   : > { %s324_s7 = sadd.s32 %s1336_s6, %s322_s30  ;;  %s333_s12 = sadd.s32 %s1336_s6, %s1443_s29 }
  0x15   : > { %s1024_s8 = sshll.u32 %s324_s7, 2  ;;  %s1025_s13 = sshll.u32 %s333_s12, 2 }
  0x16   : > { %s326_s11 = scalar_lea.vmem %s1424_s0, %s1024_s8  ;;  %s335_s16 = scalar_lea.vmem %s1425_s1, %s1025_s13 }
  0x17   : > { %v382_v3 = vld [vmem:[%s326_s11] sm:$0x7]  ;;  %s343_s9 = sadd.s32 %s1336_s6, %s1445_s28  ;;  %s352_s28 = sadd.s32 %s1027_s27, %s1447_s18 }
  0x18   : > { %v1031_v4 = vcombine.low %v382_v3, %v382_v3  ;;  %v543_v8 = vld [vmem:[%s335_s16] sm:$0x7]  ;;  %s1026_s10 = sshll.u32 %s343_s9, 2  ;;  %s1028_s29 = sshll.u32 %s352_s28, 1 }
  0x19   : > { %v1040_v9 = vcombine.low %v543_v8, %v543_v8  ;;  %s345_s13 = scalar_lea.vmem %s1426_s2, %s1026_s10  ;;  %s354_s8 = scalar_lea.vmem %s1428_s4, %s1028_s29 }
  0x1a   : > { %v387_v5 = vshrl.u32 %v1031_v4, 16  ;;  %v389_v6 = vshll.u32 %v1031_v4, 16  ;;  %v492_v20 = vrot.slane %v1031_v4, 1  ;;  %v705_v22 = vld [vmem:[%s345_s13] sm:$0x7]  ;;  %s362_s11 = scalar_lea.vmem %s1429_s5, %s1028_s29 }
  0x1b   : > { %v598_v12 = vshrl.u32 %v1040_v9, 16  ;;  %v600_v13 = vshll.u32 %v1040_v9, 16  ;;  %v654_v18 = vrot.slane %v1040_v9, 1  ;;  %v1047_v23 = vcombine.low %v705_v22, %v705_v22  ;;  %v868_v41 = vld [vmem:[%s354_s8] sm:$0x3] }
  0x1c   : > { %v391_v7 = vrot.slane %v389_v6, 1 }
  0x1d   : > { %v602_v14 = vrot.slane %v600_v13, 1  ;;  %v762_v25 = vshll.u32 %v1047_v23, 16  ;;  %v760_v26 = vshrl.u32 %v1047_v23, 16  ;;  %v816_v30 = vrot.slane %v1047_v23, 1 }
  0x1e   : > { %v392_v11 = vor.u32 %v391_v7, %v387_v5 }
  0x1f   : > { %v603_v16 = vor.u32 %v602_v14, %v598_v12  ;;  %v764_v27 = vrot.slane %v762_v25, 1 }
  0x20   : > { %1075 = vmatmul.mubr.msk.bf16.vlgmr.msra.gmra.mrb[0].mxu1 %vm399_vm1, %v392_v11 }
  0x21   : > { %1079 = vmatpush3.bf16.msra.mxu1 %v1204_v10  ;;  %1080 = vmatprep.mubr.msk.bf16.mxu1 %vm1252_vm0, %v1251_v1  ;;  %v765_v28 = vor.u32 %v764_v27, %v760_v26 }
  0x22   : > { %1084 = vmatprep.subr.bf16.mxu1 %v1251_v1  ;;  %1099 = vmatmul.mubr.msk.bf16.vlgmr.msra.gmra.mrb[0].mxu0 %vm399_vm1, %v603_v16 }
  0x23   : > { %1103 = vmatpush3.bf16.msra.mxu0 %v1203_v15  ;;  %1104 = vmatprep.mubr.msk.bf16.mxu0 %vm1252_vm0, %v1251_v1 }
  0x24   : > { %1108 = vmatprep.subr.bf16.mxu0 %v1251_v1 }
  0x2c   : > { %1081 = vmatmul.mubr.msk.bf16.vlgmr.msra.gmra.mrb[0].mxu1 %vm399_vm1, %v382_v3 }
  0x2d   : > { %1085 = vmatpush3.bf16.msra.mxu1 %v1206_v17  ;;  %1086 = vmatprep.mubr.msk.bf16.mxu1 %vm1252_vm0, %v1251_v1 }
  0x2e   : > { %1090 = vmatprep.subr.bf16.mxu1 %v1251_v1  ;;  %1105 = vmatmul.mubr.msk.bf16.vlgmr.msra.gmra.mrb[0].mxu0 %vm399_vm1, %v654_v18 }
  0x2f   : > { %1109 = vmatpush3.bf16.msra.mxu0 %v1205_v19  ;;  %1110 = vmatprep.mubr.msk.bf16.mxu0 %vm1252_vm0, %v1251_v1 }
  0x30   : > { %1114 = vmatprep.subr.bf16.mxu0 %v1251_v1 }
  0x38   : > { %1087 = vmatmul.mubr.msk.bf16.vlgmr.msra.gmra.mrb[0].mxu1 %vm399_vm1, %v492_v20 }
  0x39   : > { %1091 = vmatpush3.bf16.msra.mxu1 %v1209_v21  ;;  %1092 = vmatprep.mubr.msk.bf16.mxu1 %vm1252_vm0, %v1251_v1 }
  0x3a   : > { %1111 = vmatmul.mubr.msk.bf16.vlgmr.msra.gmra.mrb[0].mxu0 %vm399_vm1, %v705_v22 }
  0x3b   : > { %1115 = vmatpush3.bf16.msra.mxu0 %v1208_v24  ;;  %1116 = vmatprep.mubr.msk.bf16.mxu0 %vm1252_vm0, %v1251_v1 }
  0x3c   : > { %1120 = vmatprep.subr.bf16.mxu0 %v1251_v1 }
  0x44   : > { %1093 = vmatmul.mubr.msk.bf16.vlgmr.msra.gmra.mrb[0].mxu1 %vm399_vm1, %v543_v8 }
  0x46   : > { %1117 = vmatmul.mubr.msk.bf16.vlgmr.msra.gmra.mrb[0].mxu0 %vm399_vm1, %v765_v28 }
  0x47   : > { %1121 = vmatpush3.bf16.msra.mxu0 %v1210_v29  ;;  %1122 = vmatprep.mubr.msk.bf16.mxu0 %vm1252_vm0, %v1251_v1 }
  0x52   : > { %1123 = vmatmul.mubr.msk.bf16.vlgmr.msra.gmra.mrb[0].mxu0 %vm399_vm1, %v816_v30 }
 0x117   : > { %v587_v31 = vpop.f32.mrb[0].mxu1 }
 0x118   : > { %v1094_v32 = vpop.f32.mrb[1].mxu1 }
 0x119   : > { %v590_v33 = vpop.f32.mrb[2].mxu1 }
 0x11a   : > { %v1095_v34 = vpop.f32.mrb[3].mxu1 }
 0x125   : > { %v860_v35 = vpop.f32.mrb[0].mxu0 }
 0x126   : > { %v1126_v36 = vadd.f32 %v860_v35, %v587_v31  ;;  %v1124_v37 = vpop.f32.mrb[1].mxu0 }
 0x127   : > { %v863_v38 = vpop.f32.mrb[2].mxu0 }
 0x128   : > { %v867_v39 = vpack.c.bf16 %v1126_v36, %v1126_v36  ;;  %v1125_v40 = vpop.f32.mrb[3].mxu0 }
 0x12a   : > { %870 = vrot.lane.b32.xlu0 %v867_v39, %s1253_s26 }
 0x19c   : > { %v871_v42 = vpop.permute.xlu0 %870 }
 0x19d   : > { %v875_v43 = vsel %vm872_vm2, %v868_v41, %v871_v42 }
 0x19e   : > { %878 = vst.msk [vmem:[%s362_s11] sm:$0x3] %vm877_vm3, %v875_v43 }
 0x19f PF: > { %s15_s22 = sadd.s32 1, %s1249_s22   ;;  %s1430_s18 = smov %s1241_s20 }
 0x1a0   : > { %p12_p10 = scmp.ge.s32.totalorder %s15_s22, 10   ;;  %s1431_s19 = smov %s1245_s21 }
 0x1a1   : > { %s1432_s20 = smov %s1435_s23  ;;  %s1433_s21 = smov %s1439_s24 }
 0x1a2   :  { %14 = sbr.rel (!%p12_p10) target bundleno = 3 (0x3), region = 79 }

// kernel: densenet_backbone_forward.13
= control target key start
LH: loop header
LB: loop body
LE: loop exit
PB: predicated region body
PF: predicated region fallthrough
CT: control target
= control target key end

     0   :  { %s5387_s13 = smov 0   ;;  %s5389_s14 = smov 0   ;;  %s8090_s0 = inlined_call_operand.vmem [shape: bf16[2,38,19,2,3], index: 0, kind: input, shape index: {}, may-alias: {0,1,2,3,4,5,6}]   ;;  %s8091_s1 = inlined_call_operand.vmem [shape: bf16[2,38,19,2,3], index: 1, kind: input, shape index: {}, may-alias: {0,1,2,3,4,5,6}]   ;;  %s8092_s2 = inlined_call_operand.vmem [shape: bf16[2,38,19,2,3], index: 2, kind: input, shape index: {}, may-alias: {0,1,2,3,4,5,6}]   ;;  %s8093_s3 = inlined_call_operand.vmem [shape: bf16[2,38,19,2,3], index: 3, kind: input, shape index: {}, may-alias: {0,1,2,3,4,5,6}]   ;;  %s8094_s4 = inlined_call_operand.vmem [shape: bf16[2,38,19,2,3], index: 4, kind: input, shape index: {}, may-alias: {0,1,2,3,4,5,6}]   ;;  %s8095_s5 = inlined_call_operand.vmem [shape: bf16[2,38,19,2,3], index: 5, kind: input, shape index: {}, may-alias: {0,1,2,3,4,5,6}]   ;;  %s8096_s6 = inlined_call_operand.vmem [shape: bf16[2,38,19,2,3], index: 6, kind: input, shape index: {}, may-alias: {0,1,2,3,4,5,6}]   ;;  %s8097_s7 = inlined_call_operand.vmem [shape: bf16[7,21,16], index: 7, kind: input, shape index: {}]   ;;  %s8098_s8 = inlined_call_operand.vmem [shape: f32[1,16], index: 8, kind: input, shape index: {}]   ;;  %s8099_s9 = inlined_call_operand.vmem [shape: f32[1,16], index: 9, kind: input, shape index: {}]   ;;  %s8100_s10 = inlined_call_operand.vmem [shape: bf16[2,16,16,16], index: 10, kind: output, shape index: {}]  }
   0x1   :  { %s5391_s15 = smov 0   ;;  %s5393_s16 = smov 0  }
   0x2   :  { %s5395_s17 = smov 0  }
   0x3 LB: > { %s29_s18 = sadd.s32 1, %s5312_s15  ;;  %s32_s19 = sadd.s32 1, %s5316_s16  ;;  %s5320_s17 = sphi %s5395_s17, %s20_s17   ;;  %s5316_s16 = sphi %s5393_s16, %s8593_s16   ;;  %s5312_s15 = sphi %s5391_s15, %s8592_s15   ;;  %s5308_s14 = sphi %s5389_s14, %s8591_s14   ;;  %s5304_s13 = sphi %s5387_s13, %s8590_s13  }
   0x4   : > { %p30_p0 = scmp.ge.s32.totalorder %s29_s18, 16  ;;  %p4938_p1 = scmp.ge.s32.totalorder %s5320_s17, 1 }
   0x5   : > { %p473_p2 = scmp.lt.s32.totalorder %s5320_s17, 33 }
   0x6   : > { %s8595_s18 = smov (%p30_p0, %s29_s18), 0  ;;  %s8597_s19 = smov (!%p30_p0, %s32_s19), %s5316_s16 }
   0x7   : > { %p474_p3 = pnand %p4938_p1, %p473_p2  ;;  %p34_p4 = scmp.ge.s32.totalorder %s8597_s19, 2 }
   0x9   : > { %s8599_s19 = smov (%p34_p4, %s8597_s19), 0  ;;  %477 = sbr.rel (%p474_p3) target bundleno = 707 (0x2c3), region = 60 }
  0x10   : > { %s5420_s20 = sshll.u32 %s5304_s13, 1  ;;  %p580_p5 = scmp.lt.s32.totalorder %s5308_s14, 1  ;;  %v737_v0 = vlaneseq  ;;  %v5322_v1 = vmov 1966171168   ;;  %vm968_vm0 = vcmask 1041409   ;;  %vm971_vm1 = vcmask 1042434  }
  0x11   : > { %s614_s21 = sadd.s32 3, %s5420_s20  ;;  %v735_v2 = vunpack.c.l.s4 %v5322_v1  ;;  %vm974_vm2 = vcmask 1043459   ;;  %vm977_vm3 = vcmask 1044484   ;;  %vm980_vm4 = vcmask 1045509   ;;  %s626_s28 = sadd.s32 4, %s5420_s20 }
  0x12   : > { %s8601_s14 = smov (!%p580_p5, %s5308_s14), 1  ;;  %p617_p6 = scmp.lt.s32.totalorder %s614_s21, 37  ;;  %v738_v4 = vshrl.u32 %v737_v0, 7  ;;  %vm983_vm5 = vcmask 1046534   ;;  %vm986_vm6 = vcmask 1047559   ;;  %vm1198_vm7 = vcmask 23552  }
  0x13   : > { %s5426_s22 = smul.u32 722, %s8601_s14  ;;  %v736_v3 = vunpack.c.0.s8 %v735_v2  ;;  %p5574_p7 = scmp.lt.s32.totalorder %s626_s28, 37  ;;  %vm1202_vm8 = vcmask 48128   ;;  %vm1205_vm9 = vcmask 72704   ;;  %vm1741_vm10 = vcmask 1041408  }
  0x14   : > { %s8603_s21 = smov (!%p617_p6, %s614_s21), 37  ;;  %s5323_s30 = smov 9   ;;  %vm1742_vm11 = vcmask 1042432   ;;  %vm1208_vm12 = vcmask 97280   ;;  %vm1211_vm13 = vcmask 121856   ;;  %vm5331_vm14 = vmmov 0  }
  0x15   : > { %s5214_s23 = smul.u32 19, %s8603_s21  ;;  %v5428_v5 = vsub.s32 %v736_v3, %v738_v4  ;;  %s8605_s28 = smov (!%p5574_p7, %s626_s28), 37  ;;  %vm1214_vm15 = vcmask 146432  }
  0x16   : > { %s5215_s11 = smul.u32 19, %s8605_s28  ;;  %s5324_s12 = smov 3  }
  0x17   : > { %s621_s24 = sadd.s32 %s5214_s23, %s5426_s22  ;;  %s590_s21 = sadd.s32 1, %s5420_s20 }
  0x18   : > { %s5434_s27 = scalar_lea.vmem %s8093_s3, %s621_s24  ;;  %s8203_s23 = smov 12  }
  0x19   : > { %v5016_v6 = vld.sshfl [vmem:[%s5434_s27 + $0x1] sm:$0x1 pattern:$0x75316420]  ;;  %s633_s24 = sadd.s32 %s5215_s11, %s5426_s22  ;;  %p5683_p8 = scmp.lt.s32.totalorder %s590_s21, 37 }
  0x1a   : > { %v5017_v7 = vld.sshfl [vmem:[%s5434_s27 + $0x2] sm:$0x1 pattern:$0x75316420]  ;;  %v2475_v8 = vrot.slane %v5016_v6, %v5428_v5  ;;  %s5707_s28 = scalar_lea.vmem %s8094_s4, %s633_s24  ;;  %s5326_s29 = smov 6  }
  0x1b   : > { %v5018_v9 = vld.sshfl [vmem:[%s5434_s27 + $0x3] sm:$0x1 pattern:$0x75316420]  ;;  %v2489_v10 = vrot.slane %v5017_v7, %v5428_v5  ;;  %s8607_s21 = smov (!%p5683_p8, %s590_s21), 37  ;;  %s5328_s25 = smov 15  }
  0x1c   : > { %v5019_v11 = vld.sshfl [vmem:[%s5434_s27 + $0x4] sm:$0x1 pattern:$0x75316420]  ;;  %v2503_v12 = vrot.slane %v5018_v9, %v5428_v5  ;;  %v5443_v13 = vunpack.c.l.b16 %v2475_v8  ;;  %s5212_s11 = smul.u32 19, %s8607_s21  ;;  %s5327_s21 = smov 18  }
  0x1d   : > { %v5020_v14 = vld.sshfl [vmem:[%s5434_s27 + $0x5] sm:$0x1 pattern:$0x75316420]  ;;  %v2517_v15 = vrot.slane %v5019_v11, %v5428_v5  ;;  %v5447_v16 = vunpack.c.l.b16 %v2489_v10  ;;  %p582_p10 = scmp.lt.s32.totalorder %s5420_s20, 37  ;;  %p663_p13 = scmp.lt.s32.totalorder %s5304_s13, 15 }
  0x1e   : > { %v5021_v17 = vld.sshfl [vmem:[%s5434_s27 + $0x6] sm:$0x1 pattern:$0x75316420]  ;;  %v2531_v18 = vrot.slane %v5020_v14, %v5428_v5  ;;  %v5451_v19 = vunpack.c.l.b16 %v2503_v12  ;;  %v2782_v20 = vrot.slane %v5443_v13, 1  ;;  %s597_s24 = sadd.s32 %s5212_s11, %s5426_s22 }
  0x1f   : > { %8274 = vst [vmem:[#allocation2_spill] sm:$0xff] %v5447_v16  ;;  %v5022_v21 = vld.sshfl [vmem:[%s5434_s27 + $0x7] sm:$0x1 pattern:$0x75316420]  ;;  %v2545_v22 = vrot.slane %v5021_v17, %v5428_v5  ;;  %v5456_v23 = vunpack.c.l.b16 %v2517_v15  ;;  %v2719_v24 = vrot.slane %v5447_v16, 7  ;;  %s5796_s11 = scalar_lea.vmem %s8091_s1, %s597_s24 }
  0x20   : > { %8275 = vst [vmem:[#allocation3_spill] sm:$0xff] %v5451_v19  ;;  %v2847_v25 = vrot.slane %v5447_v16, 1  ;;  %v5023_v26 = vld.sshfl [vmem:[%s5434_s27 + $0x8] sm:$0x1 pattern:$0x75316420]  ;;  %v2559_v27 = vrot.slane %v5022_v21, %v5428_v5  ;;  %v5462_v28 = vunpack.c.l.b16 %v2531_v18  ;;  %v2783_v29 = vsel %vm968_vm0, %v5447_v16, %v2782_v20 }
  0x21   : > { %8276 = vst [vmem:[#allocation4_spill] sm:$0xff] %v5456_v23  ;;  %v2784_v30 = vrot.slane %v5451_v19, 7  ;;  %v5024_v31 = vld.sshfl [vmem:[%s5434_s27 + $0x9] sm:$0x1 pattern:$0x75316420]  ;;  %v2573_v32 = vrot.slane %v5023_v26, %v5428_v5  ;;  %v5469_v33 = vunpack.c.l.b16 %v2545_v22 }
  0x22   : > { %8277 = vst [vmem:[#allocation5_spill] sm:$0xff] %v5462_v28  ;;  %v2786_v34 = vrot.slane %v5456_v23, 6  ;;  %v2721_v35 = vrot.slane %v5451_v19, 6  ;;  %v2587_v37 = vrot.slane %v5024_v31, %v5428_v5  ;;  %v5475_v38 = vunpack.c.l.b16 %v2559_v27  ;;  %s638_s24 = sadd.s32 5, %s5420_s20  ;;  %s8615_s13 = smov (!%p663_p13, %s5304_s13), 15 }
  0x23   : > { %8278 = vst [vmem:[#allocation6_spill] sm:$0xff] %v5469_v33  ;;  %v5025_v36 = vld.sshfl [vmem:[%s5434_s27 + $0xa] sm:$0x1 pattern:$0x75316420]  ;;  %v2785_v39 = vsel %vm971_vm1, %v2784_v30, %v2783_v29  ;;  %v2788_v40 = vrot.slane %v5462_v28, 5  ;;  %v5483_v43 = vunpack.c.l.b16 %v2573_v32 }
  0x24   : > { %8279 = vst [vmem:[#allocation7_spill] sm:$0xff] %v5475_v38  ;;  %v5026_v41 = vld.sshfl [vmem:[%s5434_s27 + $0xb] sm:$0x1 pattern:$0x75316420]  ;;  %v2601_v42 = vrot.slane %v5025_v36, %v5428_v5  ;;  %v2787_v44 = vsel %vm974_vm2, %v2786_v34, %v2785_v39  ;;  %v2790_v45 = vrot.slane %v5469_v33, 4  ;;  %v5491_v48 = vunpack.c.l.b16 %v2587_v37 }
  0x25   : > { %8280 = vst [vmem:[#allocation8_spill] sm:$0xff] %v5483_v43  ;;  %v5027_v46 = vld.sshfl [vmem:[%s5434_s27 + $0xc] sm:$0x1 pattern:$0x75316420]  ;;  %v2615_v47 = vrot.slane %v5026_v41, %v5428_v5  ;;  %v2789_v49 = vsel %vm977_vm3, %v2788_v40, %v2787_v44  ;;  %v2792_v50 = vrot.slane %v5475_v38, 3 }
  0x26   : > { %8281 = vst [vmem:[#allocation9_spill] sm:$0xff] %v5491_v48  ;;  %v5028_v51 = vld.sshfl [vmem:[%s5434_s27 + $0xd] sm:$0x1 pattern:$0x75316420]  ;;  %v2629_v52 = vrot.slane %v5027_v46, %v5428_v5  ;;  %v5499_v53 = vunpack.c.l.b16 %v2601_v42  ;;  %v2791_v54 = vsel %vm980_vm4, %v2790_v45, %v2789_v49  ;;  %v2794_v55 = vrot.slane %v5483_v43, 2 }
  0x27   : > { %v5029_v56 = vld.sshfl [vmem:[%s5434_s27 + $0xe] sm:$0x1 pattern:$0x75316420]  ;;  %v2643_v57 = vrot.slane %v5028_v51, %v5428_v5  ;;  %v5507_v58 = vunpack.c.l.b16 %v2615_v47  ;;  %v2793_v59 = vsel %vm983_vm5, %v2792_v50, %v2791_v54  ;;  %v2796_v60 = vrot.slane %v5491_v48, 1  ;;  %p6188_p9 = scmp.lt.s32.totalorder %s638_s24, 37 }
  0x28   : > { %8282 = vst [vmem:[#allocation10_spill] sm:$0xff] %v5499_v53  ;;  %v5030_v61 = vld.sshfl [vmem:[%s5434_s27 + $0xf] sm:$0x1 pattern:$0x75316420]  ;;  %v2657_v62 = vrot.slane %v5029_v56, %v5428_v5  ;;  %v5515_v63 = vunpack.c.l.b16 %v2629_v52  ;;  %v2795_v0 = vsel %vm986_vm6, %v2794_v55, %v2793_v59  ;;  %v2723_v1 = vrot.slane %v5456_v23, 5 }
  0x29   : > { %8283 = vst [vmem:[#allocation11_spill] sm:$0xff] %v5507_v58  ;;  %v5031_v2 = vld.sshfl [vmem:[%s5434_s27 + $0x10] sm:$0x1 pattern:$0x75316420]  ;;  %v2671_v3 = vrot.slane %v5030_v61, %v5428_v5  ;;  %v5523_v4 = vunpack.c.l.b16 %v2643_v57  ;;  %v2797_v6 = vsel %vm968_vm0, %v5499_v53, %v2796_v60  ;;  %v2798_v7 = vrot.slane %v5507_v58, 7 }
  0x2a   : > { %8284 = vst [vmem:[#allocation12_spill] sm:$0xff] %v5515_v63  ;;  %v5530_v8 = vunpack.c.l.b16 %v2657_v62  ;;  %v2762_v9 = vrot.slane %v5031_v2, %v5428_v5  ;;  %v2800_v10 = vrot.slane %v5515_v63, 6  ;;  %v5015_v11 = vld.sshfl [vmem:[%s5434_s27] sm:$0x1 pattern:$0x75316420] }
  0x2b   : > { %8285 = vst [vmem:[#allocation13_spill] sm:$0xff] %v5523_v4  ;;  %v2725_v12 = vrot.slane %v5462_v28, 4  ;;  %v5536_v14 = vunpack.c.l.b16 %v2671_v3  ;;  %v2799_v15 = vsel %vm971_vm1, %v2798_v7, %v2797_v6  ;;  %v2802_v17 = vrot.slane %v5523_v4, 5  ;;  %s8609_s24 = smov (!%p6188_p9, %s638_s24), 37 }
  0x2c   : > { %8286 = vst [vmem:[#allocation14_spill] sm:$0xff] %v5530_v8  ;;  %v2461_v18 = vrot.slane %v5015_v11, %v5428_v5  ;;  %v5541_v20 = vunpack.c.l.b16 %v2762_v9  ;;  %v2801_v21 = vsel %vm974_vm2, %v2800_v10, %v2799_v15  ;;  %v2804_v22 = vrot.slane %v5530_v8, 4  ;;  %v5032_v36 = vld.sshfl [vmem:[%s5434_s27 + $0x11] sm:$0x1 pattern:$0x75316420] }
  0x2d   : > { %8287 = vst [vmem:[#allocation15_spill] sm:$0xff] %v5536_v14  ;;  %v2727_v26 = vrot.slane %v5469_v33, 3  ;;  %v2803_v27 = vsel %vm977_vm3, %v2802_v17, %v2801_v21  ;;  %v2806_v29 = vrot.slane %v5536_v14, 3  ;;  %v2729_v32 = vrot.slane %v5475_v38, 2 }
  0x2e   : > { %v5548_v31 = vunpack.c.l.b16 %v2461_v18  ;;  %v2805_v37 = vsel %vm980_vm4, %v2804_v22, %v2803_v27  ;;  %v2808_v39 = vrot.slane %v5541_v20, 2  ;;  %v2731_v41 = vrot.slane %v5483_v43, 1 }
  0x2f   : > { %v2733_v42 = vrot.slane %v5499_v53, 7  ;;  %v2807_v44 = vsel %vm983_vm5, %v2806_v29, %v2805_v37  ;;  %v2735_v47 = vrot.slane %v5507_v58, 6  ;;  %v2737_v49 = vrot.slane %v5515_v63, 5 }
  0x30   : > { %8288 = vst [vmem:[#allocation16_spill] sm:$0xff] %v5548_v31  ;;  %v2717_v46 = vrot.slane %v5548_v31, 1  ;;  %v2809_v51 = vsel %vm986_vm6, %v2808_v39, %v2807_v44  ;;  %v2732_v52 = vsel %vm968_vm0, %v5491_v48, %v2731_v41  ;;  %v2739_v54 = vrot.slane %v5523_v4, 4 }
  0x31   : > { %v2741_v56 = vrot.slane %v5530_v8, 3  ;;  %v2810_v57 = vpack.c.b16 %v2809_v51, %v2795_v0  ;;  %v2734_v61 = vsel %vm971_vm1, %v2733_v42, %v2732_v52  ;;  %v2743_v62 = vrot.slane %v5536_v14, 2 }
  0x32   : > { %v2718_v59 = vsel %vm968_vm0, %v5443_v13, %v2717_v46  ;;  %v2736_v3 = vsel %vm974_vm2, %v2735_v47, %v2734_v61  ;;  %v2827_v0 = vrot.slane %v5032_v36, %v5428_v5  ;;  %v2829_v6 = vsel %vm968_vm0, %v2784_v30, %v5447_v16 }
  0x33   : > { %v2720_v2 = vsel %vm971_vm1, %v2719_v24, %v2718_v59  ;;  %2811 = vrot.lane.b32.xlu1 %v2810_v57, %s5323_s30  ;;  %v2738_v11 = vsel %vm977_vm3, %v2737_v49, %v2736_v3  ;;  %v2830_v15 = vsel %vm971_vm1, %v2786_v34, %v2829_v6  ;;  %v2836_v18 = vsel %vm968_vm0, %v2798_v7, %v5499_v53 }
  0x34   : > { %v2722_v9 = vsel %vm974_vm2, %v2721_v35, %v2720_v2  ;;  %v2740_v21 = vsel %vm980_vm4, %v2739_v54, %v2738_v11  ;;  %v5601_v27 = vunpack.c.l.b16 %v2827_v0  ;;  %v2831_v36 = vsel %vm974_vm2, %v2788_v40, %v2830_v15 }
  0x35   : > { %v2724_v30 = vsel %vm977_vm3, %v2723_v1, %v2722_v9  ;;  %v2742_v34 = vsel %vm983_vm5, %v2741_v56, %v2740_v21  ;;  %v2832_v7 = vsel %vm977_vm3, %v2790_v45, %v2831_v36  ;;  %v2837_v44 = vsel %vm971_vm1, %v2800_v10, %v2836_v18 }
  0x36   : > { %v2726_v37 = vsel %vm980_vm4, %v2725_v12, %v2724_v30  ;;  %v2744_v46 = vsel %vm986_vm6, %v2743_v62, %v2742_v34  ;;  %v2833_v51 = vsel %vm980_vm4, %v2792_v50, %v2832_v7  ;;  %v2838_v45 = vsel %vm974_vm2, %v2802_v17, %v2837_v44 }
  0x37   : > { %v2728_v40 = vsel %vm983_vm5, %v2727_v26, %v2726_v37  ;;  %v2834_v52 = vsel %vm983_vm5, %v2794_v55, %v2833_v51  ;;  %v2839_v57 = vsel %vm977_vm3, %v2804_v22, %v2838_v45  ;;  %v2842_v59 = vrot.slane %v5601_v27, 1 }
  0x38   : > { %v2730_v10 = vsel %vm986_vm6, %v2729_v32, %v2728_v40  ;;  %v2835_v50 = vsel %vm986_vm6, %v2796_v60, %v2834_v52  ;;  %v2840_v17 = vsel %vm980_vm4, %v2806_v29, %v2839_v57  ;;  %v2764_v2 = vsel %vm968_vm0, %v2719_v24, %v5443_v13 }
  0x39   : > { %v2745_v61 = vpack.c.b16 %v2744_v46, %v2730_v10  ;;  %v2841_v3 = vsel %vm983_vm5, %v2808_v39, %v2840_v17  ;;  %v2765_v55 = vsel %vm971_vm1, %v2721_v35, %v2764_v2  ;;  %v2771_v22 = vsel %vm968_vm0, %v2733_v42, %v5491_v48  ;;  %v5037_v17 = vld.sshfl [vmem:[%s5707_s28] sm:$0x1 pattern:$0x75316420] }
  0x3a   : > { %v2777_v0 = vrot.slane %v5541_v20, 1  ;;  %v2843_v60 = vsel %vm986_vm6, %v2842_v59, %v2841_v3  ;;  %v2766_v24 = vsel %vm974_vm2, %v2723_v1, %v2765_v55  ;;  %v2772_v29 = vsel %vm971_vm1, %v2735_v47, %v2771_v22  ;;  %v5038_v2 = vld.sshfl [vmem:[%s5707_s28 + $0x1] sm:$0x1 pattern:$0x75316420] }
  0x3b   : > { %2746 = vrot.lane.b32.xlu0 %v2745_v61, %s5324_s12  ;;  %v2849_v39 = vrot.slane %v5456_v23, 7  ;;  %v2844_v35 = vpack.c.b16 %v2843_v60, %v2835_v50  ;;  %v2767_v42 = vsel %vm977_vm3, %v2725_v12, %v2766_v24  ;;  %v2773_v6 = vsel %vm974_vm2, %v2737_v49, %v2772_v29  ;;  %v5039_v60 = vld.sshfl [vmem:[%s5707_s28 + $0x2] sm:$0x1 pattern:$0x75316420] }
  0x3c   : > { %v2851_v9 = vrot.slane %v5462_v28, 6  ;;  %v2768_v1 = vsel %vm980_vm4, %v2727_v26, %v2767_v42  ;;  %v2774_v47 = vsel %vm977_vm3, %v2739_v54, %v2773_v6  ;;  %v2853_v11 = vrot.slane %v5469_v33, 5  ;;  %v5033_v54 = vld.sshfl [vmem:[%s5434_s27 + $0x12] sm:$0x1 pattern:$0x75316420] }
  0x3d   : > { %v2855_v15 = vrot.slane %v5475_v38, 4  ;;  %2845 = vrot.lane.b32.xlu1 %v2844_v35, %s8203_s23  ;;  %v2769_v12 = vsel %vm983_vm5, %v2729_v32, %v2768_v1  ;;  %v2775_v49 = vsel %vm980_vm4, %v2741_v56, %v2774_v47  ;;  %v2857_v18 = vrot.slane %v5483_v43, 3  ;;  %v5040_v24 = vld.sshfl [vmem:[%s5707_s28 + $0x3] sm:$0x1 pattern:$0x75316420] }
  0x3e   : > { %v2859_v30 = vrot.slane %v5491_v48, 2  ;;  %v2770_v26 = vsel %vm986_vm6, %v2731_v41, %v2769_v12  ;;  %v2776_v32 = vsel %vm983_vm5, %v2743_v62, %v2775_v49  ;;  %v2861_v56 = vrot.slane %v5499_v53, 1  ;;  %v5041_v29 = vld.sshfl [vmem:[%s5707_s28 + $0x4] sm:$0x1 pattern:$0x75316420] }
  0x3f   : > { %v2863_v21 = vrot.slane %v5515_v63, 7  ;;  %v2778_v36 = vsel %vm986_vm6, %v2777_v0, %v2776_v32  ;;  %v2865_v37 = vrot.slane %v5523_v4, 6  ;;  %v2867_v34 = vrot.slane %v5530_v8, 5  ;;  %s5216_s27 = smul.u32 19, %s8609_s24 }
  0x40   : > { %v2869_v7 = vrot.slane %v5536_v14, 4  ;;  %v2779_v41 = vpack.c.b16 %v2778_v36, %v2770_v26  ;;  %v2862_v44 = vsel %vm968_vm0, %v5507_v58, %v2861_v56  ;;  %v2871_v62 = vrot.slane %v5541_v20, 3  ;;  %v5043_v1 = vld.sshfl [vmem:[%s5707_s28 + $0x6] sm:$0x1 pattern:$0x75316420] }
  0x41   : > { %v2873_v40 = vrot.slane %v5601_v27, 2  ;;  %v2892_v46 = vrot.slane %v5033_v54, %v5428_v5  ;;  %v2894_v51 = vsel %vm968_vm0, %v2849_v39, %v5451_v19  ;;  %v2901_v45 = vsel %vm968_vm0, %v2863_v21, %v5507_v58  ;;  %v5044_v47 = vld.sshfl [vmem:[%s5707_s28 + $0x7] sm:$0x1 pattern:$0x75316420]  ;;  %s645_s24 = sadd.s32 %s5216_s27, %s5426_s22 }
  0x42   : > { %v2848_v20 = vsel %vm968_vm0, %v5451_v19, %v2847_v25  ;;  %2780 = vrot.lane.b32.xlu0 %v2779_v41, %s5326_s29  ;;  %v2895_v27 = vsel %vm971_vm1, %v2851_v9, %v2894_v51  ;;  %v2902_v10 = vsel %vm971_vm1, %v2865_v37, %v2901_v45  ;;  %v2864_v57 = vsel %vm971_vm1, %v2863_v21, %v2862_v44  ;;  %v5045_v32 = vld.sshfl [vmem:[%s5707_s28 + $0x8] sm:$0x1 pattern:$0x75316420]  ;;  %s6311_s26 = scalar_lea.vmem %s8095_s5, %s645_s24 }
  0x43   : > { %v2850_v52 = vsel %vm971_vm1, %v2849_v39, %v2848_v20  ;;  %v2893_v59 = vunpack.c.l.b16 %v2892_v46  ;;  %v2896_v25 = vsel %vm974_vm2, %v2853_v11, %v2895_v27  ;;  %v2903_v61 = vsel %vm974_vm2, %v2867_v34, %v2902_v10  ;;  %v5046_v54 = vld.sshfl [vmem:[%s5707_s28 + $0x9] sm:$0x1 pattern:$0x75316420]  ;;  %s6347_s27 = scalar_select %p582_p10, %s5420_s20, 37 }
  0x44   : > { %v2852_v50 = vsel %vm974_vm2, %v2851_v9, %v2850_v52  ;;  %v2897_v3 = vsel %vm977_vm3, %v2855_v15, %v2896_v25  ;;  %v2904_v55 = vsel %vm977_vm3, %v2869_v7, %v2903_v61  ;;  %v2866_v0 = vsel %vm974_vm2, %v2865_v37, %v2864_v57  ;;  %v5042_v9 = vld.sshfl [vmem:[%s5707_s28 + $0x5] sm:$0x1 pattern:$0x75316420] }
  0x45   : > { %v2854_v22 = vsel %vm977_vm3, %v2853_v11, %v2852_v50  ;;  %v2898_v39 = vsel %vm980_vm4, %v2857_v18, %v2897_v3  ;;  %v2905_v35 = vsel %vm980_vm4, %v2871_v62, %v2904_v55  ;;  %v2907_v42 = vrot.slane %v2893_v59, 1  ;;  %v5047_v21 = vld.sshfl [vmem:[%s5707_s28 + $0xa] sm:$0x1 pattern:$0x75316420]  ;;  %s5210_s24 = smul.u32 19, %s6347_s27 }
  0x46   : > { %v2856_v6 = vsel %vm980_vm4, %v2855_v15, %v2854_v22  ;;  %v2899_v11 = vsel %vm983_vm5, %v2859_v30, %v2898_v39  ;;  %v2906_v12 = vsel %vm983_vm5, %v2873_v40, %v2905_v35  ;;  %v2868_v26 = vsel %vm977_vm3, %v2867_v34, %v2866_v0  ;;  %v5048_v36 = vld.sshfl [vmem:[%s5707_s28 + $0xb] sm:$0x1 pattern:$0x75316420] }
  0x47   : > { %v2858_v49 = vsel %vm983_vm5, %v2857_v18, %v2856_v6  ;;  %v2900_v15 = vsel %vm986_vm6, %v2861_v56, %v2899_v11  ;;  %v2908_v37 = vsel %vm986_vm6, %v2907_v42, %v2906_v12  ;;  %v2870_v44 = vsel %vm980_vm4, %v2869_v7, %v2868_v26  ;;  %v5049_v46 = vld.sshfl [vmem:[%s5707_s28 + $0xc] sm:$0x1 pattern:$0x75316420] }
  0x48   : > { %v2860_v41 = vsel %vm986_vm6, %v2859_v30, %v2858_v49  ;;  %v5050_v51 = vld.sshfl [vmem:[%s5707_s28 + $0xd] sm:$0x1 pattern:$0x75316420]  ;;  %v2909_v45 = vpack.c.b16 %v2908_v37, %v2900_v15  ;;  %v2872_v18 = vsel %vm983_vm5, %v2871_v62, %v2870_v44  ;;  %v3030_v20 = vrot.slane %v5037_v17, %v5428_v5 }
  0x49   : > { %v5051_v34 = vld.sshfl [vmem:[%s5707_s28 + $0xe] sm:$0x1 pattern:$0x75316420]  ;;  %v3044_v27 = vrot.slane %v5038_v2, %v5428_v5  ;;  %v2874_v10 = vsel %vm986_vm6, %v2873_v40, %v2872_v18  ;;  %v3058_v52 = vrot.slane %v5039_v60, %v5428_v5  ;;  %v3072_v30 = vrot.slane %v5040_v24, %v5428_v5 }
  0x4a   : > { %v5052_v56 = vld.sshfl [vmem:[%s5707_s28 + $0xf] sm:$0x1 pattern:$0x75316420]  ;;  %v3086_v7 = vrot.slane %v5041_v29, %v5428_v5  ;;  %2910 = vrot.lane.b32.xlu1 %v2909_v45, %s5327_s21  ;;  %v2875_v57 = vpack.c.b16 %v2874_v10, %v2860_v41  ;;  %v3100_v62 = vrot.slane %v5042_v9, %v5428_v5  ;;  %v3114_v59 = vrot.slane %v5043_v1, %v5428_v5 }
  0x4b   : > { %v3128_v25 = vrot.slane %v5044_v47, %v5428_v5  ;;  %v3142_v40 = vrot.slane %v5045_v32, %v5428_v5  ;;  %v3156_v61 = vrot.slane %v5046_v54, %v5428_v5  ;;  %v3170_v50 = vrot.slane %v5047_v21, %v5428_v5  ;;  %v4968_v54 = vld.sshfl [vmem:[%s5796_s11] sm:$0x1 pattern:$0x75316420] }
  0x4c   : > { %v3184_v17 = vrot.slane %v5048_v36, %v5428_v5  ;;  %2876 = vrot.lane.b32.xlu0 %v2875_v57, %s5328_s25  ;;  %v3198_v2 = vrot.slane %v5049_v46, %v5428_v5  ;;  %v3212_v3 = vrot.slane %v5050_v51, %v5428_v5  ;;  %v3226_v55 = vrot.slane %v5051_v34, %v5428_v5  ;;  %v4969_v41 = vld.sshfl [vmem:[%s5796_s11 + $0x1] sm:$0x1 pattern:$0x75316420] }
  0x4d   : > { %v3240_v22 = vrot.slane %v5052_v56, %v5428_v5  ;;  %v5785_v0 = vunpack.c.l.b16 %v3030_v20  ;;  %v5787_v60 = vunpack.c.l.b16 %v3044_v27  ;;  %v5789_v24 = vunpack.c.l.b16 %v3058_v52  ;;  %v4970_v44 = vld.sshfl [vmem:[%s5796_s11 + $0x2] sm:$0x1 pattern:$0x75316420] }
  0x4e   : > { %v5791_v29 = vunpack.c.l.b16 %v3072_v30  ;;  %v5798_v39 = vunpack.c.l.b16 %v3086_v7  ;;  %v5800_v35 = vunpack.c.l.b16 %v3100_v62  ;;  %v5802_v42 = vunpack.c.l.b16 %v3114_v59  ;;  %v4971_v34 = vld.sshfl [vmem:[%s5796_s11 + $0x3] sm:$0x1 pattern:$0x75316420] }
  0x4f   : > { %8291 = vst [vmem:[#allocation17_spill] sm:$0xff] %v5785_v0  ;;  %8292 = vst [vmem:[#allocation18_spill] sm:$0xff] %v5787_v60  ;;  %v5804_v6 = vunpack.c.l.b16 %v3128_v25  ;;  %v5806_v9 = vunpack.c.l.b16 %v3142_v40  ;;  %v5808_v1 = vunpack.c.l.b16 %v3156_v61  ;;  %v5810_v47 = vunpack.c.l.b16 %v3170_v50  ;;  %v4972_v20 = vld.sshfl [vmem:[%s5796_s11 + $0x4] sm:$0x1 pattern:$0x75316420] }
  0x50   : > { %8293 = vst [vmem:[#allocation19_spill] sm:$0xff] %v5789_v24  ;;  %8294 = vst [vmem:[#allocation20_spill] sm:$0xff] %v5791_v29  ;;  %v5812_v11 = vunpack.c.l.b16 %v3184_v17  ;;  %v5814_v12 = vunpack.c.l.b16 %v3198_v2  ;;  %v5816_v49 = vunpack.c.l.b16 %v3212_v3  ;;  %v5818_v26 = vunpack.c.l.b16 %v3226_v55  ;;  %v4973_v30 = vld.sshfl [vmem:[%s5796_s11 + $0x5] sm:$0x1 pattern:$0x75316420] }
  0x51   : > { %8295 = vst [vmem:[#allocation21_spill] sm:$0xff] %v5798_v39  ;;  %8296 = vst [vmem:[#allocation22_spill] sm:$0xff] %v5800_v35  ;;  %v5820_v32 = vunpack.c.l.b16 %v3240_v22  ;;  %v3286_v21 = vrot.slane %v5785_v0, 1  ;;  %v8104_v36 = vrot.slane %v5789_v24, 7  ;;  %v8102_v15 = vrot.slane %v5791_v29, 6 }
  0x52   : > { %8297 = vst [vmem:[#allocation23_spill] sm:$0xff] %v5802_v42  ;;  %8298 = vst [vmem:[#allocation24_spill] sm:$0xff] %v5804_v6  ;;  %v8105_v37 = vrot.slane %v5798_v39, 5  ;;  %v8106_v46 = vrot.slane %v5800_v35, 4  ;;  %v8107_v51 = vrot.slane %v5802_v42, 3  ;;  %v8109_v45 = vrot.slane %v5804_v6, 2 }
  0x53   : > { %8299 = vst [vmem:[#allocation25_spill] sm:$0xff] %v5806_v9  ;;  %8300 = vst [vmem:[#allocation26_spill] sm:$0xff] %v5808_v1  ;;  %v8101_v18 = vrot.slane %v5806_v9, 1  ;;  %v3287_v27 = vsel %vm968_vm0, %v5787_v60, %v3286_v21  ;;  %v8103_v10 = vrot.slane %v5810_v47, 7  ;;  %v8113_v56 = vrot.slane %v5812_v11, 6 }
  0x54   : > { %8301 = vst [vmem:[#allocation27_spill] sm:$0xff] %v5810_v47  ;;  %8302 = vst [vmem:[#allocation28_spill] sm:$0xff] %v5812_v11  ;;  %v8111_v52 = vrot.slane %v5814_v12, 5  ;;  %v3289_v57 = vsel %vm971_vm1, %v8104_v36, %v3287_v27  ;;  %v8108_v59 = vrot.slane %v5816_v49, 4  ;;  %v8110_v25 = vrot.slane %v5818_v26, 3 }
  0x55   : > { %8303 = vst [vmem:[#allocation29_spill] sm:$0xff] %v5814_v12  ;;  %8304 = vst [vmem:[#allocation30_spill] sm:$0xff] %v5816_v49  ;;  %v4974_v7 = vld.sshfl [vmem:[%s5796_s11 + $0x6] sm:$0x1 pattern:$0x75316420]  ;;  %v3301_v62 = vsel %vm968_vm0, %v5808_v1, %v8101_v18  ;;  %v3291_v50 = vsel %vm974_vm2, %v8102_v15, %v3289_v57  ;;  %v1265_v21 = vrot.slane %v4968_v54, %v5428_v5 }
  0x56   : > { %8305 = vst [vmem:[#allocation31_spill] sm:$0xff] %v5818_v26  ;;  %8306 = vst [vmem:[#allocation32_spill] sm:$0xff] %v5820_v32  ;;  %v4975_v40 = vld.sshfl [vmem:[%s5796_s11 + $0x7] sm:$0x1 pattern:$0x75316420]  ;;  %v3303_v17 = vsel %vm971_vm1, %v8103_v10, %v3301_v62  ;;  %v3293_v27 = vsel %vm977_vm3, %v8105_v37, %v3291_v50  ;;  %v1279_v62 = vrot.slane %v4969_v41, %v5428_v5 }
  0x57   : > { %v4976_v61 = vld.sshfl [vmem:[%s5796_s11 + $0x8] sm:$0x1 pattern:$0x75316420]  ;;  %v8112_v2 = vrot.slane %v5820_v32, 2  ;;  %v3305_v57 = vsel %vm974_vm2, %v8113_v56, %v3303_v17  ;;  %v1293_v15 = vrot.slane %v4970_v44, %v5428_v5  ;;  %v3295_v10 = vsel %vm980_vm4, %v8106_v46, %v3293_v27 }
  0x58   : > { %v4977_v3 = vld.sshfl [vmem:[%s5796_s11 + $0x9] sm:$0x1 pattern:$0x75316420]  ;;  %v3307_v54 = vsel %vm977_vm3, %v8111_v52, %v3305_v57  ;;  %v1307_v50 = vrot.slane %v4971_v34, %v5428_v5  ;;  %v1321_v37 = vrot.slane %v4972_v20, %v5428_v5  ;;  %v3297_v17 = vsel %vm983_vm5, %v8107_v51, %v3295_v10 }
  0x59   : > { %v4978_v55 = vld.sshfl [vmem:[%s5796_s11 + $0xa] sm:$0x1 pattern:$0x75316420]  ;;  %v3309_v41 = vsel %vm980_vm4, %v8108_v59, %v3307_v54  ;;  %v1335_v27 = vrot.slane %v4973_v30, %v5428_v5  ;;  %v1349_v46 = vrot.slane %v4974_v7, %v5428_v5  ;;  %v3299_v57 = vsel %vm986_vm6, %v8109_v45, %v3297_v17 }
  0x5a   : > { %v4979_v22 = vld.sshfl [vmem:[%s5796_s11 + $0xb] sm:$0x1 pattern:$0x75316420]  ;;  %v3311_v34 = vsel %vm983_vm5, %v8110_v25, %v3309_v41  ;;  %v1363_v10 = vrot.slane %v4975_v40, %v5428_v5  ;;  %v1377_v51 = vrot.slane %v4976_v61, %v5428_v5  ;;  %v1391_v30 = vrot.slane %v4977_v3, %v5428_v5 }
  0x5b   : > { %v4980_v18 = vld.sshfl [vmem:[%s5796_s11 + $0xc] sm:$0x1 pattern:$0x75316420]  ;;  %v3313_v54 = vsel %vm986_vm6, %v8112_v2, %v3311_v34  ;;  %v1405_v7 = vrot.slane %v4978_v55, %v5428_v5  ;;  %v1419_v59 = vrot.slane %v4979_v22, %v5428_v5  ;;  %v5910_v61 = vunpack.c.l.b16 %v1265_v21 }
  0x5c   : > { %v4981_v36 = vld.sshfl [vmem:[%s5796_s11 + $0xd] sm:$0x1 pattern:$0x75316420]  ;;  %v3314_v17 = vpack.c.b16 %v3313_v54, %v3299_v57  ;;  %v1433_v45 = vrot.slane %v4980_v18, %v5428_v5  ;;  %v5912_v52 = vunpack.c.l.b16 %v1279_v62  ;;  %v5914_v34 = vunpack.c.l.b16 %v1293_v15 }
  0x5d   : > { %v4982_v44 = vld.sshfl [vmem:[%s5796_s11 + $0xe] sm:$0x1 pattern:$0x75316420]  ;;  %v1447_v41 = vrot.slane %v4981_v36, %v5428_v5  ;;  %8307 = vst [vmem:[#allocation33_spill] sm:$0xff] %v5910_v61  ;;  %v5917_v3 = vunpack.c.l.b16 %v1307_v50  ;;  %v5919_v55 = vunpack.c.l.b16 %v1321_v37  ;;  %v5921_v18 = vunpack.c.l.b16 %v1335_v27 }
  0x5e   : > { %v4983_v20 = vld.sshfl [vmem:[%s5796_s11 + $0xf] sm:$0x1 pattern:$0x75316420]  ;;  %v1461_v25 = vrot.slane %v4982_v44, %v5428_v5  ;;  %8308 = vst [vmem:[#allocation34_spill] sm:$0xff] %v5912_v52  ;;  %8309 = vst [vmem:[#allocation35_spill] sm:$0xff] %v5914_v34  ;;  %3315 = vrot.lane.b32.xlu1 %v3314_v17, %s5324_s12  ;;  %v5923_v36 = vunpack.c.l.b16 %v1349_v46  ;;  %v5925_v22 = vunpack.c.l.b16 %v1363_v10  ;;  %v5927_v44 = vunpack.c.l.b16 %v1377_v51 }
  0x5f   : > { %v1475_v40 = vrot.slane %v4983_v20, %v5428_v5  ;;  %8310 = vst [vmem:[#allocation36_spill] sm:$0xff] %v5917_v3  ;;  %8311 = vst [vmem:[#allocation37_spill] sm:$0xff] %v5919_v55  ;;  %v5929_v21 = vunpack.c.l.b16 %v1391_v30  ;;  %v5931_v62 = vunpack.c.l.b16 %v1405_v7  ;;  %v5933_v15 = vunpack.c.l.b16 %v1419_v59  ;;  %v5053_v27 = vld.sshfl [vmem:[%s5707_s28 + $0x10] sm:$0x1 pattern:$0x75316420] }
  0x60   : > { %8312 = vst [vmem:[#allocation38_spill] sm:$0xff] %v5921_v18  ;;  %8313 = vst [vmem:[#allocation39_spill] sm:$0xff] %v5923_v36  ;;  %v5935_v57 = vunpack.c.l.b16 %v1433_v45  ;;  %v5937_v50 = vunpack.c.l.b16 %v1447_v41  ;;  %v5939_v37 = vunpack.c.l.b16 %v1461_v25  ;;  %v1521_v46 = vrot.slane %v5910_v61, 1 }
  0x61   : > { %8314 = vst [vmem:[#allocation40_spill] sm:$0xff] %v5925_v22  ;;  %8315 = vst [vmem:[#allocation41_spill] sm:$0xff] %v5927_v44  ;;  %v5942_v20 = vunpack.c.l.b16 %v1475_v40  ;;  %v1523_v51 = vrot.slane %v5914_v34, 7  ;;  %v1525_v10 = vrot.slane %v5917_v3, 6  ;;  %v1527_v54 = vrot.slane %v5919_v55, 5 }
  0x62   : > { %8316 = vst [vmem:[#allocation42_spill] sm:$0xff] %v5929_v21  ;;  %8317 = vst [vmem:[#allocation43_spill] sm:$0xff] %v5931_v62  ;;  %v1529_v59 = vrot.slane %v5921_v18, 4  ;;  %v1531_v45 = vrot.slane %v5923_v36, 3  ;;  %v1533_v30 = vrot.slane %v5925_v22, 2  ;;  %v1522_v25 = vsel %vm968_vm0, %v5912_v52, %v1521_v46 }
  0x63   : > { %8318 = vst [vmem:[#allocation44_spill] sm:$0xff] %v5933_v15  ;;  %8319 = vst [vmem:[#allocation45_spill] sm:$0xff] %v5935_v57  ;;  %v8122_v7 = vrot.slane %v5927_v44, 1  ;;  %v1537_v17 = vrot.slane %v5931_v62, 7  ;;  %v1539_v41 = vrot.slane %v5933_v15, 6  ;;  %v1524_v40 = vsel %vm971_vm1, %v1523_v51, %v1522_v25 }
  0x64   : > { %8320 = vst [vmem:[#allocation46_spill] sm:$0xff] %v5937_v50  ;;  %8321 = vst [vmem:[#allocation47_spill] sm:$0xff] %v5939_v37  ;;  %v1541_v2 = vrot.slane %v5935_v57, 5  ;;  %v1543_v56 = vrot.slane %v5937_v50, 4  ;;  %v1545_v61 = vrot.slane %v5939_v37, 3  ;;  %v1526_v0 = vsel %vm974_vm2, %v1525_v10, %v1524_v40 }
  0x65   : > { %8322 = vst [vmem:[#allocation48_spill] sm:$0xff] %v5942_v20  ;;  %v1536_v46 = vsel %vm968_vm0, %v5929_v21, %v8122_v7  ;;  %v1547_v31 = vrot.slane %v5942_v20, 2  ;;  %v3331_v14 = vrot.slane %v5053_v27, %v5428_v5  ;;  %v1528_v25 = vsel %vm977_vm3, %v1527_v54, %v1526_v0  ;;  %v4984_v33 = vld.sshfl [vmem:[%s5796_s11 + $0x10] sm:$0x1 pattern:$0x75316420] }
  0x66   : > { %v1538_v43 = vsel %vm971_vm1, %v1537_v17, %v1536_v46  ;;  %v8323_v8 = vrot.slane %v5789_v24, 7  ;;  %v8324_v40 = vrot.slane %v5810_v47, 7  ;;  %v1530_v7 = vsel %vm980_vm4, %v1529_v59, %v1528_v25 }
  0x67   : > { %v1540_v58 = vsel %vm974_vm2, %v1539_v41, %v1538_v43  ;;  %v5979_v53 = vunpack.c.l.b16 %v3331_v14  ;;  %v8325_v0 = vrot.slane %v5791_v29, 6  ;;  %v1532_v46 = vsel %vm983_vm5, %v1531_v45, %v1530_v7 }
  0x68   : > { %v3333_v4 = vsel %vm968_vm0, %v8323_v8, %v5787_v60  ;;  %v3340_v63 = vsel %vm968_vm0, %v8324_v40, %v5808_v1  ;;  %v1542_v48 = vsel %vm977_vm3, %v1541_v2, %v1540_v58  ;;  %v8326_v8 = vrot.slane %v5798_v39, 5 }
  0x69   : > { %v3334_v27 = vsel %vm971_vm1, %v8325_v0, %v3333_v4  ;;  %v8327_v40 = vrot.slane %v5812_v11, 6  ;;  %v1534_v43 = vsel %vm986_vm6, %v1533_v30, %v1532_v46  ;;  %v1544_v14 = vsel %vm980_vm4, %v1543_v56, %v1542_v48 }
  0x6a   : > { %v3335_v38 = vsel %vm974_vm2, %v8326_v8, %v3334_v27  ;;  %v8328_v28 = vrot.slane %v5800_v35, 4  ;;  %v8329_v7 = vrot.slane %v5814_v12, 5  ;;  %v1546_v0 = vsel %vm983_vm5, %v1545_v61, %v1544_v14 }
  0x6b   : > { %v3341_v25 = vsel %vm971_vm1, %v8327_v40, %v3340_v63  ;;  %v8330_v27 = vrot.slane %v5802_v42, 3  ;;  %v8331_v63 = vrot.slane %v5816_v49, 4  ;;  %v3346_v48 = vrot.slane %v5979_v53, 1 }
  0x6c   : > { %v3336_v4 = vsel %vm977_vm3, %v8328_v28, %v3335_v38  ;;  %v3342_v58 = vsel %vm974_vm2, %v8329_v7, %v3341_v25  ;;  %v1548_v40 = vsel %vm986_vm6, %v1547_v31, %v1546_v0  ;;  %v8332_v28 = vrot.slane %v5804_v6, 2 }
  0x6d   : > { %v3337_v8 = vsel %vm980_vm4, %v8330_v27, %v3336_v4  ;;  %v3343_v46 = vsel %vm977_vm3, %v8331_v63, %v3342_v58  ;;  %v8333_v25 = vrot.slane %v5818_v26, 3  ;;  %v1566_v7 = vrot.slane %v4984_v33, %v5428_v5 }
  0x6e   : > { %v3338_v38 = vsel %vm983_vm5, %v8332_v28, %v3337_v8  ;;  %v1549_v23 = vpack.c.b16 %v1548_v40, %v1534_v43  ;;  %v8334_v4 = vrot.slane %v5806_v9, 1  ;;  %v8335_v58 = vrot.slane %v5820_v32, 2 }
  0x6f   : > { %v3344_v14 = vsel %vm980_vm4, %v8333_v25, %v3343_v46  ;;  %v1568_v0 = vsel %vm968_vm0, %v1523_v51, %v5912_v52  ;;  %v6026_v28 = vunpack.c.l.b16 %v1566_v7  ;;  %v1575_v33 = vsel %vm968_vm0, %v1537_v17, %v5929_v21 }
  0x70   : > { %v3339_v27 = vsel %vm986_vm6, %v8334_v4, %v3338_v38  ;;  %v3345_v63 = vsel %vm983_vm5, %v8335_v58, %v3344_v14  ;;  %v1569_v46 = vsel %vm971_vm1, %v1525_v10, %v1568_v0  ;;  %1550 = vrot.lane.b32.xlu0 %v1549_v23, %s5324_s12  ;;  %v1576_v38 = vsel %vm971_vm1, %v1539_v41, %v1575_v33 }
  0x71   : > { %v3347_v8 = vsel %vm986_vm6, %v3346_v48, %v3345_v63  ;;  %v1570_v40 = vsel %vm974_vm2, %v1527_v54, %v1569_v46  ;;  %v3351_v25 = vrot.slane %v5787_v60, 1  ;;  %v1577_v48 = vsel %vm974_vm2, %v1541_v2, %v1576_v38 }
  0x72   : > { %v3348_v43 = vpack.c.b16 %v3347_v8, %v3339_v27  ;;  %v1571_v51 = vsel %vm977_vm3, %v1529_v59, %v1570_v40  ;;  %v1581_v14 = vrot.slane %v6026_v28, 1  ;;  %v8136_v10 = vrot.slane %v5791_v29, 7 }
  0x73   : > { %v1572_v17 = vsel %vm980_vm4, %v1531_v45, %v1571_v51  ;;  %v1578_v23 = vsel %vm977_vm3, %v1543_v56, %v1577_v48  ;;  %v3352_v54 = vsel %vm968_vm0, %v5789_v24, %v3351_v25  ;;  %v8135_v41 = vrot.slane %v5798_v39, 6 }
  0x74   : > { %3349 = vrot.lane.b32.xlu1 %v3348_v43, %s5326_s29  ;;  %v1573_v7 = vsel %vm983_vm5, %v1533_v30, %v1572_v17  ;;  %v1579_v59 = vsel %vm980_vm4, %v1545_v61, %v1578_v23  ;;  %v3354_v2 = vsel %vm971_vm1, %v8136_v10, %v3352_v54  ;;  %v8134_v4 = vrot.slane %v5800_v35, 5 }
  0x75   : > { %v8336_v27 = vrot.slane %v5927_v44, 1  ;;  %v1580_v56 = vsel %vm983_vm5, %v1547_v31, %v1579_v59  ;;  %v3356_v58 = vsel %vm974_vm2, %v8135_v41, %v3354_v2  ;;  %v8133_v30 = vrot.slane %v5802_v42, 4 }
  0x76   : > { %v1582_v61 = vsel %vm986_vm6, %v1581_v14, %v1580_v56  ;;  %v3358_v63 = vsel %vm977_vm3, %v8134_v4, %v3356_v58  ;;  %v8132_v0 = vrot.slane %v5804_v6, 3  ;;  %v8131_v8 = vrot.slane %v5806_v9, 2 }
  0x77   : > { %v1574_v45 = vsel %vm986_vm6, %v8336_v27, %v1573_v7  ;;  %v3360_v31 = vsel %vm980_vm4, %v8133_v30, %v3358_v63  ;;  %v8130_v33 = vrot.slane %v5808_v1, 1  ;;  %v3367_v43 = vrot.slane %v5812_v11, 7  ;;  %v5054_v30 = vld.sshfl [vmem:[%s5707_s28 + $0x11] sm:$0x1 pattern:$0x75316420] }
  0x78   : > { %v1583_v46 = vpack.c.b16 %v1582_v61, %v1574_v45  ;;  %v3362_v40 = vsel %vm983_vm5, %v8132_v0, %v3360_v31  ;;  %v3369_v38 = vrot.slane %v5814_v12, 6  ;;  %v3371_v25 = vrot.slane %v5816_v49, 5 }
  0x79   : > { %v3373_v51 = vrot.slane %v5818_v26, 4  ;;  %v3364_v48 = vsel %vm986_vm6, %v8131_v8, %v3362_v40  ;;  %v3366_v14 = vsel %vm968_vm0, %v5810_v47, %v8130_v33  ;;  %v3375_v17 = vrot.slane %v5820_v32, 3 }
  0x7a   : > { %1584 = vrot.lane.b32.xlu0 %v1583_v46, %s5326_s29  ;;  %v3377_v23 = vrot.slane %v5979_v53, 2  ;;  %v3368_v54 = vsel %vm971_vm1, %v3367_v43, %v3366_v14  ;;  %v1586_v7 = vrot.slane %v5912_v52, 1  ;;  %v1588_v59 = vrot.slane %v5917_v3, 7 }
  0x7b   : > { %v1590_v2 = vrot.slane %v5919_v55, 6  ;;  %v3370_v27 = vsel %vm974_vm2, %v3369_v38, %v3368_v54  ;;  %v1592_v45 = vrot.slane %v5921_v18, 5  ;;  %v1594_v56 = vrot.slane %v5923_v36, 4 }
  0x7c   : > { %v8139_v58 = vrot.slane %v5925_v22, 3  ;;  %v3372_v61 = vsel %vm977_vm3, %v3371_v25, %v3370_v27  ;;  %v1587_v63 = vsel %vm968_vm0, %v5914_v34, %v1586_v7  ;;  %v8137_v31 = vrot.slane %v5929_v21, 1 }
  0x7d   : > { %v3374_v40 = vsel %vm980_vm4, %v3373_v51, %v3372_v61  ;;  %v1589_v14 = vsel %vm971_vm1, %v1588_v59, %v1587_v63  ;;  %v1602_v54 = vrot.slane %v5933_v15, 7  ;;  %v1604_v33 = vrot.slane %v5935_v57, 6 }
  0x7e   : > { %v3376_v8 = vsel %vm983_vm5, %v3375_v17, %v3374_v40  ;;  %v1591_v0 = vsel %vm974_vm2, %v1590_v2, %v1589_v14  ;;  %v1601_v7 = vsel %vm968_vm0, %v5931_v62, %v8137_v31  ;;  %v1606_v27 = vrot.slane %v5937_v50, 5 }
  0x7f   : > { %v3378_v61 = vsel %vm986_vm6, %v3377_v23, %v3376_v8  ;;  %v1593_v63 = vsel %vm977_vm3, %v1592_v45, %v1591_v0  ;;  %v1603_v4 = vsel %vm971_vm1, %v1602_v54, %v1601_v7  ;;  %v1608_v41 = vrot.slane %v5939_v37, 4  ;;  %v4985_v7 = vld.sshfl [vmem:[%s5796_s11 + $0x11] sm:$0x1 pattern:$0x75316420] }
  0x80   : > { %v3379_v40 = vpack.c.b16 %v3378_v61, %v3364_v48  ;;  %v1595_v14 = vsel %vm980_vm4, %v1594_v56, %v1593_v63  ;;  %v1605_v10 = vsel %vm974_vm2, %v1604_v33, %v1603_v4  ;;  %v1610_v46 = vrot.slane %v5942_v20, 3 }
  0x81   : > { %v1597_v31 = vsel %vm983_vm5, %v8139_v58, %v1595_v14  ;;  %v1607_v52 = vsel %vm977_vm3, %v1606_v27, %v1605_v10  ;;  %v1612_v8 = vrot.slane %v6026_v28, 2  ;;  %v3396_v0 = vrot.slane %v5054_v30, %v5428_v5 }
  0x82   : > { %3380 = vrot.lane.b32.xlu1 %v3379_v40, %s5323_s30  ;;  %v8337_v48 = vrot.slane %v5927_v44, 2  ;;  %v1609_v4 = vsel %vm980_vm4, %v1608_v41, %v1607_v52  ;;  %v8338_v63 = vrot.slane %v5791_v29, 7  ;;  %v3405_v10 = vsel %vm968_vm0, %v3367_v43, %v5810_v47 }
  0x83   : > { %v1611_v58 = vsel %vm983_vm5, %v1610_v46, %v1609_v4  ;;  %v6137_v30 = vunpack.c.l.b16 %v3396_v0  ;;  %v8339_v40 = vrot.slane %v5798_v39, 6  ;;  %v1631_v43 = vrot.slane %v4985_v7, %v5428_v5 }
  0x84   : > { %v1599_v61 = vsel %vm986_vm6, %v8337_v48, %v1597_v31  ;;  %v3398_v14 = vsel %vm968_vm0, %v8338_v63, %v5789_v24  ;;  %v3406_v31 = vsel %vm971_vm1, %v3369_v38, %v3405_v10  ;;  %v1613_v52 = vsel %vm986_vm6, %v1612_v8, %v1611_v58 }
  0x85   : > { %v3399_v60 = vsel %vm971_vm1, %v8339_v40, %v3398_v14  ;;  %v8340_v48 = vrot.slane %v5800_v35, 5  ;;  %v3407_v63 = vsel %vm974_vm2, %v3371_v25, %v3406_v31  ;;  %v1614_v4 = vpack.c.b16 %v1613_v52, %v1599_v61 }
  0x86   : > { %v8341_v0 = vrot.slane %v5802_v42, 4  ;;  %v3408_v14 = vsel %vm977_vm3, %v3373_v51, %v3407_v63  ;;  %v3411_v38 = vrot.slane %v6137_v30, 1  ;;  %v8342_v58 = vrot.slane %v5804_v6, 3 }
  0x87   : > { %v3400_v19 = vsel %vm974_vm2, %v8340_v48, %v3399_v60  ;;  %v3409_v60 = vsel %vm980_vm4, %v3375_v17, %v3408_v14  ;;  %v6158_v40 = vunpack.c.l.b16 %v1631_v43  ;;  %v1633_v25 = vsel %vm968_vm0, %v1588_v59, %v5914_v34  ;;  %1615 = vrot.lane.b32.xlu0 %v1614_v4, %s5323_s30 }
  0x88   : > { %v3401_v16 = vsel %vm977_vm3, %v8341_v0, %v3400_v19  ;;  %v8343_v7 = vrot.slane %v5806_v9, 2  ;;  %v3410_v51 = vsel %vm983_vm5, %v3377_v23, %v3409_v60  ;;  %v1634_v61 = vsel %vm971_vm1, %v1590_v2, %v1633_v25 }
  0x89   : > { %v3402_v10 = vsel %vm980_vm4, %v8342_v58, %v3401_v16  ;;  %v1640_v16 = vsel %vm968_vm0, %v1602_v54, %v5931_v62  ;;  %v8344_v17 = vrot.slane %v5808_v1, 1  ;;  %v3412_v59 = vsel %vm986_vm6, %v3411_v38, %v3410_v51 }
  0x8a   : > { %v3403_v19 = vsel %vm983_vm5, %v8343_v7, %v3402_v10  ;;  %v1635_v52 = vsel %vm974_vm2, %v1592_v45, %v1634_v61  ;;  %v1641_v48 = vsel %vm971_vm1, %v1604_v33, %v1640_v16  ;;  %v1646_v2 = vrot.slane %v6158_v40, 1 }
  0x8b   : > { %v3404_v31 = vsel %vm986_vm6, %v8344_v17, %v3403_v19  ;;  %v1636_v23 = vsel %vm977_vm3, %v1594_v56, %v1635_v52  ;;  %v1642_v43 = vsel %vm974_vm2, %v1606_v27, %v1641_v48  ;;  %v8345_v54 = vrot.slane %v5925_v22, 3 }
  0x8c   : > { %v3413_v63 = vpack.c.b16 %v3412_v59, %v3404_v31  ;;  %v1643_v0 = vsel %vm977_vm3, %v1608_v41, %v1642_v43  ;;  %v3416_v14 = vrot.slane %v5789_v24, 1  ;;  %v3418_v38 = vrot.slane %v5798_v39, 7 }
  0x8d   : > { %v1637_v4 = vsel %vm980_vm4, %v8345_v54, %v1636_v23  ;;  %v8347_v33 = vrot.slane %v5927_v44, 2  ;;  %v1644_v56 = vsel %vm980_vm4, %v1610_v46, %v1643_v0  ;;  %v3420_v41 = vrot.slane %v5800_v35, 6 }
  0x8e   : > { %3414 = vrot.lane.b32.xlu1 %v3413_v63, %s8203_s23  ;;  %v3422_v27 = vrot.slane %v5802_v42, 5  ;;  %v8348_v58 = vrot.slane %v5929_v21, 1  ;;  %v1645_v60 = vsel %vm983_vm5, %v1612_v8, %v1644_v56  ;;  %v3417_v25 = vsel %vm968_vm0, %v5791_v29, %v3416_v14 }
  0x8f   : > { %v1638_v45 = vsel %vm983_vm5, %v8347_v33, %v1637_v4  ;;  %v3424_v7 = vrot.slane %v5804_v6, 4  ;;  %v1647_v19 = vsel %vm986_vm6, %v1646_v2, %v1645_v60  ;;  %v3419_v46 = vsel %vm971_vm1, %v3418_v38, %v3417_v25 }
  0x90   : > { %v1639_v10 = vsel %vm986_vm6, %v8348_v58, %v1638_v45  ;;  %v3426_v51 = vrot.slane %v5806_v9, 3  ;;  %v3428_v61 = vrot.slane %v5808_v1, 2  ;;  %v3421_v8 = vsel %vm974_vm2, %v3420_v41, %v3419_v46 }
  0x91   : > { %v1648_v16 = vpack.c.b16 %v1647_v19, %v1639_v10  ;;  %v8144_v17 = vrot.slane %v5810_v47, 1  ;;  %v3432_v31 = vrot.slane %v5814_v12, 7  ;;  %v3423_v59 = vsel %vm977_vm3, %v3422_v27, %v3421_v8 }
  0x92   : > { %v3434_v52 = vrot.slane %v5816_v49, 6  ;;  %v3436_v48 = vrot.slane %v5818_v26, 5  ;;  %v3438_v63 = vrot.slane %v5820_v32, 4  ;;  %v3425_v23 = vsel %vm980_vm4, %v3424_v7, %v3423_v59 }
  0x93   : > { %1649 = vrot.lane.b32.xlu0 %v1648_v16, %s8203_s23  ;;  %v3431_v43 = vsel %vm968_vm0, %v5812_v11, %v8144_v17  ;;  %v8149_v2 = vrot.slane %v5979_v53, 3  ;;  %v8145_v54 = vrot.slane %v6137_v30, 2  ;;  %v3427_v4 = vsel %vm983_vm5, %v3426_v51, %v3425_v23 }
  0x94   : > { %v3433_v0 = vsel %vm971_vm1, %v3432_v31, %v3431_v43  ;;  %v1651_v14 = vrot.slane %v5914_v34, 1  ;;  %v8148_v33 = vrot.slane %v5919_v55, 7  ;;  %v3429_v45 = vsel %vm986_vm6, %v3428_v61, %v3427_v4 }
  0x95   : > { %v3435_v56 = vsel %vm974_vm2, %v3434_v52, %v3433_v0  ;;  %v8143_v58 = vrot.slane %v5921_v18, 6  ;;  %v8146_v10 = vrot.slane %v5923_v36, 5  ;;  %v1659_v19 = vrot.slane %v5925_v22, 4 }
  0x96   : > { %v3437_v60 = vsel %vm977_vm3, %v3436_v48, %v3435_v56  ;;  %v1652_v25 = vsel %vm968_vm0, %v5917_v3, %v1651_v14  ;;  %v1661_v46 = vrot.slane %v5927_v44, 3  ;;  %v1663_v59 = vrot.slane %v5929_v21, 2 }
  0x97   : > { %v3439_v16 = vsel %vm980_vm4, %v3438_v63, %v3437_v60  ;;  %v1654_v8 = vsel %vm971_vm1, %v8148_v33, %v1652_v25  ;;  %v8147_v23 = vrot.slane %v5931_v62, 1  ;;  %v1667_v0 = vrot.slane %v5935_v57, 7 }
  0x98   : > { %v3441_v43 = vsel %vm983_vm5, %v8149_v2, %v3439_v16  ;;  %v1656_v4 = vsel %vm974_vm2, %v8143_v58, %v1654_v8  ;;  %v1669_v14 = vrot.slane %v5937_v50, 6  ;;  %v1671_v16 = vrot.slane %v5939_v37, 5  ;;  %v5055_v8 = vld.sshfl [vmem:[%s5707_s28 + $0x12] sm:$0x1 pattern:$0x75316420]  ;;  %s586_s28 = sadd.s32 %s5426_s22, %s5210_s24 }
  0x99   : > { %v3443_v56 = vsel %vm986_vm6, %v8145_v54, %v3441_v43  ;;  %v1658_v60 = vsel %vm977_vm3, %v8146_v10, %v1656_v4  ;;  %v1666_v25 = vsel %vm968_vm0, %v5933_v15, %v8147_v23  ;;  %v1673_v54 = vrot.slane %v5942_v20, 4  ;;  %v4986_v4 = vld.sshfl [vmem:[%s5796_s11 + $0x12] sm:$0x1 pattern:$0x75316420]  ;;  %s6444_s24 = scalar_lea.vmem %s8090_s0, %s586_s28  ;;  %s650_s28 = sadd.s32 6, %s5420_s20 }
  0x9a   : > { %v3444_v58 = vpack.c.b16 %v3443_v56, %v3429_v45  ;;  %v1660_v17 = vsel %vm980_vm4, %v1659_v19, %v1658_v60  ;;  %v1668_v43 = vsel %vm971_vm1, %v1667_v0, %v1666_v25  ;;  %v1675_v33 = vrot.slane %v6026_v28, 3  ;;  %v4961_v50 = vld.sshfl [vmem:[%s6444_s24 + $0xc] sm:$0x1 pattern:$0x75316420]  ;;  %p6830_p11 = scmp.lt.s32.totalorder %s650_s28, 37 }
  0x9b   : > { %v1662_v10 = vsel %vm983_vm5, %v1661_v46, %v1660_v17  ;;  %v1670_v23 = vsel %vm974_vm2, %v1669_v14, %v1668_v43  ;;  %v1677_v2 = vrot.slane %v6158_v40, 2  ;;  %v3461_v60 = vrot.slane %v5055_v8, %v5428_v5  ;;  %v4963_v21 = vld.sshfl [vmem:[%s6444_s24 + $0xe] sm:$0x1 pattern:$0x75316420] }
  0x9c   : > { %3445 = vrot.lane.b32.xlu1 %v3444_v58, %s5328_s25  ;;  %v1664_v45 = vsel %vm986_vm6, %v1663_v59, %v1662_v10  ;;  %v1672_v56 = vsel %vm977_vm3, %v1671_v16, %v1670_v23  ;;  %v3463_v17 = vsel %vm968_vm0, %v3418_v38, %v5791_v29  ;;  %v3470_v10 = vsel %vm968_vm0, %v3432_v31, %v5812_v11  ;;  %v4964_v22 = vld.sshfl [vmem:[%s6444_s24 + $0xf] sm:$0x1 pattern:$0x75316420]  ;;  %s8611_s28 = smov (!%p6830_p11, %s650_s28), 37 }
  0x9d   : > { %v1674_v28 = vsel %vm980_vm4, %v1673_v54, %v1672_v56  ;;  %v3464_v58 = vsel %vm971_vm1, %v3420_v41, %v3463_v17  ;;  %v1696_v38 = vrot.slane %v4986_v4, %v5428_v5  ;;  %v3462_v25 = vunpack.c.l.b16 %v3461_v60  ;;  %v6334_v60 = vld.sshfl [vmem:[%s6311_s26] sm:$0x1 pattern:$0x75316420]  ;;  %s5217_s27 = smul.u32 19, %s8611_s28  ;;  %s602_s28 = sadd.s32 2, %s5420_s20 }
  0x9e   : > { %v1676_v23 = vsel %vm983_vm5, %v1675_v33, %v1674_v28  ;;  %v3465_v8 = vsel %vm974_vm2, %v3422_v27, %v3464_v58  ;;  %v3471_v43 = vsel %vm971_vm1, %v3434_v52, %v3470_v10  ;;  %v5060_v58 = vld.sshfl [vmem:[%s6311_s26 + $0x1] sm:$0x1 pattern:$0x75316420]  ;;  %v8350_v10 = vrot.slane %v5919_v55, 7  ;;  %p6941_p12 = scmp.lt.s32.totalorder %s602_s28, 37 }
  0x9f   : > { %v1678_v41 = vsel %vm986_vm6, %v1677_v2, %v1676_v23  ;;  %v3466_v31 = vsel %vm977_vm3, %v3424_v7, %v3465_v8  ;;  %v3472_v4 = vsel %vm974_vm2, %v3436_v48, %v3471_v43  ;;  %v1697_v56 = vunpack.c.l.b16 %v1696_v38  ;;  %v5061_v7 = vld.sshfl [vmem:[%s6311_s26 + $0x2] sm:$0x1 pattern:$0x75316420]  ;;  %s657_s11 = sadd.s32 %s5217_s27, %s5426_s22 }
  0xa0   : > { %v1679_v17 = vpack.c.b16 %v1678_v41, %v1664_v45  ;;  %v3467_v27 = vsel %vm980_vm4, %v3426_v51, %v3466_v31  ;;  %v3473_v52 = vsel %vm977_vm3, %v3438_v63, %v3472_v4  ;;  %v3476_v28 = vrot.slane %v3462_v25, 1  ;;  %v5062_v23 = vld.sshfl [vmem:[%s6311_s26 + $0x3] sm:$0x1 pattern:$0x75316420]  ;;  %s8613_s28 = smov (!%p6941_p12, %s602_s28), 37 }
  0xa1   : > { %v3468_v48 = vsel %vm983_vm5, %v3428_v61, %v3467_v27  ;;  %v8349_v45 = vrot.slane %v5979_v53, 3  ;;  %v1698_v63 = vsel %vm968_vm0, %v8350_v10, %v5917_v3  ;;  %v1705_v38 = vsel %vm968_vm0, %v1667_v0, %v5933_v15  ;;  %v5063_v25 = vld.sshfl [vmem:[%s6311_s26 + $0x4] sm:$0x1 pattern:$0x75316420]  ;;  %s5213_s20 = smul.u32 19, %s8613_s28 }
  0xa2   : > { %1680 = vrot.lane.b32.xlu0 %v1679_v17, %s5328_s25  ;;  %v8351_v61 = vrot.slane %v5810_v47, 1  ;;  %v8352_v8 = vrot.slane %v6137_v30, 2  ;;  %v8353_v41 = vrot.slane %v5921_v18, 6  ;;  %v1706_v0 = vsel %vm971_vm1, %v1669_v14, %v1705_v38 }
  0xa3   : > { %v3474_v51 = vsel %vm980_vm4, %v8349_v45, %v3473_v52  ;;  %v5064_v4 = vld.sshfl [vmem:[%s6311_s26 + $0x5] sm:$0x1 pattern:$0x75316420]  ;;  %v8354_v52 = vrot.slane %v5923_v36, 5  ;;  %v1711_v45 = vrot.slane %v1697_v56, 1  ;;  %v936_v18 = vrot.slane %v4963_v21, %v5428_v5  ;;  %s609_s28 = sadd.s32 %s5213_s20, %s5426_s22 }
  0xa4   : > { %v3469_v53 = vsel %vm986_vm6, %v8351_v61, %v3468_v48  ;;  %v3475_v43 = vsel %vm983_vm5, %v8352_v8, %v3474_v51  ;;  %v1699_v31 = vsel %vm971_vm1, %v8353_v41, %v1698_v63  ;;  %v5065_v17 = vld.sshfl [vmem:[%s6311_s26 + $0x6] sm:$0x1 pattern:$0x75316420]  ;;  %v1707_v48 = vsel %vm974_vm2, %v1671_v16, %v1706_v0 }
  0xa5   : > { %v3477_v27 = vsel %vm986_vm6, %v3476_v28, %v3475_v43  ;;  %v1700_v30 = vsel %vm974_vm2, %v8354_v52, %v1699_v31  ;;  %v5066_v51 = vld.sshfl [vmem:[%s6311_s26 + $0x7] sm:$0x1 pattern:$0x75316420]  ;;  %v1708_v38 = vsel %vm977_vm3, %v1673_v54, %v1707_v48  ;;  %v3599_v41 = vrot.slane %v6334_v60, %v5428_v5 }
  0xa6   : > { %v5067_v10 = vld.sshfl [vmem:[%s6311_s26 + $0x8] sm:$0x1 pattern:$0x75316420]  ;;  %v3478_v63 = vpack.c.b16 %v3477_v27, %v3469_v53  ;;  %v1701_v14 = vsel %vm977_vm3, %v1659_v19, %v1700_v30  ;;  %v1709_v56 = vsel %vm980_vm4, %v1675_v33, %v1708_v38  ;;  %v3613_v31 = vrot.slane %v5060_v58, %v5428_v5 }
  0xa7   : > { %v5068_v61 = vld.sshfl [vmem:[%s6311_s26 + $0x9] sm:$0x1 pattern:$0x75316420]  ;;  %v1702_v16 = vsel %vm980_vm4, %v1661_v46, %v1701_v14  ;;  %v3627_v19 = vrot.slane %v5061_v7, %v5428_v5  ;;  %v1710_v60 = vsel %vm983_vm5, %v1677_v2, %v1709_v56  ;;  %v3641_v46 = vrot.slane %v5062_v23, %v5428_v5 }
  0xa8   : > { %v5069_v28 = vld.sshfl [vmem:[%s6311_s26 + $0xa] sm:$0x1 pattern:$0x75316420]  ;;  %3479 = vrot.lane.b32.xlu1 %v3478_v63, %s5327_s21  ;;  %v1703_v54 = vsel %vm983_vm5, %v1663_v59, %v1702_v16  ;;  %v3655_v33 = vrot.slane %v5063_v25, %v5428_v5  ;;  %v8355_v58 = vrot.slane %v5931_v62, 1  ;;  %v1712_v27 = vsel %vm986_vm6, %v1711_v45, %v1710_v60 }
  0xa9   : > { %v5070_v8 = vld.sshfl [vmem:[%s6311_s26 + $0xb] sm:$0x1 pattern:$0x75316420]  ;;  %v3669_v30 = vrot.slane %v5064_v4, %v5428_v5  ;;  %v3683_v59 = vrot.slane %v5065_v17, %v5428_v5  ;;  %v3697_v40 = vrot.slane %v5066_v51, %v5428_v5  ;;  %v3711_v2 = vrot.slane %v5067_v10, %v5428_v5 }
  0xaa   : > { %v5071_v43 = vld.sshfl [vmem:[%s6311_s26 + $0xc] sm:$0x1 pattern:$0x75316420]  ;;  %v1704_v7 = vsel %vm986_vm6, %v8355_v58, %v1703_v54  ;;  %v3725_v23 = vrot.slane %v5068_v61, %v5428_v5  ;;  %v3739_v25 = vrot.slane %v5069_v28, %v5428_v5  ;;  %v3753_v63 = vrot.slane %v5070_v8, %v5428_v5 }
  0xab   : > { %v5072_v53 = vld.sshfl [vmem:[%s6311_s26 + $0xd] sm:$0x1 pattern:$0x75316420]  ;;  %v1713_v48 = vpack.c.b16 %v1712_v27, %v1704_v7  ;;  %v3767_v14 = vrot.slane %v5071_v43, %v5428_v5  ;;  %v6429_v51 = vunpack.c.l.b16 %v3599_v41  ;;  %v6431_v10 = vunpack.c.l.b16 %v3613_v31 }
  0xac   : > { %v5073_v0 = vld.sshfl [vmem:[%s6311_s26 + $0xe] sm:$0x1 pattern:$0x75316420]  ;;  %v3781_v45 = vrot.slane %v5072_v53, %v5428_v5  ;;  %v6433_v61 = vunpack.c.l.b16 %v3627_v19  ;;  %v6435_v38 = vunpack.c.l.b16 %v3641_v46  ;;  %v6437_v28 = vunpack.c.l.b16 %v3655_v33 }
  0xad   : > { %v5074_v52 = vld.sshfl [vmem:[%s6311_s26 + $0xf] sm:$0x1 pattern:$0x75316420]  ;;  %1714 = vrot.lane.b32.xlu0 %v1713_v48, %s5327_s21  ;;  %v3795_v4 = vrot.slane %v5073_v0, %v5428_v5  ;;  %8356 = vst [vmem:[#allocation49_spill] sm:$0xff] %v6429_v51  ;;  %8357 = vst [vmem:[#allocation50_spill] sm:$0xff] %v6431_v10  ;;  %v6439_v8 = vunpack.c.l.b16 %v3669_v30  ;;  %v6446_v43 = vunpack.c.l.b16 %v3683_v59  ;;  %v6448_v41 = vunpack.c.l.b16 %v3697_v40 }
  0xae   : > { %v3809_v17 = vrot.slane %v5074_v52, %v5428_v5  ;;  %8358 = vst [vmem:[#allocation51_spill] sm:$0xff] %v6433_v61  ;;  %8359 = vst [vmem:[#allocation52_spill] sm:$0xff] %v6435_v38  ;;  %v6450_v16 = vunpack.c.l.b16 %v3711_v2  ;;  %v6452_v56 = vunpack.c.l.b16 %v3725_v23  ;;  %v6454_v53 = vunpack.c.l.b16 %v3739_v25  ;;  %v4949_v58 = vld.sshfl [vmem:[%s6444_s24] sm:$0x1 pattern:$0x75316420] }
  0xaf   : > { %8360 = vst [vmem:[#allocation53_spill] sm:$0xff] %v6437_v28  ;;  %8361 = vst [vmem:[#allocation54_spill] sm:$0xff] %v6439_v8  ;;  %v6456_v31 = vunpack.c.l.b16 %v3753_v63  ;;  %v6458_v19 = vunpack.c.l.b16 %v3767_v14  ;;  %v6460_v54 = vunpack.c.l.b16 %v3781_v45  ;;  %v6462_v60 = vunpack.c.l.b16 %v3795_v4  ;;  %v4950_v7 = vld.sshfl [vmem:[%s6444_s24 + $0x1] sm:$0x1 pattern:$0x75316420] }
  0xb0   : > { %8362 = vst [vmem:[#allocation55_spill] sm:$0xff] %v6446_v43  ;;  %8363 = vst [vmem:[#allocation56_spill] sm:$0xff] %v6448_v41  ;;  %v6464_v0 = vunpack.c.l.b16 %v3809_v17  ;;  %v3855_v46 = vrot.slane %v6429_v51, 1  ;;  %v8150_v33 = vrot.slane %v6433_v61, 7  ;;  %v8154_v27 = vrot.slane %v6435_v38, 6 }
  0xb1   : > { %8364 = vst [vmem:[#allocation57_spill] sm:$0xff] %v6450_v16  ;;  %8365 = vst [vmem:[#allocation58_spill] sm:$0xff] %v6452_v56  ;;  %v4951_v48 = vld.sshfl [vmem:[%s6444_s24 + $0x2] sm:$0x1 pattern:$0x75316420] }
  0xb2   : > { %8366 = vst [vmem:[#allocation59_spill] sm:$0xff] %v6454_v53  ;;  %8367 = vst [vmem:[#allocation60_spill] sm:$0xff] %v6456_v31  ;;  %v4952_v40 = vld.sshfl [vmem:[%s6444_s24 + $0x3] sm:$0x1 pattern:$0x75316420]  ;;  %v3856_v2 = vsel %vm968_vm0, %v6431_v10, %v3855_v46 }
  0xb3   : > { %8368 = vst [vmem:[#allocation61_spill] sm:$0xff] %v6458_v19  ;;  %8369 = vst [vmem:[#allocation62_spill] sm:$0xff] %v6460_v54  ;;  %v8156_v25 = vrot.slane %v6450_v16, 1  ;;  %v3858_v4 = vsel %vm971_vm1, %v8150_v33, %v3856_v2  ;;  %v8372_v51 = vrot.slane %v6437_v28, 5  ;;  %v8373_v37 = vrot.slane %v6454_v53, 7 }
  0xb4   : > { %8370 = vst [vmem:[#allocation63_spill] sm:$0xff] %v6462_v60  ;;  %8371 = vst [vmem:[#allocation64_spill] sm:$0xff] %v6464_v0  ;;  %v4953_v14 = vld.sshfl [vmem:[%s6444_s24 + $0x4] sm:$0x1 pattern:$0x75316420]  ;;  %v3860_v63 = vsel %vm974_vm2, %v8154_v27, %v3858_v4  ;;  %v754_v2 = vrot.slane %v4950_v7, %v5428_v5 }
  0xb5   : > { %v4954_v45 = vld.sshfl [vmem:[%s6444_s24 + $0x5] sm:$0x1 pattern:$0x75316420]  ;;  %v3870_v52 = vsel %vm968_vm0, %v6452_v56, %v8156_v25  ;;  %v3862_v20 = vsel %vm977_vm3, %v8372_v51, %v3860_v63  ;;  %v740_v25 = vrot.slane %v4949_v58, %v5428_v5  ;;  %v8374_v33 = vrot.slane %v6439_v8, 4 }
  0xb6   : > { %v4955_v59 = vld.sshfl [vmem:[%s6444_s24 + $0x6] sm:$0x1 pattern:$0x75316420]  ;;  %v3872_v4 = vsel %vm971_vm1, %v8373_v37, %v3870_v52  ;;  %v8375_v57 = vrot.slane %v6456_v31, 6  ;;  %v768_v63 = vrot.slane %v4951_v48, %v5428_v5  ;;  %v782_v37 = vrot.slane %v4952_v40, %v5428_v5 }
  0xb7   : > { %v4956_v30 = vld.sshfl [vmem:[%s6444_s24 + $0x7] sm:$0x1 pattern:$0x75316420]  ;;  %v3864_v44 = vsel %vm980_vm4, %v8374_v33, %v3862_v20  ;;  %v8376_v52 = vrot.slane %v6446_v43, 3  ;;  %v8377_v58 = vrot.slane %v6458_v19, 5  ;;  %v796_v20 = vrot.slane %v4953_v14, %v5428_v5 }
  0xb8   : > { %v4957_v17 = vld.sshfl [vmem:[%s6444_s24 + $0x8] sm:$0x1 pattern:$0x75316420]  ;;  %v3874_v15 = vsel %vm974_vm2, %v8375_v57, %v3872_v4  ;;  %v810_v33 = vrot.slane %v4954_v45, %v5428_v5  ;;  %v8378_v57 = vrot.slane %v6448_v41, 2  ;;  %v8379_v48 = vrot.slane %v6460_v54, 4 }
  0xb9   : > { %v4958_v46 = vld.sshfl [vmem:[%s6444_s24 + $0x9] sm:$0x1 pattern:$0x75316420]  ;;  %v3866_v62 = vsel %vm983_vm5, %v8376_v52, %v3864_v44  ;;  %v3876_v7 = vsel %vm977_vm3, %v8377_v58, %v3874_v15  ;;  %v824_v44 = vrot.slane %v4955_v59, %v5428_v5  ;;  %v838_v52 = vrot.slane %v4956_v30, %v5428_v5 }
  0xba   : > { %v4959_v23 = vld.sshfl [vmem:[%s6444_s24 + $0xa] sm:$0x1 pattern:$0x75316420]  ;;  %v3868_v4 = vsel %vm986_vm6, %v8378_v57, %v3866_v62  ;;  %v3878_v40 = vsel %vm980_vm4, %v8379_v48, %v3876_v7  ;;  %v8380_v15 = vrot.slane %v6462_v60, 3  ;;  %v852_v14 = vrot.slane %v4957_v17, %v5428_v5 }
  0xbb   : > { %v4960_v27 = vld.sshfl [vmem:[%s6444_s24 + $0xb] sm:$0x1 pattern:$0x75316420]  ;;  %v866_v45 = vrot.slane %v4958_v46, %v5428_v5  ;;  %v880_v36 = vrot.slane %v4959_v23, %v5428_v5  ;;  %v8381_v62 = vrot.slane %v6464_v0, 2  ;;  %v908_v59 = vrot.slane %v4961_v50, %v5428_v5 }
  0xbc   : > { %v4962_v51 = vld.sshfl [vmem:[%s6444_s24 + $0xd] sm:$0x1 pattern:$0x75316420]  ;;  %v3880_v58 = vsel %vm983_vm5, %v8380_v15, %v3878_v40  ;;  %v894_v7 = vrot.slane %v4960_v27, %v5428_v5  ;;  %v950_v40 = vrot.slane %v4964_v22, %v5428_v5  ;;  %v6554_v17 = vunpack.c.l.b16 %v740_v25 }
  0xbd   : > { %v3882_v57 = vsel %vm986_vm6, %v8381_v62, %v3880_v58  ;;  %v922_v30 = vrot.slane %v4962_v51, %v5428_v5  ;;  %v6556_v46 = vunpack.c.l.b16 %v754_v2  ;;  %v6558_v23 = vunpack.c.l.b16 %v768_v63 }
  0xbe   : > { %v3883_v48 = vpack.c.b16 %v3882_v57, %v3868_v4  ;;  %8382 = vst [vmem:[#allocation65_spill] sm:$0xff] %v6554_v17  ;;  %v6560_v15 = vunpack.c.l.b16 %v782_v37  ;;  %v6562_v58 = vunpack.c.l.b16 %v796_v20  ;;  %v6565_v50 = vunpack.c.l.b16 %v810_v33 }
  0xbf   : > { %8383 = vst [vmem:[#allocation66_spill] sm:$0xff] %v6556_v46  ;;  %8384 = vst [vmem:[#allocation67_spill] sm:$0xff] %v6558_v23  ;;  %v6567_v27 = vunpack.c.l.b16 %v824_v44  ;;  %v6569_v21 = vunpack.c.l.b16 %v838_v52  ;;  %v6571_v22 = vunpack.c.l.b16 %v852_v14  ;;  %v6573_v25 = vunpack.c.l.b16 %v866_v45  ;;  %v5075_v44 = vld.sshfl [vmem:[%s6311_s26 + $0x10] sm:$0x1 pattern:$0x75316420] }
  0xc0   : > { %8385 = vst [vmem:[#allocation68_spill] sm:$0xff] %v6560_v15  ;;  %8386 = vst [vmem:[#allocation69_spill] sm:$0xff] %v6562_v58  ;;  %3884 = vrot.lane.b32.xlu1 %v3883_v48, %s5324_s12  ;;  %v6575_v2 = vunpack.c.l.b16 %v880_v36  ;;  %v6577_v51 = vunpack.c.l.b16 %v894_v7  ;;  %v6579_v63 = vunpack.c.l.b16 %v908_v59  ;;  %v6581_v37 = vunpack.c.l.b16 %v922_v30 }
  0xc1   : > { %8387 = vst [vmem:[#allocation70_spill] sm:$0xff] %v6565_v50  ;;  %8388 = vst [vmem:[#allocation71_spill] sm:$0xff] %v6567_v27  ;;  %v6583_v20 = vunpack.c.l.b16 %v936_v18  ;;  %v6585_v33 = vunpack.c.l.b16 %v950_v40  ;;  %v1003_v4 = vrot.slane %v6554_v17, 1  ;;  %v1005_v52 = vrot.slane %v6558_v23, 7 }
  0xc2   : > { %8389 = vst [vmem:[#allocation72_spill] sm:$0xff] %v6569_v21  ;;  %8390 = vst [vmem:[#allocation73_spill] sm:$0xff] %v6571_v22  ;;  %v1007_v14 = vrot.slane %v6560_v15, 6  ;;  %v1009_v36 = vrot.slane %v6562_v58, 5  ;;  %v1011_v45 = vrot.slane %v6565_v50, 4  ;;  %v1013_v57 = vrot.slane %v6567_v27, 3 }
  0xc3   : > { %8391 = vst [vmem:[#allocation74_spill] sm:$0xff] %v6573_v25  ;;  %8392 = vst [vmem:[#allocation75_spill] sm:$0xff] %v6575_v2  ;;  %v1004_v62 = vsel %vm968_vm0, %v6556_v46, %v1003_v4  ;;  %v1015_v18 = vrot.slane %v6569_v21, 2  ;;  %v1017_v7 = vrot.slane %v6571_v22, 1  ;;  %v1019_v30 = vrot.slane %v6575_v2, 7 }
  0xc4   : > { %8393 = vst [vmem:[#allocation76_spill] sm:$0xff] %v6577_v51  ;;  %8394 = vst [vmem:[#allocation77_spill] sm:$0xff] %v6579_v63  ;;  %v1006_v59 = vsel %vm971_vm1, %v1005_v52, %v1004_v62  ;;  %v1021_v48 = vrot.slane %v6577_v51, 6  ;;  %v1023_v40 = vrot.slane %v6579_v63, 5  ;;  %v1025_v55 = vrot.slane %v6581_v37, 4 }
  0xc5   : > { %8395 = vst [vmem:[#allocation78_spill] sm:$0xff] %v6581_v37  ;;  %8396 = vst [vmem:[#allocation79_spill] sm:$0xff] %v6583_v20  ;;  %v1008_v17 = vsel %vm974_vm2, %v1007_v14, %v1006_v59  ;;  %v1018_v4 = vsel %vm968_vm0, %v6573_v25, %v1017_v7  ;;  %v1027_v3 = vrot.slane %v6583_v20, 3  ;;  %v1029_v32 = vrot.slane %v6585_v33, 2 }
  0xc6   : > { %8397 = vst [vmem:[#allocation80_spill] sm:$0xff] %v6585_v33  ;;  %v1010_v34 = vsel %vm977_vm3, %v1009_v36, %v1008_v17  ;;  %v1020_v62 = vsel %vm971_vm1, %v1019_v30, %v1018_v4  ;;  %v3900_v26 = vrot.slane %v5075_v44, %v5428_v5  ;;  %v8398_v12 = vrot.slane %v6433_v61, 7 }
  0xc7   : > { %v1012_v49 = vsel %vm980_vm4, %v1011_v45, %v1010_v34  ;;  %v1022_v59 = vsel %vm974_vm2, %v1021_v48, %v1020_v62  ;;  %v8399_v11 = vrot.slane %v6454_v53, 7  ;;  %v8400_v34 = vrot.slane %v6435_v38, 6  ;;  %v4965_v62 = vld.sshfl [vmem:[%s6444_s24 + $0x10] sm:$0x1 pattern:$0x75316420] }
  0xc8   : > { %v3902_v9 = vsel %vm968_vm0, %v8398_v12, %v6431_v10  ;;  %v1014_v4 = vsel %vm983_vm5, %v1013_v57, %v1012_v49  ;;  %v1024_v47 = vsel %vm977_vm3, %v1023_v40, %v1022_v59  ;;  %v6623_v1 = vunpack.c.l.b16 %v3900_v26 }
  0xc9   : > { %v3909_v17 = vsel %vm968_vm0, %v8399_v11, %v6452_v56  ;;  %v3903_v44 = vsel %vm971_vm1, %v8400_v34, %v3902_v9  ;;  %v1016_v6 = vsel %vm986_vm6, %v1015_v18, %v1014_v4  ;;  %v1026_v12 = vsel %vm980_vm4, %v1025_v55, %v1024_v47 }
  0xca   : > { %v8401_v42 = vrot.slane %v6437_v28, 5  ;;  %v8402_v11 = vrot.slane %v6456_v31, 6  ;;  %v1028_v26 = vsel %vm983_vm5, %v1027_v3, %v1026_v12  ;;  %v8403_v59 = vrot.slane %v6439_v8, 4 }
  0xcb   : > { %v8404_v9 = vrot.slane %v6458_v19, 5  ;;  %v3915_v47 = vrot.slane %v6623_v1, 1  ;;  %v1030_v34 = vsel %vm986_vm6, %v1029_v32, %v1028_v26  ;;  %v1050_v26 = vsel %vm968_vm0, %v1005_v52, %v6556_v46 }
  0xcc   : > { %v3904_v35 = vsel %vm974_vm2, %v8401_v42, %v3903_v44  ;;  %v3910_v49 = vsel %vm971_vm1, %v8402_v11, %v3909_v17  ;;  %v8405_v42 = vrot.slane %v6446_v43, 3  ;;  %v8406_v17 = vrot.slane %v6460_v54, 4 }
  0xcd   : > { %v3905_v39 = vsel %vm977_vm3, %v8403_v59, %v3904_v35  ;;  %v3911_v4 = vsel %vm974_vm2, %v8404_v9, %v3910_v49  ;;  %v1048_v11 = vrot.slane %v4965_v62, %v5428_v5  ;;  %v1031_v29 = vpack.c.b16 %v1030_v34, %v1016_v6 }
  0xce   : > { %v3906_v44 = vsel %vm980_vm4, %v8405_v42, %v3905_v39  ;;  %v3912_v12 = vsel %vm977_vm3, %v8406_v17, %v3911_v4  ;;  %v8407_v35 = vrot.slane %v6448_v41, 2  ;;  %v8408_v49 = vrot.slane %v6462_v60, 3 }
  0xcf   : > { %v8409_v39 = vrot.slane %v6450_v16, 1  ;;  %v8410_v4 = vrot.slane %v6464_v0, 2  ;;  %v6667_v6 = vunpack.c.l.b16 %v1048_v11  ;;  %v1051_v34 = vsel %vm971_vm1, %v1007_v14, %v1050_v26  ;;  %1032 = vrot.lane.b32.xlu0 %v1031_v29, %s5324_s12 }
  0xd0   : > { %v3907_v59 = vsel %vm983_vm5, %v8407_v35, %v3906_v44  ;;  %v3913_v9 = vsel %vm980_vm4, %v8408_v49, %v3912_v12  ;;  %v1052_v17 = vsel %vm974_vm2, %v1009_v36, %v1051_v34  ;;  %v1057_v52 = vsel %vm968_vm0, %v1019_v30, %v6573_v25 }
  0xd1   : > { %v3908_v42 = vsel %vm986_vm6, %v8409_v39, %v3907_v59  ;;  %v3914_v62 = vsel %vm983_vm5, %v8410_v4, %v3913_v9  ;;  %v3920_v12 = vrot.slane %v6431_v10, 1  ;;  %v1053_v59 = vsel %vm977_vm3, %v1011_v45, %v1052_v17 }
  0xd2   : > { %v3916_v44 = vsel %vm986_vm6, %v3915_v47, %v3914_v62  ;;  %v1058_v49 = vsel %vm971_vm1, %v1021_v48, %v1057_v52  ;;  %v1063_v11 = vrot.slane %v6667_v6, 1  ;;  %v1054_v14 = vsel %vm980_vm4, %v1013_v57, %v1053_v59 }
  0xd3   : > { %v3917_v35 = vpack.c.b16 %v3916_v44, %v3908_v42  ;;  %v1059_v29 = vsel %vm974_vm2, %v1023_v40, %v1058_v49  ;;  %v3921_v47 = vsel %vm968_vm0, %v6433_v61, %v3920_v12  ;;  %v8188_v36 = vrot.slane %v6435_v38, 7 }
  0xd4   : > { %v1055_v30 = vsel %vm983_vm5, %v1015_v18, %v1054_v14  ;;  %v1060_v9 = vsel %vm977_vm3, %v1025_v55, %v1059_v29  ;;  %v8187_v45 = vrot.slane %v6437_v28, 6  ;;  %v8186_v48 = vrot.slane %v6439_v8, 5 }
  0xd5   : > { %3918 = vrot.lane.b32.xlu1 %v3917_v35, %s5326_s29  ;;  %v1056_v26 = vsel %vm986_vm6, %v1017_v7, %v1055_v30  ;;  %v1061_v57 = vsel %vm980_vm4, %v1027_v3, %v1060_v9  ;;  %v3923_v40 = vsel %vm971_vm1, %v8188_v36, %v3921_v47  ;;  %v8185_v39 = vrot.slane %v6446_v43, 4 }
  0xd6   : > { %v1062_v42 = vsel %vm983_vm5, %v1029_v32, %v1061_v57  ;;  %v3925_v55 = vsel %vm974_vm2, %v8187_v45, %v3923_v40  ;;  %v8184_v18 = vrot.slane %v6448_v41, 3  ;;  %v8183_v4 = vrot.slane %v6450_v16, 2  ;;  %v4966_v45 = vld.sshfl [vmem:[%s6444_s24 + $0x11] sm:$0x1 pattern:$0x75316420] }
  0xd7   : > { %v1064_v7 = vsel %vm986_vm6, %v1063_v11, %v1062_v42  ;;  %v3927_v3 = vsel %vm977_vm3, %v8186_v48, %v3925_v55  ;;  %v8182_v62 = vrot.slane %v6452_v56, 1  ;;  %v3936_v34 = vrot.slane %v6456_v31, 7 }
  0xd8   : > { %v1065_v44 = vpack.c.b16 %v1064_v7, %v1056_v26  ;;  %v3929_v32 = vsel %vm980_vm4, %v8185_v39, %v3927_v3  ;;  %v3938_v17 = vrot.slane %v6458_v19, 6  ;;  %v3940_v52 = vrot.slane %v6460_v54, 5 }
  0xd9   : > { %v3931_v12 = vsel %vm983_vm5, %v8184_v18, %v3929_v32  ;;  %v3935_v35 = vsel %vm968_vm0, %v6454_v53, %v8182_v62  ;;  %v3942_v59 = vrot.slane %v6462_v60, 4  ;;  %v3944_v49 = vrot.slane %v6464_v0, 3  ;;  %v5076_v18 = vld.sshfl [vmem:[%s6311_s26 + $0x11] sm:$0x1 pattern:$0x75316420] }
  0xda   : > { %1066 = vrot.lane.b32.xlu0 %v1065_v44, %s5326_s29  ;;  %v3933_v11 = vsel %vm986_vm6, %v8183_v4, %v3931_v12  ;;  %v3937_v14 = vsel %vm971_vm1, %v3936_v34, %v3935_v35  ;;  %v3946_v29 = vrot.slane %v6623_v1, 2  ;;  %v1068_v47 = vrot.slane %v6556_v46, 1 }
  0xdb   : > { %v3939_v30 = vsel %vm974_vm2, %v3938_v17, %v3937_v14  ;;  %v1070_v9 = vrot.slane %v6560_v15, 7  ;;  %v1072_v26 = vrot.slane %v6562_v58, 6  ;;  %v1074_v57 = vrot.slane %v6565_v50, 5 }
  0xdc   : > { %v3941_v40 = vsel %vm977_vm3, %v3940_v52, %v3939_v30  ;;  %v1069_v42 = vsel %vm968_vm0, %v6558_v23, %v1068_v47  ;;  %v1076_v55 = vrot.slane %v6567_v27, 4  ;;  %v8190_v7 = vrot.slane %v6569_v21, 3 }
  0xdd   : > { %v3943_v3 = vsel %vm980_vm4, %v3942_v59, %v3941_v40  ;;  %v1071_v44 = vsel %vm971_vm1, %v1070_v9, %v1069_v42  ;;  %v8192_v32 = vrot.slane %v6571_v22, 2  ;;  %v8189_v12 = vrot.slane %v6573_v25, 1 }
  0xde   : > { %v3945_v35 = vsel %vm983_vm5, %v3944_v49, %v3943_v3  ;;  %v1073_v14 = vsel %vm974_vm2, %v1072_v26, %v1071_v44  ;;  %v1084_v30 = vrot.slane %v6577_v51, 7  ;;  %v1086_v47 = vrot.slane %v6579_v63, 6 }
  0xdf   : > { %v3947_v62 = vsel %vm986_vm6, %v3946_v29, %v3945_v35  ;;  %v1075_v4 = vsel %vm977_vm3, %v1074_v57, %v1073_v14  ;;  %v1083_v40 = vsel %vm968_vm0, %v6575_v2, %v8189_v12  ;;  %v1088_v42 = vrot.slane %v6581_v37, 5 }
  0xe0   : > { %v3948_v39 = vpack.c.b16 %v3947_v62, %v3933_v11  ;;  %v1077_v3 = vsel %vm980_vm4, %v1076_v55, %v1075_v4  ;;  %v1085_v44 = vsel %vm971_vm1, %v1084_v30, %v1083_v40  ;;  %v1090_v48 = vrot.slane %v6583_v20, 4 }
  0xe1   : > { %v1079_v35 = vsel %vm983_vm5, %v8190_v7, %v1077_v3  ;;  %v1087_v14 = vsel %vm974_vm2, %v1086_v47, %v1085_v44  ;;  %v1092_v36 = vrot.slane %v6585_v33, 3  ;;  %v1094_v12 = vrot.slane %v6667_v6, 2 }
  0xe2   : > { %3949 = vrot.lane.b32.xlu1 %v3948_v39, %s5323_s30  ;;  %v1081_v4 = vsel %vm986_vm6, %v8192_v32, %v1079_v35  ;;  %v1089_v62 = vsel %vm977_vm3, %v1088_v42, %v1087_v14  ;;  %v3965_v11 = vrot.slane %v5076_v18, %v5428_v5  ;;  %v8411_v40 = vrot.slane %v6435_v38, 7 }
  0xe3   : > { %v1091_v44 = vsel %vm980_vm4, %v1090_v48, %v1089_v62  ;;  %v8412_v7 = vrot.slane %v6437_v28, 6  ;;  %v3974_v39 = vsel %vm968_vm0, %v3936_v34, %v6454_v53  ;;  %v1113_v35 = vrot.slane %v4966_v45, %v5428_v5 }
  0xe4   : > { %v3967_v3 = vsel %vm968_vm0, %v8411_v40, %v6433_v61  ;;  %v1093_v14 = vsel %vm983_vm5, %v1092_v36, %v1091_v44  ;;  %v6781_v32 = vunpack.c.l.b16 %v3965_v11  ;;  %v8413_v18 = vrot.slane %v6439_v8, 5 }
  0xe5   : > { %v3968_v46 = vsel %vm971_vm1, %v8412_v7, %v3967_v3  ;;  %v3975_v40 = vsel %vm971_vm1, %v3938_v17, %v3974_v39  ;;  %v1095_v62 = vsel %vm986_vm6, %v1094_v12, %v1093_v14  ;;  %v8414_v24 = vrot.slane %v6446_v43, 4 }
  0xe6   : > { %v3969_v10 = vsel %vm974_vm2, %v8413_v18, %v3968_v46  ;;  %v3976_v34 = vsel %vm974_vm2, %v3940_v52, %v3975_v40  ;;  %v6792_v45 = vunpack.c.l.b16 %v1113_v35  ;;  %v1096_v3 = vpack.c.b16 %v1095_v62, %v1081_v4 }
  0xe7   : > { %v3970_v7 = vsel %vm977_vm3, %v8414_v24, %v3969_v10  ;;  %v8415_v11 = vrot.slane %v6448_v41, 3  ;;  %v3977_v46 = vsel %vm977_vm3, %v3942_v59, %v3976_v34  ;;  %v3980_v17 = vrot.slane %v6781_v32, 1 }
  0xe8   : > { %v8416_v39 = vrot.slane %v6450_v16, 2  ;;  %v3978_v24 = vsel %vm980_vm4, %v3944_v49, %v3977_v46  ;;  %v1115_v10 = vsel %vm968_vm0, %v1070_v9, %v6558_v23  ;;  %v1122_v52 = vsel %vm968_vm0, %v1084_v30, %v6575_v2  ;;  %1097 = vrot.lane.b32.xlu0 %v1096_v3, %s5323_s30 }
  0xe9   : > { %v3971_v44 = vsel %vm980_vm4, %v8415_v11, %v3970_v7  ;;  %v8417_v4 = vrot.slane %v6452_v56, 1  ;;  %v3979_v35 = vsel %vm983_vm5, %v3946_v29, %v3978_v24  ;;  %v1116_v18 = vsel %vm971_vm1, %v1072_v26, %v1115_v10 }
  0xea   : > { %v3972_v14 = vsel %vm983_vm5, %v8416_v39, %v3971_v44  ;;  %v1123_v40 = vsel %vm971_vm1, %v1086_v47, %v1122_v52  ;;  %v3981_v49 = vsel %vm986_vm6, %v3980_v17, %v3979_v35  ;;  %v1117_v9 = vsel %vm974_vm2, %v1074_v57, %v1116_v18 }
  0xeb   : > { %v3973_v59 = vsel %vm986_vm6, %v8417_v4, %v3972_v14  ;;  %v1124_v30 = vsel %vm974_vm2, %v1088_v42, %v1123_v40  ;;  %v1128_v62 = vrot.slane %v6792_v45, 1  ;;  %v1118_v34 = vsel %vm977_vm3, %v1076_v55, %v1117_v9 }
  0xec   : > { %v3982_v7 = vpack.c.b16 %v3981_v49, %v3973_v59  ;;  %v1125_v3 = vsel %vm977_vm3, %v1090_v48, %v1124_v30  ;;  %v3985_v29 = vrot.slane %v6433_v61, 1  ;;  %v8418_v26 = vrot.slane %v6569_v21, 3 }
  0xed   : > { %v1126_v11 = vsel %vm980_vm4, %v1092_v36, %v1125_v3  ;;  %v3987_v44 = vrot.slane %v6437_v28, 7  ;;  %v3989_v57 = vrot.slane %v6439_v8, 6  ;;  %v8420_v48 = vrot.slane %v6571_v22, 2 }
  0xee   : > { %v1119_v47 = vsel %vm980_vm4, %v8418_v26, %v1118_v34  ;;  %3983 = vrot.lane.b32.xlu1 %v3982_v7, %s8203_s23  ;;  %v1127_v42 = vsel %vm983_vm5, %v1094_v12, %v1126_v11  ;;  %v3986_v36 = vsel %vm968_vm0, %v6435_v38, %v3985_v29  ;;  %v3991_v46 = vrot.slane %v6446_v43, 5 }
  0xef   : > { %v1120_v55 = vsel %vm983_vm5, %v8420_v48, %v1119_v47  ;;  %v8421_v17 = vrot.slane %v6573_v25, 1  ;;  %v1129_v14 = vsel %vm986_vm6, %v1128_v62, %v1127_v42  ;;  %v3988_v24 = vsel %vm971_vm1, %v3987_v44, %v3986_v36 }
  0xf0   : > { %v3993_v10 = vrot.slane %v6448_v41, 4  ;;  %v3990_v12 = vsel %vm974_vm2, %v3989_v57, %v3988_v24  ;;  %v3995_v4 = vrot.slane %v6450_v16, 3  ;;  %v8198_v59 = vrot.slane %v6452_v56, 2 }
  0xf1   : > { %v1121_v39 = vsel %vm986_vm6, %v8421_v17, %v1120_v55  ;;  %v3992_v35 = vsel %vm977_vm3, %v3991_v46, %v3990_v12  ;;  %v8195_v18 = vrot.slane %v6454_v53, 1  ;;  %v4001_v40 = vrot.slane %v6458_v19, 7 }
  0xf2   : > { %v1130_v52 = vpack.c.b16 %v1129_v14, %v1121_v39  ;;  %v4003_v49 = vrot.slane %v6460_v54, 6  ;;  %v3994_v9 = vsel %vm980_vm4, %v3993_v10, %v3992_v35  ;;  %v4005_v30 = vrot.slane %v6462_v60, 5 }
  0xf3   : > { %v4007_v62 = vrot.slane %v6464_v0, 4  ;;  %v8202_v7 = vrot.slane %v6623_v1, 3  ;;  %v3996_v34 = vsel %vm983_vm5, %v3995_v4, %v3994_v9  ;;  %v4000_v3 = vsel %vm968_vm0, %v6456_v31, %v8195_v18 }
  0xf4   : > { %1131 = vrot.lane.b32.xlu0 %v1130_v52, %s8203_s23  ;;  %v8199_v29 = vrot.slane %v6781_v32, 2  ;;  %v1133_v26 = vrot.slane %v6558_v23, 1  ;;  %v3998_v47 = vsel %vm986_vm6, %v8198_v59, %v3996_v34  ;;  %v4002_v11 = vsel %vm971_vm1, %v4001_v40, %v4000_v3  ;;  %s6957_s23 = scalar_lea.vmem %s8096_s6, %s657_s11 }
  0xf5   : > { %v1135_v48 = vrot.slane %v6562_v58, 7  ;;  %v8197_v55 = vrot.slane %v6565_v50, 6  ;;  %v4004_v42 = vsel %vm974_vm2, %v4003_v49, %v4002_v11  ;;  %v8196_v17 = vrot.slane %v6567_v27, 5 }
  0xf6   : > { %v1134_v36 = vsel %vm968_vm0, %v6560_v15, %v1133_v26  ;;  %v8200_v39 = vrot.slane %v6569_v21, 4  ;;  %v4006_v14 = vsel %vm977_vm3, %v4005_v30, %v4004_v42  ;;  %v1143_v52 = vrot.slane %v6571_v22, 3 }
  0xf7   : > { %v1136_v24 = vsel %vm971_vm1, %v1135_v48, %v1134_v36  ;;  %v1145_v12 = vrot.slane %v6573_v25, 2  ;;  %v4008_v35 = vsel %vm980_vm4, %v4007_v62, %v4006_v14  ;;  %v8201_v34 = vrot.slane %v6575_v2, 1  ;;  %v5077_v14 = vld.sshfl [vmem:[%s6311_s26 + $0x12] sm:$0x1 pattern:$0x75316420]  ;;  %s7084_s26 = scalar_lea.vmem %s8092_s2, %s609_s28 }
  0xf8   : > { %v1138_v9 = vsel %vm974_vm2, %v8197_v55, %v1136_v24  ;;  %v1149_v3 = vrot.slane %v6579_v63, 7  ;;  %v4010_v26 = vsel %vm983_vm5, %v8202_v7, %v4008_v35  ;;  %v1151_v42 = vrot.slane %v6581_v37, 6  ;;  %v5007_v25 = vld.sshfl [vmem:[%s7084_s26 + $0xe] sm:$0x1 pattern:$0x75316420] }
  0xf9   : > { %v1140_v11 = vsel %vm977_vm3, %v8196_v17, %v1138_v9  ;;  %v1153_v36 = vrot.slane %v6583_v20, 5  ;;  %v4012_v24 = vsel %vm986_vm6, %v8199_v29, %v4010_v26  ;;  %v1148_v35 = vsel %vm968_vm0, %v6577_v51, %v8201_v34  ;;  %v4967_v17 = vld.sshfl [vmem:[%s6444_s24 + $0x12] sm:$0x1 pattern:$0x75316420] }
  0xfa   : > { %v1142_v18 = vsel %vm980_vm4, %v8200_v39, %v1140_v11  ;;  %v1155_v9 = vrot.slane %v6585_v33, 4  ;;  %v4013_v55 = vpack.c.b16 %v4012_v24, %v3998_v47  ;;  %v1150_v26 = vsel %vm971_vm1, %v1149_v3, %v1148_v35  ;;  %v5002_v33 = vld.sshfl [vmem:[%s7084_s26 + $0x9] sm:$0x1 pattern:$0x75316420] }
  0xfb   : > { %v1144_v59 = vsel %vm983_vm5, %v1143_v52, %v1142_v18  ;;  %v1157_v29 = vrot.slane %v6667_v6, 3  ;;  %v1152_v39 = vsel %vm974_vm2, %v1151_v42, %v1150_v26  ;;  %v1159_v34 = vrot.slane %v6792_v45, 2  ;;  %v5004_v20 = vld.sshfl [vmem:[%s7084_s26 + $0xb] sm:$0x1 pattern:$0x75316420] }
  0xfc   : > { %v1146_v11 = vsel %vm986_vm6, %v1145_v12, %v1144_v59  ;;  %v4030_v7 = vrot.slane %v5077_v14, %v5428_v5  ;;  %4014 = vrot.lane.b32.xlu1 %v4013_v55, %s5328_s25  ;;  %v1154_v18 = vsel %vm977_vm3, %v1153_v36, %v1152_v39  ;;  %v4032_v59 = vsel %vm968_vm0, %v3987_v44, %v6435_v38  ;;  %v5009_v43 = vld.sshfl [vmem:[%s7084_s26 + $0x10] sm:$0x1 pattern:$0x75316420] }
  0xfd   : > { %v4039_v47 = vsel %vm968_vm0, %v4001_v40, %v6456_v31  ;;  %v1178_v24 = vrot.slane %v4967_v17, %v5428_v5  ;;  %v1156_v55 = vsel %vm980_vm4, %v1155_v9, %v1154_v18  ;;  %v4033_v44 = vsel %vm971_vm1, %v3989_v57, %v4032_v59  ;;  %v5081_v59 = vld.sshfl [vmem:[%s6957_s23] sm:$0x1 pattern:$0x75316420] }
  0xfe   : > { %v4031_v39 = vunpack.c.l.b16 %v4030_v7  ;;  %v4040_v40 = vsel %vm971_vm1, %v4003_v49, %v4039_v47  ;;  %v1158_v17 = vsel %vm983_vm5, %v1157_v29, %v1156_v55  ;;  %v4034_v14 = vsel %vm974_vm2, %v3991_v46, %v4033_v44  ;;  %v5082_v47 = vld.sshfl [vmem:[%s6957_s23 + $0x1] sm:$0x1 pattern:$0x75316420] }
  0xff   : > { %v4041_v35 = vsel %vm974_vm2, %v4005_v30, %v4040_v40  ;;  %v1179_v26 = vunpack.c.l.b16 %v1178_v24  ;;  %v1160_v7 = vsel %vm986_vm6, %v1159_v34, %v1158_v17  ;;  %v4035_v57 = vsel %vm977_vm3, %v3993_v10, %v4034_v14  ;;  %v5083_v55 = vld.sshfl [vmem:[%s6957_s23 + $0x2] sm:$0x1 pattern:$0x75316420] }
 0x100   : > { %v4042_v49 = vsel %vm977_vm3, %v4007_v62, %v4041_v35  ;;  %v4045_v18 = vrot.slane %v4031_v39, 1  ;;  %v1161_v46 = vpack.c.b16 %v1160_v7, %v1146_v11  ;;  %v4036_v30 = vsel %vm980_vm4, %v3995_v4, %v4035_v57  ;;  %v5084_v39 = vld.sshfl [vmem:[%s6957_s23 + $0x3] sm:$0x1 pattern:$0x75316420] }
 0x101   : > { %v8423_v24 = vrot.slane %v6623_v1, 3  ;;  %v1180_v62 = vsel %vm968_vm0, %v1135_v48, %v6560_v15  ;;  %v8424_v44 = vrot.slane %v6452_v56, 2  ;;  %v8425_v40 = vrot.slane %v6781_v32, 2 }
 0x102   : > { %v8426_v1 = vrot.slane %v6565_v50, 6  ;;  %v1187_v14 = vsel %vm968_vm0, %v1149_v3, %v6577_v51  ;;  %v5085_v48 = vld.sshfl [vmem:[%s6957_s23 + $0x4] sm:$0x1 pattern:$0x75316420]  ;;  %1162 = vrot.lane.b32.xlu0 %v1161_v46, %s5328_s25  ;;  %v8427_v7 = vrot.slane %v6454_v53, 1 }
 0x103   : > { %v4043_v10 = vsel %vm980_vm4, %v8423_v24, %v4042_v49  ;;  %v4037_v11 = vsel %vm983_vm5, %v8424_v44, %v4036_v30  ;;  %v5086_v35 = vld.sshfl [vmem:[%s6957_s23 + $0x5] sm:$0x1 pattern:$0x75316420]  ;;  %v8428_v49 = vrot.slane %v6567_v27, 5  ;;  %v1188_v3 = vsel %vm971_vm1, %v1151_v42, %v1187_v14 }
 0x104   : > { %v4044_v4 = vsel %vm983_vm5, %v8425_v40, %v4043_v10  ;;  %v1181_v17 = vsel %vm971_vm1, %v8426_v1, %v1180_v62  ;;  %v4038_v32 = vsel %vm986_vm6, %v8427_v7, %v4037_v11  ;;  %v5087_v24 = vld.sshfl [vmem:[%s6957_s23 + $0x6] sm:$0x1 pattern:$0x75316420]  ;;  %v8429_v46 = vrot.slane %v6569_v21, 4 }
 0x105   : > { %v4046_v57 = vsel %vm986_vm6, %v4045_v18, %v4044_v4  ;;  %v1182_v30 = vsel %vm974_vm2, %v8428_v49, %v1181_v17  ;;  %v5088_v10 = vld.sshfl [vmem:[%s6957_s23 + $0x7] sm:$0x1 pattern:$0x75316420]  ;;  %v1189_v11 = vsel %vm974_vm2, %v1153_v36, %v1188_v3  ;;  %v1193_v18 = vrot.slane %v1179_v26, 1 }
 0x106   : > { %v5089_v62 = vld.sshfl [vmem:[%s6957_s23 + $0x8] sm:$0x1 pattern:$0x75316420]  ;;  %v4047_v44 = vpack.c.b16 %v4046_v57, %v4038_v32  ;;  %v1183_v40 = vsel %vm977_vm3, %v8429_v46, %v1182_v30  ;;  %v1190_v17 = vsel %vm977_vm3, %v1155_v9, %v1189_v11  ;;  %v4168_v57 = vrot.slane %v5081_v59, %v5428_v5 }
 0x107   : > { %v5090_v4 = vld.sshfl [vmem:[%s6957_s23 + $0x9] sm:$0x1 pattern:$0x75316420]  ;;  %v1184_v42 = vsel %vm980_vm4, %v1143_v52, %v1183_v40  ;;  %v4182_v36 = vrot.slane %v5082_v47, %v5428_v5  ;;  %v1191_v52 = vsel %vm980_vm4, %v1157_v29, %v1190_v17  ;;  %v4196_v9 = vrot.slane %v5083_v55, %v5428_v5 }
 0x108   : > { %v5091_v1 = vld.sshfl [vmem:[%s6957_s23 + $0xa] sm:$0x1 pattern:$0x75316420]  ;;  %4048 = vrot.lane.b32.xlu1 %v4047_v44, %s5327_s21  ;;  %v1185_v26 = vsel %vm983_vm5, %v1145_v12, %v1184_v42  ;;  %v4210_v30 = vrot.slane %v5084_v39, %v5428_v5  ;;  %v8430_v59 = vrot.slane %v6575_v2, 1  ;;  %v1192_v3 = vsel %vm983_vm5, %v1159_v34, %v1191_v52 }
 0x109   : > { %v5092_v7 = vld.sshfl [vmem:[%s6957_s23 + $0xb] sm:$0x1 pattern:$0x75316420]  ;;  %v4224_v12 = vrot.slane %v5085_v48, %v5428_v5  ;;  %v4238_v6 = vrot.slane %v5086_v35, %v5428_v5  ;;  %v1194_v29 = vsel %vm986_vm6, %v1193_v18, %v1192_v3  ;;  %v4252_v46 = vrot.slane %v5087_v24, %v5428_v5 }
 0x10a   : > { %v5093_v14 = vld.sshfl [vmem:[%s6957_s23 + $0xc] sm:$0x1 pattern:$0x75316420]  ;;  %v1186_v47 = vsel %vm986_vm6, %v8430_v59, %v1185_v26  ;;  %v4266_v55 = vrot.slane %v5088_v10, %v5428_v5  ;;  %v4280_v39 = vrot.slane %v5089_v62, %v5428_v5  ;;  %v4294_v11 = vrot.slane %v5090_v4, %v5428_v5 }
 0x10b   : > { %v5094_v32 = vld.sshfl [vmem:[%s6957_s23 + $0xd] sm:$0x1 pattern:$0x75316420]  ;;  %v1195_v40 = vpack.c.b16 %v1194_v29, %v1186_v47  ;;  %v4308_v45 = vrot.slane %v5091_v1, %v5428_v5  ;;  %v4322_v34 = vrot.slane %v5092_v7, %v5428_v5  ;;  %v4336_v48 = vrot.slane %v5093_v14, %v5428_v5 }
 0x10c   : > { %v5095_v49 = vld.sshfl [vmem:[%s6957_s23 + $0xe] sm:$0x1 pattern:$0x75316420]  ;;  %v4350_v35 = vrot.slane %v5094_v32, %v5428_v5  ;;  %v7073_v10 = vunpack.c.l.b16 %v4168_v57  ;;  %v7075_v62 = vunpack.c.l.b16 %v4182_v36  ;;  %v7077_v42 = vunpack.c.l.b16 %v4196_v9 }
 0x10d   : > { %v5096_v44 = vld.sshfl [vmem:[%s6957_s23 + $0xf] sm:$0x1 pattern:$0x75316420]  ;;  %v4364_v18 = vrot.slane %v5095_v49, %v5428_v5  ;;  %1196 = vrot.lane.b32.xlu0 %v1195_v40, %s5327_s21  ;;  %v7079_v4 = vunpack.c.l.b16 %v4210_v30  ;;  %v7086_v1 = vunpack.c.l.b16 %v4224_v12  ;;  %v7088_v7 = vunpack.c.l.b16 %v4238_v6 }
 0x10e   : > { %v4378_v24 = vrot.slane %v5096_v44, %v5428_v5  ;;  %8431 = vst [vmem:[#allocation81_spill] sm:$0xff] %v7073_v10  ;;  %8432 = vst [vmem:[#allocation82_spill] sm:$0xff] %v7075_v62  ;;  %v7090_v17 = vunpack.c.l.b16 %v4252_v46  ;;  %v7092_v14 = vunpack.c.l.b16 %v4266_v55  ;;  %v7094_v32 = vunpack.c.l.b16 %v4280_v39  ;;  %v4993_v59 = vld.sshfl [vmem:[%s7084_s26] sm:$0x1 pattern:$0x75316420] }
 0x10f   : > { %v7096_v57 = vunpack.c.l.b16 %v4294_v11  ;;  %v7098_v36 = vunpack.c.l.b16 %v4308_v45  ;;  %v7100_v26 = vunpack.c.l.b16 %v4322_v34  ;;  %v7102_v52 = vunpack.c.l.b16 %v4336_v48  ;;  %v4994_v6 = vld.sshfl [vmem:[%s7084_s26 + $0x1] sm:$0x1 pattern:$0x75316420] }
 0x110   : > { %v7104_v49 = vunpack.c.l.b16 %v4350_v35  ;;  %v7106_v9 = vunpack.c.l.b16 %v4364_v18  ;;  %v7108_v30 = vunpack.c.l.b16 %v4378_v24  ;;  %v4424_v47 = vrot.slane %v7073_v10, 1  ;;  %v4995_v29 = vld.sshfl [vmem:[%s7084_s26 + $0x2] sm:$0x1 pattern:$0x75316420] }
 0x111   : > { %v8206_v3 = vrot.slane %v7077_v42, 7  ;;  %v8212_v44 = vrot.slane %v7079_v4, 6  ;;  %v8208_v40 = vrot.slane %v7094_v32, 1  ;;  %v8433_v10 = vrot.slane %v7098_v36, 7 }
 0x112   : > { %v4996_v11 = vld.sshfl [vmem:[%s7084_s26 + $0x3] sm:$0x1 pattern:$0x75316420]  ;;  %v4425_v34 = vsel %vm968_vm0, %v7075_v62, %v4424_v47  ;;  %v1892_v46 = vrot.slane %v4993_v59, %v5428_v5  ;;  %v8434_v12 = vrot.slane %v7086_v1, 5  ;;  %v8435_v22 = vrot.slane %v7100_v26, 6 }
 0x113   : > { %v4997_v45 = vld.sshfl [vmem:[%s7084_s26 + $0x4] sm:$0x1 pattern:$0x75316420]  ;;  %v4427_v39 = vsel %vm971_vm1, %v8206_v3, %v4425_v34  ;;  %v4439_v47 = vsel %vm968_vm0, %v7096_v57, %v8208_v40  ;;  %v8436_v3 = vrot.slane %v7088_v7, 4  ;;  %v8437_v59 = vrot.slane %v7102_v52, 5 }
 0x114   : > { %v4998_v24 = vld.sshfl [vmem:[%s7084_s26 + $0x5] sm:$0x1 pattern:$0x75316420]  ;;  %v4429_v18 = vsel %vm974_vm2, %v8212_v44, %v4427_v39  ;;  %v4441_v34 = vsel %vm971_vm1, %v8433_v10, %v4439_v47  ;;  %v1906_v10 = vrot.slane %v4994_v6, %v5428_v5  ;;  %v1920_v47 = vrot.slane %v4995_v29, %v5428_v5 }
 0x115   : > { %v4999_v55 = vld.sshfl [vmem:[%s7084_s26 + $0x6] sm:$0x1 pattern:$0x75316420]  ;;  %v4431_v37 = vsel %vm977_vm3, %v8434_v12, %v4429_v18  ;;  %v4443_v39 = vsel %vm974_vm2, %v8435_v22, %v4441_v34  ;;  %v1934_v12 = vrot.slane %v4996_v11, %v5428_v5  ;;  %v1948_v18 = vrot.slane %v4997_v45, %v5428_v5 }
 0x116   : > { %v5000_v48 = vld.sshfl [vmem:[%s7084_s26 + $0x7] sm:$0x1 pattern:$0x75316420]  ;;  %v4433_v63 = vsel %vm980_vm4, %v8436_v3, %v4431_v37  ;;  %v4445_v51 = vsel %vm977_vm3, %v8437_v59, %v4443_v39  ;;  %v8438_v22 = vrot.slane %v7090_v17, 3  ;;  %v8439_v6 = vrot.slane %v7104_v49, 4 }
 0x117   : > { %v5001_v35 = vld.sshfl [vmem:[%s7084_s26 + $0x8] sm:$0x1 pattern:$0x75316420]  ;;  %v1962_v37 = vrot.slane %v4998_v24, %v5428_v5  ;;  %v1976_v3 = vrot.slane %v4999_v55, %v5428_v5  ;;  %v8440_v39 = vrot.slane %v7092_v14, 2  ;;  %v8441_v11 = vrot.slane %v7106_v9, 3 }
 0x118   : > { %v5003_v40 = vld.sshfl [vmem:[%s7084_s26 + $0xa] sm:$0x1 pattern:$0x75316420]  ;;  %v4435_v34 = vsel %vm983_vm5, %v8438_v22, %v4433_v63  ;;  %v4447_v29 = vsel %vm980_vm4, %v8439_v6, %v4445_v51  ;;  %v1990_v63 = vrot.slane %v5000_v48, %v5428_v5  ;;  %v2004_v22 = vrot.slane %v5001_v35, %v5428_v5 }
 0x119   : > { %v5005_v44 = vld.sshfl [vmem:[%s7084_s26 + $0xc] sm:$0x1 pattern:$0x75316420]  ;;  %v4437_v59 = vsel %vm986_vm6, %v8440_v39, %v4435_v34  ;;  %v4449_v45 = vsel %vm983_vm5, %v8441_v11, %v4447_v29  ;;  %v8442_v51 = vrot.slane %v7108_v30, 2  ;;  %v2018_v24 = vrot.slane %v5002_v33, %v5428_v5 }
 0x11a   : > { %v5006_v2 = vld.sshfl [vmem:[%s7084_s26 + $0xd] sm:$0x1 pattern:$0x75316420]  ;;  %v2032_v55 = vrot.slane %v5003_v40, %v5428_v5  ;;  %v2046_v27 = vrot.slane %v5004_v20, %v5428_v5  ;;  %v2060_v39 = vrot.slane %v5005_v44, %v5428_v5  ;;  %v2088_v11 = vrot.slane %v5007_v25, %v5428_v5 }
 0x11b   : > { %v5008_v21 = vld.sshfl [vmem:[%s7084_s26 + $0xf] sm:$0x1 pattern:$0x75316420]  ;;  %v4451_v6 = vsel %vm986_vm6, %v8442_v51, %v4449_v45  ;;  %v2074_v29 = vrot.slane %v5006_v2, %v5428_v5  ;;  %v7198_v35 = vunpack.c.l.b16 %v1892_v46  ;;  %v7200_v50 = vunpack.c.l.b16 %v1906_v10 }
 0x11c   : > { %v4452_v34 = vpack.c.b16 %v4451_v6, %v4437_v59  ;;  %v2102_v48 = vrot.slane %v5008_v21, %v5428_v5  ;;  %v7202_v45 = vunpack.c.l.b16 %v1920_v47  ;;  %v7205_v33 = vunpack.c.l.b16 %v1934_v12 }
 0x11d   : > { %8443 = vst [vmem:[#allocation83_spill] sm:$0xff] %v7198_v35  ;;  %8444 = vst [vmem:[#allocation84_spill] sm:$0xff] %v7200_v50  ;;  %v7207_v20 = vunpack.c.l.b16 %v1948_v18  ;;  %v7209_v44 = vunpack.c.l.b16 %v1962_v37  ;;  %v7211_v2 = vunpack.c.l.b16 %v1976_v3  ;;  %v7213_v25 = vunpack.c.l.b16 %v1990_v63  ;;  %v5097_v37 = vld.sshfl [vmem:[%s6957_s23 + $0x10] sm:$0x1 pattern:$0x75316420] }
 0x11e   : > { %4453 = vrot.lane.b32.xlu1 %v4452_v34, %s5324_s12  ;;  %v7215_v21 = vunpack.c.l.b16 %v2004_v22  ;;  %v7217_v46 = vunpack.c.l.b16 %v2018_v24  ;;  %v7219_v40 = vunpack.c.l.b16 %v2032_v55  ;;  %v7221_v10 = vunpack.c.l.b16 %v2046_v27 }
 0x11f   : > { %8445 = vst [vmem:[#allocation85_spill] sm:$0xff] %v7213_v25  ;;  %v7223_v47 = vunpack.c.l.b16 %v2060_v39  ;;  %v7225_v12 = vunpack.c.l.b16 %v2074_v29  ;;  %v7227_v18 = vunpack.c.l.b16 %v2088_v11  ;;  %v7230_v59 = vunpack.c.l.b16 %v2102_v48 }
 0x120   : > { %8446 = vst [vmem:[#allocation86_spill] sm:$0xff] %v7215_v21  ;;  %8447 = vst [vmem:[#allocation87_spill] sm:$0xff] %v7221_v10  ;;  %v2148_v3 = vrot.slane %v7198_v35, 1  ;;  %v2150_v63 = vrot.slane %v7202_v45, 7  ;;  %v2152_v22 = vrot.slane %v7205_v33, 6  ;;  %v2154_v51 = vrot.slane %v7207_v20, 5 }
 0x121   : > { %8448 = vst [vmem:[#allocation88_spill] sm:$0xff] %v7223_v47  ;;  %8449 = vst [vmem:[#allocation89_spill] sm:$0xff] %v7225_v12  ;;  %v2156_v27 = vrot.slane %v7209_v44, 4  ;;  %v2158_v6 = vrot.slane %v7211_v2, 3  ;;  %v2160_v24 = vrot.slane %v7213_v25, 2  ;;  %v8229_v34 = vrot.slane %v7215_v21, 1 }
 0x122   : > { %8450 = vst [vmem:[#allocation90_spill] sm:$0xff] %v7227_v18  ;;  %8451 = vst [vmem:[#allocation91_spill] sm:$0xff] %v7230_v59  ;;  %v2149_v55 = vsel %vm968_vm0, %v7200_v50, %v2148_v3  ;;  %v2164_v39 = vrot.slane %v7219_v40, 7  ;;  %v2166_v29 = vrot.slane %v7221_v10, 6  ;;  %v2168_v48 = vrot.slane %v7223_v47, 5 }
 0x123   : > { %v2151_v11 = vsel %vm971_vm1, %v2150_v63, %v2149_v55  ;;  %v2170_v35 = vrot.slane %v7225_v12, 4  ;;  %v2172_v58 = vrot.slane %v7227_v18, 3  ;;  %v2163_v3 = vsel %vm968_vm0, %v7217_v46, %v8229_v34 }
 0x124   : > { %v2153_v15 = vsel %vm974_vm2, %v2152_v22, %v2151_v11  ;;  %v2174_v23 = vrot.slane %v7230_v59, 2  ;;  %v4469_v0 = vrot.slane %v5097_v37, %v5428_v5  ;;  %v2165_v60 = vsel %vm971_vm1, %v2164_v39, %v2163_v3 }
 0x125   : > { %v2155_v55 = vsel %vm977_vm3, %v2154_v51, %v2153_v15  ;;  %v8452_v54 = vrot.slane %v7077_v42, 7  ;;  %v8453_v11 = vrot.slane %v7098_v36, 7  ;;  %v2167_v31 = vsel %vm974_vm2, %v2166_v29, %v2165_v60 }
 0x126   : > { %v2157_v34 = vsel %vm980_vm4, %v2156_v27, %v2155_v55  ;;  %v7267_v53 = vunpack.c.l.b16 %v4469_v0  ;;  %v8454_v15 = vrot.slane %v7079_v4, 6  ;;  %v2169_v56 = vsel %vm977_vm3, %v2168_v48, %v2167_v31 }
 0x127   : > { %v4471_v16 = vsel %vm968_vm0, %v8452_v54, %v7075_v62  ;;  %v4478_v19 = vsel %vm968_vm0, %v8453_v11, %v7096_v57  ;;  %v2159_v3 = vsel %vm983_vm5, %v2158_v6, %v2157_v34  ;;  %v8455_v54 = vrot.slane %v7086_v1, 5 }
 0x128   : > { %v4472_v37 = vsel %vm971_vm1, %v8454_v15, %v4471_v16  ;;  %v8456_v11 = vrot.slane %v7100_v26, 6  ;;  %v2161_v60 = vsel %vm986_vm6, %v2160_v24, %v2159_v3  ;;  %v2171_v0 = vsel %vm980_vm4, %v2170_v35, %v2169_v56 }
 0x129   : > { %v4473_v41 = vsel %vm974_vm2, %v8455_v54, %v4472_v37  ;;  %v8457_v8 = vrot.slane %v7088_v7, 4  ;;  %v8458_v34 = vrot.slane %v7102_v52, 5  ;;  %v2173_v15 = vsel %vm983_vm5, %v2172_v58, %v2171_v0 }
 0x12a   : > { %v4479_v55 = vsel %vm971_vm1, %v8456_v11, %v4478_v19  ;;  %v8459_v37 = vrot.slane %v7090_v17, 3  ;;  %v8460_v19 = vrot.slane %v7104_v49, 4  ;;  %v4484_v56 = vrot.slane %v7267_v53, 1 }
 0x12b   : > { %v4474_v16 = vsel %vm977_vm3, %v8457_v8, %v4473_v41  ;;  %v4480_v31 = vsel %vm974_vm2, %v8458_v34, %v4479_v55  ;;  %v2175_v11 = vsel %vm986_vm6, %v2174_v23, %v2173_v15  ;;  %v8461_v8 = vrot.slane %v7092_v14, 2 }
 0x12c   : > { %v4475_v54 = vsel %vm980_vm4, %v8459_v37, %v4474_v16  ;;  %v4481_v3 = vsel %vm977_vm3, %v8460_v19, %v4480_v31  ;;  %v8462_v55 = vrot.slane %v7106_v9, 3  ;;  %v2193_v34 = vrot.slane %v5009_v43, %v5428_v5 }
 0x12d   : > { %v4476_v41 = vsel %vm983_vm5, %v8461_v8, %v4475_v54  ;;  %v2176_v28 = vpack.c.b16 %v2175_v11, %v2161_v60  ;;  %v8463_v16 = vrot.slane %v7094_v32, 1  ;;  %v8464_v31 = vrot.slane %v7108_v30, 2 }
 0x12e   : > { %v4482_v0 = vsel %vm980_vm4, %v8462_v55, %v4481_v3  ;;  %v2195_v15 = vsel %vm968_vm0, %v2150_v63, %v7200_v50  ;;  %v7314_v8 = vunpack.c.l.b16 %v2193_v34  ;;  %v2202_v43 = vsel %vm968_vm0, %v2164_v39, %v7217_v46 }
 0x12f   : > { %v4477_v37 = vsel %vm986_vm6, %v8463_v16, %v4476_v41  ;;  %v4483_v19 = vsel %vm983_vm5, %v8464_v31, %v4482_v0  ;;  %v2196_v3 = vsel %vm971_vm1, %v2152_v22, %v2195_v15  ;;  %2177 = vrot.lane.b32.xlu0 %v2176_v28, %s5324_s12  ;;  %v2203_v41 = vsel %vm971_vm1, %v2166_v29, %v2202_v43 }
 0x130   : > { %v4485_v54 = vsel %vm986_vm6, %v4484_v56, %v4483_v19  ;;  %v2197_v11 = vsel %vm974_vm2, %v2154_v51, %v2196_v3  ;;  %v4489_v55 = vrot.slane %v7075_v62, 1  ;;  %v2204_v56 = vsel %vm974_vm2, %v2168_v48, %v2203_v41  ;;  %v5010_v62 = vld.sshfl [vmem:[%s7084_s26 + $0x11] sm:$0x1 pattern:$0x75316420] }
 0x131   : > { %v4486_v60 = vpack.c.b16 %v4485_v54, %v4477_v37  ;;  %v2198_v63 = vsel %vm977_vm3, %v2156_v27, %v2197_v11  ;;  %v2208_v0 = vrot.slane %v7314_v8, 1  ;;  %v8243_v22 = vrot.slane %v7079_v4, 7 }
 0x132   : > { %v2199_v39 = vsel %vm980_vm4, %v2158_v6, %v2198_v63  ;;  %v2205_v28 = vsel %vm977_vm3, %v2170_v35, %v2204_v56  ;;  %v4490_v51 = vsel %vm968_vm0, %v7077_v42, %v4489_v55  ;;  %v8242_v29 = vrot.slane %v7086_v1, 6 }
 0x133   : > { %4487 = vrot.lane.b32.xlu1 %v4486_v60, %s5326_s29  ;;  %v2200_v34 = vsel %vm983_vm5, %v2160_v24, %v2199_v39  ;;  %v2206_v27 = vsel %vm980_vm4, %v2172_v58, %v2205_v28  ;;  %v4492_v48 = vsel %vm971_vm1, %v8243_v22, %v4490_v51  ;;  %v8241_v16 = vrot.slane %v7088_v7, 5 }
 0x134   : > { %v8465_v37 = vrot.slane %v7215_v21, 1  ;;  %v2207_v35 = vsel %vm983_vm5, %v2174_v23, %v2206_v27  ;;  %v4494_v31 = vsel %vm974_vm2, %v8242_v29, %v4492_v48  ;;  %v8240_v24 = vrot.slane %v7090_v17, 4 }
 0x135   : > { %v2209_v58 = vsel %vm986_vm6, %v2208_v0, %v2207_v35  ;;  %v4496_v19 = vsel %vm977_vm3, %v8241_v16, %v4494_v31  ;;  %v8239_v15 = vrot.slane %v7092_v14, 3  ;;  %v8238_v54 = vrot.slane %v7094_v32, 2  ;;  %v5098_v16 = vld.sshfl [vmem:[%s6957_s23 + $0x11] sm:$0x1 pattern:$0x75316420] }
 0x136   : > { %v2201_v6 = vsel %vm986_vm6, %v8465_v37, %v2200_v34  ;;  %v4498_v23 = vsel %vm980_vm4, %v8240_v24, %v4496_v19  ;;  %v8237_v43 = vrot.slane %v7096_v57, 1  ;;  %v4505_v60 = vrot.slane %v7100_v26, 7 }
 0x137   : > { %v2210_v3 = vpack.c.b16 %v2209_v58, %v2201_v6  ;;  %v4500_v11 = vsel %vm983_vm5, %v8239_v15, %v4498_v23  ;;  %v4507_v41 = vrot.slane %v7102_v52, 6  ;;  %v4509_v55 = vrot.slane %v7104_v49, 5  ;;  %v7382_v58 = vpop.permute.xlu1 %2811 }
 0x138   : > { %v4511_v63 = vrot.slane %v7106_v9, 4  ;;  %v4502_v56 = vsel %vm986_vm6, %v8238_v54, %v4500_v11  ;;  %v4504_v0 = vsel %vm968_vm0, %v7098_v36, %v8237_v43  ;;  %v4513_v39 = vrot.slane %v7108_v30, 3  ;;  %8466 = vst [vmem:[#allocation92_spill] sm:$0xff] %v7382_v58 }
 0x139   : > { %2211 = vrot.lane.b32.xlu0 %v2210_v3, %s5326_s29  ;;  %v4515_v28 = vrot.slane %v7267_v53, 2  ;;  %v4506_v51 = vsel %vm971_vm1, %v4505_v60, %v4504_v0  ;;  %v2213_v34 = vrot.slane %v7200_v50, 1  ;;  %v2215_v27 = vrot.slane %v7205_v33, 7  ;;  %s4946_s29 = sshll.u32 %s8615_s13, 1 }
 0x13a   : > { %v2217_v48 = vrot.slane %v7207_v20, 6  ;;  %v4508_v37 = vsel %vm974_vm2, %v4507_v41, %v4506_v51  ;;  %v2219_v6 = vrot.slane %v7209_v44, 5  ;;  %v8248_v35 = vrot.slane %v7211_v2, 4 }
 0x13b   : > { %v8247_v31 = vrot.slane %v7213_v25, 3  ;;  %v4510_v19 = vsel %vm977_vm3, %v4509_v55, %v4508_v37  ;;  %v2214_v3 = vsel %vm968_vm0, %v7202_v45, %v2213_v34  ;;  %v8244_v11 = vrot.slane %v7217_v46, 1 }
 0x13c   : > { %v4512_v0 = vsel %vm980_vm4, %v4511_v63, %v4510_v19  ;;  %v2216_v51 = vsel %vm971_vm1, %v2215_v27, %v2214_v3  ;;  %v2229_v43 = vrot.slane %v7221_v10, 7  ;;  %v2231_v54 = vrot.slane %v7223_v47, 6 }
 0x13d   : > { %v4514_v15 = vsel %vm983_vm5, %v4513_v39, %v4512_v0  ;;  %v2218_v24 = vsel %vm974_vm2, %v2217_v48, %v2216_v51  ;;  %v2228_v34 = vsel %vm968_vm0, %v7219_v40, %v8244_v11  ;;  %v2233_v37 = vrot.slane %v7225_v12, 5 }
 0x13e   : > { %v4516_v19 = vsel %vm986_vm6, %v4515_v28, %v4514_v15  ;;  %v2220_v3 = vsel %vm977_vm3, %v2219_v6, %v2218_v24  ;;  %v2230_v29 = vsel %vm971_vm1, %v2229_v43, %v2228_v34  ;;  %v2235_v22 = vrot.slane %v7227_v18, 4 }
 0x13f   : > { %v4517_v0 = vpack.c.b16 %v4516_v19, %v4502_v56  ;;  %v2222_v51 = vsel %vm980_vm4, %v8248_v35, %v2220_v3  ;;  %v2232_v23 = vsel %vm974_vm2, %v2231_v54, %v2230_v29  ;;  %v2237_v11 = vrot.slane %v7230_v59, 3  ;;  %v7417_v56 = vpop.permute.xlu1 %2845 }
 0x140   : > { %v2224_v50 = vsel %vm983_vm5, %v8247_v31, %v2222_v51  ;;  %v2234_v15 = vsel %vm977_vm3, %v2233_v37, %v2232_v23  ;;  %v2239_v24 = vrot.slane %v7314_v8, 2  ;;  %v4534_v34 = vrot.slane %v5098_v16, %v5428_v5  ;;  %8467 = vst [vmem:[#allocation93_spill] sm:$0xff] %v7417_v56  ;;  %v7443_v56 = vpop.permute.xlu0 %2746 }
 0x141   : > { %4518 = vrot.lane.b32.xlu1 %v4517_v0, %s5323_s30  ;;  %v8468_v19 = vrot.slane %v7215_v21, 2  ;;  %v2236_v3 = vsel %vm980_vm4, %v2235_v22, %v2234_v15  ;;  %v8469_v51 = vrot.slane %v7079_v4, 7  ;;  %v4543_v31 = vsel %vm968_vm0, %v4505_v60, %v7098_v36 }
 0x142   : > { %v2238_v16 = vsel %vm983_vm5, %v2237_v11, %v2236_v3  ;;  %v7431_v35 = vunpack.c.l.b16 %v4534_v34  ;;  %v8470_v0 = vrot.slane %v7086_v1, 6  ;;  %v2258_v60 = vrot.slane %v5010_v62, %v5428_v5 }
 0x143   : > { %v2226_v29 = vsel %vm986_vm6, %v8468_v19, %v2224_v50  ;;  %v4536_v23 = vsel %vm968_vm0, %v8469_v51, %v7077_v42  ;;  %v4544_v50 = vsel %vm971_vm1, %v4507_v41, %v4543_v31  ;;  %v2240_v15 = vsel %vm986_vm6, %v2239_v24, %v2238_v16 }
 0x144   : > { %v4537_v38 = vsel %vm971_vm1, %v8470_v0, %v4536_v23  ;;  %v8471_v19 = vrot.slane %v7088_v7, 5  ;;  %v4545_v51 = vsel %vm974_vm2, %v4509_v55, %v4544_v50  ;;  %v2241_v34 = vpack.c.b16 %v2240_v15, %v2226_v29  ;;  %v7466_v50 = vpop.permute.xlu1 %2910 }
 0x145   : > { %v8472_v3 = vrot.slane %v7090_v17, 4  ;;  %v4546_v23 = vsel %vm977_vm3, %v4511_v63, %v4545_v51  ;;  %v4549_v41 = vrot.slane %v7431_v35, 1  ;;  %v8473_v31 = vrot.slane %v7092_v14, 3 }
 0x146   : > { %v4538_v61 = vsel %vm974_vm2, %v8471_v19, %v4537_v38  ;;  %v4547_v38 = vsel %vm980_vm4, %v4513_v39, %v4546_v23  ;;  %v7454_v55 = vunpack.c.l.b16 %v2258_v60  ;;  %v2260_v62 = vsel %vm968_vm0, %v2215_v27, %v7202_v45  ;;  %2242 = vrot.lane.b32.xlu0 %v2241_v34, %s5323_s30  ;;  %s8478_s30 = smov 12  }
 0x147   : > { %v4539_v58 = vsel %vm977_vm3, %v8472_v3, %v4538_v61  ;;  %v8474_v29 = vrot.slane %v7094_v32, 2  ;;  %v4548_v63 = vsel %vm983_vm5, %v4515_v28, %v4547_v38  ;;  %v2261_v0 = vsel %vm971_vm1, %v2217_v48, %v2260_v62 }
 0x148   : > { %v4540_v16 = vsel %vm980_vm4, %v8473_v31, %v4539_v58  ;;  %v2267_v58 = vsel %vm968_vm0, %v2229_v43, %v7219_v40  ;;  %v8475_v39 = vrot.slane %v7096_v57, 1  ;;  %v4550_v27 = vsel %vm986_vm6, %v4549_v41, %v4548_v63 }
 0x149   : > { %v4541_v61 = vsel %vm983_vm5, %v8474_v29, %v4540_v16  ;;  %v2262_v19 = vsel %vm974_vm2, %v2219_v6, %v2261_v0  ;;  %v2268_v51 = vsel %vm971_vm1, %v2231_v54, %v2267_v58  ;;  %v8476_v28 = vrot.slane %v7211_v2, 4  ;;  %v7485_v54 = vpop.permute.xlu0 %2780 }
 0x14a   : > { %v4542_v15 = vsel %vm986_vm6, %v8475_v39, %v4541_v61  ;;  %v2269_v34 = vsel %vm974_vm2, %v2233_v37, %v2268_v51  ;;  %v2273_v43 = vrot.slane %v7454_v55, 1  ;;  %v8477_v3 = vrot.slane %v7213_v25, 3 }
 0x14b   : > { %v4551_v60 = vpack.c.b16 %v4550_v27, %v4542_v15  ;;  %v2263_v48 = vsel %vm977_vm3, %v8476_v28, %v2262_v19  ;;  %v2270_v31 = vsel %vm977_vm3, %v2235_v22, %v2269_v34  ;;  %v4554_v41 = vrot.slane %v7077_v42, 1  ;;  %v7507_v19 = vpop.permute.xlu1 %3315 }
 0x14c   : > { %v2264_v23 = vsel %vm980_vm4, %v8477_v3, %v2263_v48  ;;  %v8259_v6 = vrot.slane %v7086_v1, 7  ;;  %v8479_v16 = vrot.slane %v7215_v21, 2  ;;  %v2271_v38 = vsel %vm980_vm4, %v2237_v11, %v2270_v31 }
 0x14d   : > { %4552 = vrot.lane.b32.xlu1 %v4551_v60, %s8478_s30  ;;  %v8258_v62 = vrot.slane %v7088_v7, 6  ;;  %v8255_v29 = vrot.slane %v7090_v17, 5  ;;  %v8480_v22 = vrot.slane %v7217_v46, 1  ;;  %v2272_v63 = vsel %vm983_vm5, %v2239_v24, %v2271_v38 }
 0x14e   : > { %v2265_v37 = vsel %vm983_vm5, %v8479_v16, %v2264_v23  ;;  %v4555_v0 = vsel %vm968_vm0, %v7079_v4, %v4554_v41  ;;  %v8254_v58 = vrot.slane %v7092_v14, 4  ;;  %v2274_v39 = vsel %vm986_vm6, %v2273_v43, %v2272_v63 }
 0x14f   : > { %v2266_v61 = vsel %vm986_vm6, %v8480_v22, %v2265_v37  ;;  %v4557_v11 = vsel %vm971_vm1, %v8259_v6, %v4555_v0  ;;  %v8253_v15 = vrot.slane %v7094_v32, 3  ;;  %v8252_v27 = vrot.slane %v7096_v57, 2  ;;  %v7530_v37 = vpop.permute.xlu0 %2876 }
 0x150   : > { %v2275_v51 = vpack.c.b16 %v2274_v39, %v2266_v61  ;;  %v4559_v24 = vsel %vm974_vm2, %v8258_v62, %v4557_v11  ;;  %v8251_v60 = vrot.slane %v7098_v36, 1  ;;  %v4570_v28 = vrot.slane %v7102_v52, 7 }
 0x151   : > { %v4561_v48 = vsel %vm977_vm3, %v8255_v29, %v4559_v24  ;;  %v4572_v34 = vrot.slane %v7104_v49, 6  ;;  %v4574_v43 = vrot.slane %v7106_v9, 5  ;;  %v8256_v3 = vrot.slane %v7108_v30, 4 }
 0x152   : > { %2276 = vrot.lane.b32.xlu0 %v2275_v51, %s8478_s30  ;;  %v4563_v23 = vsel %vm980_vm4, %v8254_v58, %v4561_v48  ;;  %v4569_v31 = vsel %vm968_vm0, %v7100_v26, %v8251_v60  ;;  %v8257_v41 = vrot.slane %v7267_v53, 3  ;;  %v8260_v16 = vrot.slane %v7431_v35, 2  ;;  %v7549_v60 = vpop.permute.xlu1 %3349 }
 0x153   : > { %v4565_v38 = vsel %vm983_vm5, %v8253_v15, %v4563_v23  ;;  %v4571_v22 = vsel %vm971_vm1, %v4570_v28, %v4569_v31  ;;  %v2278_v61 = vrot.slane %v7202_v45, 1  ;;  %v2280_v63 = vrot.slane %v7207_v20, 7 }
 0x154   : > { %v4567_v0 = vsel %vm986_vm6, %v8252_v27, %v4565_v38  ;;  %v4573_v39 = vsel %vm974_vm2, %v4572_v34, %v4571_v22  ;;  %v2282_v11 = vrot.slane %v7209_v44, 6  ;;  %v8261_v51 = vrot.slane %v7211_v2, 5 }
 0x155   : > { %v4575_v24 = vsel %vm977_vm3, %v4574_v43, %v4573_v39  ;;  %v2279_v48 = vsel %vm968_vm0, %v7205_v33, %v2278_v61  ;;  %v8264_v23 = vrot.slane %v7213_v25, 4  ;;  %v8265_v31 = vrot.slane %v7215_v21, 3 }
 0x156   : > { %v4577_v38 = vsel %vm980_vm4, %v8256_v3, %v4575_v24  ;;  %v2281_v22 = vsel %vm971_vm1, %v2280_v63, %v2279_v48  ;;  %v8262_v39 = vrot.slane %v7219_v40, 1  ;;  %v2294_v58 = vrot.slane %v7223_v47, 7 }
 0x157   : > { %v4579_v61 = vsel %vm983_vm5, %v8257_v41, %v4577_v38  ;;  %v2283_v15 = vsel %vm974_vm2, %v2282_v11, %v2281_v22  ;;  %v2296_v29 = vrot.slane %v7225_v12, 6  ;;  %v2298_v38 = vrot.slane %v7227_v18, 5  ;;  %v5099_v22 = vld.sshfl [vmem:[%s6957_s23 + $0x12] sm:$0x1 pattern:$0x75316420]  ;;  %v7575_v41 = vpop.permute.xlu0 %1550 }
 0x158   : > { %v4581_v24 = vsel %vm986_vm6, %v8260_v16, %v4579_v61  ;;  %v2285_v48 = vsel %vm977_vm3, %v8261_v51, %v2283_v15  ;;  %v2293_v3 = vsel %vm968_vm0, %v7221_v10, %v8262_v39  ;;  %v2300_v16 = vrot.slane %v7230_v59, 4  ;;  %v5011_v15 = vld.sshfl [vmem:[%s7084_s26 + $0x12] sm:$0x1 pattern:$0x75316420] }
 0x159   : > { %v4582_v62 = vpack.c.b16 %v4581_v24, %v4567_v0  ;;  %v2287_v6 = vsel %vm980_vm4, %v8264_v23, %v2285_v48  ;;  %v2295_v61 = vsel %vm971_vm1, %v2294_v58, %v2293_v3  ;;  %v2302_v27 = vrot.slane %v7314_v8, 3 }
 0x15a   : > { %v2289_v51 = vsel %vm983_vm5, %v8265_v31, %v2287_v6  ;;  %v2297_v39 = vsel %vm974_vm2, %v2296_v29, %v2295_v61  ;;  %v2304_v18 = vrot.slane %v7454_v55, 2  ;;  %v8481_v0 = vrot.slane %v7217_v46, 2  ;;  %v7599_v61 = vpop.permute.xlu1 %3380 }
 0x15b   : > { %4583 = vrot.lane.b32.xlu1 %v4582_v62, %s5328_s25  ;;  %v2299_v3 = vsel %vm977_vm3, %v2298_v38, %v2297_v39  ;;  %v4599_v48 = vrot.slane %v5099_v22, %v5428_v5  ;;  %v8482_v23 = vrot.slane %v7086_v1, 7  ;;  %v8483_v55 = vrot.slane %v7088_v7, 6  ;;  %v7618_v47 = vpop.permute.xlu0 %1584 }
 0x15c   : > { %v2291_v24 = vsel %vm986_vm6, %v8481_v0, %v2289_v51  ;;  %v2301_v8 = vsel %vm980_vm4, %v2300_v16, %v2299_v3  ;;  %v4608_v51 = vsel %vm968_vm0, %v4570_v28, %v7100_v26  ;;  %v2323_v39 = vrot.slane %v5011_v15, %v5428_v5 }
 0x15d   : > { %v4601_v6 = vsel %vm968_vm0, %v8482_v23, %v7079_v4  ;;  %v2303_v22 = vsel %vm983_vm5, %v2302_v27, %v2301_v8  ;;  %v4600_v0 = vunpack.c.l.b16 %v4599_v48  ;;  %v8484_v31 = vrot.slane %v7090_v17, 5 }
 0x15e   : > { %v4602_v62 = vsel %vm971_vm1, %v8483_v55, %v4601_v6  ;;  %v4609_v59 = vsel %vm971_vm1, %v4572_v34, %v4608_v51  ;;  %v2305_v3 = vsel %vm986_vm6, %v2304_v18, %v2303_v22  ;;  %v8485_v12 = vrot.slane %v7092_v14, 4 }
 0x15f   : > { %v4603_v23 = vsel %vm974_vm2, %v8484_v31, %v4602_v62  ;;  %v4610_v55 = vsel %vm974_vm2, %v4574_v43, %v4609_v59  ;;  %v2324_v28 = vunpack.c.l.b16 %v2323_v39  ;;  %v2306_v5 = vpack.c.b16 %v2305_v3, %v2291_v24 }
 0x160   : > { %v4604_v6 = vsel %vm977_vm3, %v8485_v12, %v4603_v23  ;;  %v8486_v15 = vrot.slane %v7094_v32, 3  ;;  %v8487_v31 = vrot.slane %v7108_v30, 4  ;;  %v4614_v8 = vrot.slane %v4600_v0, 1 }
 0x161   : > { %v8488_v62 = vrot.slane %v7096_v57, 2  ;;  %v8489_v12 = vrot.slane %v7267_v53, 3  ;;  %v2325_v43 = vsel %vm968_vm0, %v2280_v63, %v7205_v33  ;;  %v2332_v24 = vsel %vm968_vm0, %v2294_v58, %v7221_v10  ;;  %2307 = vrot.lane.b32.xlu0 %v2306_v5, %s5328_s25  ;;  %s4947_s25 = sshll.u32 %s8601_s14, 5 }
 0x162   : > { %v4605_v48 = vsel %vm980_vm4, %v8486_v15, %v4604_v6  ;;  %v4611_v34 = vsel %vm977_vm3, %v8487_v31, %v4610_v55  ;;  %v8490_v39 = vrot.slane %v7098_v36, 1  ;;  %v8491_v0 = vrot.slane %v7431_v35, 2  ;;  %v7645_v6 = vpop.permute.xlu1 %3414  ;;  %s667_s27 = sadd.s32 %s4947_s25, %s4946_s29 }
 0x163   : > { %v4606_v51 = vsel %vm983_vm5, %v8488_v62, %v4605_v48  ;;  %v4612_v59 = vsel %vm980_vm4, %v8489_v12, %v4611_v34  ;;  %v2326_v53 = vsel %vm971_vm1, %v2282_v11, %v2325_v43  ;;  %v2333_v3 = vsel %vm971_vm1, %v2296_v29, %v2332_v24  ;;  %v8497_v43 = vld [vmem:[#allocation3_spill] sm:$0xff]  ;;  %s4948_s22 = sshll.u32 %s667_s27, 2 }
 0x164   : > { %v4607_v22 = vsel %vm986_vm6, %v8490_v39, %v4606_v51  ;;  %v4613_v23 = vsel %vm983_vm5, %v8491_v0, %v4612_v59  ;;  %v8492_v58 = vrot.slane %v7211_v2, 5  ;;  %v2334_v5 = vsel %vm974_vm2, %v2298_v38, %v2333_v3  ;;  %v8495_v51 = vld [vmem:[#allocation2_spill] sm:$0xff]  ;;  %v7662_v59 = vpop.permute.xlu0 %1615  ;;  %v8498_v39 = vld [vmem:[#allocation4_spill] sm:$0xff]  ;;  %s669_s11 = scalar_lea.vmem %s8100_s10, %s4948_s22 }
 0x165   : > { %v4615_v63 = vsel %vm986_vm6, %v4614_v8, %v4613_v23  ;;  %v2338_v15 = vrot.slane %v2324_v28, 1  ;;  %v8493_v35 = vrot.slane %v7213_v25, 4  ;;  %v2335_v11 = vsel %vm977_vm3, %v2300_v16, %v2334_v5  ;;  %v8500_v23 = vld [vmem:[#allocation5_spill] sm:$0xff]  ;;  %v8501_v3 = vld [vmem:[#allocation6_spill] sm:$0xff]  ;;  %v8543_v25 = vld [vmem:[#allocation47_spill] sm:$0xff] }
 0x166   : > { %v2327_v55 = vsel %vm974_vm2, %v8492_v58, %v2326_v53  ;;  %v4616_v48 = vpack.c.b16 %v4615_v63, %v4607_v22  ;;  %v8494_v29 = vrot.slane %v7215_v21, 3  ;;  %v2336_v8 = vsel %vm980_vm4, %v2302_v27, %v2335_v11  ;;  %v5268_v11 = vld [vmem:[%s8097_s7 + $0x24] sm:$0xff]   ;;  %v8544_v21 = vld [vmem:[#allocation48_spill] sm:$0xff] }
 0x167   : > { %v2328_v31 = vsel %vm977_vm3, %v8493_v35, %v2327_v55  ;;  %v2688_v62 = vrot.slane %v5443_v13, 7  ;;  %v2690_v12 = vrot.slane %v8495_v51, 6  ;;  %v8496_v38 = vrot.slane %v7217_v46, 2  ;;  %v8502_v55 = vld [vmem:[#allocation7_spill] sm:$0xff]  ;;  %v8504_v35 = vld [vmem:[#allocation10_spill] sm:$0xff]  ;;  %v8506_v51 = vld [vmem:[#allocation12_spill] sm:$0xff] }
 0x168   : > { %v2329_v34 = vsel %vm980_vm4, %v8494_v29, %v2328_v31  ;;  %4617 = vrot.lane.b32.xlu1 %v4616_v48, %s5327_s21  ;;  %v2337_v16 = vsel %vm983_vm5, %v2304_v18, %v2336_v8  ;;  %v2692_v24 = vrot.slane %v8497_v43, 5  ;;  %v2694_v22 = vrot.slane %v8498_v39, 4  ;;  %v8503_v48 = vld [vmem:[#allocation9_spill] sm:$0xff]  ;;  %v7686_v29 = vpop.permute.xlu1 %3445  ;;  %v8508_v43 = vld [vmem:[#allocation14_spill] sm:$0xff] }
 0x169   : > { %v2330_v28 = vsel %vm983_vm5, %v8496_v38, %v2329_v34  ;;  %v8499_v27 = vrot.slane %v7219_v40, 1  ;;  %v2339_v0 = vsel %vm986_vm6, %v2338_v15, %v2337_v16  ;;  %v2696_v53 = vrot.slane %v8500_v23, 3  ;;  %v5270_v15 = vld [vmem:[%s8097_s7 + $0xc] sm:$0xff]  }
 0x16a   : > { %v2698_v63 = vrot.slane %v8501_v3, 2  ;;  %v2700_v5 = vrot.slane %v8502_v55, 1  ;;  %v2702_v18 = vrot.slane %v8503_v48, 7  ;;  %v2704_v31 = vrot.slane %v8504_v35, 6  ;;  %v8505_v34 = vld [vmem:[#allocation11_spill] sm:$0xff]  ;;  %v8511_v3 = vld [vmem:[#allocation16_spill] sm:$0xff] }
 0x16b   : > { %v2331_v13 = vsel %vm986_vm6, %v8499_v27, %v2330_v28  ;;  %v2706_v8 = vrot.slane %v8505_v34, 5  ;;  %v2708_v38 = vrot.slane %v8506_v51, 4  ;;  %v8507_v28 = vld [vmem:[#allocation13_spill] sm:$0xff]  ;;  %v2712_v39 = vrot.slane %v8508_v43, 2  ;;  %v8509_v27 = vld [vmem:[#allocation8_spill] sm:$0xff]  ;;  %v7701_v51 = vpop.permute.xlu0 %1649 }
 0x16c   : > { %v2340_v58 = vpack.c.b16 %v2339_v0, %v2331_v13  ;;  %v2710_v16 = vrot.slane %v8507_v28, 3  ;;  %v2703_v13 = vsel %vm968_vm0, %v2702_v18, %v8509_v27  ;;  %v8510_v0 = vld [vmem:[#allocation15_spill] sm:$0xff]  ;;  %v2689_v55 = vsel %vm968_vm0, %v2688_v62, %v8511_v3  ;;  %v7715_v43 = vpop.permute.xlu1 %3479 }
 0x16d   : > { %v2714_v23 = vrot.slane %v8510_v0, 1  ;;  %v2705_v48 = vsel %vm971_vm1, %v2704_v31, %v2703_v13  ;;  %v2691_v35 = vsel %vm971_vm1, %v2690_v12, %v2689_v55  ;;  %v8271_v34 = vmov 0.0   ;;  %v5269_v62 = vld [vmem:[%s8097_s7 + $0x2c] ss:$0 sps:$4 sm:$0x77]  }
 0x16e   : > { %2341 = vrot.lane.b32.xlu0 %v2340_v58, %s5327_s21  ;;  %5156 = vmatprep.subr.bf16.mxu0 %v8271_v34  ;;  %v2707_v58 = vsel %vm974_vm2, %v2706_v8, %v2705_v48  ;;  %v2693_v18 = vsel %vm974_vm2, %v2692_v24, %v2691_v35  ;;  %v8513_v0 = vld [vmem:[#allocation19_spill] sm:$0xff]  ;;  %v8515_v48 = vld [vmem:[#allocation21_spill] sm:$0xff] }
 0x16f   : > { %5132 = vmatprep.subr.bf16.mxu1 %v8271_v34  ;;  %5157 = vmatpush3.bf16.msra.mxu0 %v5268_v11  ;;  %v2709_v12 = vsel %vm977_vm3, %v2708_v38, %v2707_v58  ;;  %v2695_v31 = vsel %vm977_vm3, %v2694_v22, %v2693_v18  ;;  %v5330_v11 = vmov 65535   ;;  %v3259_v3 = vrot.slane %v8513_v0, 6  ;;  %v7731_v55 = vpop.permute.xlu0 %1680  ;;  %v8516_v58 = vld [vmem:[#allocation22_spill] sm:$0xff]  ;;  %v8522_v0 = vld [vmem:[#allocation28_spill] sm:$0xff] }
 0x170   : > { %5133 = vmatpush3.bf16.msra.mxu1 %v5270_v15  ;;  %5158 = vmatprep.subr.bf16.mxu0 %v8271_v34  ;;  %v2711_v8 = vsel %vm980_vm4, %v2710_v16, %v2709_v12  ;;  %v2697_v24 = vsel %vm980_vm4, %v2696_v53, %v2695_v31  ;;  %v1743_v28 = vsel %vm1741_vm10, 4294967295, %v5330_v11  ;;  %vm1738_vm10 = vcmask 171008   ;;  %v8519_v11 = vld [vmem:[#allocation24_spill] sm:$0xff] }
 0x171   : > { %5134 = vmatprep.subr.bf16.mxu1 %v8271_v34  ;;  %v2713_v15 = vsel %vm983_vm5, %v2712_v39, %v2711_v8  ;;  %v2699_v38 = vsel %vm983_vm5, %v2698_v63, %v2697_v24  ;;  %v7720_v22 = vsel %vm1742_vm11, %v1743_v28, 0  ;;  %5160 = vmatprep.mubr.msk.bf16.mxu0 %vm5331_vm14, %v8271_v34  ;;  %v8512_v63 = vld [vmem:[#allocation18_spill] sm:$0xff]  ;;  %v3263_v35 = vrot.slane %v8515_v48, 4  ;;  %v8518_v8 = vld [vmem:[#allocation17_spill] sm:$0xff]  ;;  %v7749_v48 = vpop.permute.xlu1 %3884 }
 0x172   : > { %v2715_v27 = vsel %vm986_vm6, %v2714_v23, %v2713_v15  ;;  %v2701_v13 = vsel %vm986_vm6, %v2700_v5, %v2699_v38  ;;  %v2937_v16 = vand.u32 %v5269_v62, %v7720_v22  ;;  %5136 = vmatprep.mubr.msk.bf16.mxu1 %vm5331_vm14, %v8271_v34  ;;  %v3257_v39 = vrot.slane %v8512_v63, 7  ;;  %v8514_v5 = vld [vmem:[#allocation20_spill] sm:$0xff]  ;;  %v8517_v62 = vld [vmem:[#allocation23_spill] sm:$0xff]  ;;  %v8520_v15 = vld [vmem:[#allocation26_spill] sm:$0xff] }
 0x173   : > { %v2716_v53 = vpack.c.b16 %v2715_v27, %v2701_v13  ;;  %v3261_v23 = vrot.slane %v8514_v5, 5  ;;  %v3265_v18 = vrot.slane %v8516_v58, 3  ;;  %v3267_v12 = vrot.slane %v8517_v62, 2  ;;  %v8524_v58 = vld [vmem:[#allocation25_spill] sm:$0xff] }
 0x174   : > { %5159 = vmatpush3.bf16.msra.mxu0 %v2937_v16  ;;  %v3258_v24 = vsel %vm968_vm0, %v3257_v39, %v8518_v8  ;;  %v3269_v28 = vrot.slane %v8519_v11, 1  ;;  %v3271_v38 = vrot.slane %v8520_v15, 7  ;;  %v8521_v16 = vld [vmem:[#allocation27_spill] sm:$0xff]  ;;  %v3275_v5 = vrot.slane %v8522_v0, 5  ;;  %v8525_v8 = vld [vmem:[#allocation29_spill] sm:$0xff] }
 0x175   : > { %v2914_v31 = vsel %vm1198_vm7, %v2716_v53, %v7443_v56  ;;  %5164 = vmatprep.subr.bf16.mxu0 %v8271_v34  ;;  %v3260_v13 = vsel %vm971_vm1, %v3259_v3, %v3258_v24  ;;  %v3273_v63 = vrot.slane %v8521_v16, 6  ;;  %v8523_v56 = vld [vmem:[#allocation92_spill] sm:$0xff]  ;;  %v3277_v11 = vrot.slane %v8525_v8, 4  ;;  %v8526_v15 = vld [vmem:[#allocation93_spill] sm:$0xff]  ;;  %v8527_v24 = vld [vmem:[#allocation30_spill] sm:$0xff] }
 0x176   : > { %v2916_v27 = vsel %vm1202_vm8, %v2914_v31, %v7485_v54  ;;  %v3262_v39 = vsel %vm974_vm2, %v3261_v23, %v3260_v13  ;;  %v3272_v62 = vsel %vm968_vm0, %v3271_v38, %v8524_v58  ;;  %v3279_v16 = vrot.slane %v8527_v24, 3  ;;  %v8528_v0 = vld [vmem:[#allocation31_spill] sm:$0xff]  ;;  %v8529_v58 = vld [vmem:[#allocation32_spill] sm:$0xff]  ;;  %v8533_v24 = vld [vmem:[#allocation37_spill] sm:$0xff] }
 0x177   : > { %v2918_v53 = vsel %vm1205_vm9, %v2916_v27, %v8523_v56  ;;  %v3264_v3 = vsel %vm977_vm3, %v3263_v35, %v3262_v39  ;;  %v3274_v31 = vsel %vm971_vm1, %v3273_v63, %v3272_v62  ;;  %v5271_v27 = vld [vmem:[%s8097_s7 + $0x30] sm:$0xff]   ;;  %v3281_v56 = vrot.slane %v8528_v0, 2 }
 0x178   : > { %v2920_v54 = vsel %vm1208_vm12, %v2918_v53, %v8526_v15  ;;  %v3266_v38 = vsel %vm980_vm4, %v3265_v18, %v3264_v3  ;;  %v3276_v13 = vsel %vm974_vm2, %v3275_v5, %v3274_v31  ;;  %v7770_v53 = vpop.permute.xlu0 %1714  ;;  %v3283_v62 = vrot.slane %v8529_v58, 1  ;;  %v8530_v5 = vld [vmem:[#allocation34_spill] sm:$0xff]  ;;  %v8531_v15 = vld [vmem:[#allocation35_spill] sm:$0xff]  ;;  %v8532_v31 = vld [vmem:[#allocation36_spill] sm:$0xff] }
 0x179   : > { %v2922_v23 = vsel %vm1211_vm13, %v2920_v54, %v7530_v37  ;;  %v3268_v63 = vsel %vm983_vm5, %v3267_v12, %v3266_v38  ;;  %v3278_v39 = vsel %vm977_vm3, %v3277_v11, %v3276_v13  ;;  %v1492_v8 = vrot.slane %v8530_v5, 7  ;;  %v5272_v38 = vld [vmem:[%s8097_s7 + $0x14] ss:$0 sps:$4 sm:$0x77]   ;;  %v8535_v13 = vld [vmem:[#allocation39_spill] sm:$0xff] }
 0x17a   : > { %v2924_v35 = vsel %vm1214_vm15, %v2922_v23, %v7466_v50  ;;  %v3270_v37 = vsel %vm986_vm6, %v3269_v28, %v3268_v63  ;;  %v3280_v18 = vsel %vm980_vm4, %v3279_v16, %v3278_v39  ;;  %v1494_v54 = vrot.slane %v8531_v15, 6  ;;  %v8534_v23 = vld [vmem:[#allocation38_spill] sm:$0xff]  ;;  %v7791_v28 = vpop.permute.xlu1 %3918  ;;  %v8539_v15 = vld [vmem:[#allocation44_spill] sm:$0xff] }
 0x17b   : > { %5161 = vmatmul.mubr.msk.bf16.vlgmr.msra.gmra.mrb[0].mxu0 %vm1738_vm10, %v2924_v35  ;;  %v3282_v3 = vsel %vm983_vm5, %v3281_v56, %v3280_v18  ;;  %v1496_v50 = vrot.slane %v8532_v31, 5  ;;  %v1498_v12 = vrot.slane %v8533_v24, 4  ;;  %v1500_v11 = vrot.slane %v8534_v23, 3  ;;  %v8536_v56 = vld [vmem:[#allocation40_spill] sm:$0xff]  ;;  %v8537_v63 = vld [vmem:[#allocation42_spill] sm:$0xff]  ;;  %v8538_v18 = vld [vmem:[#allocation43_spill] sm:$0xff] }
 0x17c   : > { %5165 = vmatpush3.bf16.msra.mxu0 %v5271_v27  ;;  %5168 = vmatprep.mubr.msk.bf16.mxu0 %vm5331_vm14, %v8271_v34  ;;  %v3284_v16 = vsel %vm986_vm6, %v3283_v62, %v3282_v3  ;;  %v1502_v0 = vrot.slane %v8535_v13, 2  ;;  %v1504_v35 = vrot.slane %v8536_v56, 1  ;;  %v1506_v39 = vrot.slane %v8537_v63, 7  ;;  %v5273_v27 = vld [vmem:[%s8097_s7 + $0x38] ss:$0 sps:$4 sm:$0x77]   ;;  %v7809_v10 = vpop.permute.xlu0 %1032 }
 0x17d   : > { %5166 = vmatprep.subr.bf16.mxu0 %v8271_v34  ;;  %v3285_v58 = vpack.c.b16 %v3284_v16, %v3270_v37  ;;  %v1508_v5 = vrot.slane %v8538_v18, 6  ;;  %v1510_v31 = vrot.slane %v8539_v15, 5  ;;  %v8540_v24 = vld [vmem:[#allocation45_spill] sm:$0xff]  ;;  %v8542_v13 = vld [vmem:[#allocation46_spill] sm:$0xff]  ;;  %v1516_v63 = vrot.slane %v8543_v25, 2 }
 0x17e   : > { %v1512_v23 = vrot.slane %v8540_v24, 4  ;;  %v8541_v62 = vld [vmem:[#allocation41_spill] sm:$0xff]  ;;  %v1514_v56 = vrot.slane %v8542_v13, 3  ;;  %v1518_v34 = vrot.slane %v8544_v21, 1  ;;  %v1746_v24 = vand.u32 %v5272_v38, %v7720_v22  ;;  %v7827_v38 = vpop.permute.xlu1 %3949 }
 0x17f   : > { %v1507_v3 = vsel %vm968_vm0, %v1506_v39, %v8541_v62  ;;  %v3483_v37 = vsel %vm1198_vm7, %v3285_v58, %v7507_v19  ;;  %v8545_v18 = vld [vmem:[#allocation33_spill] sm:$0xff]  ;;  %v3506_v21 = vand.u32 %v5273_v27, %v7720_v22  ;;  %v8547_v27 = vld [vmem:[#allocation51_spill] sm:$0xff] }
 0x180   : > { %v1509_v16 = vsel %vm971_vm1, %v1508_v5, %v1507_v3  ;;  %v1493_v15 = vsel %vm968_vm0, %v1492_v8, %v8545_v18  ;;  %v3485_v25 = vsel %vm1202_vm8, %v3483_v37, %v7549_v60  ;;  %5135 = vmatpush3.bf16.msra.mxu1 %v1746_v24  ;;  %v8546_v8 = vld [vmem:[#allocation50_spill] sm:$0xff]  ;;  %v8548_v3 = vmov 0.0   ;;  %v8550_v24 = vld [vmem:[#allocation52_spill] sm:$0xff] }
 0x181   : > { %v1511_v39 = vsel %vm974_vm2, %v1510_v31, %v1509_v16  ;;  %v1495_v62 = vsel %vm971_vm1, %v1494_v54, %v1493_v15  ;;  %v3487_v58 = vsel %vm1205_vm9, %v3485_v25, %v7599_v61  ;;  %v3826_v5 = vrot.slane %v8546_v8, 7  ;;  %5167 = vmatpush3.bf16.msra.mxu0 %v3506_v21  ;;  %5140 = vmatprep.subr.bf16.mxu1 %v8548_v3  ;;  %v8549_v16 = vld [vmem:[#allocation49_spill] sm:$0xff]  ;;  %v7850_v15 = vpop.permute.xlu0 %1066  ;;  %v8552_v21 = vld [vmem:[#allocation54_spill] sm:$0xff] }
 0x182   : > { %v1513_v13 = vsel %vm977_vm3, %v1512_v23, %v1511_v39  ;;  %v1497_v19 = vsel %vm974_vm2, %v1496_v50, %v1495_v62  ;;  %v3489_v60 = vsel %vm1208_vm12, %v3487_v58, %v7645_v6  ;;  %v3828_v23 = vrot.slane %v8547_v27, 6  ;;  %5172 = vmatprep.subr.bf16.mxu0 %v8548_v3  ;;  %v5275_v6 = vld [vmem:[%s8097_s7 + $0x3c] sm:$0xff]   ;;  %v8554_v58 = vld [vmem:[#allocation56_spill] sm:$0xff] }
 0x183   : > { %v1515_v31 = vsel %vm980_vm4, %v1514_v56, %v1513_v13  ;;  %v1499_v54 = vsel %vm977_vm3, %v1498_v12, %v1497_v19  ;;  %v3491_v37 = vsel %vm1211_vm13, %v3489_v60, %v7686_v29  ;;  %v3827_v56 = vsel %vm968_vm0, %v3826_v5, %v8549_v16  ;;  %v8551_v62 = vld [vmem:[#allocation53_spill] sm:$0xff] }
 0x184   : > { %v1517_v50 = vsel %vm983_vm5, %v1516_v63, %v1515_v31  ;;  %v1501_v61 = vsel %vm980_vm4, %v1500_v11, %v1499_v54  ;;  %v3493_v63 = vsel %vm1214_vm15, %v3491_v37, %v7715_v43  ;;  %v3829_v11 = vsel %vm971_vm1, %v3828_v23, %v3827_v56  ;;  %v8555_v43 = vld [vmem:[#allocation58_spill] sm:$0xff]  ;;  %v8556_v54 = vld [vmem:[#allocation59_spill] sm:$0xff]  ;;  %v8558_v23 = vld [vmem:[#allocation61_spill] sm:$0xff] }
 0x185   : > { %v1519_v12 = vsel %vm986_vm6, %v1518_v34, %v1517_v50  ;;  %v1503_v18 = vsel %vm983_vm5, %v1502_v0, %v1501_v61  ;;  %v3830_v39 = vrot.slane %v8550_v24, 5  ;;  %v3832_v25 = vrot.slane %v8551_v62, 4  ;;  %v8553_v34 = vld [vmem:[#allocation55_spill] sm:$0xff]  ;;  %v7864_v61 = vpop.permute.xlu1 %3983  ;;  %v8559_v56 = vld [vmem:[#allocation57_spill] sm:$0xff] }
 0x186   : > { %v1505_v29 = vsel %vm986_vm6, %v1504_v35, %v1503_v18  ;;  %v3834_v13 = vrot.slane %v8552_v21, 3  ;;  %v3836_v0 = vrot.slane %v8553_v34, 2  ;;  %v3838_v8 = vrot.slane %v8554_v58, 1  ;;  %v8557_v35 = vld [vmem:[#allocation60_spill] sm:$0xff]  ;;  %v8560_v18 = vld [vmem:[#allocation62_spill] sm:$0xff]  ;;  %v8561_v24 = vld [vmem:[#allocation63_spill] sm:$0xff]  ;;  %v7885_v34 = vpop.permute.xlu0 %1097 }
 0x187   : > { %v1520_v19 = vpack.c.b16 %v1519_v12, %v1505_v29  ;;  %5169 = vmatmul.mubr.msk.bf16.vlgmr.msra.gmra.mrb[0].mxu0 %vm1738_vm10, %v3493_v63  ;;  %v3840_v5 = vrot.slane %v8555_v43, 7  ;;  %v3831_v31 = vsel %vm974_vm2, %v3830_v39, %v3829_v11  ;;  %v3842_v60 = vrot.slane %v8556_v54, 6  ;;  %v8562_v21 = vld [vmem:[#allocation64_spill] sm:$0xff]  ;;  %v8563_v43 = vld [vmem:[#allocation66_spill] sm:$0xff]  ;;  %v8564_v54 = vld [vmem:[#allocation67_spill] sm:$0xff] }
 0x188   : > { %v3844_v27 = vrot.slane %v8557_v35, 5  ;;  %v3846_v50 = vrot.slane %v8558_v23, 4  ;;  %5173 = vmatpush3.bf16.msra.mxu0 %v5275_v6  ;;  %5176 = vmatprep.mubr.msk.bf16.mxu0 %vm5331_vm14, %v8548_v3  ;;  %v3833_v16 = vsel %vm977_vm3, %v3832_v25, %v3831_v31  ;;  %v3848_v63 = vrot.slane %v8560_v18, 3  ;;  %v8565_v35 = vld [vmem:[#allocation68_spill] sm:$0xff]  ;;  %v8566_v23 = vld [vmem:[#allocation69_spill] sm:$0xff]  ;;  %v8568_v18 = vld [vmem:[#allocation71_spill] sm:$0xff] }
 0x189   : > { %v1718_v37 = vsel %vm1198_vm7, %v1520_v19, %v7575_v41  ;;  %v3841_v12 = vsel %vm968_vm0, %v3840_v5, %v8559_v56  ;;  %5174 = vmatprep.subr.bf16.mxu0 %v8548_v3  ;;  %v3835_v6 = vsel %vm980_vm4, %v3834_v13, %v3833_v16  ;;  %v3850_v39 = vrot.slane %v8561_v24, 2  ;;  %v4015_v56 = vpop.permute.xlu1 %4014  ;;  %v5277_v24 = vld [vmem:[%s8097_s7 + $0x44] ss:$0 sps:$4 sm:$0x77]  }
 0x18a   : > { %v1720_v11 = vsel %vm1202_vm8, %v1718_v37, %v7618_v47  ;;  %v3843_v29 = vsel %vm971_vm1, %v3842_v60, %v3841_v12  ;;  %v3837_v62 = vsel %vm983_vm5, %v3836_v0, %v3835_v6  ;;  %v3852_v19 = vrot.slane %v8562_v21, 1  ;;  %v8567_v37 = vld [vmem:[#allocation70_spill] sm:$0xff] }
 0x18b   : > { %v1722_v41 = vsel %vm1205_vm9, %v1720_v11, %v7662_v59  ;;  %v3845_v25 = vsel %vm974_vm2, %v3844_v27, %v3843_v29  ;;  %v3839_v13 = vsel %vm986_vm6, %v3838_v8, %v3837_v62  ;;  %v967_v5 = vrot.slane %v8563_v43, 7  ;;  %v5274_v59 = vld [vmem:[%s8097_s7] sm:$0xff]   ;;  %v8569_v11 = vld [vmem:[#allocation72_spill] sm:$0xff] }
 0x18c   : > { %v1724_v47 = vsel %vm1208_vm12, %v1722_v41, %v7701_v51  ;;  %v3847_v58 = vsel %vm977_vm3, %v3846_v50, %v3845_v25  ;;  %v970_v60 = vrot.slane %v8564_v54, 6  ;;  %v973_v27 = vrot.slane %v8565_v35, 5  ;;  %v8571_v41 = vld [vmem:[#allocation75_spill] sm:$0xff]  ;;  %v8572_v25 = vld [vmem:[#allocation76_spill] sm:$0xff] }
 0x18d   : > { %v1726_v0 = vsel %vm1211_vm13, %v1724_v47, %v7731_v55  ;;  %v3849_v31 = vsel %vm980_vm4, %v3848_v63, %v3847_v58  ;;  %v976_v50 = vrot.slane %v8566_v23, 4  ;;  %v979_v16 = vrot.slane %v8567_v37, 3  ;;  %v5276_v55 = vld [vmem:[%s8097_s7 + $0x8] ss:$0 sps:$4 sm:$0x77]   ;;  %v8573_v47 = vld [vmem:[#allocation77_spill] sm:$0xff] }
 0x18e   : > { %v1728_v51 = vsel %vm1214_vm15, %v1726_v0, %v7770_v53  ;;  %v3851_v8 = vsel %vm983_vm5, %v3850_v39, %v3849_v31  ;;  %v982_v63 = vrot.slane %v8568_v18, 2  ;;  %v985_v6 = vrot.slane %v8569_v11, 1  ;;  %v8570_v53 = vld [vmem:[#allocation74_spill] sm:$0xff]  ;;  %v8576_v54 = vld [vmem:[#allocation79_spill] sm:$0xff]  ;;  %v8578_v37 = vld [vmem:[#allocation65_spill] sm:$0xff] }
 0x18f   : > { %5137 = vmatmul.mubr.msk.bf16.vlgmr.msra.gmra.mrb[0].mxu1 %vm1738_vm10, %v1728_v51  ;;  %v3853_v12 = vsel %vm986_vm6, %v3852_v19, %v3851_v8  ;;  %v988_v29 = vrot.slane %v8570_v53, 7  ;;  %v990_v62 = vrot.slane %v8571_v41, 6  ;;  %v992_v21 = vrot.slane %v8572_v25, 5  ;;  %v8574_v19 = vld [vmem:[#allocation73_spill] sm:$0xff]  ;;  %v8575_v0 = vld [vmem:[#allocation78_spill] sm:$0xff]  ;;  %v8577_v51 = vld [vmem:[#allocation80_spill] sm:$0xff] }
 0x190   : > { %v3854_v39 = vpack.c.b16 %v3853_v12, %v3839_v13  ;;  %v994_v58 = vrot.slane %v8573_v47, 4  ;;  %5141 = vmatpush3.bf16.msra.mxu1 %v5274_v59  ;;  %5144 = vmatprep.mubr.msk.bf16.mxu1 %vm5331_vm14, %v8548_v3  ;;  %v996_v31 = vrot.slane %v8575_v0, 3  ;;  %v998_v35 = vrot.slane %v8576_v54, 2  ;;  %v7926_v13 = vpop.permute.xlu0 %1131 }
 0x191   : > { %v989_v43 = vsel %vm968_vm0, %v988_v29, %v8574_v19  ;;  %v1000_v8 = vrot.slane %v8577_v51, 1  ;;  %5142 = vmatprep.subr.bf16.mxu1 %v8548_v3  ;;  %v969_v12 = vsel %vm968_vm0, %v967_v5, %v8578_v37  ;;  %v1801_v18 = vand.u32 %v5276_v55, %v7720_v22  ;;  %v4049_v5 = vpop.permute.xlu1 %4048  ;;  %v8580_v19 = vld [vmem:[#allocation81_spill] sm:$0xff] }
 0x192   : > { %v4052_v23 = vsel %vm1198_vm7, %v3854_v39, %v7749_v48  ;;  %v991_v59 = vsel %vm971_vm1, %v990_v62, %v989_v43  ;;  %v972_v53 = vsel %vm971_vm1, %v970_v60, %v969_v12  ;;  %v4075_v41 = vand.u32 %v5277_v24, %v7720_v22  ;;  %v8579_v62 = vld [vmem:[#allocation82_spill] sm:$0xff] }
 0x193   : > { %v993_v11 = vsel %vm974_vm2, %v992_v21, %v991_v59  ;;  %v4054_v29 = vsel %vm1202_vm8, %v4052_v23, %v7791_v28  ;;  %v975_v48 = vsel %vm974_vm2, %v973_v27, %v972_v53  ;;  %v4395_v55 = vrot.slane %v8579_v62, 7 }
 0x194   : > { %v995_v25 = vsel %vm977_vm3, %v994_v58, %v993_v11  ;;  %v4056_v39 = vsel %vm1205_vm9, %v4054_v29, %v7827_v38  ;;  %5143 = vmatpush3.bf16.msra.mxu1 %v1801_v18  ;;  %v978_v60 = vsel %vm977_vm3, %v976_v50, %v975_v48  ;;  %5175 = vmatpush3.bf16.msra.mxu0 %v4075_v41  ;;  %v4397_v24 = vrot.slane %v7077_v42, 6  ;;  %v5279_v38 = vld [vmem:[%s8097_s7 + $0x48] sm:$0xff]   ;;  %v1163_v43 = vpop.permute.xlu0 %1162  ;;  %v8581_v29 = vld [vmem:[#allocation84_spill] sm:$0xff] }
 0x195   : > { %v997_v21 = vsel %vm980_vm4, %v996_v31, %v995_v25  ;;  %v4058_v28 = vsel %vm1208_vm12, %v4056_v39, %v7864_v61  ;;  %5148 = vmatprep.subr.bf16.mxu1 %v8548_v3  ;;  %v981_v47 = vsel %vm980_vm4, %v979_v16, %v978_v60  ;;  %v4396_v50 = vsel %vm968_vm0, %v4395_v55, %v8580_v19 }
 0x196   : > { %v999_v27 = vsel %vm983_vm5, %v998_v35, %v997_v21  ;;  %v4060_v58 = vsel %vm1211_vm13, %v4058_v28, %v4015_v56  ;;  %5180 = vmatprep.subr.bf16.mxu0 %v8548_v3  ;;  %v984_v42 = vsel %vm983_vm5, %v982_v63, %v981_v47  ;;  %v4398_v31 = vsel %vm971_vm1, %v4397_v24, %v4396_v50 }
 0x197   : > { %v1001_v61 = vsel %vm986_vm6, %v1000_v8, %v999_v27  ;;  %v4062_v0 = vsel %vm1214_vm15, %v4060_v58, %v4049_v5  ;;  %v987_v54 = vsel %vm986_vm6, %v985_v6, %v984_v42  ;;  %v4399_v16 = vrot.slane %v7079_v4, 5  ;;  %v8582_v5 = vld [vmem:[#allocation83_spill] sm:$0xff]  ;;  %v8584_v58 = vld [vmem:[#allocation88_spill] sm:$0xff]  ;;  %v8585_v42 = vld [vmem:[#allocation86_spill] sm:$0xff] }
 0x198   : > { %5177 = vmatmul.mubr.msk.bf16.vlgmr.msra.gmra.mrb[0].mxu0 %vm1738_vm10, %v4062_v0  ;;  %v4401_v56 = vrot.slane %v7086_v1, 4  ;;  %v4403_v35 = vrot.slane %v7088_v7, 3  ;;  %v1002_v51 = vpack.c.b16 %v1001_v61, %v987_v54  ;;  %v4405_v8 = vrot.slane %v7090_v17, 2  ;;  %v8583_v27 = vld [vmem:[#allocation87_spill] sm:$0xff]  ;;  %v8586_v0 = vld [vmem:[#allocation89_spill] sm:$0xff] }
 0x199   : > { %v4407_v63 = vrot.slane %v7092_v14, 1  ;;  %v4409_v23 = vrot.slane %v7096_v57, 7  ;;  %5181 = vmatpush3.bf16.msra.mxu0 %v5279_v38  ;;  %5184 = vmatprep.mubr.msk.bf16.mxu0 %vm5331_vm14, %v8548_v3  ;;  %v4400_v6 = vsel %vm974_vm2, %v4399_v16, %v4398_v31  ;;  %v4411_v59 = vrot.slane %v7098_v36, 6  ;;  %v8587_v16 = vld [vmem:[#allocation85_spill] sm:$0xff] }
 0x19a   : > { %v4413_v4 = vrot.slane %v7100_v26, 5  ;;  %v4415_v1 = vrot.slane %v7102_v52, 4  ;;  %5182 = vmatprep.subr.bf16.mxu0 %v8548_v3  ;;  %v1201_v7 = vsel %vm1198_vm7, %v1002_v51, %v7809_v10  ;;  %v4402_v17 = vsel %vm977_vm3, %v4401_v56, %v4400_v6  ;;  %v1197_v10 = vpop.permute.xlu0 %1196 }
 0x19b   : > { %v4410_v14 = vsel %vm968_vm0, %v4409_v23, %v7094_v32  ;;  %v4417_v57 = vrot.slane %v7104_v49, 3  ;;  %v1204_v37 = vsel %vm1202_vm8, %v1201_v7, %v7850_v15  ;;  %v4404_v36 = vsel %vm980_vm4, %v4403_v35, %v4402_v17  ;;  %v8588_v35 = vld [vmem:[#allocation90_spill] sm:$0xff] }
 0x19c   : > { %v4412_v26 = vsel %vm971_vm1, %v4411_v59, %v4410_v14  ;;  %v4419_v52 = vrot.slane %v7106_v9, 2  ;;  %v1207_v12 = vsel %vm1205_vm9, %v1204_v37, %v7885_v34  ;;  %v4406_v18 = vsel %vm983_vm5, %v4405_v8, %v4404_v36  ;;  %v5278_v9 = vld [vmem:[%s8097_s7 + $0x18] sm:$0xff]  }
 0x19d   : > { %v4414_v11 = vsel %vm974_vm2, %v4413_v4, %v4412_v26  ;;  %v4421_v32 = vrot.slane %v7108_v30, 1  ;;  %v1210_v49 = vsel %vm1208_vm12, %v1207_v12, %v7926_v13  ;;  %v4408_v15 = vsel %vm986_vm6, %v4407_v63, %v4406_v18 }
 0x19e   : > { %v4416_v53 = vsel %vm977_vm3, %v4415_v1, %v4414_v11  ;;  %v2119_v41 = vrot.slane %v8581_v29, 7  ;;  %v1213_v34 = vsel %vm1211_vm13, %v1210_v49, %v1163_v43  ;;  %v2121_v48 = vrot.slane %v7202_v45, 6 }
 0x19f   : > { %v4418_v25 = vsel %vm980_vm4, %v4417_v57, %v4416_v53  ;;  %v2123_v30 = vrot.slane %v7205_v33, 5  ;;  %v1216_v13 = vsel %vm1214_vm15, %v1213_v34, %v1197_v10  ;;  %v2125_v55 = vrot.slane %v7207_v20, 4  ;;  %v5280_v33 = vld [vmem:[%s8097_s7 + $0x50] ss:$0 sps:$4 sm:$0x77]  }
 0x1a0   : > { %v4420_v39 = vsel %vm983_vm5, %v4419_v52, %v4418_v25  ;;  %v2120_v62 = vsel %vm968_vm0, %v2119_v41, %v8582_v5  ;;  %5145 = vmatmul.mubr.msk.bf16.vlgmr.msra.gmra.mrb[0].mxu1 %vm1738_vm10, %v1216_v13  ;;  %v2127_v28 = vrot.slane %v7209_v44, 3  ;;  %v2129_v45 = vrot.slane %v7211_v2, 2  ;;  %v5281_v20 = vld [vmem:[%s8097_s7 + $0x20] ss:$0 sps:$4 sm:$0x77]  }
 0x1a1   : > { %v4422_v21 = vsel %vm986_vm6, %v4421_v32, %v4420_v39  ;;  %v2122_v60 = vsel %vm971_vm1, %v2121_v48, %v2120_v62  ;;  %v2133_v38 = vrot.slane %v7217_v46, 7  ;;  %5149 = vmatpush3.bf16.msra.mxu1 %v5278_v9  ;;  %5152 = vmatprep.mubr.msk.bf16.mxu1 %vm5331_vm14, %v8548_v3  ;;  %v2135_v2 = vrot.slane %v7219_v40, 6  ;;  %v4454_v46 = vpop.permute.xlu1 %4453  ;;  %v2178_v57 = vpop.permute.xlu0 %2177 }
 0x1a2   : > { %v2124_v24 = vsel %vm974_vm2, %v2123_v30, %v2122_v60  ;;  %v2137_v47 = vrot.slane %v8583_v27, 5  ;;  %v2139_v19 = vrot.slane %v8584_v58, 4  ;;  %5150 = vmatprep.subr.bf16.mxu1 %v8548_v3  ;;  %v4423_v50 = vpack.c.b16 %v4422_v21, %v4408_v15  ;;  %v8589_v3 = vld [vmem:[#allocation91_spill] sm:$0xff] }
 0x1a3   : > { %v2126_v44 = vsel %vm977_vm3, %v2125_v55, %v2124_v24  ;;  %v2134_v43 = vsel %vm968_vm0, %v2133_v38, %v8585_v42  ;;  %v2141_v31 = vrot.slane %v8586_v0, 3  ;;  %v2131_v56 = vrot.slane %v8587_v16, 1  ;;  %v5104_v24 = vld [vmem:[%s8099_s9] ss:$0 sm:$0xff] }
 0x1a4   : > { %v2128_v61 = vsel %vm980_vm4, %v2127_v28, %v2126_v44  ;;  %v2136_v40 = vsel %vm971_vm1, %v2135_v2, %v2134_v43  ;;  %v2143_v51 = vrot.slane %v8588_v35, 2  ;;  %v2145_v63 = vrot.slane %v8589_v3, 1  ;;  %v5103_v28 = vld [vmem:[%s8098_s8] ss:$0 sm:$0xff] }
 0x1a5   : > { %v2130_v54 = vsel %vm983_vm5, %v2129_v45, %v2128_v61  ;;  %v2138_v8 = vsel %vm974_vm2, %v2137_v47, %v2136_v40  ;;  %v4644_v23 = vand.u32 %v5280_v33, %v7720_v22  ;;  %v2368_v6 = vand.u32 %v5281_v20, %v7720_v22  ;;  %v4488_v37 = vpop.permute.xlu1 %4487 }
 0x1a6   : > { %v2140_v59 = vsel %vm977_vm3, %v2139_v19, %v2138_v8  ;;  %v2132_v1 = vsel %vm986_vm6, %v2131_v56, %v2130_v54  ;;  %v4621_v17 = vsel %vm1198_vm7, %v4423_v50, %v4454_v46  ;;  %vm4717_vm0 = vcmask 125952  }
 0x1a7   : > { %v2142_v4 = vsel %vm980_vm4, %v2141_v31, %v2140_v59  ;;  %5183 = vmatpush3.bf16.msra.mxu0 %v4644_v23  ;;  %5151 = vmatpush3.bf16.msra.mxu1 %v2368_v6  ;;  %v4623_v36 = vsel %vm1202_vm8, %v4621_v17, %v4488_v37 }
 0x1a8   : > { %v2144_v7 = vsel %vm983_vm5, %v2143_v51, %v2142_v4 }
 0x1a9   : > { %v2146_v14 = vsel %vm986_vm6, %v2145_v63, %v2144_v7 }
 0x1aa   : > { %v2147_v26 = vpack.c.b16 %v2146_v14, %v2132_v1 }
 0x1ab   : > { %v2212_v52 = vpop.permute.xlu0 %2211 }
 0x1ac   : > { %v2345_v22 = vsel %vm1198_vm7, %v2147_v26, %v2178_v57 }
 0x1ad   : > { %v2347_v12 = vsel %vm1202_vm8, %v2345_v22, %v2212_v52 }
 0x1b3   : > { %v4519_v10 = vpop.permute.xlu1 %4518 }
 0x1b4   : > { %v4625_v15 = vsel %vm1205_vm9, %v4623_v36, %v4519_v10 }
 0x1b8   : > { %v2243_v18 = vpop.permute.xlu0 %2242 }
 0x1b9   : > { %v2349_v25 = vsel %vm1205_vm9, %v2347_v12, %v2243_v18 }
 0x1bf   : > { %v4553_v11 = vpop.permute.xlu1 %4552 }
 0x1c0   : > { %v4627_v29 = vsel %vm1208_vm12, %v4625_v15, %v4553_v11 }
 0x1c4   : > { %v2277_v32 = vpop.permute.xlu0 %2276 }
 0x1c5   : > { %v2351_v48 = vsel %vm1208_vm12, %v2349_v25, %v2277_v32 }
 0x1cd   : > { %v4584_v49 = vpop.permute.xlu1 %4583 }
 0x1ce   : > { %v4629_v41 = vsel %vm1211_vm13, %v4627_v29, %v4584_v49 }
 0x1d3   : > { %v2308_v53 = vpop.permute.xlu0 %2307 }
 0x1d4   : > { %v2353_v30 = vsel %vm1211_vm13, %v2351_v48, %v2308_v53 }
 0x1da   : > { %v4618_v9 = vpop.permute.xlu1 %4617 }
 0x1db   : > { %v4631_v34 = vsel %vm1214_vm15, %v4629_v41, %v4618_v9 }
 0x1dc   : > { %5185 = vmatmul.mubr.msk.bf16.vlgmr.msra.gmra.mrb[0].mxu0 %vm1738_vm10, %v4631_v34 }
 0x1e0   : > { %v2342_v13 = vpop.permute.xlu0 %2341 }
 0x1e1   : > { %v2355_v39 = vsel %vm1214_vm15, %v2353_v30, %v2342_v13 }
 0x1e2   : > { %5153 = vmatmul.mubr.msk.bf16.vlgmr.msra.gmra.mrb[0].mxu1 %vm1738_vm10, %v2355_v39 }
 0x2af   : > { %v4680_v5 = vpop.f32.mrb[0].mxu0 }
 0x2b0   : > { %v5186_v62 = vpop.f32.mrb[1].mxu0 }
 0x2b1   : > { %v4683_v55 = vpop.f32.mrb[2].mxu0 }
 0x2b2   : > { %v5187_v21 = vpop.f32.mrb[3].mxu0 }
 0x2b5   : > { %v2404_v60 = vpop.f32.mrb[0].mxu1 }
 0x2b6   : > { %v5188_v45 = vadd.f32 %v4680_v5, %v2404_v60  ;;  %v5154_v33 = vpop.f32.mrb[1].mxu1 }
 0x2b7   : > { %v2407_v38 = vpop.f32.mrb[2].mxu1 }
 0x2b8   : > { %v4696_v20 = vmul.f32 %v5188_v45, %v5103_v28  ;;  %v5189_v44 = vadd.f32 %v4683_v55, %v2407_v38  ;;  %v5155_v2 = vpop.f32.mrb[3].mxu1 }
 0x2ba   : > { %v4705_v27 = vadd.f32 %v5104_v24, %v4696_v20  ;;  %v4697_v47 = vmul.f32 %v5189_v44, %v5103_v28 }
 0x2bc   : > { %v4707_v58 = vmax.f32 %v4705_v27, 0.0  ;;  %v4706_v19 = vadd.f32 %v5104_v24, %v4697_v47 }
 0x2be   : > { %v5109_v50 = vpack.c.bf16 %v4707_v58, %v4707_v58  ;;  %v4708_v46 = vmax.f32 %v4706_v19, 0.0 }
 0x2c0   : > { %4718 = vst.msk [vmem:[%s669_s11] sm:$0xf] %vm4717_vm0, %v5109_v50  ;;  %v5110_v61 = vpack.c.bf16 %v4708_v46, %v4708_v46 }
 0x2c2   : > { %4719 = vst.msk [vmem:[%s669_s11 + $0x4] sm:$0xf] %vm4717_vm0, %v5110_v61 }
 0x2c3 PF: > { %s20_s17 = sadd.s32 1, %s5320_s17   ;;  %s8590_s13 = smov %s5312_s15 }
 0x2c4   : > { %p17_p0 = scmp.ge.s32.totalorder %s20_s17, 34   ;;  %s8591_s14 = smov %s5316_s16 }
 0x2c5   : > { %s8592_s15 = smov %s8595_s18  ;;  %s8593_s16 = smov %s8599_s19 }
 0x2c6   :  { %19 = sbr.rel (!%p17_p0) target bundleno = 3 (0x3), region = 108 }

</bundles_post_ra>
